<compile_context>
chip_gen: v7x
topology: tpu7x:2x2x1
jax: 0.10.0
libtpu: 0.0.40
codegen_flags: <defaults>
</compile_context>

<pallas_src>
import numpy as np
import jax
import jax.numpy as jnp
from jax import lax
from jax.experimental import pallas as pl
from jax.experimental.pallas import tpu as pltpu


# ---------------------------------------------------------------------------
# Fused Pallas kernel
# ---------------------------------------------------------------------------

def _hi_dot(a, b):
    return jnp.dot(a, b, precision=lax.Precision.HIGHEST,
                   preferred_element_type=jnp.float32)


def _stc_fused_kernel(xq_ref, xk_ref, xv_ref,
                      wbig_ref, wmix_ref, rowv_ref, msk_ref, sumf_ref,
                      o_ref):
    H, Fo, J = 4, 8, 16

    xq = xq_ref[0]                      # (32, 128)  rows (h,t),  cols (j%4, Cin)
    xk = xk_ref[0]                      # (64, 128)  rows (h,f)
    xv = xv_ref[0]                      # (64, 128)

    # --- packed constants (static lane slices of the refs) -------------------
    w_vt = wbig_ref[:, 0:64]            # (128,64) V temporal-half, cols c*16+s
    w_qs = wbig_ref[:, 64:80]           # (128,16) Q spatial-half sums per joint
    w_ks = wbig_ref[:, 80:96]           # (128,16) K spatial-half sums per joint
    w_vs = wbig_ref[:, 96:100]          # (128, 4) V spatial-half, summed over joints

    ws_blk = wmix_ref[:, 0:64]          # (32,64) block-diag per-head conv_s weight
    b_ks = wmix_ref[:, 64:80]           # (32,16) folded K bias (proj bias + conv bias)
    b_vs = wmix_ref[:, 80:84]           # (32, 4) folded V-spatial bias

    b_vt = rowv_ref[:, 0:64]            # (1,64)  folded V-temporal bias
    b_qs = rowv_ref[:, 64:80]           # (1,16)  folded Q bias
    msd_mul = rowv_ref[:, 80:96]        # (1,16)  diag(mask_s)
    msd_add = rowv_ref[:, 96:112]       # (1,16)  (1-diag(mask_s))*(-1e9)

    ms_mul = msk_ref[:, 0:16]           # (16,16) mask_s
    ms_add = msk_ref[:, 16:32]          # (16,16) (1-mask_s)*(-1e9)

    # --- projections (reshape scramble + channel-half/joint sums folded in) ---
    qs_sum = _hi_dot(xq, w_qs) + b_qs                 # (32,16) rows (h,t), cols s
    ks_pre = _hi_dot(xk, w_ks)                        # (64,16) rows (h,f)
    ks_sum = _hi_dot(ws_blk, ks_pre) + b_ks           # (32,16) rows (h,t)  (conv_s mixed)
    v_pre = _hi_dot(xv, w_vs)                         # (64, 4) rows (h,f)
    v_sum_s = _hi_dot(ws_blk, v_pre) + b_vs           # (32, 4) rows (h,t)
    xv_h = _hi_dot(sumf_ref[...], xv)                 # (4,128) per-head frame sums
    vt_cs = _hi_dot(xv_h, w_vt) + b_vt                # (4,64)  [h, c*16 + s]

    # --- spatial attention (vectorised over all heads) -----------------------
    # logits[ht, s, u] = qs_sum[ht,s] * ks_sum[ht,u]; only the softmax diagonal
    # survives the 'bhtss,bhtuf->bhtsf' contraction.
    ls = qs_sum[:, :, None] * ks_sum[:, None, :]      # (32,16,16)
    ls = ls * ms_mul[None, :, :] + ms_add[None, :, :]
    rmax = jnp.max(ls, axis=-1)                       # (32,16)
    den = jnp.sum(jnp.exp(ls - rmax[:, :, None]), axis=-1)
    dlog = qs_sum * ks_sum * msd_mul + msd_add        # masked diagonal logit
    diag_p = jnp.exp(dlog - rmax) / den               # softmax diagonal, (32,16)
    x_s = diag_p[:, :, None] * v_sum_s[:, None, :]    # (32,16,4)

    # --- temporal branch ------------------------------------------------------
    # softmax rows sum to 1 and both contracted einsum axes are free sums, so
    # x_t[b,h,t,s,c] == sum_f v_t[b,h,s,f,c] (independent of t, q_t, k_t, mask_t).
    # vt_cs already holds those frame sums.

    # --- output assembly:  out[t, s, h*8 + c] ---------------------------------
    for h in range(H):                                # static unroll, H = 4
        r0 = h * Fo
        o_ref[0, :, :, h * 8:h * 8 + 4] = x_s[r0:r0 + Fo].astype(o_ref.dtype)
        for c in range(4):
            vrow = vt_cs[h:h + 1, c * J:(c + 1) * J]              # (1,16)
            col = jnp.broadcast_to(vrow, (Fo, J))[:, :, None]     # (8,16,1)
            o_ref[0, :, :, h * 8 + 4 + c:h * 8 + 5 + c] = col.astype(o_ref.dtype)


# ---------------------------------------------------------------------------
# Wrapper: fold the reshape-scramble / sums / conv biases into small constants.
# ---------------------------------------------------------------------------

def _expand_proj(W, b, order):
    """Expanded (128,128) projection weight folding the PyTorch reshape scramble.

    (X_exp @ W_exp + b_exp)[(h,frame), col] == projected value at logical (s, c),
    with col = s*8+c ("sc") or c*16+s ("cs").
    """
    Cin = W.shape[1]
    Wt = W.T.reshape(Cin, 4, 8)                         # [ci, co//8, co%8]
    eye4 = jnp.eye(4, dtype=W.dtype)
    w5 = eye4[:, None, :, None, None] * Wt[None, :, None, :, :]   # (4,Cin,4,4,8)
    if order == "sc":
        w_exp = w5.reshape(4 * Cin, 128)                          # col = s*8+c
        b_exp = jnp.tile(b, 4).reshape(1, 128)
    else:  # "cs"
        w_exp = jnp.transpose(w5, (0, 1, 4, 2, 3)).reshape(4 * Cin, 128)  # col = c*16+s
        b_exp = jnp.broadcast_to(b.reshape(4, 8).T[:, None, :], (8, 4, 4)).reshape(1, 128)
    return w_exp, b_exp


def stc_forward(params, q_in, k_in, v_in, mask_s, mask_t, cfg):
    # mask_t is accepted for API parity but is mathematically irrelevant to the
    # forward output (the temporal softmax cancels out; see kernel comment).
    del mask_t
    B = q_in.shape[0]
    H = cfg["num_heads"]
    F = cfg["num_frames"]
    Fo = cfg["num_frames_out"]
    J = cfg["num_joints"]
    Cin = cfg["in_features"]
    Cout = cfg["out_features"]
    hf = Cout // H
    hs = hf // 2
    assert (H, hf, hs, J, F, Fo, Cin, Cout) == (4, 8, 4, 16, 16, 8, 32, 32)
    assert q_in.shape[1] == Fo

    f32 = jnp.float32
    npf = np.float32

    # ---- constant 0/1 structure matrices (exact) -----------------------------
    half_lo = (np.arange(8) < 4).astype(npf).reshape(8, 1)
    s_s = jnp.asarray(np.kron(np.eye(J, dtype=npf), half_lo))                    # (128,16)
    g_vs = jnp.asarray(np.kron(np.eye(8, 4, dtype=npf), np.ones((J, 1), npf)))   # (128,4)
    sumf = jnp.asarray(np.kron(np.eye(H, dtype=npf), np.ones((1, F), npf)))      # (4,64)

    # ---- expanded projection weights (reshape scramble folded in) ------------
    wq_exp, bq_exp = _expand_proj(params["Wq_w"], params["Wq_b"], "sc")
    wk_exp, bk_exp = _expand_proj(params["Wk_w"], params["Wk_b"], "sc")
    wv_exp, bv_exp = _expand_proj(params["Wv_w"], params["Wv_b"], "cs")

    # ---- fold the channel-half / joint / frame sums into the weights ---------
    WQs = wq_exp @ s_s                      # (128,16)
    BQs = bq_exp @ s_s                      # (1,16)
    WKs = wk_exp @ s_s                      # (128,16)
    bks_row = bk_exp @ s_s                  # (1,16)
    WVs = wv_exp @ g_vs                     # (128,4)
    bvs_row = bv_exp @ g_vs                 # (1,4)
    WVt = wv_exp[:, 4 * J:]                 # (128,64)  temporal half, cols c*16+s
    BVT = float(F) * bv_exp[:, 4 * J:]      # (1,64)    bias summed over F frames

    # ---- block-diagonal (per-head) conv_s weight + folded biases -------------
    eyeH = jnp.eye(H, dtype=f32)
    wsblk = (eyeH[:, None, :, None] * params["conv_s_w"][None, :, None, :]).reshape(H * Fo, H * F)
    ws_rowsum = jnp.sum(wsblk, axis=1, keepdims=True)               # (32,1)
    bs4 = jnp.tile(params["conv_s_b"] * float(hs), H).reshape(H * Fo, 1)
    bs16 = jnp.tile(params["conv_s_b"] * float(J), H).reshape(H * Fo, 1)
    BKS = ws_rowsum @ bks_row + bs4                                  # (32,16)
    BVS = ws_rowsum @ bvs_row + bs16                                 # (32,4)

    # ---- spatial mask as exact multiply/add ----------------------------------
    NEG = np.float32(-1000000000.0)
    ms = mask_s.reshape(J, J).astype(f32)
    ms_add = (1.0 - ms) * NEG
    msd = jnp.diag(ms).reshape(1, J)
    msd_add = (1.0 - msd) * NEG

    # ---- packed constant operands (fewer DMA descriptors) --------------------
    wbig = jnp.concatenate([WVt, WQs, WKs, WVs], axis=1)         # (128,100)
    wmix = jnp.concatenate([wsblk, BKS, BVS], axis=1)            # (32, 84)
    rowv = jnp.concatenate([BVT, BQs, msd, msd_add], axis=1)     # (1, 112)
    msk = jnp.concatenate([ms, ms_add], axis=1)                  # (16, 32)

    # ---- per-batch inputs, free row-major reshapes to the expanded layout ----
    xq = q_in.reshape(B, (Fo * J * Cin) // 128, 128)             # (B, 32, 128)
    xk = k_in.reshape(B, (F * J * Cin) // 128, 128)              # (B, 64, 128)
    xv = v_in.reshape(B, (F * J * Cin) // 128, 128)              # (B, 64, 128)

    def per_batch_spec(shape):
        return pl.BlockSpec((1,) + tuple(shape[1:]), lambda b: (b, 0, 0))

    consts = [wbig, wmix, rowv, msk, sumf]

    out = pl.pallas_call(
        _stc_fused_kernel,
        out_shape=jax.ShapeDtypeStruct((B, Fo, J, H * hf), q_in.dtype),
        grid=(B,),
        in_specs=[per_batch_spec(xq.shape), per_batch_spec(xk.shape),
                  per_batch_spec(xv.shape)]
                 + [pl.BlockSpec(tuple(c.shape), lambda b: (0, 0)) for c in consts],
        out_specs=pl.BlockSpec((1, Fo, J, H * hf), lambda b: (b, 0, 0, 0)),
        compiler_params=pltpu.CompilerParams(
            dimension_semantics=("parallel",)),
    )(xq, xk, xv, *consts)
    return out


# ---------------------------------------------------------------------------
# Pure-JAX reference (line-by-line mirror of the PyTorch forward)
# ---------------------------------------------------------------------------

def reference_forward(params, q, k, v, mask_s, mask_t, cfg):
    HI = lax.Precision.HIGHEST
    B = q.shape[0]
    H = cfg["num_heads"]
    F = cfg["num_frames"]
    Fo = cfg["num_frames_out"]
    J = cfg["num_joints"]
    Cout = cfg["out_features"]
    hf = Cout // H
    hs = hf // 2

    lin = lambda x, W, b: jnp.einsum('...i,oi->...o', x, W, precision=HI) + b
    q = lin(q, params["Wq_w"], params["Wq_b"])
    k = lin(k, params["Wk_w"], params["Wk_b"])
    v = lin(v, params["Wv_w"], params["Wv_b"])
    temporal_size = q.shape[1]
    q = q.reshape(B, H, Fo, J, hf)
    k = k.reshape(B, H, F, J, hf)
    v = v.reshape(B, H, F, J, hf)
    q_s, q_t = q[..., :hs], q[..., hs:]
    k_s, k_t = k[..., :hs], k[..., hs:]
    v_s, v_t = v[..., :hs], v[..., hs:]

    conv_s = lambda x: jnp.einsum('of,bfjc->bojc', params["conv_s_w"], x,
                                  precision=HI) + params["conv_s_b"][None, :, None, None]
    conv_t = lambda x: jnp.einsum('of,bfjc->bojc', params["conv_t_w"], x,
                                  precision=HI) + params["conv_t_b"][None, :, None, None]

    k_s = jnp.transpose(k_s, (0, 2, 3, 1, 4)).reshape(B, F, J, H * hs)
    k_s = conv_s(k_s).reshape(B, Fo, J, H, hs)
    k_s = jnp.transpose(k_s, (0, 3, 1, 2, 4))
    v_s = jnp.transpose(v_s, (0, 2, 3, 1, 4)).reshape(B, F, J, H * hs)
    v_s = conv_s(v_s).reshape(B, Fo, J, H, hs)
    v_s = jnp.transpose(v_s, (0, 3, 1, 2, 4))

    attn_s = jnp.einsum('bhtsc,bhtdu->bhtsu', q_s, jnp.swapaxes(k_s, 3, 4), precision=HI)
    attn_s = jnp.where(mask_s == 0, -1000000000.0, attn_s)

    q_t = jnp.transpose(q_t, (0, 1, 3, 2, 4))
    k_tp = jnp.transpose(k_t, (0, 1, 3, 2, 4))
    v_t = jnp.transpose(v_t, (0, 1, 3, 2, 4))
    k_tp = jnp.transpose(k_tp, (0, 1, 3, 2, 4))
    k_tp = k_tp.reshape(-1, F, J, hs)
    k_tp = conv_t(k_tp).reshape(B, H, Fo, J, hs)
    k_tp = jnp.transpose(k_tp, (0, 1, 3, 2, 4))

    attn_t = jnp.einsum('bhstf,bhsug->bhstg', q_t, jnp.swapaxes(k_tp, 3, 4), precision=HI)
    attn_t = jnp.where(mask_t == 0, -1000000000.0, attn_t)

    attn_s = jax.nn.softmax(attn_s, axis=-1)
    attn_t = jax.nn.softmax(attn_t, axis=-1)

    x_s = jnp.einsum('bhtss,bhtuf->bhtsf', attn_s, v_s, precision=HI)
    x_t = jnp.einsum('bhstf,bhsug->bhstg', attn_t, v_t, precision=HI)
    x_t = jnp.transpose(x_t, (0, 1, 3, 2, 4))

    x_s_up = x_s[:, :, :temporal_size]
    x_up = jnp.concatenate([x_s_up, x_t], axis=-1)
    x_s_after = x_s[:, :, temporal_size:]
    x_after = jnp.concatenate([x_s_after, jnp.zeros_like(x_s_after)], axis=-1)
    x = jnp.concatenate([x_up, x_after], axis=2)
    x = jnp.transpose(x, (0, 2, 3, 1, 4)).reshape(B, Fo, J, H * hf)
    return x


# ---------------------------------------------------------------------------
# Driver
# ---------------------------------------------------------------------------

if __name__ == "__main__":
    B = 2
    in_features = 32
    out_features = 32
    num_frames = 16
    num_frames_out = 8
    num_joints = 16
    num_heads = 4

    cfg = dict(in_features=in_features, out_features=out_features,
               num_frames=num_frames, num_frames_out=num_frames_out,
               num_joints=num_joints, num_heads=num_heads)

    key = jax.random.PRNGKey(0)
    keys = jax.random.split(key, 16)

    def u(k_, shape, fan_in):
        bnd = 1.0 / np.sqrt(fan_in)
        return jax.random.uniform(k_, shape, jnp.float32, -bnd, bnd)

    params = {
        "Wq_w": u(keys[0], (out_features, in_features), in_features),
        "Wq_b": u(keys[1], (out_features,), in_features),
        "Wk_w": u(keys[2], (out_features, in_features), in_features),
        "Wk_b": u(keys[3], (out_features,), in_features),
        "Wv_w": u(keys[4], (out_features, in_features), in_features),
        "Wv_b": u(keys[5], (out_features,), in_features),
        "conv_s_w": u(keys[6], (num_frames_out, num_frames), num_frames),
        "conv_s_b": u(keys[7], (num_frames_out,), num_frames),
        "conv_t_w": u(keys[8], (num_frames_out, num_frames), num_frames),
        "conv_t_b": u(keys[9], (num_frames_out,), num_frames),
    }

    q_in = jax.random.normal(keys[10], (B, num_frames_out, num_joints, in_features), jnp.float32)
    k_in = jax.random.normal(keys[11], (B, num_frames, num_joints, in_features), jnp.float32)
    v_in = jax.random.normal(keys[12], (B, num_frames, num_joints, in_features), jnp.float32)
    mask_s = (jax.random.uniform(keys[13], (1, 1, 1, num_joints, num_joints)) > 0.1).astype(jnp.int32)
    mask_t = (jax.random.uniform(keys[14], (1, 1, 1, num_frames_out, num_frames_out)) > 0.1).astype(jnp.int32)

    fwd = jax.jit(lambda p, qq, kk, vv, ms_, mt_: stc_forward(p, qq, kk, vv, ms_, mt_, cfg))
    out = fwd(params, q_in, k_in, v_in, mask_s, mask_t)
    out = jax.block_until_ready(out)

    ref = reference_forward(params, q_in, k_in, v_in, mask_s, mask_t, cfg)
    ref = jax.block_until_ready(ref)
    np.testing.assert_allclose(np.asarray(out), np.asarray(ref), rtol=2e-3, atol=2e-3)

    print("KERNEL_OK")
</pallas_src>

<mosaic_0001>
module attributes {stable_mosaic.version = 11 : i64} {
  func.func @_stc_fused_kernel(%arg0: i32, %arg1: memref<1x32x128xf32, #tpu.memory_space<vmem>>, %arg2: memref<1x64x128xf32, #tpu.memory_space<vmem>>, %arg3: memref<1x64x128xf32, #tpu.memory_space<vmem>>, %arg4: memref<128x100xf32, #tpu.memory_space<vmem>>, %arg5: memref<32x84xf32, #tpu.memory_space<vmem>>, %arg6: memref<1x112xf32, #tpu.memory_space<vmem>>, %arg7: memref<16x32xf32, #tpu.memory_space<vmem>>, %arg8: memref<4x64xf32, #tpu.memory_space<vmem>>, %arg9: memref<1x8x16x32xf32, #tpu.memory_space<vmem>>) attributes {dimension_semantics = [#tpu.dimension_semantics<parallel>], iteration_bounds = array<i64: 2>, scalar_prefetch = 0 : i64, scratch_operands = 0 : i64, tpu.core_type = #tpu.core_type<tc>, window_params = [{transform_indices = @transform_0, window_bounds = array<i64: 1, 32, 128>}, {transform_indices = @transform_1, window_bounds = array<i64: 1, 64, 128>}, {transform_indices = @transform_2, window_bounds = array<i64: 1, 64, 128>}, {pipeline_mode = #tpu.pipeline_mode<synchronous>, transform_indices = @transform_3, window_bounds = array<i64: 128, 100>}, {pipeline_mode = #tpu.pipeline_mode<synchronous>, transform_indices = @transform_4, window_bounds = array<i64: 32, 84>}, {pipeline_mode = #tpu.pipeline_mode<synchronous>, transform_indices = @transform_5, window_bounds = array<i64: 1, 112>}, {pipeline_mode = #tpu.pipeline_mode<synchronous>, transform_indices = @transform_6, window_bounds = array<i64: 16, 32>}, {pipeline_mode = #tpu.pipeline_mode<synchronous>, transform_indices = @transform_7, window_bounds = array<i64: 4, 64>}, {transform_indices = @transform_8, window_bounds = array<i64: 1, 8, 16, 32>}]} {
    %c0 = arith.constant 0 : index
    %c0_0 = arith.constant 0 : index
    %c0_1 = arith.constant 0 : index
    %0 = vector.load %arg1[%c0, %c0_0, %c0_1] : memref<1x32x128xf32, #tpu.memory_space<vmem>>, vector<1x32x128xf32>
    %1 = vector.shape_cast %0 : vector<1x32x128xf32> to vector<32x128xf32>
    %c0_2 = arith.constant 0 : index
    %c0_3 = arith.constant 0 : index
    %c0_4 = arith.constant 0 : index
    %2 = vector.load %arg2[%c0_2, %c0_3, %c0_4] : memref<1x64x128xf32, #tpu.memory_space<vmem>>, vector<1x64x128xf32>
    %3 = vector.shape_cast %2 : vector<1x64x128xf32> to vector<64x128xf32>
    %c0_5 = arith.constant 0 : index
    %c0_6 = arith.constant 0 : index
    %c0_7 = arith.constant 0 : index
    %4 = vector.load %arg3[%c0_5, %c0_6, %c0_7] : memref<1x64x128xf32, #tpu.memory_space<vmem>>, vector<1x64x128xf32>
    %5 = vector.shape_cast %4 : vector<1x64x128xf32> to vector<64x128xf32>
    %c0_8 = arith.constant 0 : index
    %c0_9 = arith.constant 0 : index
    %6 = vector.load %arg4[%c0_8, %c0_9] : memref<128x100xf32, #tpu.memory_space<vmem>>, vector<128x64xf32>
    %c0_10 = arith.constant 0 : index
    %c64 = arith.constant 64 : index
    %7 = vector.load %arg4[%c0_10, %c64] : memref<128x100xf32, #tpu.memory_space<vmem>>, vector<128x16xf32>
    %c0_11 = arith.constant 0 : index
    %c80 = arith.constant 80 : index
    %8 = vector.load %arg4[%c0_11, %c80] : memref<128x100xf32, #tpu.memory_space<vmem>>, vector<128x16xf32>
    %c0_12 = arith.constant 0 : index
    %c96 = arith.constant 96 : index
    %9 = vector.load %arg4[%c0_12, %c96] : memref<128x100xf32, #tpu.memory_space<vmem>>, vector<128x4xf32>
    %c0_13 = arith.constant 0 : index
    %c0_14 = arith.constant 0 : index
    %10 = vector.load %arg5[%c0_13, %c0_14] : memref<32x84xf32, #tpu.memory_space<vmem>>, vector<32x64xf32>
    %c0_15 = arith.constant 0 : index
    %c64_16 = arith.constant 64 : index
    %11 = vector.load %arg5[%c0_15, %c64_16] : memref<32x84xf32, #tpu.memory_space<vmem>>, vector<32x16xf32>
    %c0_17 = arith.constant 0 : index
    %c80_18 = arith.constant 80 : index
    %12 = vector.load %arg5[%c0_17, %c80_18] : memref<32x84xf32, #tpu.memory_space<vmem>>, vector<32x4xf32>
    %c0_19 = arith.constant 0 : index
    %c0_20 = arith.constant 0 : index
    %13 = vector.load %arg6[%c0_19, %c0_20] : memref<1x112xf32, #tpu.memory_space<vmem>>, vector<1x64xf32>
    %c0_21 = arith.constant 0 : index
    %c64_22 = arith.constant 64 : index
    %14 = vector.load %arg6[%c0_21, %c64_22] : memref<1x112xf32, #tpu.memory_space<vmem>>, vector<1x16xf32>
    %c0_23 = arith.constant 0 : index
    %c80_24 = arith.constant 80 : index
    %15 = vector.load %arg6[%c0_23, %c80_24] : memref<1x112xf32, #tpu.memory_space<vmem>>, vector<1x16xf32>
    %c0_25 = arith.constant 0 : index
    %c96_26 = arith.constant 96 : index
    %16 = vector.load %arg6[%c0_25, %c96_26] : memref<1x112xf32, #tpu.memory_space<vmem>>, vector<1x16xf32>
    %c0_27 = arith.constant 0 : index
    %c0_28 = arith.constant 0 : index
    %17 = vector.load %arg7[%c0_27, %c0_28] : memref<16x32xf32, #tpu.memory_space<vmem>>, vector<16x16xf32>
    %c0_29 = arith.constant 0 : index
    %c16 = arith.constant 16 : index
    %18 = vector.load %arg7[%c0_29, %c16] : memref<16x32xf32, #tpu.memory_space<vmem>>, vector<16x16xf32>
    %cst = arith.constant dense<0.000000e+00> : vector<32x16xf32>
    %19 = tpu.matmul %1, %7, %cst {dimension_numbers = #tpu.dot_dimension_numbers<[1], [0], [0], [1], [0, 0, 1, 1], [], []>, precision = #tpu.contract_precision<fp32>} : vector<32x128xf32>, vector<128x16xf32>, vector<32x16xf32> -> vector<32x16xf32>
    %20 = vector.broadcast %14 : vector<1x16xf32> to vector<32x16xf32>
    %21 = arith.addf %19, %20 : vector<32x16xf32>
    %cst_30 = arith.constant dense<0.000000e+00> : vector<64x16xf32>
    %22 = tpu.matmul %3, %8, %cst_30 {dimension_numbers = #tpu.dot_dimension_numbers<[1], [0], [0], [1], [0, 0, 1, 1], [], []>, precision = #tpu.contract_precision<fp32>} : vector<64x128xf32>, vector<128x16xf32>, vector<64x16xf32> -> vector<64x16xf32>
    %cst_31 = arith.constant dense<0.000000e+00> : vector<32x16xf32>
    %23 = tpu.matmul %10, %22, %cst_31 {dimension_numbers = #tpu.dot_dimension_numbers<[1], [0], [0], [1], [0, 0, 1, 1], [], []>, precision = #tpu.contract_precision<fp32>} : vector<32x64xf32>, vector<64x16xf32>, vector<32x16xf32> -> vector<32x16xf32>
    %24 = arith.addf %23, %11 : vector<32x16xf32>
    %cst_32 = arith.constant dense<0.000000e+00> : vector<64x4xf32>
    %25 = tpu.matmul %5, %9, %cst_32 {dimension_numbers = #tpu.dot_dimension_numbers<[1], [0], [0], [1], [0, 0, 1, 1], [], []>, precision = #tpu.contract_precision<fp32>} : vector<64x128xf32>, vector<128x4xf32>, vector<64x4xf32> -> vector<64x4xf32>
    %cst_33 = arith.constant dense<0.000000e+00> : vector<32x4xf32>
    %26 = tpu.matmul %10, %25, %cst_33 {dimension_numbers = #tpu.dot_dimension_numbers<[1], [0], [0], [1], [0, 0, 1, 1], [], []>, precision = #tpu.contract_precision<fp32>} : vector<32x64xf32>, vector<64x4xf32>, vector<32x4xf32> -> vector<32x4xf32>
    %27 = arith.addf %26, %12 : vector<32x4xf32>
    %c0_34 = arith.constant 0 : index
    %c0_35 = arith.constant 0 : index
    %28 = vector.load %arg8[%c0_34, %c0_35] : memref<4x64xf32, #tpu.memory_space<vmem>>, vector<4x64xf32>
    %cst_36 = arith.constant dense<0.000000e+00> : vector<4x128xf32>
    %29 = tpu.matmul %28, %5, %cst_36 {dimension_numbers = #tpu.dot_dimension_numbers<[1], [0], [0], [1], [0, 0, 1, 1], [], []>, precision = #tpu.contract_precision<fp32>} : vector<4x64xf32>, vector<64x128xf32>, vector<4x128xf32> -> vector<4x128xf32>
    %cst_37 = arith.constant dense<0.000000e+00> : vector<4x64xf32>
    %30 = tpu.matmul %29, %6, %cst_37 {dimension_numbers = #tpu.dot_dimension_numbers<[1], [0], [0], [1], [0, 0, 1, 1], [], []>, precision = #tpu.contract_precision<fp32>} : vector<4x128xf32>, vector<128x64xf32>, vector<4x64xf32> -> vector<4x64xf32>
    %31 = vector.broadcast %13 : vector<1x64xf32> to vector<4x64xf32>
    %32 = arith.addf %30, %31 : vector<4x64xf32>
    %33 = vector.shape_cast %21 : vector<32x16xf32> to vector<32x16x1xf32>
    %34 = vector.shape_cast %24 : vector<32x16xf32> to vector<32x1x16xf32>
    %35 = vector.broadcast %33 : vector<32x16x1xf32> to vector<32x16x16xf32>
    %36 = vector.broadcast %34 : vector<32x1x16xf32> to vector<32x16x16xf32>
    %37 = arith.mulf %35, %36 : vector<32x16x16xf32>
    %38 = vector.shape_cast %17 : vector<16x16xf32> to vector<1x16x16xf32>
    %39 = vector.broadcast %38 : vector<1x16x16xf32> to vector<32x16x16xf32>
    %40 = arith.mulf %37, %39 : vector<32x16x16xf32>
    %41 = vector.shape_cast %18 : vector<16x16xf32> to vector<1x16x16xf32>
    %42 = vector.broadcast %41 : vector<1x16x16xf32> to vector<32x16x16xf32>
    %43 = arith.addf %40, %42 : vector<32x16x16xf32>
    %cst_38 = arith.constant dense<0xFF800000> : vector<32x16xf32>
    %44 = vector.multi_reduction <maximumf>, %43, %cst_38 [2] : vector<32x16x16xf32> to vector<32x16xf32>
    %45 = vector.shape_cast %44 : vector<32x16xf32> to vector<32x16x1xf32>
    %46 = vector.broadcast %45 : vector<32x16x1xf32> to vector<32x16x16xf32>
    %47 = arith.subf %43, %46 : vector<32x16x16xf32>
    %48 = math.exp %47 : vector<32x16x16xf32>
    %cst_39 = arith.constant dense<0.000000e+00> : vector<32x16xf32>
    %49 = vector.multi_reduction <add>, %48, %cst_39 [2] : vector<32x16x16xf32> to vector<32x16xf32>
    %50 = arith.mulf %21, %24 : vector<32x16xf32>
    %51 = vector.broadcast %15 : vector<1x16xf32> to vector<32x16xf32>
    %52 = arith.mulf %50, %51 : vector<32x16xf32>
    %53 = vector.broadcast %16 : vector<1x16xf32> to vector<32x16xf32>
    %54 = arith.addf %52, %53 : vector<32x16xf32>
    %55 = arith.subf %54, %44 : vector<32x16xf32>
    %56 = math.exp %55 : vector<32x16xf32>
    %57 = arith.divf %56, %49 : vector<32x16xf32>
    %58 = vector.shape_cast %57 : vector<32x16xf32> to vector<32x16x1xf32>
    %59 = vector.shape_cast %27 : vector<32x4xf32> to vector<32x1x4xf32>
    %60 = vector.broadcast %58 : vector<32x16x1xf32> to vector<32x16x4xf32>
    %61 = vector.broadcast %59 : vector<32x1x4xf32> to vector<32x16x4xf32>
    %62 = arith.mulf %60, %61 : vector<32x16x4xf32>
    %63 = vector.extract_strided_slice %62 {offsets = [0, 0, 0], sizes = [8, 16, 4], strides = [1, 1, 1]} : vector<32x16x4xf32> to vector<8x16x4xf32>
    %c0_40 = arith.constant 0 : index
    %c0_41 = arith.constant 0 : index
    %c0_42 = arith.constant 0 : index
    %c0_43 = arith.constant 0 : index
    %64 = vector.load %arg9[%c0_40, %c0_41, %c0_42, %c0_43] : memref<1x8x16x32xf32, #tpu.memory_space<vmem>>, vector<1x8x16x4xf32>
    %65 = vector.shape_cast %64 : vector<1x8x16x4xf32> to vector<8x16x4xf32>
    %66 = vector.shape_cast %63 : vector<8x16x4xf32> to vector<1x8x16x4xf32>
    tpu.vector_store %arg9[%c0_40, %c0_41, %c0_42, %c0_43], %66 {strides = array<i32>} : memref<1x8x16x32xf32, #tpu.memory_space<vmem>>, vector<1x8x16x4xf32>,
    %67 = vector.extract_strided_slice %32 {offsets = [0, 0], sizes = [1, 16], strides = [1, 1]} : vector<4x64xf32> to vector<1x16xf32>
    %68 = vector.shape_cast %67 : vector<1x16xf32> to vector<1x16xf32>
    %69 = vector.broadcast %68 : vector<1x16xf32> to vector<8x16xf32>
    %70 = vector.shape_cast %69 : vector<8x16xf32> to vector<8x16x1xf32>
    %c0_44 = arith.constant 0 : index
    %c0_45 = arith.constant 0 : index
    %c0_46 = arith.constant 0 : index
    %c4 = arith.constant 4 : index
    %71 = vector.load %arg9[%c0_44, %c0_45, %c0_46, %c4] : memref<1x8x16x32xf32, #tpu.memory_space<vmem>>, vector<1x8x16x1xf32>
    %72 = vector.shape_cast %71 : vector<1x8x16x1xf32> to vector<8x16x1xf32>
    %73 = vector.shape_cast %70 : vector<8x16x1xf32> to vector<1x8x16x1xf32>
    tpu.vector_store %arg9[%c0_44, %c0_45, %c0_46, %c4], %73 {strides = array<i32>} : memref<1x8x16x32xf32, #tpu.memory_space<vmem>>, vector<1x8x16x1xf32>,
    %74 = vector.extract_strided_slice %32 {offsets = [0, 16], sizes = [1, 16], strides = [1, 1]} : vector<4x64xf32> to vector<1x16xf32>
    %75 = vector.shape_cast %74 : vector<1x16xf32> to vector<1x16xf32>
    %76 = vector.broadcast %75 : vector<1x16xf32> to vector<8x16xf32>
    %77 = vector.shape_cast %76 : vector<8x16xf32> to vector<8x16x1xf32>
    %c0_47 = arith.constant 0 : index
    %c0_48 = arith.constant 0 : index
    %c0_49 = arith.constant 0 : index
    %c5 = arith.constant 5 : index
    %78 = vector.load %arg9[%c0_47, %c0_48, %c0_49, %c5] : memref<1x8x16x32xf32, #tpu.memory_space<vmem>>, vector<1x8x16x1xf32>
    %79 = vector.shape_cast %78 : vector<1x8x16x1xf32> to vector<8x16x1xf32>
    %80 = vector.shape_cast %77 : vector<8x16x1xf32> to vector<1x8x16x1xf32>
    tpu.vector_store %arg9[%c0_47, %c0_48, %c0_49, %c5], %80 {strides = array<i32>} : memref<1x8x16x32xf32, #tpu.memory_space<vmem>>, vector<1x8x16x1xf32>,
    %81 = vector.extract_strided_slice %32 {offsets = [0, 32], sizes = [1, 16], strides = [1, 1]} : vector<4x64xf32> to vector<1x16xf32>
    %82 = vector.shape_cast %81 : vector<1x16xf32> to vector<1x16xf32>
    %83 = vector.broadcast %82 : vector<1x16xf32> to vector<8x16xf32>
    %84 = vector.shape_cast %83 : vector<8x16xf32> to vector<8x16x1xf32>
    %c0_50 = arith.constant 0 : index
    %c0_51 = arith.constant 0 : index
    %c0_52 = arith.constant 0 : index
    %c6 = arith.constant 6 : index
    %85 = vector.load %arg9[%c0_50, %c0_51, %c0_52, %c6] : memref<1x8x16x32xf32, #tpu.memory_space<vmem>>, vector<1x8x16x1xf32>
    %86 = vector.shape_cast %85 : vector<1x8x16x1xf32> to vector<8x16x1xf32>
    %87 = vector.shape_cast %84 : vector<8x16x1xf32> to vector<1x8x16x1xf32>
    tpu.vector_store %arg9[%c0_50, %c0_51, %c0_52, %c6], %87 {strides = array<i32>} : memref<1x8x16x32xf32, #tpu.memory_space<vmem>>, vector<1x8x16x1xf32>,
    %88 = vector.extract_strided_slice %32 {offsets = [0, 48], sizes = [1, 16], strides = [1, 1]} : vector<4x64xf32> to vector<1x16xf32>
    %89 = vector.shape_cast %88 : vector<1x16xf32> to vector<1x16xf32>
    %90 = vector.broadcast %89 : vector<1x16xf32> to vector<8x16xf32>
    %91 = vector.shape_cast %90 : vector<8x16xf32> to vector<8x16x1xf32>
    %c0_53 = arith.constant 0 : index
    %c0_54 = arith.constant 0 : index
    %c0_55 = arith.constant 0 : index
    %c7 = arith.constant 7 : index
    %92 = vector.load %arg9[%c0_53, %c0_54, %c0_55, %c7] : memref<1x8x16x32xf32, #tpu.memory_space<vmem>>, vector<1x8x16x1xf32>
    %93 = vector.shape_cast %92 : vector<1x8x16x1xf32> to vector<8x16x1xf32>
    %94 = vector.shape_cast %91 : vector<8x16x1xf32> to vector<1x8x16x1xf32>
    tpu.vector_store %arg9[%c0_53, %c0_54, %c0_55, %c7], %94 {strides = array<i32>} : memref<1x8x16x32xf32, #tpu.memory_space<vmem>>, vector<1x8x16x1xf32>,
    %95 = vector.extract_strided_slice %62 {offsets = [8, 0, 0], sizes = [8, 16, 4], strides = [1, 1, 1]} : vector<32x16x4xf32> to vector<8x16x4xf32>
    %c0_56 = arith.constant 0 : index
    %c0_57 = arith.constant 0 : index
    %c0_58 = arith.constant 0 : index
    %c8 = arith.constant 8 : index
    %96 = vector.load %arg9[%c0_56, %c0_57, %c0_58, %c8] : memref<1x8x16x32xf32, #tpu.memory_space<vmem>>, vector<1x8x16x4xf32>
    %97 = vector.shape_cast %96 : vector<1x8x16x4xf32> to vector<8x16x4xf32>
    %98 = vector.shape_cast %95 : vector<8x16x4xf32> to vector<1x8x16x4xf32>
    tpu.vector_store %arg9[%c0_56, %c0_57, %c0_58, %c8], %98 {strides = array<i32>} : memref<1x8x16x32xf32, #tpu.memory_space<vmem>>, vector<1x8x16x4xf32>,
    %99 = vector.extract_strided_slice %32 {offsets = [1, 0], sizes = [1, 16], strides = [1, 1]} : vector<4x64xf32> to vector<1x16xf32>
    %100 = vector.shape_cast %99 : vector<1x16xf32> to vector<1x16xf32>
    %101 = vector.broadcast %100 : vector<1x16xf32> to vector<8x16xf32>
    %102 = vector.shape_cast %101 : vector<8x16xf32> to vector<8x16x1xf32>
    %c0_59 = arith.constant 0 : index
    %c0_60 = arith.constant 0 : index
    %c0_61 = arith.constant 0 : index
    %c12 = arith.constant 12 : index
    %103 = vector.load %arg9[%c0_59, %c0_60, %c0_61, %c12] : memref<1x8x16x32xf32, #tpu.memory_space<vmem>>, vector<1x8x16x1xf32>
    %104 = vector.shape_cast %103 : vector<1x8x16x1xf32> to vector<8x16x1xf32>
    %105 = vector.shape_cast %102 : vector<8x16x1xf32> to vector<1x8x16x1xf32>
    tpu.vector_store %arg9[%c0_59, %c0_60, %c0_61, %c12], %105 {strides = array<i32>} : memref<1x8x16x32xf32, #tpu.memory_space<vmem>>, vector<1x8x16x1xf32>,
    %106 = vector.extract_strided_slice %32 {offsets = [1, 16], sizes = [1, 16], strides = [1, 1]} : vector<4x64xf32> to vector<1x16xf32>
    %107 = vector.shape_cast %106 : vector<1x16xf32> to vector<1x16xf32>
    %108 = vector.broadcast %107 : vector<1x16xf32> to vector<8x16xf32>
    %109 = vector.shape_cast %108 : vector<8x16xf32> to vector<8x16x1xf32>
    %c0_62 = arith.constant 0 : index
    %c0_63 = arith.constant 0 : index
    %c0_64 = arith.constant 0 : index
    %c13 = arith.constant 13 : index
    %110 = vector.load %arg9[%c0_62, %c0_63, %c0_64, %c13] : memref<1x8x16x32xf32, #tpu.memory_space<vmem>>, vector<1x8x16x1xf32>
    %111 = vector.shape_cast %110 : vector<1x8x16x1xf32> to vector<8x16x1xf32>
    %112 = vector.shape_cast %109 : vector<8x16x1xf32> to vector<1x8x16x1xf32>
    tpu.vector_store %arg9[%c0_62, %c0_63, %c0_64, %c13], %112 {strides = array<i32>} : memref<1x8x16x32xf32, #tpu.memory_space<vmem>>, vector<1x8x16x1xf32>,
    %113 = vector.extract_strided_slice %32 {offsets = [1, 32], sizes = [1, 16], strides = [1, 1]} : vector<4x64xf32> to vector<1x16xf32>
    %114 = vector.shape_cast %113 : vector<1x16xf32> to vector<1x16xf32>
    %115 = vector.broadcast %114 : vector<1x16xf32> to vector<8x16xf32>
    %116 = vector.shape_cast %115 : vector<8x16xf32> to vector<8x16x1xf32>
    %c0_65 = arith.constant 0 : index
    %c0_66 = arith.constant 0 : index
    %c0_67 = arith.constant 0 : index
    %c14 = arith.constant 14 : index
    %117 = vector.load %arg9[%c0_65, %c0_66, %c0_67, %c14] : memref<1x8x16x32xf32, #tpu.memory_space<vmem>>, vector<1x8x16x1xf32>
    %118 = vector.shape_cast %117 : vector<1x8x16x1xf32> to vector<8x16x1xf32>
    %119 = vector.shape_cast %116 : vector<8x16x1xf32> to vector<1x8x16x1xf32>
    tpu.vector_store %arg9[%c0_65, %c0_66, %c0_67, %c14], %119 {strides = array<i32>} : memref<1x8x16x32xf32, #tpu.memory_space<vmem>>, vector<1x8x16x1xf32>,
    %120 = vector.extract_strided_slice %32 {offsets = [1, 48], sizes = [1, 16], strides = [1, 1]} : vector<4x64xf32> to vector<1x16xf32>
    %121 = vector.shape_cast %120 : vector<1x16xf32> to vector<1x16xf32>
    %122 = vector.broadcast %121 : vector<1x16xf32> to vector<8x16xf32>
    %123 = vector.shape_cast %122 : vector<8x16xf32> to vector<8x16x1xf32>
    %c0_68 = arith.constant 0 : index
    %c0_69 = arith.constant 0 : index
    %c0_70 = arith.constant 0 : index
    %c15 = arith.constant 15 : index
    %124 = vector.load %arg9[%c0_68, %c0_69, %c0_70, %c15] : memref<1x8x16x32xf32, #tpu.memory_space<vmem>>, vector<1x8x16x1xf32>
    %125 = vector.shape_cast %124 : vector<1x8x16x1xf32> to vector<8x16x1xf32>
    %126 = vector.shape_cast %123 : vector<8x16x1xf32> to vector<1x8x16x1xf32>
    tpu.vector_store %arg9[%c0_68, %c0_69, %c0_70, %c15], %126 {strides = array<i32>} : memref<1x8x16x32xf32, #tpu.memory_space<vmem>>, vector<1x8x16x1xf32>,
    %127 = vector.extract_strided_slice %62 {offsets = [16, 0, 0], sizes = [8, 16, 4], strides = [1, 1, 1]} : vector<32x16x4xf32> to vector<8x16x4xf32>
    %c0_71 = arith.constant 0 : index
    %c0_72 = arith.constant 0 : index
    %c0_73 = arith.constant 0 : index
    %c16_74 = arith.constant 16 : index
    %128 = vector.load %arg9[%c0_71, %c0_72, %c0_73, %c16_74] : memref<1x8x16x32xf32, #tpu.memory_space<vmem>>, vector<1x8x16x4xf32>
    %129 = vector.shape_cast %128 : vector<1x8x16x4xf32> to vector<8x16x4xf32>
    %130 = vector.shape_cast %127 : vector<8x16x4xf32> to vector<1x8x16x4xf32>
    tpu.vector_store %arg9[%c0_71, %c0_72, %c0_73, %c16_74], %130 {strides = array<i32>} : memref<1x8x16x32xf32, #tpu.memory_space<vmem>>, vector<1x8x16x4xf32>,
    %131 = vector.extract_strided_slice %32 {offsets = [2, 0], sizes = [1, 16], strides = [1, 1]} : vector<4x64xf32> to vector<1x16xf32>
    %132 = vector.shape_cast %131 : vector<1x16xf32> to vector<1x16xf32>
    %133 = vector.broadcast %132 : vector<1x16xf32> to vector<8x16xf32>
    %134 = vector.shape_cast %133 : vector<8x16xf32> to vector<8x16x1xf32>
    %c0_75 = arith.constant 0 : index
    %c0_76 = arith.constant 0 : index
    %c0_77 = arith.constant 0 : index
    %c20 = arith.constant 20 : index
    %135 = vector.load %arg9[%c0_75, %c0_76, %c0_77, %c20] : memref<1x8x16x32xf32, #tpu.memory_space<vmem>>, vector<1x8x16x1xf32>
    %136 = vector.shape_cast %135 : vector<1x8x16x1xf32> to vector<8x16x1xf32>
    %137 = vector.shape_cast %134 : vector<8x16x1xf32> to vector<1x8x16x1xf32>
    tpu.vector_store %arg9[%c0_75, %c0_76, %c0_77, %c20], %137 {strides = array<i32>} : memref<1x8x16x32xf32, #tpu.memory_space<vmem>>, vector<1x8x16x1xf32>,
    %138 = vector.extract_strided_slice %32 {offsets = [2, 16], sizes = [1, 16], strides = [1, 1]} : vector<4x64xf32> to vector<1x16xf32>
    %139 = vector.shape_cast %138 : vector<1x16xf32> to vector<1x16xf32>
    %140 = vector.broadcast %139 : vector<1x16xf32> to vector<8x16xf32>
    %141 = vector.shape_cast %140 : vector<8x16xf32> to vector<8x16x1xf32>
    %c0_78 = arith.constant 0 : index
    %c0_79 = arith.constant 0 : index
    %c0_80 = arith.constant 0 : index
    %c21 = arith.constant 21 : index
    %142 = vector.load %arg9[%c0_78, %c0_79, %c0_80, %c21] : memref<1x8x16x32xf32, #tpu.memory_space<vmem>>, vector<1x8x16x1xf32>
    %143 = vector.shape_cast %142 : vector<1x8x16x1xf32> to vector<8x16x1xf32>
    %144 = vector.shape_cast %141 : vector<8x16x1xf32> to vector<1x8x16x1xf32>
    tpu.vector_store %arg9[%c0_78, %c0_79, %c0_80, %c21], %144 {strides = array<i32>} : memref<1x8x16x32xf32, #tpu.memory_space<vmem>>, vector<1x8x16x1xf32>,
    %145 = vector.extract_strided_slice %32 {offsets = [2, 32], sizes = [1, 16], strides = [1, 1]} : vector<4x64xf32> to vector<1x16xf32>
    %146 = vector.shape_cast %145 : vector<1x16xf32> to vector<1x16xf32>
    %147 = vector.broadcast %146 : vector<1x16xf32> to vector<8x16xf32>
    %148 = vector.shape_cast %147 : vector<8x16xf32> to vector<8x16x1xf32>
    %c0_81 = arith.constant 0 : index
    %c0_82 = arith.constant 0 : index
    %c0_83 = arith.constant 0 : index
    %c22 = arith.constant 22 : index
    %149 = vector.load %arg9[%c0_81, %c0_82, %c0_83, %c22] : memref<1x8x16x32xf32, #tpu.memory_space<vmem>>, vector<1x8x16x1xf32>
    %150 = vector.shape_cast %149 : vector<1x8x16x1xf32> to vector<8x16x1xf32>
    %151 = vector.shape_cast %148 : vector<8x16x1xf32> to vector<1x8x16x1xf32>
    tpu.vector_store %arg9[%c0_81, %c0_82, %c0_83, %c22], %151 {strides = array<i32>} : memref<1x8x16x32xf32, #tpu.memory_space<vmem>>, vector<1x8x16x1xf32>,
    %152 = vector.extract_strided_slice %32 {offsets = [2, 48], sizes = [1, 16], strides = [1, 1]} : vector<4x64xf32> to vector<1x16xf32>
    %153 = vector.shape_cast %152 : vector<1x16xf32> to vector<1x16xf32>
    %154 = vector.broadcast %153 : vector<1x16xf32> to vector<8x16xf32>
    %155 = vector.shape_cast %154 : vector<8x16xf32> to vector<8x16x1xf32>
    %c0_84 = arith.constant 0 : index
    %c0_85 = arith.constant 0 : index
    %c0_86 = arith.constant 0 : index
    %c23 = arith.constant 23 : index
    %156 = vector.load %arg9[%c0_84, %c0_85, %c0_86, %c23] : memref<1x8x16x32xf32, #tpu.memory_space<vmem>>, vector<1x8x16x1xf32>
    %157 = vector.shape_cast %156 : vector<1x8x16x1xf32> to vector<8x16x1xf32>
    %158 = vector.shape_cast %155 : vector<8x16x1xf32> to vector<1x8x16x1xf32>
    tpu.vector_store %arg9[%c0_84, %c0_85, %c0_86, %c23], %158 {strides = array<i32>} : memref<1x8x16x32xf32, #tpu.memory_space<vmem>>, vector<1x8x16x1xf32>,
    %159 = vector.extract_strided_slice %62 {offsets = [24, 0, 0], sizes = [8, 16, 4], strides = [1, 1, 1]} : vector<32x16x4xf32> to vector<8x16x4xf32>
    %c0_87 = arith.constant 0 : index
    %c0_88 = arith.constant 0 : index
    %c0_89 = arith.constant 0 : index
    %c24 = arith.constant 24 : index
    %160 = vector.load %arg9[%c0_87, %c0_88, %c0_89, %c24] : memref<1x8x16x32xf32, #tpu.memory_space<vmem>>, vector<1x8x16x4xf32>
    %161 = vector.shape_cast %160 : vector<1x8x16x4xf32> to vector<8x16x4xf32>
    %162 = vector.shape_cast %159 : vector<8x16x4xf32> to vector<1x8x16x4xf32>
    tpu.vector_store %arg9[%c0_87, %c0_88, %c0_89, %c24], %162 {strides = array<i32>} : memref<1x8x16x32xf32, #tpu.memory_space<vmem>>, vector<1x8x16x4xf32>,
    %163 = vector.extract_strided_slice %32 {offsets = [3, 0], sizes = [1, 16], strides = [1, 1]} : vector<4x64xf32> to vector<1x16xf32>
    %164 = vector.shape_cast %163 : vector<1x16xf32> to vector<1x16xf32>
    %165 = vector.broadcast %164 : vector<1x16xf32> to vector<8x16xf32>
    %166 = vector.shape_cast %165 : vector<8x16xf32> to vector<8x16x1xf32>
    %c0_90 = arith.constant 0 : index
    %c0_91 = arith.constant 0 : index
    %c0_92 = arith.constant 0 : index
    %c28 = arith.constant 28 : index
    %167 = vector.load %arg9[%c0_90, %c0_91, %c0_92, %c28] : memref<1x8x16x32xf32, #tpu.memory_space<vmem>>, vector<1x8x16x1xf32>
    %168 = vector.shape_cast %167 : vector<1x8x16x1xf32> to vector<8x16x1xf32>
    %169 = vector.shape_cast %166 : vector<8x16x1xf32> to vector<1x8x16x1xf32>
    tpu.vector_store %arg9[%c0_90, %c0_91, %c0_92, %c28], %169 {strides = array<i32>} : memref<1x8x16x32xf32, #tpu.memory_space<vmem>>, vector<1x8x16x1xf32>,
    %170 = vector.extract_strided_slice %32 {offsets = [3, 16], sizes = [1, 16], strides = [1, 1]} : vector<4x64xf32> to vector<1x16xf32>
    %171 = vector.shape_cast %170 : vector<1x16xf32> to vector<1x16xf32>
    %172 = vector.broadcast %171 : vector<1x16xf32> to vector<8x16xf32>
    %173 = vector.shape_cast %172 : vector<8x16xf32> to vector<8x16x1xf32>
    %c0_93 = arith.constant 0 : index
    %c0_94 = arith.constant 0 : index
    %c0_95 = arith.constant 0 : index
    %c29 = arith.constant 29 : index
    %174 = vector.load %arg9[%c0_93, %c0_94, %c0_95, %c29] : memref<1x8x16x32xf32, #tpu.memory_space<vmem>>, vector<1x8x16x1xf32>
    %175 = vector.shape_cast %174 : vector<1x8x16x1xf32> to vector<8x16x1xf32>
    %176 = vector.shape_cast %173 : vector<8x16x1xf32> to vector<1x8x16x1xf32>
    tpu.vector_store %arg9[%c0_93, %c0_94, %c0_95, %c29], %176 {strides = array<i32>} : memref<1x8x16x32xf32, #tpu.memory_space<vmem>>, vector<1x8x16x1xf32>,
    %177 = vector.extract_strided_slice %32 {offsets = [3, 32], sizes = [1, 16], strides = [1, 1]} : vector<4x64xf32> to vector<1x16xf32>
    %178 = vector.shape_cast %177 : vector<1x16xf32> to vector<1x16xf32>
    %179 = vector.broadcast %178 : vector<1x16xf32> to vector<8x16xf32>
    %180 = vector.shape_cast %179 : vector<8x16xf32> to vector<8x16x1xf32>
    %c0_96 = arith.constant 0 : index
    %c0_97 = arith.constant 0 : index
    %c0_98 = arith.constant 0 : index
    %c30 = arith.constant 30 : index
    %181 = vector.load %arg9[%c0_96, %c0_97, %c0_98, %c30] : memref<1x8x16x32xf32, #tpu.memory_space<vmem>>, vector<1x8x16x1xf32>
    %182 = vector.shape_cast %181 : vector<1x8x16x1xf32> to vector<8x16x1xf32>
    %183 = vector.shape_cast %180 : vector<8x16x1xf32> to vector<1x8x16x1xf32>
    tpu.vector_store %arg9[%c0_96, %c0_97, %c0_98, %c30], %183 {strides = array<i32>} : memref<1x8x16x32xf32, #tpu.memory_space<vmem>>, vector<1x8x16x1xf32>,
    %184 = vector.extract_strided_slice %32 {offsets = [3, 48], sizes = [1, 16], strides = [1, 1]} : vector<4x64xf32> to vector<1x16xf32>
    %185 = vector.shape_cast %184 : vector<1x16xf32> to vector<1x16xf32>
    %186 = vector.broadcast %185 : vector<1x16xf32> to vector<8x16xf32>
    %187 = vector.shape_cast %186 : vector<8x16xf32> to vector<8x16x1xf32>
    %c0_99 = arith.constant 0 : index
    %c0_100 = arith.constant 0 : index
    %c0_101 = arith.constant 0 : index
    %c31 = arith.constant 31 : index
    %188 = vector.load %arg9[%c0_99, %c0_100, %c0_101, %c31] : memref<1x8x16x32xf32, #tpu.memory_space<vmem>>, vector<1x8x16x1xf32>
    %189 = vector.shape_cast %188 : vector<1x8x16x1xf32> to vector<8x16x1xf32>
    %190 = vector.shape_cast %187 : vector<8x16x1xf32> to vector<1x8x16x1xf32>
    tpu.vector_store %arg9[%c0_99, %c0_100, %c0_101, %c31], %190 {strides = array<i32>} : memref<1x8x16x32xf32, #tpu.memory_space<vmem>>, vector<1x8x16x1xf32>,
    return
  }
  func.func @transform_0(%arg0: i32) -> (i32, i32, i32) {
    %c0_i32 = arith.constant 0 : i32
    %c0_i32_0 = arith.constant 0 : i32
    %c0_i32_1 = arith.constant 0 : i32
    return %arg0, %c0_i32, %c0_i32_0 : i32, i32, i32
  }
  func.func @transform_1(%arg0: i32) -> (i32, i32, i32) {
    %c0_i32 = arith.constant 0 : i32
    %c0_i32_0 = arith.constant 0 : i32
    %c0_i32_1 = arith.constant 0 : i32
    return %arg0, %c0_i32, %c0_i32_0 : i32, i32, i32
  }
  func.func @transform_2(%arg0: i32) -> (i32, i32, i32) {
    %c0_i32 = arith.constant 0 : i32
    %c0_i32_0 = arith.constant 0 : i32
    %c0_i32_1 = arith.constant 0 : i32
    return %arg0, %c0_i32, %c0_i32_0 : i32, i32, i32
  }
  func.func @transform_3(%arg0: i32) -> (i32, i32) {
    %c0_i32 = arith.constant 0 : i32
    %c0_i32_0 = arith.constant 0 : i32
    %c0_i32_1 = arith.constant 0 : i32
    return %c0_i32, %c0_i32_0 : i32, i32
  }
  func.func @transform_4(%arg0: i32) -> (i32, i32) {
    %c0_i32 = arith.constant 0 : i32
    %c0_i32_0 = arith.constant 0 : i32
    %c0_i32_1 = arith.constant 0 : i32
    return %c0_i32, %c0_i32_0 : i32, i32
  }
  func.func @transform_5(%arg0: i32) -> (i32, i32) {
    %c0_i32 = arith.constant 0 : i32
    %c0_i32_0 = arith.constant 0 : i32
    %c0_i32_1 = arith.constant 0 : i32
    return %c0_i32, %c0_i32_0 : i32, i32
  }
  func.func @transform_6(%arg0: i32) -> (i32, i32) {
    %c0_i32 = arith.constant 0 : i32
    %c0_i32_0 = arith.constant 0 : i32
    %c0_i32_1 = arith.constant 0 : i32
    return %c0_i32, %c0_i32_0 : i32, i32
  }
  func.func @transform_7(%arg0: i32) -> (i32, i32) {
    %c0_i32 = arith.constant 0 : i32
    %c0_i32_0 = arith.constant 0 : i32
    %c0_i32_1 = arith.constant 0 : i32
    return %c0_i32, %c0_i32_0 : i32, i32
  }
  func.func @transform_8(%arg0: i32) -> (i32, i32, i32, i32) {
    %c0_i32 = arith.constant 0 : i32
    %c0_i32_0 = arith.constant 0 : i32
    %c0_i32_1 = arith.constant 0 : i32
    %c0_i32_2 = arith.constant 0 : i32
    return %arg0, %c0_i32, %c0_i32_0, %c0_i32_1 : i32, i32, i32, i32
  }
}

</mosaic_0001>

<bundles_post_ra>
// kernel: tile.38
= control target key start
LH: loop header
LB: loop body
LE: loop exit
PB: predicated region body
PF: predicated region fallthrough
CT: control target
= control target key end

     0   :  { %s22_s0 = inlined_call_operand.vmem [shape: f32[8], index: 0, kind: input, shape index: {}]   ;;  %s23_s1 = inlined_call_operand.vmem [shape: f32[4,8], index: 1, kind: output, shape index: {}]  }
   0x1   :  { %v4_v0 = vld [vmem:[%s22_s0] ss:$0 sm:$0xff] }
   0x2   :  { %5 = vst [vmem:[%s23_s1] sm:$0xf] %v4_v0 }

// kernel: tile.28
= control target key start
LH: loop header
LB: loop body
LE: loop exit
PB: predicated region body
PF: predicated region fallthrough
CT: control target
= control target key end

     0   :  { %s22_s0 = inlined_call_operand.vmem [shape: f32[32], index: 0, kind: input, shape index: {}]   ;;  %s23_s1 = inlined_call_operand.vmem [shape: f32[4,32], index: 1, kind: output, shape index: {}]  }
   0x1   :  { %v4_v0 = vld [vmem:[%s22_s0] ss:$0 sm:$0xff] }
   0x2   :  { %5 = vst [vmem:[%s23_s1] sm:$0xf] %v4_v0 }

// kernel: _lambda_.1
= control target key start
LH: loop header
LB: loop body
LE: loop exit
PB: predicated region body
PF: predicated region fallthrough
CT: control target
= control target key end

     0   :  { %13 = vsyncpa [#allocation3], 0  ;;  %s18058_s0 = inlined_call_operand.vmem [shape: f32[2,32,128], index: 0, kind: input, shape index: {}]   ;;  %s18059_s1 = inlined_call_operand.vmem [shape: f32[2,64,128], index: 1, kind: input, shape index: {}]   ;;  %s18060_s2 = inlined_call_operand.vmem [shape: f32[2,64,128], index: 2, kind: input, shape index: {}]   ;;  %s18061_s3 = inlined_call_operand.vmem [shape: f32[128,100], index: 3, kind: input, shape index: {}]   ;;  %s18062_s4 = inlined_call_operand.vmem [shape: f32[32,84], index: 4, kind: input, shape index: {}]   ;;  %s18063_s5 = inlined_call_operand.vmem [shape: f32[1,112], index: 5, kind: input, shape index: {}]   ;;  %s18064_s6 = inlined_call_operand.vmem [shape: f32[16,32], index: 6, kind: input, shape index: {}]   ;;  %s18065_s7 = inlined_call_operand.vmem [shape: f32[4,64], index: 7, kind: input, shape index: {}]   ;;  %s18066_s8 = inlined_call_operand.hbm [shape: f32[2,8,16,32], index: 8, kind: output, shape index: {}]  }
   0x1   :  { %15 = vsyncpa [#allocation3 + $0x1], 0  ;;  %s13183_s27 = smov 0   ;;  %s13185_s28 = smov 0  }
   0x2   :  { %s13187_s29 = smov 0   ;;  %s13189_s30 = smov 0  }
   0x3 LB: > { %s13204_s9 = sadd.s32 4294967295, %s13123_s30   ;;  %s9615_s10 = sadd.s32 4294967294, %s13123_s30   ;;  %s13123_s30 = sphi %s13189_s30, %s18945_s30   ;;  %s13119_s29 = sphi %s13187_s29, %s18944_s29   ;;  %s13115_s28 = sphi %s13185_s28, %s18943_s28   ;;  %s13111_s27 = sphi %s13183_s27, %s18942_s27  }
   0x4   : > { %s13208_s11 = sadd.s32 1, %s13123_s30   ;;  %s211_s12 = sadd.s32 1, %s13119_s29 }
   0x5   : > { %s208_s13 = ssub.s32 %s13123_s30, %s13208_s11  ;;  %p221_p0 = scmp.ne.s32.totalorder %s13119_s29, %s13115_s28 }
   0x6   : > { %p209_p1 = scmp.eq.s32.totalorder %s208_s13, 0  ;;  %p222_p2 = scmp.eq.s32.totalorder %s13204_s9, 1 }
   0x7   : > { %p227_p3 = scmp.ne.s32.totalorder %s13115_s28, %s13111_s27  ;;  %p228_p4 = scmp.eq.s32.totalorder %s9615_s10, 1 }
   0x8   : > { %s13219_s14 = scalar_select %p209_p1, %s13119_s29, %s211_s12  }
   0x9   : > { %p13221_p5 = por %p222_p2, %p221_p0  ;;  %p13225_p6 = por %p228_p4, %p227_p3 }
   0xa   : > { %p9618_p7 = scmp.ge.s32.totalorder %s13123_s30, 1  ;;  %p285_p8 = scmp.lt.s32.totalorder %s13123_s30, 3 }
   0xc   : > { %p286_p9 = pnand %p9618_p7, %p285_p8 }
   0xe   : > { %289 = sbr.rel (%p286_p9) target bundleno = 1856 (0x740), region = 52 }
  0x15   : > { %v13234_v0 = vld [vmem:[%s18061_s3 + $0x10] sm:$0xff]  ;;  %v13239_v1 = vld [vmem:[%s18061_s3] sm:$0xff]  ;;  %s13125_s21 = smov 48   ;;  %v13248_v2 = vld [vmem:[%s18061_s3 + $0x18] sm:$0xff]  ;;  %p329_p10 = scmp.lt.s32.totalorder %s13204_s9, 1  ;;  %vm2235_vm0 = vcmask 523264  }
  0x16   : > { %1233 = vrot.lane.b32.xlu1 %v13234_v0, %s13125_s21  ;;  %1229 = vrot.lane.b32.xlu0 %v13239_v1, %s13125_s21  ;;  %v365_v3 = vld [vmem:[%s18061_s3 + $0x8] sm:$0xff]  ;;  %v368_v5 = vld [vmem:[%s18061_s3 + $0x20] sm:$0xff]  ;;  %s13126_s12 = smov 64   ;;  %s13127_s24 = smov 32   ;;  %vm13130_vm1 = vmmov 0   ;;  %vm6673_vm2 = vcmask 130048  }
  0x17   : > { %v369_v4 = vld [vmem:[%s18061_s3 + $0x28] sm:$0xff]  ;;  %v371_v6 = vld [vmem:[%s18061_s3 + $0x38] sm:$0xff]  ;;  %v370_v7 = vld [vmem:[%s18061_s3 + $0x30] sm:$0xff]  ;;  %s13306_s26 = scalar_select %p329_p10, %s13204_s9, 1  ;;  %vm7343_vm3 = vcmask 130112   ;;  %vm7624_vm4 = vcmask 1041409  }
  0x18   : > { %v373_v8 = vld [vmem:[%s18061_s3 + $0x48] sm:$0xff]  ;;  %v372_v9 = vld [vmem:[%s18061_s3 + $0x40] sm:$0xff]  ;;  %v375_v10 = vld [vmem:[%s18061_s3 + $0x58] sm:$0xff]  ;;  %vm7626_vm5 = vcmask 1042434   ;;  %vm7628_vm6 = vcmask 1043459   ;;  %vm7630_vm7 = vcmask 1044484  }
  0x19   : > { %v374_v11 = vld [vmem:[%s18061_s3 + $0x50] sm:$0xff]  ;;  %v377_v12 = vld [vmem:[%s18061_s3 + $0x68] sm:$0xff]  ;;  %v376_v13 = vld [vmem:[%s18061_s3 + $0x60] sm:$0xff]  ;;  %s9633_s10 = sshll.u32 %s13306_s26, 6  ;;  %s9632_s19 = sshll.u32 %s13306_s26, 5  ;;  %vm7632_vm8 = vcmask 1045509  }
  0x1a   : > { %1235 = vrot.lane.b32.xlu1 %v13248_v2, %s13125_s21  ;;  %1231 = vrot.lane.b32.xlu0 %v365_v3, %s13125_s21  ;;  %v379_v14 = vld [vmem:[%s18061_s3 + $0x78] sm:$0xff]  ;;  %v378_v15 = vld [vmem:[%s18061_s3 + $0x70] sm:$0xff]  ;;  %s13317_s18 = scalar_lea.vmem %s18059_s1, %s9633_s10  ;;  %s13338_s23 = scalar_lea.vmem %s18058_s0, %s9632_s19  ;;  %vm7634_vm9 = vcmask 1046534   ;;  %vm7636_vm10 = vcmask 1047559   ;;  %vm8843_vm11 = vcmask 31744   ;;  %vm8871_vm12 = vcmask 39968  }
  0x1b   : > { %v13320_v16 = vld [vmem:[%s13317_s18] sm:$0xff]  ;;  %s14102_s17 = scalar_lea.vmem %s18060_s2, %s9633_s10  ;;  %s13128_s19 = smov 112   ;;  %vm8896_vm13 = vcmask 48168   ;;  %vm8921_vm14 = vcmask 56368   ;;  %vm8946_vm15 = vcmask 64568  }
  0x1c   : > { %v13323_v17 = vand.u32 4294901760, %v13320_v16  ;;  %v344_v18 = vld [vmem:[%s13338_s23] sm:$0xff]  ;;  %s13133_s22 = smov 8  }
  0x1d   : > { %v13341_v19 = vand.u32 4294901760, %v344_v18 }
  0x1e   : > { %1239 = vrot.lane.b32.xlu1 %v369_v4, %s13125_s21  ;;  %1237 = vrot.lane.b32.xlu0 %v368_v5, %s13125_s21  ;;  %18378 = vst [vmem:[#allocation5_spill] sm:$0xff] %v13323_v17 }
  0x1f   : > { %10648 = vmatprep.mubr.f32.mxu1 %v13323_v17  ;;  %v13346_v20 = vsub.f32 %v344_v18, %v13341_v19 }
  0x21   : > { %18379 = vst [vmem:[#allocation6_spill] sm:$0xff] %v13346_v20  ;;  %v18067_v21 = vand.u32 4294901760, %v13346_v20 }
  0x22   : > { %1243 = vrot.lane.b32.xlu1 %v371_v6, %s13125_s21  ;;  %1241 = vrot.lane.b32.xlu0 %v370_v7, %s13125_s21 }
  0x23   : > { %v543_v22 = vsub.f32 %v13346_v20, %v18067_v21 }
  0x25   : > { %v544_v23 = vand.u32 4294901760, %v543_v22 }
  0x26   : > { %1247 = vrot.lane.b32.xlu1 %v373_v8, %s13125_s21  ;;  %1245 = vrot.lane.b32.xlu0 %v372_v9, %s13125_s21 }
  0x27   : > { %10376 = vmatprep.mubr.f32.mxu0 %v544_v23 }
  0x2a   : > { %1251 = vrot.lane.b32.xlu1 %v375_v10, %s13125_s21  ;;  %1249 = vrot.lane.b32.xlu0 %v374_v11, %s13125_s21 }
  0x2e   : > { %1255 = vrot.lane.b32.xlu1 %v377_v12, %s13125_s21  ;;  %1253 = vrot.lane.b32.xlu0 %v376_v13, %s13125_s21 }
  0x32   : > { %1259 = vrot.lane.b32.xlu1 %v379_v14, %s13125_s21  ;;  %1257 = vrot.lane.b32.xlu0 %v378_v15, %s13125_s21 }
  0x36   : > { %410 = vrot.lane.b32.xlu1 %v365_v3, %s13126_s12  ;;  %408 = vrot.lane.b32.xlu0 %v13239_v1, %s13126_s12 }
  0x3a   : > { %414 = vrot.lane.b32.xlu1 %v13248_v2, %s13126_s12  ;;  %412 = vrot.lane.b32.xlu0 %v13234_v0, %s13126_s12 }
  0x3e   : > { %418 = vrot.lane.b32.xlu1 %v369_v4, %s13126_s12  ;;  %416 = vrot.lane.b32.xlu0 %v368_v5, %s13126_s12 }
  0x42   : > { %422 = vrot.lane.b32.xlu1 %v371_v6, %s13126_s12  ;;  %420 = vrot.lane.b32.xlu0 %v370_v7, %s13126_s12 }
  0x46   : > { %426 = vrot.lane.b32.xlu1 %v373_v8, %s13126_s12  ;;  %424 = vrot.lane.b32.xlu0 %v372_v9, %s13126_s12 }
  0x4a   : > { %430 = vrot.lane.b32.xlu1 %v375_v10, %s13126_s12  ;;  %428 = vrot.lane.b32.xlu0 %v374_v11, %s13126_s12 }
  0x4e   : > { %434 = vrot.lane.b32.xlu1 %v377_v12, %s13126_s12  ;;  %432 = vrot.lane.b32.xlu0 %v376_v13, %s13126_s12 }
  0x52   : > { %438 = vrot.lane.b32.xlu1 %v379_v14, %s13126_s12  ;;  %436 = vrot.lane.b32.xlu0 %v378_v15, %s13126_s12 }
  0x56   : > { %2912 = vrot.lane.b32.xlu1 %v365_v3, %s13127_s24  ;;  %2910 = vrot.lane.b32.xlu0 %v13239_v1, %s13127_s24 }
  0x5a   : > { %2916 = vrot.lane.b32.xlu1 %v13248_v2, %s13127_s24  ;;  %2914 = vrot.lane.b32.xlu0 %v13234_v0, %s13127_s24 }
  0x5e   : > { %2920 = vrot.lane.b32.xlu1 %v369_v4, %s13127_s24  ;;  %2918 = vrot.lane.b32.xlu0 %v368_v5, %s13127_s24 }
  0x62   : > { %2924 = vrot.lane.b32.xlu1 %v371_v6, %s13127_s24  ;;  %2922 = vrot.lane.b32.xlu0 %v370_v7, %s13127_s24 }
  0x66   : > { %2928 = vrot.lane.b32.xlu1 %v373_v8, %s13127_s24  ;;  %2926 = vrot.lane.b32.xlu0 %v372_v9, %s13127_s24 }
  0x6a   : > { %2932 = vrot.lane.b32.xlu1 %v375_v10, %s13127_s24  ;;  %2930 = vrot.lane.b32.xlu0 %v374_v11, %s13127_s24 }
  0x6e   : > { %2936 = vrot.lane.b32.xlu1 %v377_v12, %s13127_s24  ;;  %2934 = vrot.lane.b32.xlu0 %v376_v13, %s13127_s24 }
  0x72   : > { %2940 = vrot.lane.b32.xlu1 %v379_v14, %s13127_s24  ;;  %2938 = vrot.lane.b32.xlu0 %v378_v15, %s13127_s24 }
  0x88   : > { %v1234_v24 = vpop.permute.xlu1 %1233  ;;  %v1230_v25 = vpop.permute.xlu0 %1229 }
  0x89   : > { %v1284_v26 = vand.u32 4294901760, %v1234_v24  ;;  %v1278_v27 = vand.u32 4294901760, %v1230_v25 }
  0x8b   : > { %v13377_v28 = vsub.f32 %v1230_v25, %v1278_v27  ;;  %v13379_v29 = vsub.f32 %v1234_v24, %v1284_v26 }
  0x8c   : > { %v1236_v30 = vpop.permute.xlu1 %1235  ;;  %v1232_v31 = vpop.permute.xlu0 %1231 }
  0x8d   : > { %v1287_v32 = vand.u32 4294901760, %v1236_v30  ;;  %v1281_v33 = vand.u32 4294901760, %v1232_v31  ;;  %v1441_v34 = vand.u32 4294901760, %v13377_v28  ;;  %v1455_v39 = vand.u32 4294901760, %v13379_v29 }
  0x8f   : > { %v13382_v35 = vpack.c.bf16 %v1287_v32, %v1284_v26  ;;  %v13384_v36 = vsub.f32 %v1236_v30, %v1287_v32  ;;  %v13386_v37 = vpack.c.bf16 %v1281_v33, %v1278_v27  ;;  %v13388_v38 = vsub.f32 %v1232_v31, %v1281_v33 }
  0x90   : > { %v1240_v40 = vpop.permute.xlu1 %1239  ;;  %v1238_v41 = vpop.permute.xlu0 %1237  ;;  %v1442_v46 = vsub.f32 %v13377_v28, %v1441_v34  ;;  %v1456_v53 = vsub.f32 %v13379_v29, %v1455_v39 }
  0x91   : > { %v1462_v42 = vand.u32 4294901760, %v13384_v36  ;;  %v1293_v43 = vand.u32 4294901760, %v1240_v40  ;;  %v1290_v44 = vand.u32 4294901760, %v1238_v41  ;;  %v1448_v45 = vand.u32 4294901760, %v13388_v38 }
  0x92   : > { %v1443_v61 = vand.u32 4294901760, %v1442_v46  ;;  %v1457_v7 = vand.u32 4294901760, %v1456_v53 }
  0x93   : > { %v13394_v47 = vsub.f32 %v1240_v40, %v1293_v43  ;;  %v13396_v48 = vpack.c.bf16 %v1293_v43, %v1290_v44  ;;  %v13398_v49 = vsub.f32 %v1238_v41, %v1290_v44  ;;  %v1449_v50 = vsub.f32 %v13388_v38, %v1448_v45 }
  0x94   : > { %v1244_v51 = vpop.permute.xlu1 %1243  ;;  %v1242_v52 = vpop.permute.xlu0 %1241  ;;  %v1463_v54 = vsub.f32 %v13384_v36, %v1462_v42  ;;  %v13403_v55 = vpack.c.bf16 %v1448_v45, %v1441_v34  ;;  %v13405_v56 = vpack.c.bf16 %v1462_v42, %v1455_v39 }
  0x95   : > { %v1476_v57 = vand.u32 4294901760, %v13394_v47  ;;  %v1469_v58 = vand.u32 4294901760, %v13398_v49  ;;  %v1299_v59 = vand.u32 4294901760, %v1244_v51  ;;  %v1296_v60 = vand.u32 4294901760, %v1242_v52 }
  0x96   : > { %18380 = vst [vmem:[#allocation7_spill] sm:$0xff] %v13403_v55  ;;  %18381 = vst [vmem:[#allocation8_spill] sm:$0xff] %v13405_v56  ;;  %v1450_v62 = vand.u32 4294901760, %v1449_v50  ;;  %v1464_v63 = vand.u32 4294901760, %v1463_v54 }
  0x97   : > { %v13409_v0 = vsub.f32 %v1244_v51, %v1299_v59  ;;  %v13411_v1 = vpack.c.bf16 %v1299_v59, %v1296_v60  ;;  %v13413_v2 = vsub.f32 %v1242_v52, %v1296_v60  ;;  %v1470_v3 = vsub.f32 %v13398_v49, %v1469_v58 }
  0x98   : > { %v1248_v4 = vpop.permute.xlu1 %1247  ;;  %v1246_v5 = vpop.permute.xlu0 %1245  ;;  %v11912_v6 = vpack.c.bf16 %v1450_v62, %v1443_v61  ;;  %v1477_v8 = vsub.f32 %v13394_v47, %v1476_v57  ;;  %v13417_v9 = vpack.c.bf16 %v1476_v57, %v1469_v58  ;;  %v11916_v14 = vpack.c.bf16 %v1464_v63, %v1457_v7 }
  0x99   : > { %v1490_v10 = vand.u32 4294901760, %v13409_v0  ;;  %v1483_v11 = vand.u32 4294901760, %v13413_v2  ;;  %v1305_v12 = vand.u32 4294901760, %v1248_v4  ;;  %v1302_v13 = vand.u32 4294901760, %v1246_v5 }
  0x9a   : > { %18382 = vst [vmem:[#allocation9_spill] sm:$0xff] %v13417_v9  ;;  %11913 = vmatprep.subr.bf16.mxu1 %v11912_v6  ;;  %v1471_v15 = vand.u32 4294901760, %v1470_v3  ;;  %v1478_v18 = vand.u32 4294901760, %v1477_v8 }
  0x9b   : > { %v13421_v22 = vsub.f32 %v1248_v4, %v1305_v12  ;;  %v13423_v23 = vpack.c.bf16 %v1305_v12, %v1302_v13  ;;  %v13425_v24 = vsub.f32 %v1246_v5, %v1302_v13  ;;  %11915 = vmatpush3.bf16.msra.mxu1 %v11912_v6  ;;  %v1484_v25 = vsub.f32 %v13413_v2, %v1483_v11 }
  0x9c   : > { %11917 = vmatprep.subr.bf16.mxu1 %v11916_v14  ;;  %v1252_v26 = vpop.permute.xlu1 %1251  ;;  %v1250_v27 = vpop.permute.xlu0 %1249  ;;  %v1491_v30 = vsub.f32 %v13409_v0, %v1490_v10  ;;  %v13429_v31 = vpack.c.bf16 %v1490_v10, %v1483_v11  ;;  %v11920_v40 = vpack.c.bf16 %v1478_v18, %v1471_v15 }
  0x9d   : > { %v1504_v32 = vand.u32 4294901760, %v13421_v22  ;;  %v1497_v33 = vand.u32 4294901760, %v13425_v24  ;;  %v1311_v34 = vand.u32 4294901760, %v1252_v26  ;;  %v1308_v39 = vand.u32 4294901760, %v1250_v27 }
  0x9e   : > { %18383 = vst [vmem:[#allocation10_spill] sm:$0xff] %v13429_v31  ;;  %v1485_v41 = vand.u32 4294901760, %v1484_v25  ;;  %v1492_v42 = vand.u32 4294901760, %v1491_v30 }
  0x9f   : > { %v13433_v43 = vsub.f32 %v1252_v26, %v1311_v34  ;;  %v13435_v44 = vpack.c.bf16 %v1311_v34, %v1308_v39  ;;  %v13437_v45 = vsub.f32 %v1250_v27, %v1308_v39  ;;  %11919 = vmatpush3.bf16.msra.mxu1 %v11916_v14  ;;  %v1498_v46 = vsub.f32 %v13425_v24, %v1497_v33 }
  0xa0   : > { %11921 = vmatprep.subr.bf16.mxu1 %v11920_v40  ;;  %v1256_v50 = vpop.permute.xlu1 %1255  ;;  %v1254_v51 = vpop.permute.xlu0 %1253  ;;  %v1505_v52 = vsub.f32 %v13421_v22, %v1504_v32  ;;  %v13441_v53 = vpack.c.bf16 %v1504_v32, %v1497_v33  ;;  %v11924_v60 = vpack.c.bf16 %v1492_v42, %v1485_v41 }
  0xa1   : > { %v1518_v54 = vand.u32 4294901760, %v13433_v43  ;;  %v1511_v57 = vand.u32 4294901760, %v13437_v45  ;;  %v1317_v58 = vand.u32 4294901760, %v1256_v50  ;;  %v1314_v59 = vand.u32 4294901760, %v1254_v51 }
  0xa2   : > { %18384 = vst [vmem:[#allocation11_spill] sm:$0xff] %v13441_v53  ;;  %v1499_v61 = vand.u32 4294901760, %v1498_v46  ;;  %v1506_v62 = vand.u32 4294901760, %v1505_v52 }
  0xa3   : > { %v13445_v63 = vsub.f32 %v1256_v50, %v1317_v58  ;;  %v13447_v3 = vpack.c.bf16 %v1317_v58, %v1314_v59  ;;  %v13449_v4 = vsub.f32 %v1254_v51, %v1314_v59  ;;  %11923 = vmatpush3.bf16.msra.mxu1 %v11920_v40  ;;  %v1512_v5 = vsub.f32 %v13437_v45, %v1511_v57 }
  0xa4   : > { %11925 = vmatprep.subr.bf16.mxu1 %v11924_v60  ;;  %v1260_v6 = vpop.permute.xlu1 %1259  ;;  %v1258_v7 = vpop.permute.xlu0 %1257  ;;  %v1519_v8 = vsub.f32 %v13433_v43, %v1518_v54  ;;  %v13453_v10 = vpack.c.bf16 %v1518_v54, %v1511_v57  ;;  %v11928_v15 = vpack.c.bf16 %v1506_v62, %v1499_v61 }
  0xa5   : > { %18385 = vst [vmem:[#allocation12_spill] sm:$0xff] %v13447_v3  ;;  %v1532_v11 = vand.u32 4294901760, %v13445_v63  ;;  %v1525_v12 = vand.u32 4294901760, %v13449_v4  ;;  %v1323_v13 = vand.u32 4294901760, %v1260_v6  ;;  %v1320_v14 = vand.u32 4294901760, %v1258_v7 }
  0xa6   : > { %18386 = vst [vmem:[#allocation13_spill] sm:$0xff] %v13453_v10  ;;  %v1513_v18 = vand.u32 4294901760, %v1512_v5  ;;  %v1520_v25 = vand.u32 4294901760, %v1519_v8  ;;  %v13580_v10 = vld [vmem:[%s13317_s18 + $0x28] sm:$0xff] }
  0xa7   : > { %v13457_v26 = vsub.f32 %v1260_v6, %v1323_v13  ;;  %v13459_v27 = vpack.c.bf16 %v1323_v13, %v1320_v14  ;;  %v13461_v30 = vsub.f32 %v1258_v7, %v1320_v14  ;;  %11927 = vmatpush3.bf16.msra.mxu1 %v11924_v60  ;;  %v1526_v32 = vsub.f32 %v13449_v4, %v1525_v12 }
  0xa8   : > { %11929 = vmatprep.subr.bf16.mxu1 %v11928_v15  ;;  %v411_v33 = vpop.permute.xlu1 %410  ;;  %v409_v34 = vpop.permute.xlu0 %408  ;;  %v1533_v39 = vsub.f32 %v13445_v63, %v1532_v11  ;;  %v13465_v40 = vpack.c.bf16 %v1532_v11, %v1525_v12  ;;  %v11932_v51 = vpack.c.bf16 %v1520_v25, %v1513_v18 }
  0xa9   : > { %18387 = vst [vmem:[#allocation14_spill] sm:$0xff] %v13459_v27  ;;  %v1546_v41 = vand.u32 4294901760, %v13457_v26  ;;  %v1539_v42 = vand.u32 4294901760, %v13461_v30  ;;  %v463_v46 = vand.u32 4294901760, %v411_v33  ;;  %v460_v50 = vand.u32 4294901760, %v409_v34 }
  0xaa   : > { %18388 = vst [vmem:[#allocation15_spill] sm:$0xff] %v13465_v40  ;;  %v1527_v52 = vand.u32 4294901760, %v1526_v32  ;;  %v1534_v54 = vand.u32 4294901760, %v1533_v39 }
  0xab   : > { %v13469_v57 = vsub.f32 %v411_v33, %v463_v46  ;;  %v13471_v58 = vpack.c.bf16 %v463_v46, %v460_v50  ;;  %v13473_v59 = vsub.f32 %v409_v34, %v460_v50  ;;  %11931 = vmatpush3.bf16.msra.mxu1 %v11928_v15  ;;  %v1540_v60 = vsub.f32 %v13461_v30, %v1539_v42 }
  0xac   : > { %11933 = vmatprep.subr.bf16.mxu1 %v11932_v51  ;;  %v415_v61 = vpop.permute.xlu1 %414  ;;  %v413_v62 = vpop.permute.xlu0 %412  ;;  %v1547_v5 = vsub.f32 %v13457_v26, %v1546_v41  ;;  %v13477_v6 = vpack.c.bf16 %v1546_v41, %v1539_v42  ;;  %v11936_v13 = vpack.c.bf16 %v1534_v54, %v1527_v52 }
  0xad   : > { %18389 = vst [vmem:[#allocation16_spill] sm:$0xff] %v13471_v58  ;;  %v18068_v7 = vand.u32 4294901760, %v13469_v57  ;;  %v18071_v8 = vand.u32 4294901760, %v13473_v59  ;;  %v469_v11 = vand.u32 4294901760, %v415_v61  ;;  %v466_v12 = vand.u32 4294901760, %v413_v62  ;;  %11689 = vmatprep.subr.bf16.mxu0 %v13471_v58 }
  0xae   : > { %18390 = vst [vmem:[#allocation17_spill] sm:$0xff] %v13477_v6  ;;  %11691 = vmatpush3.bf16.msra.mxu0 %v13471_v58  ;;  %v1541_v14 = vand.u32 4294901760, %v1540_v60  ;;  %v1548_v15 = vand.u32 4294901760, %v1547_v5  ;;  %v13599_v58 = vld [vmem:[%s13317_s18 + $0x38] sm:$0xff]  ;;  %v18409_v55 = vand.u32 4294901760, %v13473_v59  ;;  %v18411_v27 = vand.u32 4294901760, %v13469_v57 }
  0xaf   : > { %v13483_v18 = vsub.f32 %v415_v61, %v469_v11  ;;  %v13485_v25 = vpack.c.bf16 %v469_v11, %v466_v12  ;;  %v13487_v32 = vsub.f32 %v413_v62, %v466_v12  ;;  %11935 = vmatpush3.bf16.msra.mxu1 %v11932_v51  ;;  %v13493_v39 = vpack.c.bf16 %v18068_v7, %v18071_v8  ;;  %v345_v51 = vld [vmem:[%s13338_s23 + $0x8] sm:$0xff]  ;;  %v13510_v12 = vld [vmem:[%s13317_s18 + $0x10] sm:$0xff] }
  0xb0   : > { %11937 = vmatprep.subr.bf16.mxu1 %v11936_v13  ;;  %v419_v33 = vpop.permute.xlu1 %418  ;;  %v417_v34 = vpop.permute.xlu0 %416  ;;  %v11940_v52 = vpack.c.bf16 %v1548_v15, %v1541_v14  ;;  %v13507_v62 = vld [vmem:[%s13317_s18 + $0x8] sm:$0xff]  ;;  %v13512_v21 = vand.u32 4294901760, %v345_v51  ;;  %v13537_v15 = vand.u32 4294901760, %v13510_v12 }
  0xb1   : > { %18391 = vst [vmem:[#allocation18_spill] sm:$0xff] %v13483_v18  ;;  %18392 = vst [vmem:[#allocation19_spill] sm:$0xff] %v13485_v25  ;;  %v18069_v41 = vand.u32 4294901760, %v13483_v18  ;;  %v18070_v42 = vand.u32 4294901760, %v13487_v32  ;;  %v475_v46 = vand.u32 4294901760, %v419_v33  ;;  %v472_v50 = vand.u32 4294901760, %v417_v34  ;;  %11693 = vmatprep.subr.bf16.mxu0 %v13485_v25 }
  0xb2   : > { %18393 = vst [vmem:[#allocation20_spill] sm:$0xff] %v13493_v39  ;;  %11695 = vmatpush3.bf16.msra.mxu0 %v13485_v25  ;;  %18395 = vst [vmem:[#allocation22_spill] sm:$0xff] %v13512_v21  ;;  %v13528_v7 = vand.u32 4294901760, %v13507_v62 }
  0xb3   : > { %v13500_v54 = vsub.f32 %v419_v33, %v475_v46  ;;  %v13502_v60 = vpack.c.bf16 %v475_v46, %v472_v50  ;;  %v13504_v61 = vsub.f32 %v417_v34, %v472_v50  ;;  %11939 = vmatpush3.bf16.msra.mxu1 %v11936_v13  ;;  %v13518_v14 = vpack.c.bf16 %v18069_v41, %v18070_v42  ;;  %v346_v46 = vld [vmem:[%s13338_s23 + $0x10] sm:$0xff]  ;;  %v13540_v13 = vld [vmem:[%s13317_s18 + $0x18] sm:$0xff] }
  0xb4   : > { %11941 = vmatprep.subr.bf16.mxu1 %v11940_v52  ;;  %v423_v5 = vpop.permute.xlu1 %422  ;;  %v421_v11 = vpop.permute.xlu0 %420  ;;  %v11944_v50 = vpack.c.bf16 %v13388_v38, %v13377_v28  ;;  %v13544_v28 = vsub.f32 %v345_v51, %v13512_v21  ;;  %v13547_v38 = vld [vmem:[%s13317_s18 + $0x20] sm:$0xff]  ;;  %v11948_v51 = vpack.c.bf16 %v13384_v36, %v13379_v29 }
  0xb5   : > { %18394 = vst [vmem:[#allocation21_spill] sm:$0xff] %v13502_v60  ;;  %18396 = vst [vmem:[#allocation23_spill] sm:$0xff] %v13518_v14  ;;  %v481_v33 = vand.u32 4294901760, %v423_v5  ;;  %v478_v34 = vand.u32 4294901760, %v421_v11  ;;  %11697 = vmatprep.subr.bf16.mxu0 %v13502_v60  ;;  %v347_v14 = vld [vmem:[%s13338_s23 + $0x18] sm:$0xff]  ;;  %s326_s23 = sand.u32 1, %s13115_s28  }
  0xb6   : > { %11699 = vmatpush3.bf16.msra.mxu0 %v13502_v60  ;;  %18398 = vst [vmem:[#allocation25_spill] sm:$0xff] %v13544_v28  ;;  %s9619_s25 = sshll.u32 %s326_s23, 7  ;;  %s18016_s20 = scalar_lea.sflag [#allocation3], %s326_s23 }
  0xb7   : > { %v13530_v41 = vsub.f32 %v423_v5, %v481_v33  ;;  %v13532_v42 = vpack.c.bf16 %v481_v33, %v478_v34  ;;  %v13534_v8 = vsub.f32 %v421_v11, %v478_v34  ;;  %11943 = vmatpush3.bf16.msra.mxu1 %v11940_v52  ;;  %v13549_v5 = vand.u32 4294901760, %v346_v46  ;;  %s17130_s13 = scalar_lea.vmem [#allocation2], %s9619_s25 }
  0xb8   : > { %11945 = vmatprep.subr.bf16.mxu1 %v11944_v50  ;;  %v427_v39 = vpop.permute.xlu1 %426  ;;  %v425_v6 = vpop.permute.xlu0 %424  ;;  %v18400_v11 = vand.u32 4294901760, %v13504_v61  ;;  %v18401_v52 = vand.u32 4294901760, %v13500_v54 }
  0xb9   : > { %18397 = vst [vmem:[#allocation24_spill] sm:$0xff] %v13532_v42  ;;  %18399 = vst [vmem:[#allocation26_spill] sm:$0xff] %v13549_v5  ;;  %v487_v40 = vand.u32 4294901760, %v427_v39  ;;  %v484_v25 = vand.u32 4294901760, %v425_v6  ;;  %11701 = vmatprep.subr.bf16.mxu0 %v13532_v42 }
  0xba   : > { %v13555_v33 = vpack.c.bf16 %v18401_v52, %v18400_v11  ;;  %11703 = vmatpush3.bf16.msra.mxu0 %v13532_v42  ;;  %10649 = vmatmul.mubr.f32.vlgmr.msra.gmra.mrb[0].mxu1 %v13528_v7  ;;  %v13565_v11 = vand.u32 4294901760, %v13540_v13  ;;  %v13567_v52 = vand.u32 4294901760, %v347_v14  ;;  %v13577_v42 = vand.u32 4294901760, %v13547_v38 }
  0xbb   : > { %v13569_v34 = vsub.f32 %v427_v39, %v487_v40  ;;  %v13571_v60 = vpack.c.bf16 %v487_v40, %v484_v25  ;;  %11947 = vmatpush3.bf16.msra.mxu1 %v11944_v50  ;;  %10651 = vmatprep.mubr.f32.mxu1 %v13537_v15  ;;  %v13584_v39 = vld [vmem:[%s13317_s18 + $0x30] sm:$0xff]  ;;  %v13587_v40 = vsub.f32 %v346_v46, %v13549_v5  ;;  %s9635_s18 = sshll.u32 %s13204_s9, 11 }
  0xbc   : > { %18402 = vst [vmem:[#allocation27_spill] sm:$0xff] %v13555_v33  ;;  %18403 = vst [vmem:[#allocation28_spill] sm:$0xff] %v13567_v52  ;;  %v13573_v33 = vsub.f32 %v425_v6, %v484_v25  ;;  %11949 = vmatprep.subr.bf16.mxu1 %v11948_v51  ;;  %v431_v29 = vpop.permute.xlu1 %430  ;;  %v429_v36 = vpop.permute.xlu0 %428  ;;  %v18406_v6 = vand.u32 4294901760, %v13534_v8  ;;  %v18407_v25 = vand.u32 4294901760, %v13530_v41  ;;  %v11952_v46 = vpack.c.bf16 %v13394_v47, %v13398_v49 }
  0xbd   : > { %18404 = vst [vmem:[#allocation29_spill] sm:$0xff] %v13571_v60  ;;  %18405 = vst [vmem:[#allocation30_spill] sm:$0xff] %v13587_v40  ;;  %v493_v9 = vand.u32 4294901760, %v431_v29  ;;  %v490_v56 = vand.u32 4294901760, %v429_v36  ;;  %11705 = vmatprep.subr.bf16.mxu0 %v13571_v60  ;;  %v13612_v53 = vsub.f32 %v347_v14, %v13567_v52  ;;  %v13622_v47 = vand.u32 4294901760, %v13584_v39 }
  0xbe   : > { %v13593_v50 = vpack.c.bf16 %v18407_v25, %v18406_v6  ;;  %11707 = vmatpush3.bf16.msra.mxu0 %v13571_v60  ;;  %v584_v6 = vsub.f32 %v13473_v59, %v18409_v55  ;;  %10652 = vmatmul.mubr.f32.gmra.mrb[2].mxu1 %v13565_v11  ;;  %v13609_v25 = vand.u32 4294901760, %v13580_v10  ;;  %v591_v14 = vsub.f32 %v13469_v57, %v18411_v27 }
  0xbf   : > { %v13614_v31 = vsub.f32 %v431_v29, %v493_v9  ;;  %v13618_v60 = vsub.f32 %v429_v36, %v490_v56  ;;  %11951 = vmatpush3.bf16.msra.mxu1 %v11948_v51  ;;  %10654 = vmatprep.mubr.f32.mxu1 %v13577_v42  ;;  %v18412_v29 = vand.u32 4294901760, %v13544_v28  ;;  %v18413_v51 = vand.u32 4294901760, %v13573_v33 }
  0xc0   : > { %18408 = vst [vmem:[#allocation31_spill] sm:$0xff] %v13593_v50  ;;  %v13616_v50 = vpack.c.bf16 %v493_v9, %v490_v56  ;;  %11953 = vmatprep.subr.bf16.mxu1 %v11952_v46  ;;  %v435_v49 = vpop.permute.xlu1 %434  ;;  %v433_v55 = vpop.permute.xlu0 %432  ;;  %v13631_v56 = vand.u32 4294901760, %v13599_v58  ;;  %v18414_v36 = vand.u32 4294901760, %v13569_v34  ;;  %v11956_v27 = vpack.c.bf16 %v13409_v0, %v13413_v2 }
  0xc1   : > { %v553_v9 = vsub.f32 %v13544_v28, %v18412_v29  ;;  %v499_v5 = vand.u32 4294901760, %v435_v49  ;;  %v496_v21 = vand.u32 4294901760, %v433_v55  ;;  %v13648_v29 = vsub.f32 %v13320_v16, %v13323_v17 }
  0xc2   : > { %18410 = vst [vmem:[#allocation32_spill] sm:$0xff] %v13616_v50  ;;  %v13637_v20 = vpack.c.bf16 %v18414_v36, %v18413_v51  ;;  %11709 = vmatprep.subr.bf16.mxu0 %v13616_v50  ;;  %10655 = vmatmul.mubr.f32.gmra.mrb[4].mxu1 %v13609_v25  ;;  %v592_v28 = vand.u32 4294901760, %v591_v14  ;;  %v18418_v16 = vand.u32 4294901760, %v13487_v32  ;;  %v18419_v36 = vand.u32 4294901760, %v13483_v18 }
  0xc3   : > { %11711 = vmatpush3.bf16.msra.mxu0 %v13616_v50  ;;  %18416 = vst [vmem:[#allocation34_spill] sm:$0xff] %v13648_v29  ;;  %v13652_v52 = vsub.f32 %v435_v49, %v499_v5  ;;  %v13654_v3 = vpack.c.bf16 %v499_v5, %v496_v21  ;;  %11955 = vmatpush3.bf16.msra.mxu1 %v11952_v46  ;;  %v585_v50 = vand.u32 4294901760, %v584_v6  ;;  %v18420_v5 = vand.u32 4294901760, %v13618_v60 }
  0xc4   : > { %18415 = vst [vmem:[#allocation33_spill] sm:$0xff] %v13637_v20  ;;  %v13656_v20 = vsub.f32 %v433_v55, %v496_v21  ;;  %10657 = vmatprep.mubr.f32.mxu1 %v13622_v47  ;;  %11957 = vmatprep.subr.bf16.mxu1 %v11956_v27  ;;  %v439_v0 = vpop.permute.xlu1 %438  ;;  %v437_v2 = vpop.permute.xlu0 %436  ;;  %v598_v51 = vsub.f32 %v13487_v32, %v18418_v16  ;;  %v18421_v21 = vand.u32 4294901760, %v13614_v31 }
  0xc5   : > { %18417 = vst [vmem:[#allocation35_spill] sm:$0xff] %v13654_v3  ;;  %v605_v49 = vsub.f32 %v13483_v18, %v18419_v36  ;;  %v505_v17 = vand.u32 4294901760, %v439_v0  ;;  %v502_v14 = vand.u32 4294901760, %v437_v2  ;;  %11713 = vmatprep.subr.bf16.mxu0 %v13654_v3  ;;  %v11960_v16 = vpack.c.bf16 %v13421_v22, %v13425_v24 }
  0xc6   : > { %v13669_v46 = vpack.c.bf16 %v18421_v21, %v18420_v5  ;;  %10658 = vmatmul.mubr.f32.gmra.mrb[6].mxu1 %v13631_v56  ;;  %v18423_v36 = vand.u32 4294901760, %v13587_v40  ;;  %v18424_v21 = vand.u32 4294901760, %v13612_v53  ;;  %v11720_v22 = vpack.c.bf16 %v592_v28, %v585_v50 }
  0xc7   : > { %11715 = vmatpush3.bf16.msra.mxu0 %v13654_v3  ;;  %v13684_v55 = vsub.f32 %v439_v0, %v505_v17  ;;  %v13688_v18 = vsub.f32 %v437_v2, %v502_v14  ;;  %11959 = vmatpush3.bf16.msra.mxu1 %v11956_v27  ;;  %v554_v3 = vand.u32 4294901760, %v553_v9  ;;  %v18425_v24 = vand.u32 4294901760, %v13504_v61 }
  0xc8   : > { %18422 = vst [vmem:[#allocation36_spill] sm:$0xff] %v13669_v46  ;;  %v563_v5 = vsub.f32 %v13587_v40, %v18423_v36  ;;  %v573_v6 = vsub.f32 %v13612_v53, %v18424_v21  ;;  %v13686_v46 = vpack.c.bf16 %v505_v17, %v502_v14  ;;  %10692 = vmatprep.mubr.f32.mxu1 %v13648_v29  ;;  %v18426_v40 = vand.u32 4294901760, %v13500_v54 }
  0xc9   : > { %11961 = vmatprep.subr.bf16.mxu1 %v11960_v16  ;;  %v612_v36 = vsub.f32 %v13504_v61, %v18425_v24  ;;  %v18427_v0 = vand.u32 4294901760, %v13656_v20  ;;  %v18428_v17 = vand.u32 4294901760, %v13652_v52  ;;  %v688_v9 = vand.u32 4294901760, %v13684_v55 }
  0xca   : > { %v619_v21 = vsub.f32 %v13500_v54, %v18426_v40  ;;  %v681_v27 = vand.u32 4294901760, %v13688_v18  ;;  %11717 = vmatprep.subr.bf16.mxu0 %v13686_v46  ;;  %v599_v28 = vand.u32 4294901760, %v598_v51  ;;  %v606_v50 = vand.u32 4294901760, %v605_v49 }
  0xcb   : > { %v13701_v2 = vpack.c.bf16 %v18428_v17, %v18427_v0  ;;  %11719 = vmatpush3.bf16.msra.mxu0 %v13686_v46  ;;  %v11964_v14 = vpack.c.bf16 %v13433_v43, %v13437_v45  ;;  %v564_v40 = vand.u32 4294901760, %v563_v5  ;;  %11963 = vmatpush3.bf16.msra.mxu1 %v11960_v16  ;;  %v613_v24 = vand.u32 4294901760, %v612_v36 }
  0xcc   : > { %11721 = vmatprep.subr.bf16.mxu0 %v11720_v22  ;;  %v620_v0 = vand.u32 4294901760, %v619_v21  ;;  %v13713_v17 = vpack.c.bf16 %v688_v9, %v681_v27  ;;  %v11724_v51 = vpack.c.bf16 %v606_v50, %v599_v28  ;;  %v18430_v49 = vand.u32 4294901760, %v13534_v8 }
  0xcd   : > { %18429 = vst [vmem:[#allocation37_spill] sm:$0xff] %v13701_v2  ;;  %11965 = vmatprep.subr.bf16.mxu1 %v11964_v14  ;;  %v18431_v43 = vand.u32 4294901760, %v13530_v41  ;;  %v574_v16 = vand.u32 4294901760, %v573_v6  ;;  %v11968_v5 = vpack.c.bf16 %v13445_v63, %v13449_v4  ;;  %v18432_v28 = vand.u32 4294901760, %v13573_v33 }
  0xce   : > { %10377 = vmatmul.mubr.f32.vlgmr.msra.gmra.mrb[0].mxu0 %v554_v3  ;;  %v626_v2 = vsub.f32 %v13534_v8, %v18430_v49  ;;  %v11728_v36 = vpack.c.bf16 %v620_v0, %v613_v24  ;;  %v18433_v49 = vand.u32 4294901760, %v13569_v34  ;;  %v11972_v63 = vpack.c.bf16 %v13457_v26, %v13461_v30 }
  0xcf   : > { %v633_v45 = vsub.f32 %v13530_v41, %v18431_v43  ;;  %11723 = vmatpush3.bf16.msra.mxu0 %v11720_v22  ;;  %10379 = vmatprep.mubr.f32.mxu0 %v564_v40  ;;  %v640_v50 = vsub.f32 %v13573_v33, %v18432_v28  ;;  %v18434_v4 = vand.u32 4294901760, %v13618_v60  ;;  %v18435_v22 = vand.u32 4294901760, %v13614_v31 }
  0xd0   : > { %11967 = vmatpush3.bf16.msra.mxu1 %v11964_v14  ;;  %11725 = vmatprep.subr.bf16.mxu0 %v11724_v51  ;;  %v627_v3 = vand.u32 4294901760, %v626_v2  ;;  %v647_v43 = vsub.f32 %v13569_v34, %v18433_v49  ;;  %v13740_v0 = vsub.f32 %v13507_v62, %v13528_v7 }
  0xd1   : > { %11969 = vmatprep.subr.bf16.mxu1 %v11968_v5  ;;  %v634_v21 = vand.u32 4294901760, %v633_v45  ;;  %v654_v6 = vsub.f32 %v13618_v60, %v18434_v4  ;;  %v661_v2 = vsub.f32 %v13614_v31, %v18435_v22  ;;  %v641_v40 = vand.u32 4294901760, %v640_v50 }
  0xd2   : > { %10380 = vmatmul.mubr.f32.gmra.mrb[2].mxu0 %v574_v16  ;;  %v648_v24 = vand.u32 4294901760, %v647_v43  ;;  %18436 = vst [vmem:[#allocation38_spill] sm:$0xff] %v13740_v0  ;;  %v18438_v16 = vand.u32 4294901760, %v13656_v20  ;;  %v13767_v50 = vsub.f32 %v13547_v38, %v13577_v42  ;;  %v13778_v4 = vsub.f32 %v13580_v10, %v13609_v25 }
  0xd3   : > { %11727 = vmatpush3.bf16.msra.mxu0 %v11724_v51  ;;  %10414 = vmatprep.mubr.f32.mxu0 %v13341_v19  ;;  %v11732_v14 = vpack.c.bf16 %v634_v21, %v627_v3  ;;  %v655_v26 = vand.u32 4294901760, %v654_v6  ;;  %v662_v30 = vand.u32 4294901760, %v661_v2  ;;  %v13745_v51 = vsub.f32 %v13510_v12, %v13537_v15  ;;  %v13755_v21 = vpop.permute.xlu0 %2910 }
  0xd4   : > { %11971 = vmatpush3.bf16.msra.mxu1 %v11968_v5  ;;  %11729 = vmatprep.subr.bf16.mxu0 %v11728_v36  ;;  %v11736_v45 = vpack.c.bf16 %v648_v24, %v641_v40  ;;  %v668_v5 = vsub.f32 %v13656_v20, %v18438_v16  ;;  %v18439_v3 = vand.u32 4294901760, %v13652_v52  ;;  %v13760_v12 = vsub.f32 %v13540_v13, %v13565_v11 }
  0xd5   : > { %11973 = vmatprep.subr.bf16.mxu1 %v11972_v63  ;;  %18437 = vst [vmem:[#allocation39_spill] sm:$0xff] %v13745_v51  ;;  %v11740_v28 = vpack.c.bf16 %v662_v30, %v655_v26  ;;  %18441 = vst [vmem:[#allocation41_spill] sm:$0xff] %v13767_v50  ;;  %v689_v13 = vsub.f32 %v13684_v55, %v688_v9  ;;  %v13789_v9 = vsub.f32 %v13584_v39, %v13622_v47 }
  0xd6   : > { %v675_v62 = vsub.f32 %v13652_v52, %v18439_v3  ;;  %18440 = vst [vmem:[#allocation40_spill] sm:$0xff] %v13760_v12  ;;  %v669_v49 = vand.u32 4294901760, %v668_v5  ;;  %18442 = vst [vmem:[#allocation42_spill] sm:$0xff] %v13778_v4  ;;  %v13794_v10 = vsub.f32 %v13599_v58, %v13631_v56  ;;  %v18118_v39 = vand.u32 4294901760, %v13648_v29  ;;  %v18445_v5 = vld [vmem:[#allocation22_spill] sm:$0xff] }
  0xd7   : > { %11731 = vmatpush3.bf16.msra.mxu0 %v11728_v36  ;;  %v13753_v36 = vpop.permute.xlu1 %2912  ;;  %v13783_v6 = vpop.permute.xlu0 %2914  ;;  %18443 = vst [vmem:[#allocation43_spill] sm:$0xff] %v13789_v9  ;;  %v690_v2 = vand.u32 4294901760, %v689_v13  ;;  %v11752_v58 = vpack.c.bf16 %v13469_v57, %v13473_v59  ;;  %v18122_v30 = vand.u32 4294901760, %v13755_v21  ;;  %v18446_v3 = vld [vmem:[#allocation18_spill] sm:$0xff] }
  0xd8   : > { %11975 = vmatpush3.bf16.msra.mxu1 %v11972_v63  ;;  %11733 = vmatprep.subr.bf16.mxu0 %v11732_v14  ;;  %v676_v43 = vand.u32 4294901760, %v675_v62  ;;  %v682_v63 = vsub.f32 %v13688_v18, %v681_v27  ;;  %18444 = vst [vmem:[#allocation44_spill] sm:$0xff] %v13794_v10  ;;  %v18121_v26 = vand.u32 4294901760, %v13753_v36  ;;  %v11756_v62 = vpack.c.bf16 %v18446_v3, %v13487_v32  ;;  %v18448_v32 = vld [vmem:[#allocation12_spill] sm:$0xff] }
  0xd9   : > { %11977 = vmatprep.subr.bf16.mxu1 %v13386_v37  ;;  %v13830_v59 = vsub.f32 %v13755_v21, %v18122_v30 }
  0xda   : > { %v11744_v27 = vpack.c.bf16 %v676_v43, %v669_v49  ;;  %v683_v22 = vand.u32 4294901760, %v682_v63  ;;  %v13825_v57 = vsub.f32 %v13753_v36, %v18121_v26  ;;  %v18120_v43 = vand.u32 4294901760, %v13783_v6 }
  0xdb   : > { %11735 = vmatpush3.bf16.msra.mxu0 %v11732_v14  ;;  %10693 = vmatmul.mubr.f32.vlgmr.msra.gmra.mrb[0].mxu1 %v13740_v0  ;;  %v13781_v38 = vpop.permute.xlu1 %2916  ;;  %v13802_v24 = vpop.permute.xlu0 %2918 }
  0xdc   : > { %11979 = vmatpush3.bf16.msra.mxu1 %v13386_v37  ;;  %11737 = vmatprep.subr.bf16.mxu0 %v11736_v45  ;;  %v11748_v14 = vpack.c.bf16 %v690_v2, %v683_v22  ;;  %v18119_v49 = vand.u32 4294901760, %v13781_v38  ;;  %v13845_v13 = vsub.f32 %v13783_v6, %v18120_v43  ;;  %v18451_v22 = vld [vmem:[#allocation28_spill] sm:$0xff]  ;;  %v18125_v2 = vand.u32 4294901760, %v13825_v57 }
  0xdd   : > { %11981 = vmatprep.subr.bf16.mxu1 %v13382_v35  ;;  %10695 = vmatprep.mubr.f32.mxu1 %v13745_v51  ;;  %v18129_v43 = vand.u32 4294901760, %v13802_v24 }
  0xde   : > { %v13840_v63 = vsub.f32 %v13781_v38, %v18119_v49  ;;  %18450 = vst [vmem:[#allocation45_spill] sm:$0xff] %v13845_v13 }
  0xdf   : > { %11739 = vmatpush3.bf16.msra.mxu0 %v11736_v45  ;;  %10696 = vmatmul.mubr.f32.gmra.mrb[2].mxu1 %v13760_v12  ;;  %v13800_v40 = vpop.permute.xlu1 %2920  ;;  %v13816_v16 = vpop.permute.xlu0 %2922  ;;  %v13877_v29 = vsub.f32 %v13802_v24, %v18129_v43  ;;  %v11768_v43 = vpack.c.bf16 %v13569_v34, %v13573_v33  ;;  %v18463_v34 = vld [vmem:[#allocation8_spill] sm:$0xff]  ;;  %v18465_v33 = vand.u32 4294901760, %v13760_v12  ;;  %v18494_v12 = vld [vmem:[#allocation17_spill] sm:$0xff] }
  0xe0   : > { %11983 = vmatpush3.bf16.msra.mxu1 %v13382_v35  ;;  %11741 = vmatprep.subr.bf16.mxu0 %v11740_v28  ;;  %18449 = vst [vmem:[#allocation18_spill] sm:$0xff] %v13840_v63  ;;  %v18128_v49 = vand.u32 4294901760, %v13800_v40 }
  0xe1   : > { %11985 = vmatprep.subr.bf16.mxu1 %v13396_v48  ;;  %10698 = vmatprep.mubr.f32.mxu1 %v13767_v50 }
  0xe2   : > { %v13872_v30 = vsub.f32 %v13800_v40, %v18128_v49  ;;  %v18456_v49 = vand.u32 4294901760, %v13840_v63 }
  0xe3   : > { %11743 = vmatpush3.bf16.msra.mxu0 %v11740_v28  ;;  %10699 = vmatmul.mubr.f32.gmra.mrb[4].mxu1 %v13778_v4  ;;  %v13814_v45 = vpop.permute.xlu1 %2924  ;;  %v18447_v28 = vld [vmem:[#allocation26_spill] sm:$0xff]  ;;  %v13854_v3 = vpop.permute.xlu0 %2926 }
  0xe4   : > { %11987 = vmatpush3.bf16.msra.mxu1 %v13396_v48  ;;  %11745 = vmatprep.subr.bf16.mxu0 %v11744_v27  ;;  %v18133_v26 = vand.u32 4294901760, %v13814_v45  ;;  %v18138_v63 = vand.u32 4294901760, %v13854_v3 }
  0xe5   : > { %11989 = vmatprep.subr.bf16.mxu1 %v13411_v1  ;;  %10701 = vmatprep.mubr.f32.mxu1 %v13789_v9 }
  0xe7   : > { %11747 = vmatpush3.bf16.msra.mxu0 %v11744_v27  ;;  %10702 = vmatmul.mubr.f32.gmra.mrb[6].mxu1 %v13794_v10  ;;  %v11760_v27 = vpack.c.bf16 %v13500_v54, %v13504_v61  ;;  %v18454_v61 = vld [vmem:[#allocation14_spill] sm:$0xff] }
  0xe8   : > { %11991 = vmatpush3.bf16.msra.mxu1 %v13411_v1  ;;  %11749 = vmatprep.subr.bf16.mxu0 %v11748_v14 }
  0xe9   : > { %11993 = vmatprep.subr.bf16.mxu1 %v13423_v23  ;;  %10736 = vmatprep.mubr.f32.mxu1 %v18118_v39  ;;  %v18452_v39 = vld [vmem:[#allocation6_spill] sm:$0xff] }
  0xeb   : > { %11751 = vmatpush3.bf16.msra.mxu0 %v11748_v14  ;;  %v18126_v14 = vand.u32 4294901760, %v13830_v59 }
  0xec   : > { %11995 = vmatpush3.bf16.msra.mxu1 %v13423_v23  ;;  %11753 = vmatprep.subr.bf16.mxu0 %v11752_v58 }
  0xed   : > { %11997 = vmatprep.subr.bf16.mxu1 %v13435_v44  ;;  %v13864_v54 = vpack.c.bf16 %v18125_v2, %v18126_v14  ;;  %v11764_v2 = vpack.c.bf16 %v13530_v41, %v13534_v8  ;;  %v13894_v8 = vpop.permute.xlu0 %2930  ;;  %v18458_v41 = vld [vmem:[#allocation7_spill] sm:$0xff] }
  0xee   : > { %10415 = vmatmul.mubr.f32.vlgmr.msra.gmra.mrb[0].mxu0 %v18445_v5 }
  0xef   : > { %11755 = vmatpush3.bf16.msra.mxu0 %v11752_v58  ;;  %10417 = vmatprep.mubr.f32.mxu0 %v18447_v28  ;;  %v13852_v58 = vpop.permute.xlu1 %2928  ;;  %18453 = vst [vmem:[#allocation6_spill] sm:$0xff] %v13864_v54  ;;  %v18455_v54 = vand.u32 4294901760, %v13845_v13  ;;  %v18461_v13 = vand.u32 4294901760, %v13872_v30 }
  0xf0   : > { %11999 = vmatpush3.bf16.msra.mxu1 %v13435_v44  ;;  %11757 = vmatprep.subr.bf16.mxu0 %v11756_v62  ;;  %v18137_v14 = vand.u32 4294901760, %v13852_v58 }
  0xf1   : > { %12001 = vmatprep.subr.bf16.mxu1 %v18448_v32 }
  0xf2   : > { %10418 = vmatmul.mubr.f32.gmra.mrb[2].mxu0 %v18451_v22  ;;  %v13888_v22 = vpack.c.bf16 %v18456_v49, %v18455_v54  ;;  %v13902_v49 = vsub.f32 %v13814_v45, %v18133_v26  ;;  %v18460_v26 = vand.u32 4294901760, %v13877_v29 }
  0xf3   : > { %11759 = vmatpush3.bf16.msra.mxu0 %v11756_v62  ;;  %10452 = vmatprep.mubr.f32.mxu0 %v18452_v39  ;;  %v18136_v62 = vand.u32 4294901760, %v13816_v16  ;;  %v13892_v28 = vpop.permute.xlu1 %2932 }
  0xf4   : > { %12003 = vmatpush3.bf16.msra.mxu1 %v18448_v32  ;;  %11761 = vmatprep.subr.bf16.mxu0 %v11760_v27  ;;  %18457 = vst [vmem:[#allocation14_spill] sm:$0xff] %v13888_v22  ;;  %v18459_v22 = vand.u32 4294901760, %v13740_v0  ;;  %v13920_v5 = vpack.c.bf16 %v18461_v13, %v18460_v26  ;;  %v13937_v26 = vsub.f32 %v13854_v3, %v18138_v63 }
  0xf5   : > { %12005 = vmatprep.subr.bf16.mxu1 %v18454_v61  ;;  %v13907_v54 = vsub.f32 %v13816_v16, %v18136_v62  ;;  %v11772_v13 = vpack.c.bf16 %v13614_v31, %v13618_v60  ;;  %v18469_v60 = vld [vmem:[#allocation9_spill] sm:$0xff] }
  0xf6   : > { %18462 = vst [vmem:[#allocation7_spill] sm:$0xff] %v13920_v5  ;;  %v18467_v5 = vand.u32 4294901760, %v13902_v49 }
  0xf7   : > { %11763 = vmatpush3.bf16.msra.mxu0 %v11760_v27  ;;  %v13932_v27 = vsub.f32 %v13852_v58, %v18137_v14  ;;  %v18142_v14 = vand.u32 4294901760, %v13892_v28  ;;  %v18466_v63 = vand.u32 4294901760, %v13907_v54 }
  0xf8   : > { %12007 = vmatpush3.bf16.msra.mxu1 %v18454_v61  ;;  %11765 = vmatprep.subr.bf16.mxu0 %v11764_v2 }
  0xf9   : > { %12009 = vmatprep.subr.bf16.mxu1 %v18458_v41  ;;  %v13966_v62 = vsub.f32 %v13892_v28, %v18142_v14  ;;  %v18473_v14 = vand.u32 4294901760, %v13937_v26 }
  0xfb   : > { %11767 = vmatpush3.bf16.msra.mxu0 %v11764_v2  ;;  %10737 = vmatmul.mubr.f32.vlgmr.msra.gmra.mrb[0].mxu1 %v18459_v22  ;;  %v18464_v22 = vand.u32 4294901760, %v13745_v51  ;;  %v13954_v51 = vpack.c.bf16 %v18467_v5, %v18466_v63  ;;  %v18471_v5 = vand.u32 4294901760, %v13894_v8 }
  0xfc   : > { %12011 = vmatpush3.bf16.msra.mxu1 %v18458_v41  ;;  %11769 = vmatprep.subr.bf16.mxu0 %v11768_v43  ;;  %v13941_v41 = vpop.permute.xlu1 %2936 }
  0xfd   : > { %12013 = vmatprep.subr.bf16.mxu1 %v18463_v34  ;;  %10739 = vmatprep.mubr.f32.mxu1 %v18464_v22  ;;  %v13943_v22 = vpop.permute.xlu0 %2934  ;;  %18468 = vst [vmem:[#allocation8_spill] sm:$0xff] %v13954_v51  ;;  %v13971_v63 = vsub.f32 %v13894_v8, %v18471_v5  ;;  %v18474_v51 = vand.u32 4294901760, %v13932_v27  ;;  %v18477_v5 = vand.u32 4294901760, %v13789_v9 }
  0xfe   : > { %v18150_v2 = vand.u32 4294901760, %v13943_v22 }
  0xff   : > { %11771 = vmatpush3.bf16.msra.mxu0 %v11768_v43  ;;  %10740 = vmatmul.mubr.f32.gmra.mrb[2].mxu1 %v18465_v33  ;;  %v18470_v43 = vand.u32 4294901760, %v13767_v50  ;;  %v18147_v33 = vand.u32 4294901760, %v13941_v41  ;;  %v13984_v50 = vpack.c.bf16 %v18474_v51, %v18473_v14 }
 0x100   : > { %12015 = vmatpush3.bf16.msra.mxu1 %v18463_v34  ;;  %11773 = vmatprep.subr.bf16.mxu0 %v11772_v13  ;;  %v11776_v34 = vpack.c.bf16 %v13652_v52, %v13656_v20  ;;  %v13987_v20 = vpop.permute.xlu1 %2940  ;;  %v14004_v14 = vsub.f32 %v13943_v22, %v18150_v2  ;;  %v18482_v2 = vld [vmem:[#allocation11_spill] sm:$0xff] }
 0x101   : > { %12017 = vmatprep.subr.bf16.mxu1 %v18469_v60  ;;  %10742 = vmatprep.mubr.f32.mxu1 %v18470_v43  ;;  %v18472_v43 = vand.u32 4294901760, %v13778_v4  ;;  %18475 = vst [vmem:[#allocation9_spill] sm:$0xff] %v13984_v50  ;;  %v13989_v52 = vpop.permute.xlu0 %2938  ;;  %v13999_v51 = vsub.f32 %v13941_v41, %v18147_v33  ;;  %v18479_v50 = vand.u32 4294901760, %v13971_v63  ;;  %v18480_v33 = vand.u32 4294901760, %v13966_v62  ;;  %v18487_v4 = vld [vmem:[#allocation25_spill] sm:$0xff] }
 0x102   : > { %v18159_v31 = vand.u32 4294901760, %v13989_v52 }
 0x103   : > { %11775 = vmatpush3.bf16.msra.mxu0 %v11772_v13  ;;  %10743 = vmatmul.mubr.f32.gmra.mrb[4].mxu1 %v18472_v43  ;;  %v18476_v13 = vld [vmem:[#allocation10_spill] sm:$0xff]  ;;  %v18152_v43 = vand.u32 4294901760, %v13987_v20  ;;  %v14016_v9 = vpack.c.bf16 %v18480_v33, %v18479_v50 }
 0x104   : > { %12019 = vmatpush3.bf16.msra.mxu1 %v18469_v60  ;;  %11777 = vmatprep.subr.bf16.mxu0 %v11776_v34  ;;  %v11780_v60 = vpack.c.bf16 %v13684_v55, %v13688_v18  ;;  %v18483_v18 = vld [vmem:[#allocation5_spill] sm:$0xff]  ;;  %v18157_v55 = vand.u32 4294901760, %v13999_v51  ;;  %v14031_v50 = vsub.f32 %v13989_v52, %v18159_v31  ;;  %v18492_v31 = vand.u32 4294901760, %v18452_v39 }
 0x105   : > { %12021 = vmatprep.subr.bf16.mxu1 %v18476_v13  ;;  %10745 = vmatprep.mubr.f32.mxu1 %v18477_v5  ;;  %v18478_v5 = vand.u32 4294901760, %v13794_v10  ;;  %18481 = vst [vmem:[#allocation10_spill] sm:$0xff] %v14016_v9  ;;  %v18486_v9 = vld [vmem:[#allocation13_spill] sm:$0xff] }
 0x106   : > { %v18164_v10 = vand.u32 4294901760, %v14031_v50  ;;  %v18496_v39 = vld [vmem:[#allocation29_spill] sm:$0xff] }
 0x107   : > { %11779 = vmatpush3.bf16.msra.mxu0 %v11776_v34  ;;  %10746 = vmatmul.mubr.f32.gmra.mrb[6].mxu1 %v18478_v5  ;;  %v18158_v34 = vand.u32 4294901760, %v14004_v14  ;;  %v14026_v5 = vsub.f32 %v13987_v20, %v18152_v43 }
 0x108   : > { %12023 = vmatpush3.bf16.msra.mxu1 %v18476_v13  ;;  %11781 = vmatprep.subr.bf16.mxu0 %v11780_v60  ;;  %v18485_v13 = vld [vmem:[#allocation16_spill] sm:$0xff] }
 0x109   : > { %12025 = vmatprep.subr.bf16.mxu1 %v18482_v2  ;;  %10780 = vmatprep.mubr.f32.mxu1 %v18483_v18  ;;  %v14037_v33 = vpack.c.bf16 %v18157_v55, %v18158_v34  ;;  %v18163_v43 = vand.u32 4294901760, %v14026_v5  ;;  %v18491_v34 = vld [vmem:[#allocation15_spill] sm:$0xff] }
 0x10b   : > { %11783 = vmatpush3.bf16.msra.mxu0 %v11780_v60  ;;  %18484 = vst [vmem:[#allocation11_spill] sm:$0xff] %v14037_v33  ;;  %v18488_v60 = vld [vmem:[#allocation30_spill] sm:$0xff]  ;;  %v14051_v55 = vpack.c.bf16 %v18163_v43, %v18164_v10  ;;  %v18493_v33 = vld [vmem:[#allocation21_spill] sm:$0xff]  ;;  %v18500_v43 = vand.u32 4294901760, %v18487_v4  ;;  %v18502_v10 = vld [vmem:[#allocation23_spill] sm:$0xff] }
 0x10c   : > { %12027 = vmatpush3.bf16.msra.mxu1 %v18482_v2  ;;  %11785 = vmatprep.subr.bf16.mxu0 %v18485_v13  ;;  %v18490_v2 = vld [vmem:[#allocation19_spill] sm:$0xff] }
 0x10d   : > { %12029 = vmatprep.subr.bf16.mxu1 %v18486_v9  ;;  %18489 = vst [vmem:[#allocation5_spill] sm:$0xff] %v14051_v55 }
 0x10e   : > { %10453 = vmatmul.mubr.f32.vlgmr.msra.gmra.mrb[0].mxu0 %v18487_v4  ;;  %v18503_v4 = vand.u32 4294901760, %v13612_v53 }
 0x10f   : > { %11787 = vmatpush3.bf16.msra.mxu0 %v18485_v13  ;;  %10455 = vmatprep.mubr.f32.mxu0 %v18488_v60 }
 0x110   : > { %12031 = vmatpush3.bf16.msra.mxu1 %v18486_v9  ;;  %11789 = vmatprep.subr.bf16.mxu0 %v18490_v2  ;;  %v18495_v9 = vld [vmem:[#allocation24_spill] sm:$0xff] }
 0x111   : > { %12033 = vmatprep.subr.bf16.mxu1 %v18491_v34 }
 0x112   : > { %10456 = vmatmul.mubr.f32.gmra.mrb[2].mxu0 %v13612_v53  ;;  %v18508_v53 = vld [vmem:[#allocation31_spill] sm:$0xff] }
 0x113   : > { %11791 = vmatpush3.bf16.msra.mxu0 %v18490_v2  ;;  %10490 = vmatprep.mubr.f32.mxu0 %v18492_v31  ;;  %v18498_v31 = vld [vmem:[#allocation35_spill] sm:$0xff] }
 0x114   : > { %12035 = vmatpush3.bf16.msra.mxu1 %v18491_v34  ;;  %11793 = vmatprep.subr.bf16.mxu0 %v18493_v33  ;;  %v18499_v34 = vld [vmem:[#allocation20_spill] sm:$0xff] }
 0x115   : > { %12037 = vmatprep.subr.bf16.mxu1 %v18494_v12 }
 0x117   : > { %11795 = vmatpush3.bf16.msra.mxu0 %v18493_v33 }
 0x118   : > { %12039 = vmatpush3.bf16.msra.mxu1 %v18494_v12  ;;  %11797 = vmatprep.subr.bf16.mxu0 %v18495_v9  ;;  %v18497_v12 = vld [vmem:[#allocation32_spill] sm:$0xff] }
 0x119   : > { %12041 = vmatprep.subr.bf16.mxu1 %v13386_v37 }
 0x11b   : > { %11799 = vmatpush3.bf16.msra.mxu0 %v18495_v9  ;;  %10781 = vmatmul.mubr.f32.vlgmr.msra.gmra.mrb[0].mxu1 %v13528_v7 }
 0x11c   : > { %12043 = vmatpush3.bf16.msra.mxu1 %v13386_v37  ;;  %11801 = vmatprep.subr.bf16.mxu0 %v18496_v39 }
 0x11d   : > { %12045 = vmatprep.subr.bf16.mxu1 %v13382_v35  ;;  %10783 = vmatprep.mubr.f32.mxu1 %v13537_v15 }
 0x11f   : > { %11803 = vmatpush3.bf16.msra.mxu0 %v18496_v39  ;;  %10784 = vmatmul.mubr.f32.gmra.mrb[2].mxu1 %v13565_v11 }
 0x120   : > { %12047 = vmatpush3.bf16.msra.mxu1 %v13382_v35  ;;  %11805 = vmatprep.subr.bf16.mxu0 %v18497_v12 }
 0x121   : > { %12049 = vmatprep.subr.bf16.mxu1 %v13396_v48  ;;  %10786 = vmatprep.mubr.f32.mxu1 %v13577_v42 }
 0x123   : > { %11807 = vmatpush3.bf16.msra.mxu0 %v18497_v12  ;;  %10787 = vmatmul.mubr.f32.gmra.mrb[4].mxu1 %v13609_v25 }
 0x124   : > { %12051 = vmatpush3.bf16.msra.mxu1 %v13396_v48  ;;  %11809 = vmatprep.subr.bf16.mxu0 %v18498_v31 }
 0x125   : > { %12053 = vmatprep.subr.bf16.mxu1 %v13411_v1  ;;  %10789 = vmatprep.mubr.f32.mxu1 %v13622_v47 }
 0x127   : > { %11811 = vmatpush3.bf16.msra.mxu0 %v18498_v31  ;;  %10790 = vmatmul.mubr.f32.gmra.mrb[6].mxu1 %v13631_v56 }
 0x128   : > { %12055 = vmatpush3.bf16.msra.mxu1 %v13411_v1  ;;  %11813 = vmatprep.subr.bf16.mxu0 %v13686_v46 }
 0x129   : > { %12057 = vmatprep.subr.bf16.mxu1 %v13423_v23  ;;  %10824 = vmatprep.mubr.f32.mxu1 %v18483_v18  ;;  %v18501_v18 = vand.u32 4294901760, %v18488_v60  ;;  %v18505_v60 = vand.u32 4294901760, %v13755_v21  ;;  %v18513_v21 = vld [vmem:[#allocation33_spill] sm:$0xff] }
 0x12b   : > { %11815 = vmatpush3.bf16.msra.mxu0 %v13686_v46 }
 0x12c   : > { %12059 = vmatpush3.bf16.msra.mxu1 %v13423_v23  ;;  %11817 = vmatprep.subr.bf16.mxu0 %v18499_v34 }
 0x12d   : > { %12061 = vmatprep.subr.bf16.mxu1 %v13435_v44 }
 0x12e   : > { %10491 = vmatmul.mubr.f32.vlgmr.msra.gmra.mrb[0].mxu0 %v18500_v43  ;;  %v356_v43 = vld [vmem:[%s14102_s17] sm:$0xff] }
 0x12f   : > { %11819 = vmatpush3.bf16.msra.mxu0 %v18499_v34  ;;  %10493 = vmatprep.mubr.f32.mxu0 %v18501_v18  ;;  %v18504_v34 = vld [vmem:[#allocation27_spill] sm:$0xff]  ;;  %v18506_v18 = vand.u32 4294901760, %v13753_v36  ;;  %v14124_v0 = vand.u32 4294901760, %v356_v43 }
 0x130   : > { %12063 = vmatpush3.bf16.msra.mxu1 %v13435_v44  ;;  %11821 = vmatprep.subr.bf16.mxu0 %v18502_v10 }
 0x131   : > { %12065 = vmatprep.subr.bf16.mxu1 %v18448_v32  ;;  %v14122_v55 = vpack.c.bf16 %v18506_v18, %v18505_v60  ;;  %v14137_v36 = vsub.f32 %v356_v43, %v14124_v0  ;;  %v18524_v18 = vand.u32 4294901760, %v13852_v58  ;;  %v359_v58 = vld [vmem:[%s14102_s17 + $0x18] sm:$0xff] }
 0x132   : > { %10494 = vmatmul.mubr.f32.gmra.mrb[2].mxu0 %v18503_v4  ;;  %v18510_v4 = vand.u32 4294901760, %v13781_v38 }
 0x133   : > { %11823 = vmatpush3.bf16.msra.mxu0 %v18502_v10  ;;  %10528 = vmatprep.mubr.f32.mxu0 %v13341_v19  ;;  %18507 = vst [vmem:[#allocation16_spill] sm:$0xff] %v14122_v55  ;;  %v18509_v10 = vand.u32 4294901760, %v13783_v6  ;;  %18512 = vst [vmem:[#allocation25_spill] sm:$0xff] %v14137_v36  ;;  %v18515_v6 = vand.u32 4294901760, %v13800_v40  ;;  %v14152_v43 = vand.u32 4294901760, %v14137_v36  ;;  %v18519_v40 = vand.u32 4294901760, %v13816_v16 }
 0x134   : > { %12067 = vmatpush3.bf16.msra.mxu1 %v18448_v32  ;;  %11825 = vmatprep.subr.bf16.mxu0 %v18504_v34  ;;  %v357_v16 = vld [vmem:[%s14102_s17 + $0x8] sm:$0xff] }
 0x135   : > { %12069 = vmatprep.subr.bf16.mxu1 %v18454_v61  ;;  %v14133_v32 = vpack.c.bf16 %v18510_v4, %v18509_v10  ;;  %18517 = vst [vmem:[#allocation19_spill] sm:$0xff] %v14152_v43  ;;  %v14186_v10 = vand.u32 4294901760, %v357_v16 }
 0x137   : > { %11827 = vmatpush3.bf16.msra.mxu0 %v18504_v34  ;;  %18511 = vst [vmem:[#allocation13_spill] sm:$0xff] %v14133_v32  ;;  %v18514_v34 = vand.u32 4294901760, %v13802_v24  ;;  %v18520_v24 = vand.u32 4294901760, %v13814_v45  ;;  %v18523_v45 = vand.u32 4294901760, %v13854_v3  ;;  %v18527_v3 = vand.u32 4294901760, %v13894_v8 }
 0x138   : > { %12071 = vmatpush3.bf16.msra.mxu1 %v18454_v61  ;;  %11829 = vmatprep.subr.bf16.mxu0 %v18508_v53 }
 0x139   : > { %12169 = vmatprep.subr.bf16.mxu1 %v14122_v55  ;;  %v14147_v38 = vpack.c.bf16 %v18515_v6, %v18514_v34  ;;  %v14162_v60 = vpack.c.bf16 %v18520_v24, %v18519_v40  ;;  %v14204_v34 = vsub.f32 %v357_v16, %v14186_v10  ;;  %v14206_v6 = vand.u32 4294901760, %v359_v58  ;;  %v361_v24 = vld [vmem:[%s14102_s17 + $0x28] sm:$0xff] }
 0x13b   : > { %10825 = vmatmul.mubr.f32.vlgmr.msra.gmra.mrb[0].mxu1 %v13528_v7  ;;  %11831 = vmatpush3.bf16.msra.mxu0 %v18508_v53  ;;  %18516 = vst [vmem:[#allocation30_spill] sm:$0xff] %v14147_v38  ;;  %v18518_v7 = vld [vmem:[#allocation36_spill] sm:$0xff]  ;;  %18521 = vst [vmem:[#allocation15_spill] sm:$0xff] %v14162_v60 }
 0x13c   : > { %12171 = vmatpush3.bf16.msra.mxu1 %v14122_v55  ;;  %11833 = vmatprep.subr.bf16.mxu0 %v18513_v21  ;;  %18530 = vst [vmem:[#allocation29_spill] sm:$0xff] %v14204_v34 }
 0x13d   : > { %10827 = vmatprep.mubr.f32.mxu1 %v13537_v15  ;;  %12173 = vmatprep.subr.bf16.mxu1 %v14133_v32  ;;  %v3042_v15 = vsub.f32 %v14137_v36, %v14152_v43 }
 0x13f   : > { %10828 = vmatmul.mubr.f32.gmra.mrb[2].mxu1 %v13565_v11  ;;  %11835 = vmatpush3.bf16.msra.mxu0 %v18513_v21  ;;  %v18522_v11 = vld [vmem:[#allocation37_spill] sm:$0xff]  ;;  %v14181_v53 = vand.u32 4294901760, %v3042_v15  ;;  %v18534_v15 = vand.u32 4294901760, %v13941_v41  ;;  %v14240_v41 = vand.u32 4294901760, %v14204_v34 }
 0x140   : > { %12175 = vmatpush3.bf16.msra.mxu1 %v14133_v32  ;;  %11837 = vmatprep.subr.bf16.mxu0 %v18518_v7  ;;  %v360_v21 = vld [vmem:[%s14102_s17 + $0x20] sm:$0xff] }
 0x141   : > { %10830 = vmatprep.mubr.f32.mxu1 %v13577_v42  ;;  %12177 = vmatprep.subr.bf16.mxu1 %v14147_v38  ;;  %v14177_v42 = vpack.c.bf16 %v18524_v18, %v18523_v45  ;;  %18526 = vst [vmem:[#allocation17_spill] sm:$0xff] %v14181_v53  ;;  %v14227_v45 = vand.u32 4294901760, %v360_v21  ;;  %v14232_v18 = vld [vmem:[%s18063_s5] ss:$0 sm:$0xff]  ;;  %18539 = vst [vmem:[#allocation23_spill] sm:$0xff] %v14240_v41 }
 0x142   : > { %18537 = vst [vmem:[#allocation20_spill] sm:$0xff] %v14232_v18  ;;  %456 = vrot.lane.b32.xlu0 %v14232_v18, %s13126_s12  ;;  %v18545_v18 = vld [vmem:[#allocation18_spill] sm:$0xff] }
 0x143   : > { %10831 = vmatmul.mubr.f32.gmra.mrb[4].mxu1 %v13609_v25  ;;  %11839 = vmatpush3.bf16.msra.mxu0 %v18518_v7  ;;  %18525 = vst [vmem:[#allocation21_spill] sm:$0xff] %v14177_v42  ;;  %v358_v25 = vld [vmem:[%s14102_s17 + $0x10] sm:$0xff]  ;;  %v18532_v7 = vand.u32 4294901760, %v13825_v57 }
 0x144   : > { %12179 = vmatpush3.bf16.msra.mxu1 %v14147_v38  ;;  %11841 = vmatprep.subr.bf16.mxu0 %v18522_v11  ;;  %v18548_v38 = vand.u32 4294901760, %v13987_v20 }
 0x145   : > { %10833 = vmatprep.mubr.f32.mxu1 %v13622_v47  ;;  %12181 = vmatprep.subr.bf16.mxu1 %v14162_v60  ;;  %v18528_v47 = vand.u32 4294901760, %v13892_v28  ;;  %v18531_v28 = vand.u32 4294901760, %v13830_v59  ;;  %v3130_v40 = vsub.f32 %v13825_v57, %v18532_v7 }
 0x147   : > { %10834 = vmatmul.mubr.f32.gmra.mrb[6].mxu1 %v13631_v56  ;;  %11843 = vmatpush3.bf16.msra.mxu0 %v18522_v11  ;;  %v14195_v4 = vpack.c.bf16 %v18528_v47, %v18527_v3  ;;  %v14199_v56 = vand.u32 4294901760, %v358_v25  ;;  %v3123_v8 = vsub.f32 %v13830_v59, %v18531_v28  ;;  %v18538_v3 = vld [vmem:[#allocation22_spill] sm:$0xff]  ;;  %v14244_v47 = vsub.f32 %v359_v58, %v14206_v6 }
 0x148   : > { %12183 = vmatpush3.bf16.msra.mxu1 %v14162_v60  ;;  %11845 = vmatprep.subr.bf16.mxu0 %v13713_v17  ;;  %v14246_v28 = vand.u32 4294901760, %v361_v24  ;;  %v363_v60 = vld [vmem:[%s14102_s17 + $0x38] sm:$0xff]  ;;  %v18547_v58 = vand.u32 4294901760, %v13989_v52  ;;  %v3052_v52 = vsub.f32 %v14204_v34, %v14240_v41 }
 0x149   : > { %18529 = vst [vmem:[#allocation24_spill] sm:$0xff] %v14195_v4  ;;  %12185 = vmatprep.subr.bf16.mxu1 %v14177_v42  ;;  %11000 = vmatprep.mubr.f32.mxu1 %v14181_v53  ;;  %v14225_v16 = vsub.f32 %v358_v25, %v14199_v56  ;;  %v18540_v25 = vld [vmem:[#allocation26_spill] sm:$0xff]  ;;  %18541 = vst [vmem:[#allocation27_spill] sm:$0xff] %v14244_v47  ;;  %v3124_v7 = vand.u32 4294901760, %v3123_v8  ;;  %v14278_v20 = vand.u32 4294901760, %v14244_v47 }
 0x14a   : > { %18542 = vst [vmem:[#allocation31_spill] sm:$0xff] %v14246_v28  ;;  %v14261_v32 = vpack.c.bf16 %v18548_v38, %v18547_v58  ;;  %v14281_v38 = vsub.f32 %v361_v24, %v14246_v28 }
 0x14b   : > { %11847 = vmatpush3.bf16.msra.mxu0 %v13713_v17  ;;  %v18533_v17 = vand.u32 4294901760, %v13943_v22  ;;  %18536 = vst [vmem:[#allocation35_spill] sm:$0xff] %v14225_v16  ;;  %v362_v22 = vld [vmem:[%s14102_s17 + $0x30] sm:$0xff]  ;;  %v14265_v8 = vand.u32 4294901760, %v14225_v16  ;;  %18554 = vst [vmem:[#allocation26_spill] sm:$0xff] %v14278_v20  ;;  %s13134_s17 = smov 24  }
 0x14c   : > { %12187 = vmatpush3.bf16.msra.mxu1 %v14177_v42  ;;  %11849 = vmatprep.subr.bf16.mxu0 %v18485_v13  ;;  %v18546_v42 = vand.u32 4294901760, %v18545_v18  ;;  %18549 = vst [vmem:[#allocation33_spill] sm:$0xff] %v14261_v32 }
 0x14d   : > { %v14221_v11 = vpack.c.bf16 %v18534_v15, %v18533_v17  ;;  %12189 = vmatprep.subr.bf16.mxu1 %v14195_v4  ;;  %v3131_v17 = vand.u32 4294901760, %v3130_v40  ;;  %v18543_v15 = vld [vmem:[#allocation45_spill] sm:$0xff]  ;;  %18550 = vst [vmem:[#allocation36_spill] sm:$0xff] %v14265_v8  ;;  %v14268_v40 = vsub.f32 %v360_v21, %v14227_v45  ;;  %v3062_v55 = vsub.f32 %v14225_v16, %v14265_v8 }
 0x14e   : > { %10529 = vmatmul.mubr.f32.vlgmr.msra.gmra.mrb[0].mxu0 %v18538_v3  ;;  %v18544_v53 = vand.u32 4294901760, %v18543_v15  ;;  %v3144_v43 = vsub.f32 %v18545_v18, %v18546_v42  ;;  %18555 = vst [vmem:[#allocation45_spill] sm:$0xff] %v14281_v38  ;;  %v14283_v42 = vand.u32 4294901760, %v363_v60  ;;  %v18564_v8 = vand.u32 4294901760, %v13907_v54 }
 0x14f   : > { %18535 = vst [vmem:[#allocation32_spill] sm:$0xff] %v14221_v11  ;;  %11851 = vmatpush3.bf16.msra.mxu0 %v18485_v13  ;;  %10531 = vmatprep.mubr.f32.mxu0 %v18540_v25  ;;  %18551 = vst [vmem:[#allocation37_spill] sm:$0xff] %v14268_v40  ;;  %v12200_v21 = vpack.c.bf16 %v3131_v17, %v3124_v7  ;;  %v14303_v17 = vand.u32 4294901760, %v3052_v52  ;;  %v18565_v52 = vand.u32 4294901760, %v13902_v49  ;;  %v14321_v16 = vand.u32 4294901760, %v3062_v55 }
 0x150   : > { %12191 = vmatpush3.bf16.msra.mxu1 %v14195_v4  ;;  %11853 = vmatprep.subr.bf16.mxu0 %v18490_v2  ;;  %v3137_v13 = vsub.f32 %v18543_v15, %v18544_v53  ;;  %v14270_v53 = vand.u32 4294901760, %v362_v22  ;;  %v18553_v4 = vld [vmem:[#allocation28_spill] sm:$0xff]  ;;  %18556 = vst [vmem:[#allocation18_spill] sm:$0xff] %v14283_v42  ;;  %v3145_v24 = vand.u32 4294901760, %v3144_v43  ;;  %v14311_v43 = vsub.f32 %v363_v60, %v14283_v42 }
 0x151   : > { %12193 = vmatprep.subr.bf16.mxu1 %v14221_v11  ;;  %18561 = vst [vmem:[#allocation47_spill] sm:$0xff] %v14303_v17  ;;  %18566 = vst [vmem:[#allocation50_spill] sm:$0xff] %v14321_v16 }
 0x152   : > { %18552 = vst [vmem:[#allocation22_spill] sm:$0xff] %v14270_v53  ;;  %10532 = vmatmul.mubr.f32.gmra.mrb[2].mxu0 %v18553_v4  ;;  %v3138_v58 = vand.u32 4294901760, %v3137_v13  ;;  %v14300_v7 = vsub.f32 %v362_v22, %v14270_v53  ;;  %v3072_v13 = vsub.f32 %v14244_v47, %v14278_v20  ;;  %18563 = vst [vmem:[#allocation49_spill] sm:$0xff] %v14311_v43 }
 0x153   : > { %11855 = vmatpush3.bf16.msra.mxu0 %v18490_v2  ;;  %10566 = vmatprep.mubr.f32.mxu0 %v13341_v19  ;;  %v18557_v2 = vand.u32 4294901760, %v13877_v29  ;;  %v18558_v19 = vand.u32 4294901760, %v13872_v30  ;;  %v3172_v20 = vsub.f32 %v13902_v49, %v18565_v52  ;;  %v18570_v52 = vand.u32 4294901760, %v13937_v26 }
 0x154   : > { %12195 = vmatpush3.bf16.msra.mxu1 %v14221_v11  ;;  %11857 = vmatprep.subr.bf16.mxu0 %v18493_v33  ;;  %v14297_v11 = vand.u32 4294901760, %v14268_v40  ;;  %18560 = vst [vmem:[#allocation46_spill] sm:$0xff] %v14300_v7  ;;  %v12204_v47 = vpack.c.bf16 %v3145_v24, %v3138_v58 }
 0x155   : > { %v3151_v41 = vsub.f32 %v13877_v29, %v18557_v2  ;;  %v3158_v34 = vsub.f32 %v13872_v30, %v18558_v19  ;;  %12197 = vmatprep.subr.bf16.mxu1 %v14261_v32  ;;  %v14308_v2 = vand.u32 4294901760, %v14281_v38  ;;  %v3173_v24 = vand.u32 4294901760, %v3172_v20 }
 0x156   : > { %18559 = vst [vmem:[#allocation28_spill] sm:$0xff] %v14297_v11  ;;  %v3082_v60 = vsub.f32 %v14268_v40, %v14297_v11 }
 0x157   : > { %11859 = vmatpush3.bf16.msra.mxu0 %v18493_v33  ;;  %18562 = vst [vmem:[#allocation48_spill] sm:$0xff] %v14308_v2  ;;  %v3152_v19 = vand.u32 4294901760, %v3151_v41  ;;  %v3159_v22 = vand.u32 4294901760, %v3158_v34  ;;  %v3165_v33 = vsub.f32 %v13907_v54, %v18564_v8  ;;  %v14330_v34 = vand.u32 4294901760, %v3072_v13 }
 0x158   : > { %12199 = vmatpush3.bf16.msra.mxu1 %v14261_v32  ;;  %11861 = vmatprep.subr.bf16.mxu0 %v18495_v9  ;;  %v14326_v32 = vand.u32 4294901760, %v14300_v7  ;;  %v3092_v41 = vsub.f32 %v14281_v38, %v14308_v2  ;;  %v14335_v8 = vand.u32 4294901760, %v14311_v43  ;;  %v18571_v13 = vand.u32 4294901760, %v13932_v27 }
 0x159   : > { %12201 = vmatprep.subr.bf16.mxu1 %v12200_v21  ;;  %18568 = vst [vmem:[#allocation52_spill] sm:$0xff] %v14330_v34  ;;  %v12208_v55 = vpack.c.bf16 %v3159_v22, %v3152_v19  ;;  %v3166_v58 = vand.u32 4294901760, %v3165_v33  ;;  %v14345_v2 = vand.u32 4294901760, %v3082_v60  ;;  %v18574_v22 = vand.u32 4294901760, %v13971_v63 }
 0x15a   : > { %18567 = vst [vmem:[#allocation51_spill] sm:$0xff] %v14326_v32  ;;  %18569 = vst [vmem:[#allocation53_spill] sm:$0xff] %v14335_v8  ;;  %v14351_v20 = vand.u32 4294901760, %v3092_v41  ;;  %v3112_v19 = vsub.f32 %v14311_v43, %v14335_v8  ;;  %v18575_v60 = vand.u32 4294901760, %v13966_v62 }
 0x15b   : > { %11863 = vmatpush3.bf16.msra.mxu0 %v18495_v9  ;;  %11001 = vmatmul.mubr.f32.vlgmr.msra.gmra.mrb[8].mxu1 %v14303_v17  ;;  %v3179_v9 = vsub.f32 %v13937_v26, %v18570_v52  ;;  %v3186_v17 = vsub.f32 %v13932_v27, %v18571_v13  ;;  %18572 = vst [vmem:[#allocation54_spill] sm:$0xff] %v14345_v2 }
 0x15c   : > { %12203 = vmatpush3.bf16.msra.mxu1 %v12200_v21  ;;  %11865 = vmatprep.subr.bf16.mxu0 %v18496_v39  ;;  %v3102_v21 = vsub.f32 %v14300_v7, %v14326_v32  ;;  %18573 = vst [vmem:[#allocation55_spill] sm:$0xff] %v14351_v20  ;;  %v3193_v33 = vsub.f32 %v13971_v63, %v18574_v22 }
 0x15d   : > { %12205 = vmatprep.subr.bf16.mxu1 %v12204_v47  ;;  %11003 = vmatprep.mubr.f32.mxu1 %v14321_v16  ;;  %v3200_v52 = vsub.f32 %v13966_v62, %v18575_v60  ;;  %v3180_v13 = vand.u32 4294901760, %v3179_v9 }
 0x15e   : > { %v14363_v41 = vand.u32 4294901760, %v3102_v21  ;;  %v3194_v22 = vand.u32 4294901760, %v3193_v33  ;;  %v18580_v21 = vand.u32 4294901760, %v14031_v50  ;;  %v18581_v33 = vand.u32 4294901760, %v14026_v5 }
 0x15f   : > { %11867 = vmatpush3.bf16.msra.mxu0 %v18496_v39  ;;  %11004 = vmatmul.mubr.f32.gmra.mrb[10].mxu1 %v14330_v34  ;;  %v12212_v39 = vpack.c.bf16 %v3173_v24, %v3166_v58  ;;  %v3187_v34 = vand.u32 4294901760, %v3186_v17  ;;  %v3201_v16 = vand.u32 4294901760, %v3200_v52  ;;  %v18578_v58 = vand.u32 4294901760, %v14004_v14 }
 0x160   : > { %12207 = vmatpush3.bf16.msra.mxu1 %v12204_v47  ;;  %11869 = vmatprep.subr.bf16.mxu0 %v18497_v12  ;;  %18576 = vst [vmem:[#allocation56_spill] sm:$0xff] %v14363_v41  ;;  %v14367_v47 = vand.u32 4294901760, %v3112_v19  ;;  %v18579_v24 = vand.u32 4294901760, %v13999_v51  ;;  %v3221_v19 = vsub.f32 %v14031_v50, %v18580_v21  ;;  %v3228_v52 = vsub.f32 %v14026_v5, %v18581_v33 }
 0x161   : > { %12209 = vmatprep.subr.bf16.mxu1 %v12208_v55  ;;  %11006 = vmatprep.mubr.f32.mxu1 %v14345_v2  ;;  %v12216_v60 = vpack.c.bf16 %v3187_v34, %v3180_v13  ;;  %v3207_v17 = vsub.f32 %v14004_v14, %v18578_v58  ;;  %v12256_v21 = vpack.c.bf16 %v13999_v51, %v14004_v14  ;;  %v18599_v14 = vld [vmem:[#allocation16_spill] sm:$0xff] }
 0x162   : > { %18577 = vst [vmem:[#allocation57_spill] sm:$0xff] %v14367_v47  ;;  %v3214_v9 = vsub.f32 %v13999_v51, %v18579_v24  ;;  %v3229_v58 = vand.u32 4294901760, %v3228_v52  ;;  %v18597_v52 = vld [vmem:[#allocation44_spill] sm:$0xff] }
 0x163   : > { %11871 = vmatpush3.bf16.msra.mxu0 %v18497_v12  ;;  %11007 = vmatmul.mubr.f32.gmra.mrb[12].mxu1 %v14351_v20  ;;  %v12220_v12 = vpack.c.bf16 %v3201_v16, %v3194_v22  ;;  %v3208_v34 = vand.u32 4294901760, %v3207_v17  ;;  %v3222_v22 = vand.u32 4294901760, %v3221_v19  ;;  %v18595_v19 = vld [vmem:[#allocation43_spill] sm:$0xff] }
 0x164   : > { %12211 = vmatpush3.bf16.msra.mxu1 %v12208_v55  ;;  %11873 = vmatprep.subr.bf16.mxu0 %v18498_v31  ;;  %v3215_v55 = vand.u32 4294901760, %v3214_v9 }
 0x165   : > { %12213 = vmatprep.subr.bf16.mxu1 %v12212_v39  ;;  %11009 = vmatprep.mubr.f32.mxu1 %v14363_v41 }
 0x166   : > { %v12224_v16 = vpack.c.bf16 %v3215_v55, %v3208_v34 }
 0x167   : > { %11875 = vmatpush3.bf16.msra.mxu0 %v18498_v31  ;;  %11010 = vmatmul.mubr.f32.gmra.mrb[14].mxu1 %v14367_v47  ;;  %v18582_v31 = vld [vmem:[#allocation34_spill] sm:$0xff] }
 0x168   : > { %12215 = vmatpush3.bf16.msra.mxu1 %v12212_v39  ;;  %11877 = vmatprep.subr.bf16.mxu0 %v13686_v46  ;;  %v18583_v39 = vand.u32 4294901760, %v18582_v31 }
 0x169   : > { %12217 = vmatprep.subr.bf16.mxu1 %v12216_v60  ;;  %11044 = vmatprep.mubr.f32.mxu1 %v14124_v0 }
 0x16a   : > { %v1361_v13 = vsub.f32 %v18582_v31, %v18583_v39  ;;  %v18598_v31 = vand.u32 4294901760, %v18597_v52 }
 0x16b   : > { %11879 = vmatpush3.bf16.msra.mxu0 %v13686_v46  ;;  %v12228_v46 = vpack.c.bf16 %v3229_v58, %v3222_v22  ;;  %v18600_v22 = vld [vmem:[#allocation29_spill] sm:$0xff] }
 0x16c   : > { %12219 = vmatpush3.bf16.msra.mxu1 %v12216_v60  ;;  %11881 = vmatprep.subr.bf16.mxu0 %v13386_v37  ;;  %v1362_v17 = vand.u32 4294901760, %v1361_v13  ;;  %v1431_v39 = vsub.f32 %v18597_v52, %v18598_v31  ;;  %v12260_v13 = vpack.c.bf16 %v14026_v5, %v14031_v50  ;;  %v14460_v58 = vld [vmem:[%s18062_s4] sm:$0xff]  ;;  %v381_v5 = vld [vmem:[%s18062_s4 + $0x8] sm:$0xff]  ;;  %v18601_v50 = vld [vmem:[#allocation35_spill] sm:$0xff] }
 0x16d   : > { %12221 = vmatprep.subr.bf16.mxu1 %v12220_v12  ;;  %2223 = vrot.lane.b32.xlu1 %v14460_v58, %s13126_s12 }
 0x16e   : > { %10567 = vmatmul.mubr.f32.vlgmr.msra.gmra.mrb[0].mxu0 %v18538_v3  ;;  %v1432_v51 = vand.u32 4294901760, %v1431_v39  ;;  %2225 = vrot.lane.b32.xlu0 %v381_v5, %s13126_s12 }
 0x16f   : > { %11883 = vmatpush3.bf16.msra.mxu0 %v13386_v37  ;;  %10569 = vmatprep.mubr.f32.mxu0 %v18540_v25  ;;  %v12232_v37 = vpack.c.bf16 %v13825_v57, %v13830_v59  ;;  %v18587_v59 = vld [vmem:[#allocation39_spill] sm:$0xff] }
 0x170   : > { %12223 = vmatpush3.bf16.msra.mxu1 %v12220_v12  ;;  %11885 = vmatprep.subr.bf16.mxu0 %v13382_v35  ;;  %v18593_v12 = vld [vmem:[#allocation42_spill] sm:$0xff] }
 0x171   : > { %12225 = vmatprep.subr.bf16.mxu1 %v12224_v16  ;;  %v18594_v34 = vand.u32 4294901760, %v18593_v12 }
 0x172   : > { %10570 = vmatmul.mubr.f32.gmra.mrb[2].mxu0 %v18553_v4  ;;  %v18588_v4 = vand.u32 4294901760, %v18587_v59 }
 0x173   : > { %11887 = vmatpush3.bf16.msra.mxu0 %v13382_v35  ;;  %10604 = vmatprep.mubr.f32.mxu0 %v1362_v17  ;;  %v12236_v35 = vpack.c.bf16 %v18545_v18, %v18543_v15  ;;  %v18589_v18 = vld [vmem:[#allocation40_spill] sm:$0xff]  ;;  %v18591_v15 = vld [vmem:[#allocation41_spill] sm:$0xff]  ;;  %v1411_v55 = vsub.f32 %v18593_v12, %v18594_v34  ;;  %v14468_v17 = vsel %vm2235_vm0, %v381_v5, 0 }
 0x174   : > { %12227 = vmatpush3.bf16.msra.mxu1 %v12224_v16  ;;  %11889 = vmatprep.subr.bf16.mxu0 %v13396_v48  ;;  %v18590_v3 = vand.u32 4294901760, %v18589_v18  ;;  %v18592_v60 = vand.u32 4294901760, %v18591_v15  ;;  %v18619_v12 = vld [vmem:[#allocation8_spill] sm:$0xff]  ;;  %v18620_v34 = vld [vmem:[#allocation9_spill] sm:$0xff] }
 0x175   : > { %12229 = vmatprep.subr.bf16.mxu1 %v12228_v46  ;;  %v1412_v33 = vand.u32 4294901760, %v1411_v55  ;;  %v18621_v55 = vld [vmem:[#allocation10_spill] sm:$0xff] }
 0x176   : > { %v1391_v25 = vsub.f32 %v18589_v18, %v18590_v3  ;;  %v1401_v24 = vsub.f32 %v18591_v15, %v18592_v60  ;;  %v18610_v18 = vld [vmem:[#allocation20_spill] sm:$0xff]  ;;  %v18611_v3 = vld [vmem:[#allocation33_spill] sm:$0xff]  ;;  %v18615_v15 = vld [vmem:[#allocation14_spill] sm:$0xff] }
 0x177   : > { %11891 = vmatpush3.bf16.msra.mxu0 %v13396_v48  ;;  %v12240_v48 = vpack.c.bf16 %v13872_v30, %v13877_v29  ;;  %v18585_v29 = vld [vmem:[#allocation38_spill] sm:$0xff] }
 0x178   : > { %12231 = vmatpush3.bf16.msra.mxu1 %v12228_v46  ;;  %11893 = vmatprep.subr.bf16.mxu0 %v13411_v1  ;;  %v18586_v30 = vand.u32 4294901760, %v18585_v29  ;;  %v1392_v9 = vand.u32 4294901760, %v1391_v25  ;;  %v382_v46 = vld [vmem:[%s18062_s4 + $0x10] sm:$0xff]  ;;  %v18612_v25 = vld [vmem:[#allocation6_spill] sm:$0xff] }
 0x179   : > { %12233 = vmatprep.subr.bf16.mxu1 %v12232_v37  ;;  %2227 = vrot.lane.b32.xlu1 %v382_v46, %s13126_s12  ;;  %v18616_v60 = vld [vmem:[#allocation26_spill] sm:$0xff] }
 0x17a   : > { %v1371_v57 = vsub.f32 %v18585_v29, %v18586_v30  ;;  %v18604_v29 = vld [vmem:[#allocation30_spill] sm:$0xff]  ;;  %v18605_v30 = vld [vmem:[#allocation15_spill] sm:$0xff] }
 0x17b   : > { %11895 = vmatpush3.bf16.msra.mxu0 %v13411_v1  ;;  %11045 = vmatmul.mubr.f32.vlgmr.msra.gmra.mrb[8].mxu1 %v14186_v10  ;;  %v12244_v1 = vpack.c.bf16 %v13902_v49, %v13907_v54  ;;  %v1381_v49 = vsub.f32 %v18587_v59, %v18588_v4  ;;  %v385_v59 = vld [vmem:[%s18064_s6] sm:$0xff]  ;;  %v386_v4 = vld [vmem:[%s18064_s6 + $0x8] sm:$0xff] }
 0x17c   : > { %12235 = vmatpush3.bf16.msra.mxu1 %v12232_v37  ;;  %11897 = vmatprep.subr.bf16.mxu0 %v13423_v23  ;;  %v1372_v54 = vand.u32 4294901760, %v1371_v57  ;;  %v18602_v37 = vld [vmem:[#allocation13_spill] sm:$0xff]  ;;  %v18606_v57 = vld [vmem:[#allocation19_spill] sm:$0xff] }
 0x17d   : > { %12237 = vmatprep.subr.bf16.mxu1 %v12236_v35  ;;  %11047 = vmatprep.mubr.f32.mxu1 %v14199_v56 }
 0x17e   : > { %3900 = vrot.lane.b32.xlu1 %v14460_v58, %s13125_s21 }
 0x17f   : > { %11899 = vmatpush3.bf16.msra.mxu0 %v13423_v23  ;;  %11048 = vmatmul.mubr.f32.gmra.mrb[10].mxu1 %v14206_v6  ;;  %v18584_v23 = vld [vmem:[#allocation12_spill] sm:$0xff] }
 0x180   : > { %12239 = vmatpush3.bf16.msra.mxu1 %v12236_v35  ;;  %11901 = vmatprep.subr.bf16.mxu0 %v13435_v44  ;;  %v14477_v35 = vsel %vm2235_vm0, %v382_v46, 0 }
 0x181   : > { %12241 = vmatprep.subr.bf16.mxu1 %v12240_v48  ;;  %11050 = vmatprep.mubr.f32.mxu1 %v14227_v45 }
 0x182   : > { %3904 = vrot.lane.b32.xlu1 %v382_v46, %s13125_s21 }
 0x183   : > { %11903 = vmatpush3.bf16.msra.mxu0 %v13435_v44  ;;  %11051 = vmatmul.mubr.f32.gmra.mrb[12].mxu1 %v14246_v28  ;;  %v12248_v44 = vpack.c.bf16 %v13932_v27, %v13937_v26  ;;  %v12252_v27 = vpack.c.bf16 %v13966_v62, %v13971_v63  ;;  %v1382_v26 = vand.u32 4294901760, %v1381_v49  ;;  %v18596_v62 = vand.u32 4294901760, %v18595_v19  ;;  %v18608_v49 = vld [vmem:[#allocation24_spill] sm:$0xff] }
 0x184   : > { %12243 = vmatpush3.bf16.msra.mxu1 %v12240_v48  ;;  %11905 = vmatprep.subr.bf16.mxu0 %v18584_v23  ;;  %v383_v48 = vld [vmem:[%s18062_s4 + $0x18] sm:$0xff] }
 0x185   : > { %12245 = vmatprep.subr.bf16.mxu1 %v12244_v1  ;;  %11053 = vmatprep.mubr.f32.mxu1 %v14270_v53  ;;  %v1421_v63 = vsub.f32 %v18595_v19, %v18596_v62  ;;  %v2236_v19 = vsel %vm2235_vm0, %v14460_v58, 0 }
 0x186   : > { %2229 = vrot.lane.b32.xlu0 %v383_v48, %s13126_s12  ;;  %6603 = vrot.lane.b32.xlu1 %v385_v59, %s13128_s19  ;;  %v14567_v62 = vand.u32 4294901760, %v2236_v19  ;;  %s13135_s12 = smov 16  }
 0x187   : > { %11907 = vmatpush3.bf16.msra.mxu0 %v18584_v23  ;;  %11054 = vmatmul.mubr.f32.gmra.mrb[14].mxu1 %v14283_v42  ;;  %v1422_v16 = vand.u32 4294901760, %v1421_v63  ;;  %v18603_v23 = vld [vmem:[#allocation27_spill] sm:$0xff] }
 0x188   : > { %12247 = vmatpush3.bf16.msra.mxu1 %v12244_v1  ;;  %11909 = vmatprep.subr.bf16.mxu0 %v18454_v61  ;;  %v14484_v1 = vsel %vm2235_vm0, %v383_v48, 0  ;;  %v14572_v63 = vsub.f32 %v2236_v19, %v14567_v62  ;;  %v14645_v19 = vand.u32 4294901760, %v14468_v17 }
 0x189   : > { %12249 = vmatprep.subr.bf16.mxu1 %v12248_v44  ;;  %11088 = vmatprep.mubr.f32.mxu1 %v14137_v36 }
 0x18a   : > { %3902 = vrot.lane.b32.xlu0 %v381_v5, %s13125_s21  ;;  %7261 = vrot.lane.b32.xlu1 %v18610_v18, %s13127_s24  ;;  %s17978_s24 = scalar_lea.hbm %s18066_s8, %s9635_s18 }
 0x18b   : > { %11911 = vmatpush3.bf16.msra.mxu0 %v18454_v61  ;;  %v1402_v61 = vand.u32 4294901760, %v1401_v24  ;;  %v18617_v24 = vld [vmem:[#allocation7_spill] sm:$0xff] }
 0x18c   : > { %12251 = vmatpush3.bf16.msra.mxu1 %v12248_v44  ;;  %v18607_v44 = vld [vmem:[#allocation21_spill] sm:$0xff] }
 0x18d   : > { %12253 = vmatprep.subr.bf16.mxu1 %v12252_v27 }
 0x18e   : > { %10605 = vmatmul.mubr.f32.vlgmr.msra.gmra.mrb[4].mxu0 %v1372_v54  ;;  %3906 = vrot.lane.b32.xlu0 %v383_v48, %s13125_s21  ;;  %v18609_v54 = vld [vmem:[#allocation32_spill] sm:$0xff] }
 0x18f   : > { %10607 = vmatprep.mubr.f32.mxu0 %v1382_v26  ;;  %v18614_v26 = vld [vmem:[#allocation36_spill] sm:$0xff] }
 0x190   : > { %12255 = vmatpush3.bf16.msra.mxu1 %v12252_v27  ;;  %v18613_v27 = vld [vmem:[#allocation23_spill] sm:$0xff] }
 0x191   : > { %12257 = vmatprep.subr.bf16.mxu1 %v12256_v21 }
 0x192   : > { %10608 = vmatmul.mubr.f32.gmra.mrb[6].mxu0 %v1392_v9  ;;  %6605 = vrot.lane.b32.xlu0 %v386_v4, %s13128_s19  ;;  %v18618_v9 = vld [vmem:[#allocation48_spill] sm:$0xff]  ;;  %s9529_s19 = sshll.u32 %s17130_s13, 4  ;;  %s17980_s19 = int_to_ptr.vmem [resolvable:$true] %s9529_s19 }
 0x193   : > { %10610 = vmatprep.mubr.f32.mxu0 %v1402_v61  ;;  %v18623_v61 = vld [vmem:[#allocation5_spill] sm:$0xff]  ;;  %s13061_s25 = scalar_lea.vmem %s17980_s19, 2048 }
 0x194   : > { %12259 = vmatpush3.bf16.msra.mxu1 %v12256_v21  ;;  %v18622_v21 = vld [vmem:[#allocation11_spill] sm:$0xff]  ;;  %p13062_p11 = scmp.ne.s32.totalorder %s17980_s19, %s13061_s25 }
 0x195   : > { %12261 = vmatprep.subr.bf16.mxu1 %v12260_v13 }
 0x196   : > { %10611 = vmatmul.mubr.f32.gmra.mrb[8].mxu0 %v1412_v33  ;;  %7254 = vrot.lane.b32.xlu0 %v18610_v18, %s13125_s21  ;;  %v14577_v33 = vand.u32 4294901760, %v14572_v63  ;;  %p13063_p12 = pnand %p13062_p11, %p13221_p5 }
 0x197   : > { %10613 = vmatprep.mubr.f32.mxu0 %v1422_v16 }
 0x198   : > { %12263 = vmatpush3.bf16.msra.mxu1 %v12260_v13  ;;  %v2320_v52 = vsub.f32 %v14572_v63, %v14577_v33  ;;  %p13064_p13 = pneg %p13063_p12 }
 0x199   : > { %12265 = vmatprep.subr.bf16.mxu1 %v18599_v14 }
 0x19a   : > { %10614 = vmatmul.mubr.f32.gmra.mrb[10].mxu0 %v1432_v51  ;;  %v14582_v31 = vand.u32 4294901760, %v2320_v52 }
 0x19b   : > { %11089 = vmatmul.mubr.f32.vlgmr.msra.gmra.mrb[8].mxu1 %v18600_v22 }
 0x19c   : > { %12267 = vmatpush3.bf16.msra.mxu1 %v18599_v14  ;;  %11091 = vmatprep.mubr.f32.mxu1 %v18601_v50 }
 0x19d   : > { %12269 = vmatprep.subr.bf16.mxu1 %v18602_v37  ;;  %10852 = vmatprep.mubr.f32.mxu0 %v14582_v31 }
 0x19f   : > { %11092 = vmatmul.mubr.f32.gmra.mrb[10].mxu1 %v18603_v23 }
 0x1a0   : > { %12271 = vmatpush3.bf16.msra.mxu1 %v18602_v37  ;;  %11094 = vmatprep.mubr.f32.mxu1 %v14268_v40 }
 0x1a1   : > { %12273 = vmatprep.subr.bf16.mxu1 %v18604_v29 }
 0x1a3   : > { %11095 = vmatmul.mubr.f32.gmra.mrb[12].mxu1 %v14281_v38 }
 0x1a4   : > { %12275 = vmatpush3.bf16.msra.mxu1 %v18604_v29  ;;  %11097 = vmatprep.mubr.f32.mxu1 %v14300_v7 }
 0x1a5   : > { %12277 = vmatprep.subr.bf16.mxu1 %v18605_v30 }
 0x1a7   : > { %11098 = vmatmul.mubr.f32.gmra.mrb[14].mxu1 %v14311_v43 }
 0x1a8   : > { %12279 = vmatpush3.bf16.msra.mxu1 %v18605_v30  ;;  %11132 = vmatprep.mubr.f32.mxu1 %v18606_v57 }
 0x1a9   : > { %12281 = vmatprep.subr.bf16.mxu1 %v18607_v44 }
 0x1ac   : > { %12283 = vmatpush3.bf16.msra.mxu1 %v18607_v44 }
 0x1ad   : > { %12285 = vmatprep.subr.bf16.mxu1 %v18608_v49 }
 0x1b0   : > { %12287 = vmatpush3.bf16.msra.mxu1 %v18608_v49 }
 0x1b1   : > { %12289 = vmatprep.subr.bf16.mxu1 %v18609_v54 }
 0x1b4   : > { %12291 = vmatpush3.bf16.msra.mxu1 %v18609_v54 }
 0x1b5   : > { %12293 = vmatprep.subr.bf16.mxu1 %v18611_v3 }
 0x1b8   : > { %12295 = vmatpush3.bf16.msra.mxu1 %v18611_v3 }
 0x1b9   : > { %12297 = vmatprep.subr.bf16.mxu1 %v18612_v25 }
 0x1bb   : > { %11133 = vmatmul.mubr.f32.vlgmr.msra.gmra.mrb[8].mxu1 %v18613_v27 }
 0x1bc   : > { %12299 = vmatpush3.bf16.msra.mxu1 %v18612_v25  ;;  %11135 = vmatprep.mubr.f32.mxu1 %v18614_v26 }
 0x1bd   : > { %12301 = vmatprep.subr.bf16.mxu1 %v18615_v15 }
 0x1bf   : > { %11136 = vmatmul.mubr.f32.gmra.mrb[10].mxu1 %v18616_v60 }
 0x1c0   : > { %12303 = vmatpush3.bf16.msra.mxu1 %v18615_v15  ;;  %11138 = vmatprep.mubr.f32.mxu1 %v14297_v11 }
 0x1c1   : > { %12305 = vmatprep.subr.bf16.mxu1 %v18617_v24 }
 0x1c3   : > { %11139 = vmatmul.mubr.f32.gmra.mrb[12].mxu1 %v18618_v9 }
 0x1c4   : > { %12307 = vmatpush3.bf16.msra.mxu1 %v18617_v24  ;;  %11141 = vmatprep.mubr.f32.mxu1 %v14326_v32 }
 0x1c5   : > { %12309 = vmatprep.subr.bf16.mxu1 %v18619_v12 }
 0x1c7   : > { %11142 = vmatmul.mubr.f32.gmra.mrb[14].mxu1 %v14335_v8  ;;  %v14673_v8 = vand.u32 4294901760, %v14484_v1 }
 0x1c8   : > { %12311 = vmatpush3.bf16.msra.mxu1 %v18619_v12  ;;  %11176 = vmatprep.mubr.f32.mxu1 %v14124_v0 }
 0x1c9   : > { %12313 = vmatprep.subr.bf16.mxu1 %v18620_v34 }
 0x1cc   : > { %12315 = vmatpush3.bf16.msra.mxu1 %v18620_v34 }
 0x1cd   : > { %12317 = vmatprep.subr.bf16.mxu1 %v18621_v55 }
 0x1d0   : > { %12319 = vmatpush3.bf16.msra.mxu1 %v18621_v55 }
 0x1d1   : > { %12321 = vmatprep.subr.bf16.mxu1 %v18622_v21 }
 0x1d4   : > { %12323 = vmatpush3.bf16.msra.mxu1 %v18622_v21 }
 0x1d5   : > { %12325 = vmatprep.subr.bf16.mxu1 %v18623_v61 }
 0x1d8   : > { %12327 = vmatpush3.bf16.msra.mxu1 %v18623_v61 }
 0x1d9   : > { %12329 = vmatprep.subr.bf16.mxu1 %v18599_v14 }
 0x1db   : > { %11177 = vmatmul.mubr.f32.vlgmr.msra.gmra.mrb[8].mxu1 %v14186_v10 }
 0x1dc   : > { %12331 = vmatpush3.bf16.msra.mxu1 %v18599_v14  ;;  %11179 = vmatprep.mubr.f32.mxu1 %v14199_v56 }
 0x1dd   : > { %12333 = vmatprep.subr.bf16.mxu1 %v18602_v37 }
 0x1df   : > { %11180 = vmatmul.mubr.f32.gmra.mrb[10].mxu1 %v14206_v6 }
 0x1e0   : > { %12335 = vmatpush3.bf16.msra.mxu1 %v18602_v37  ;;  %11182 = vmatprep.mubr.f32.mxu1 %v14227_v45  ;;  %v18207_v37 = vlaneseq }
 0x1e1   : > { %12337 = vmatprep.subr.bf16.mxu1 %v18604_v29 }
 0x1e2   : > { %v14605_v48 = vshrl.u32 %v18207_v37, 7 }
 0x1e3   : > { %11183 = vmatmul.mubr.f32.gmra.mrb[12].mxu1 %v14246_v28 }
 0x1e4   : > { %12339 = vmatpush3.bf16.msra.mxu1 %v18604_v29  ;;  %11185 = vmatprep.mubr.f32.mxu1 %v14270_v53  ;;  %18624 = vst [vmem:[#allocation34_spill] sm:$0xff] %v14605_v48  ;;  %v14607_v29 = vpop.permute.xlu0 %456  ;;  %v14627_v15 = vsub.s32 2, %v14605_v48  ;;  %v14632_v12 = vsub.s32 3, %v14605_v48  ;;  %v14637_v55 = vsub.s32 4, %v14605_v48  ;;  %v14642_v61 = vsub.s32 5, %v14605_v48 }
 0x1e5   : > { %12341 = vmatprep.subr.bf16.mxu1 %v18605_v30 }
 0x1e6   : > { %18628 = vst [vmem:[#allocation40_spill] sm:$0xff] %v14627_v15  ;;  %18629 = vst [vmem:[#allocation41_spill] sm:$0xff] %v14632_v12 }
 0x1e7   : > { %11186 = vmatmul.mubr.f32.gmra.mrb[14].mxu1 %v14283_v42  ;;  %18630 = vst [vmem:[#allocation42_spill] sm:$0xff] %v14637_v55  ;;  %18631 = vst [vmem:[#allocation43_spill] sm:$0xff] %v14642_v61 }
 0x1e8   : > { %12343 = vmatpush3.bf16.msra.mxu1 %v18605_v30  ;;  %11220 = vmatprep.mubr.f32.mxu1 %v14124_v0  ;;  %v14610_v30 = vsub.s32 0, %v14605_v48 }
 0x1e9   : > { %12345 = vmatprep.subr.bf16.mxu1 %v18607_v44 }
 0x1ea   : > { %18625 = vst [vmem:[#allocation12_spill] sm:$0xff] %v14610_v30 }
 0x1ec   : > { %12347 = vmatpush3.bf16.msra.mxu1 %v18607_v44 }
 0x1ed   : > { %12349 = vmatprep.subr.bf16.mxu1 %v18608_v49 }
 0x1f0   : > { %12351 = vmatpush3.bf16.msra.mxu1 %v18608_v49 }
 0x1f1   : > { %12353 = vmatprep.subr.bf16.mxu1 %v18609_v54 }
 0x1f4   : > { %12355 = vmatpush3.bf16.msra.mxu1 %v18609_v54  ;;  %v14618_v54 = vsub.s32 1, %v14605_v48 }
 0x1f5   : > { %12357 = vmatprep.subr.bf16.mxu1 %v18611_v3 }
 0x1f6   : > { %18627 = vst [vmem:[#allocation39_spill] sm:$0xff] %v14618_v54 }
 0x1f8   : > { %12359 = vmatpush3.bf16.msra.mxu1 %v18611_v3 }
 0x1fb   : > { %11221 = vmatmul.mubr.f32.vlgmr.msra.gmra.mrb[8].mxu1 %v14186_v10 }
 0x1fc   : > { %11223 = vmatprep.mubr.f32.mxu1 %v14199_v56 }
 0x1ff   : > { %11224 = vmatmul.mubr.f32.gmra.mrb[10].mxu1 %v14206_v6 }
 0x200   : > { %11226 = vmatprep.mubr.f32.mxu1 %v14227_v45 }
 0x203   : > { %11227 = vmatmul.mubr.f32.gmra.mrb[12].mxu1 %v14246_v28 }
 0x204   : > { %11229 = vmatprep.mubr.f32.mxu1 %v14270_v53 }
 0x207   : > { %11230 = vmatmul.mubr.f32.gmra.mrb[14].mxu1 %v14283_v42 }
 0x20e   : > { %v10826_v39 = vpop.f32.mrb[0].mxu1 }
 0x20f   : > { %v2173_v13 = vpop.f32.mrb[1].mxu1 }
 0x212   : > { %v14592_v16 = vpop.f32.mrb[2].mxu1 }
 0x213   : > { %v14594_v51 = vpop.f32.mrb[3].mxu1 }
 0x216   : > { %v14596_v14 = vpop.f32.mrb[4].mxu1 }
 0x217   : > { %v14598_v58 = vpop.f32.mrb[5].mxu1 }
 0x21a   : > { %v14600_v5 = vpop.f32.mrb[6].mxu1 }
 0x21b   : > { %v14602_v46 = vpop.f32.mrb[7].mxu1 }
 0x241   : > { %v10568_v44 = vpop.f32.mrb[0].mxu0 }
 0x242   : > { %v14613_v59 = vadd.f32 %v10568_v44, %v14607_v29  ;;  %v1207_v4 = vpop.f32.mrb[1].mxu0  ;;  %v14650_v44 = vsub.s32 6, %v14605_v48 }
 0x244   : > { %18626 = vst [vmem:[#allocation38_spill] sm:$0xff] %v14613_v59  ;;  %v5852_v49 = vrot.slane %v14613_v59, %v14610_v30  ;;  %v5863_v25 = vrot.slane %v14613_v59, %v14618_v54  ;;  %v5874_v24 = vrot.slane %v14613_v59, %v14627_v15  ;;  %v5885_v34 = vrot.slane %v14613_v59, %v14632_v12 }
 0x245   : > { %v14620_v18 = vpop.f32.mrb[2].mxu0  ;;  %v5896_v21 = vrot.slane %v14613_v59, %v14637_v55  ;;  %v5907_v52 = vrot.slane %v14613_v59, %v14642_v61  ;;  %18632 = vst [vmem:[#allocation44_spill] sm:$0xff] %v14650_v44 }
 0x246   : > { %5858 = vbcast.lane.b32.xlu0 %v5852_v49, 264  ;;  %5854 = vbcast.lane.b32.xlu1 %v5852_v49, 256  ;;  %v14622_v3 = vpop.f32.mrb[3].mxu0  ;;  %v14654_v49 = vsub.f32 %v14468_v17, %v14645_v19  ;;  %v14670_v17 = vand.u32 4294901760, %v14477_v35 }
 0x24a   : > { %5869 = vbcast.lane.b32.xlu0 %v5863_v25, 264  ;;  %5865 = vbcast.lane.b32.xlu1 %v5863_v25, 256  ;;  %v5918_v25 = vrot.slane %v14613_v59, %v14650_v44 }
 0x24e   : > { %5880 = vbcast.lane.b32.xlu0 %v5874_v24, 264  ;;  %5876 = vbcast.lane.b32.xlu1 %v5874_v24, 256  ;;  %v14659_v24 = vsub.s32 7, %v14605_v48 }
 0x250   : > { %18633 = vst [vmem:[#allocation16_spill] sm:$0xff] %v14659_v24 }
 0x252   : > { %5891 = vbcast.lane.b32.xlu0 %v5885_v34, 264  ;;  %5887 = vbcast.lane.b32.xlu1 %v5885_v34, 256  ;;  %v14662_v34 = vand.u32 4294901760, %v14654_v49 }
 0x254   : > { %v2330_v9 = vsub.f32 %v14654_v49, %v14662_v34 }
 0x256   : > { %5902 = vbcast.lane.b32.xlu0 %v5896_v21, 264  ;;  %5898 = vbcast.lane.b32.xlu1 %v5896_v21, 256  ;;  %v14665_v21 = vadd.f32 %v1207_v4, %v14607_v29  ;;  %v14691_v43 = vand.u32 4294901760, %v2330_v9 }
 0x258   : > { %18634 = vst [vmem:[#allocation13_spill] sm:$0xff] %v14665_v21  ;;  %v5764_v11 = vrot.slane %v14665_v21, %v14610_v30  ;;  %v5775_v38 = vrot.slane %v14665_v21, %v14618_v54 }
 0x25a   : > { %5913 = vbcast.lane.b32.xlu0 %v5907_v52, 264  ;;  %5909 = vbcast.lane.b32.xlu1 %v5907_v52, 256  ;;  %v5929_v52 = vrot.slane %v14613_v59, %v14659_v24  ;;  %v14681_v59 = vsub.f32 %v14477_v35, %v14670_v17 }
 0x25e   : > { %5924 = vbcast.lane.b32.xlu0 %v5918_v25, 264  ;;  %5920 = vbcast.lane.b32.xlu1 %v5918_v25, 256 }
 0x261   : > { %v10606_v37 = vpop.f32.mrb[4].mxu0 }
 0x262   : > { %v12676_v48 = vadd.f32 %v10826_v39, %v10606_v37  ;;  %5935 = vbcast.lane.b32.xlu0 %v5929_v52, 264  ;;  %5931 = vbcast.lane.b32.xlu1 %v5929_v52, 256  ;;  %v1364_v25 = vpop.f32.mrb[5].mxu0  ;;  %v14685_v39 = vsub.f32 %v14484_v1, %v14673_v8  ;;  %v5786_v1 = vrot.slane %v14665_v21, %v14627_v15 }
 0x263   : > { %v12677_v32 = vadd.f32 %v2173_v13, %v1364_v25 }
 0x264   : > { %v2248_v4 = vand.u32 4294901760, %v12676_v48 }
 0x265   : > { %v2245_v60 = vand.u32 4294901760, %v12677_v32  ;;  %v10609_v26 = vpop.f32.mrb[6].mxu0 }
 0x266   : > { %v2366_v37 = vsub.f32 %v12676_v48, %v2248_v4  ;;  %v12678_v13 = vadd.f32 %v14592_v16, %v10609_v26  ;;  %v1384_v52 = vpop.f32.mrb[7].mxu0  ;;  %5770 = vbcast.lane.b32.xlu0 %v5764_v11, 264  ;;  %5766 = vbcast.lane.b32.xlu1 %v5764_v11, 256 }
 0x267   : > { %v14688_v25 = vpack.c.bf16 %v2248_v4, %v2245_v60  ;;  %v2359_v27 = vsub.f32 %v12677_v32, %v2245_v60  ;;  %v12679_v57 = vadd.f32 %v14594_v51, %v1384_v52  ;;  %v5797_v32 = vrot.slane %v14665_v21, %v14632_v12 }
 0x268   : > { %v2367_v35 = vand.u32 4294901760, %v2366_v37  ;;  %v2254_v7 = vand.u32 4294901760, %v12678_v13  ;;  %v14705_v52 = vand.u32 4294901760, %v14681_v59 }
 0x269   : > { %v2360_v48 = vand.u32 4294901760, %v2359_v27  ;;  %v2251_v26 = vand.u32 4294901760, %v12679_v57  ;;  %v10612_v16 = vpop.f32.mrb[8].mxu0  ;;  %12073 = vmatprep.subr.bf16.mxu0 %v14688_v25  ;;  %v14700_v11 = vpack.c.bf16 %v2366_v37, %v2359_v27 }
 0x26a   : > { %v2380_v60 = vsub.f32 %v12678_v13, %v2254_v7  ;;  %v12680_v9 = vadd.f32 %v14596_v14, %v10612_v16  ;;  %v1404_v51 = vpop.f32.mrb[9].mxu0  ;;  %12075 = vmatpush3.bf16.msra.mxu0 %v14688_v25  ;;  %5781 = vbcast.lane.b32.xlu0 %v5775_v38, 264  ;;  %v2368_v4 = vsub.f32 %v2366_v37, %v2367_v35 }
 0x26b   : > { %v14707_v40 = vpack.c.bf16 %v2254_v7, %v2251_v26  ;;  %v2373_v23 = vsub.f32 %v12679_v57, %v2251_v26  ;;  %v12681_v50 = vadd.f32 %v14598_v58, %v1404_v51  ;;  %5777 = vbcast.lane.b32.xlu1 %v5775_v38, 256  ;;  %v2361_v22 = vsub.f32 %v2359_v27, %v2360_v48 }
 0x26c   : > { %v2381_v36 = vand.u32 4294901760, %v2380_v60  ;;  %v2260_v47 = vand.u32 4294901760, %v12680_v9  ;;  %v2369_v13 = vand.u32 4294901760, %v2368_v4  ;;  %v14710_v41 = vpack.c.bf16 %v2367_v35, %v2360_v48 }
 0x26d   : > { %v2374_v14 = vand.u32 4294901760, %v2373_v23  ;;  %v2257_v16 = vand.u32 4294901760, %v12681_v50  ;;  %v10615_v20 = vpop.f32.mrb[10].mxu0  ;;  %12077 = vmatprep.subr.bf16.mxu0 %v14707_v40  ;;  %v2362_v37 = vand.u32 4294901760, %v2361_v22  ;;  %v14713_v2 = vpack.c.bf16 %v2380_v60, %v2373_v23 }
 0x26e   : > { %v2394_v7 = vsub.f32 %v12680_v9, %v2260_v47  ;;  %v12682_v57 = vadd.f32 %v14600_v5, %v10615_v20  ;;  %v1424_v26 = vpop.f32.mrb[11].mxu0  ;;  %12079 = vmatpush3.bf16.msra.mxu0 %v14707_v40  ;;  %5792 = vbcast.lane.b32.xlu0 %v5786_v1, 264  ;;  %v2382_v38 = vsub.f32 %v2380_v60, %v2381_v36  ;;  %v14718_v27 = vand.u32 4294901760, %v14685_v39 }
 0x26f   : > { %v14720_v58 = vpack.c.bf16 %v2260_v47, %v2257_v16  ;;  %v2387_v35 = vsub.f32 %v12681_v50, %v2257_v16  ;;  %v12683_v48 = vadd.f32 %v14602_v46, %v1424_v26  ;;  %5788 = vbcast.lane.b32.xlu1 %v5786_v1, 256  ;;  %v12088_v22 = vpack.c.bf16 %v2369_v13, %v2362_v37 }
 0x270   : > { %v2395_v51 = vand.u32 4294901760, %v2394_v7  ;;  %v2266_v4 = vand.u32 4294901760, %v12682_v57  ;;  %v2375_v9 = vsub.f32 %v2373_v23, %v2374_v14  ;;  %v2383_v42 = vand.u32 4294901760, %v2382_v38 }
 0x271   : > { %v2388_v20 = vand.u32 4294901760, %v2387_v35  ;;  %v2263_v5 = vand.u32 4294901760, %v12683_v48  ;;  %12081 = vmatprep.subr.bf16.mxu0 %v14720_v58  ;;  %v14724_v53 = vpack.c.bf16 %v2394_v7, %v2387_v35  ;;  %v14726_v60 = vpack.c.bf16 %v2381_v36, %v2374_v14 }
 0x272   : > { %v2408_v28 = vsub.f32 %v12682_v57, %v2266_v4  ;;  %12083 = vmatpush3.bf16.msra.mxu0 %v14720_v58  ;;  %5803 = vbcast.lane.b32.xlu0 %v5797_v32, 264  ;;  %v2376_v47 = vand.u32 4294901760, %v2375_v9  ;;  %v2396_v50 = vsub.f32 %v2394_v7, %v2395_v51  ;;  %v2340_v46 = vsub.f32 %v14681_v59, %v14705_v52 }
 0x273   : > { %v14731_v1 = vpack.c.bf16 %v2266_v4, %v2263_v5  ;;  %v2401_v23 = vsub.f32 %v12683_v48, %v2263_v5  ;;  %5799 = vbcast.lane.b32.xlu1 %v5797_v32, 256  ;;  %v2389_v13 = vsub.f32 %v2387_v35, %v2388_v20  ;;  %v14733_v16 = vpack.c.bf16 %v2395_v51, %v2388_v20 }
 0x274   : > { %v2409_v37 = vand.u32 4294901760, %v2408_v28  ;;  %v5808_v36 = vrot.slane %v14665_v21, %v14637_v55  ;;  %v12092_v14 = vpack.c.bf16 %v2383_v42, %v2376_v47  ;;  %v2397_v57 = vand.u32 4294901760, %v2396_v50 }
 0x275   : > { %v2402_v26 = vand.u32 4294901760, %v2401_v23  ;;  %12085 = vmatprep.subr.bf16.mxu0 %v14731_v1  ;;  %v2390_v7 = vand.u32 4294901760, %v2389_v13  ;;  %v2350_v38 = vsub.f32 %v14685_v39, %v14718_v27  ;;  %v12116_v4 = vpack.c.bf16 %v2408_v28, %v2401_v23 }
 0x276   : > { %12087 = vmatpush3.bf16.msra.mxu0 %v14731_v1  ;;  %5814 = vbcast.lane.b32.xlu0 %v5808_v36, 264  ;;  %v2410_v32 = vsub.f32 %v2408_v28, %v2409_v37  ;;  %v5819_v42 = vrot.slane %v14665_v21, %v14642_v61  ;;  %v14745_v20 = vand.u32 4294901760, %v2340_v46  ;;  %v5830_v50 = vrot.slane %v14665_v21, %v14650_v44 }
 0x277   : > { %5810 = vbcast.lane.b32.xlu1 %v5808_v36, 256  ;;  %12089 = vmatprep.subr.bf16.mxu0 %v12088_v22  ;;  %v12096_v35 = vpack.c.bf16 %v2397_v57, %v2390_v7  ;;  %v2403_v48 = vsub.f32 %v2401_v23, %v2402_v26  ;;  %v14741_v51 = vpack.c.bf16 %v2409_v37, %v2402_v26  ;;  %v14748_v47 = vand.u32 4294901760, %v2350_v38 }
 0x278   : > { %v2411_v9 = vand.u32 4294901760, %v2410_v32  ;;  %v14756_v46 = vadd.f32 %v14620_v18, %v14607_v29  ;;  %v14795_v36 = vadd.f32 %v14622_v3, %v14607_v29  ;;  %v18228_v7 = vmov 0.0|0.0  }
 0x279   : > { %10853 = vmatmul.mubr.f32.vlgmr.msra.gmra.mrb[12].mxu0 %v14691_v43  ;;  %v2404_v5 = vand.u32 4294901760, %v2403_v48  ;;  %12528 = vmatprep.subr.bf16.mxu1 %v18228_v7  ;;  %v18226_v38 = vmov 0.0  }
 0x27a   : > { %12091 = vmatpush3.bf16.msra.mxu0 %v12088_v22  ;;  %5825 = vbcast.lane.b32.xlu0 %v5819_v42, 264  ;;  %18635 = vst [vmem:[#allocation30_spill] sm:$0xff] %v14756_v46  ;;  %v5841_v22 = vrot.slane %v14665_v21, %v14659_v24  ;;  %v6028_v23 = vrot.slane %v14756_v46, %v14610_v30  ;;  %18636 = vst [vmem:[#allocation15_spill] sm:$0xff] %v14795_v36 }
 0x27b   : > { %5821 = vbcast.lane.b32.xlu1 %v5819_v42, 256  ;;  %12093 = vmatprep.subr.bf16.mxu0 %v12092_v14  ;;  %v12100_v28 = vpack.c.bf16 %v2411_v9, %v2404_v5  ;;  %v6039_v18 = vrot.slane %v14756_v46, %v14618_v54  ;;  %v6050_v13 = vrot.slane %v14756_v46, %v14627_v15 }
 0x27c   : > { %10855 = vmatprep.mubr.f32.mxu0 %v14745_v20  ;;  %v6072_v37 = vrot.slane %v14756_v46, %v14637_v55  ;;  %v5940_v57 = vrot.slane %v14795_v36, %v14610_v30  ;;  %v5951_v29 = vrot.slane %v14795_v36, %v14618_v54  ;;  %v5962_v3 = vrot.slane %v14795_v36, %v14627_v15  ;;  %v15152_v54 = vld [vmem:[%s18064_s6] sm:$0xff] }
 0x27d   : > { %10856 = vmatmul.mubr.f32.gmra.mrb[14].mxu0 %v14748_v47  ;;  %v5984_v26 = vrot.slane %v14795_v36, %v14637_v55  ;;  %11510 = vmatprep.mubr.msk.f32.mxu1 %vm13130_vm1, %v18226_v38 }
 0x27e   : > { %12095 = vmatpush3.bf16.msra.mxu0 %v12092_v14  ;;  %5836 = vbcast.lane.b32.xlu0 %v5830_v50, 264  ;;  %v6105_v14 = vrot.slane %v14756_v46, %v14659_v24 }
 0x27f   : > { %5832 = vbcast.lane.b32.xlu1 %v5830_v50, 256  ;;  %12097 = vmatprep.subr.bf16.mxu0 %v12096_v35 }
 0x280   : > { %10874 = vmatprep.mubr.f32.mxu0 %v14567_v62 }
 0x282   : > { %12099 = vmatpush3.bf16.msra.mxu0 %v12096_v35  ;;  %5847 = vbcast.lane.b32.xlu0 %v5841_v22, 264 }
 0x283   : > { %5843 = vbcast.lane.b32.xlu1 %v5841_v22, 256  ;;  %12101 = vmatprep.subr.bf16.mxu0 %v12100_v28 }
 0x286   : > { %12103 = vmatpush3.bf16.msra.mxu0 %v12100_v28  ;;  %6034 = vbcast.lane.b32.xlu0 %v6028_v23, 264 }
 0x287   : > { %6030 = vbcast.lane.b32.xlu1 %v6028_v23, 256  ;;  %12105 = vmatprep.subr.bf16.mxu0 %v14700_v11 }
 0x289   : > { %10875 = vmatmul.mubr.f32.vlgmr.msra.gmra.mrb[12].mxu0 %v14645_v19 }
 0x28a   : > { %12107 = vmatpush3.bf16.msra.mxu0 %v14700_v11  ;;  %6045 = vbcast.lane.b32.xlu0 %v6039_v18, 264  ;;  %v6061_v11 = vrot.slane %v14756_v46, %v14632_v12 }
 0x28b   : > { %6041 = vbcast.lane.b32.xlu1 %v6039_v18, 256  ;;  %12109 = vmatprep.subr.bf16.mxu0 %v14713_v2 }
 0x28c   : > { %10877 = vmatprep.mubr.f32.mxu0 %v14670_v17 }
 0x28d   : > { %10878 = vmatmul.mubr.f32.gmra.mrb[14].mxu0 %v14673_v8 }
 0x28e   : > { %12111 = vmatpush3.bf16.msra.mxu0 %v14713_v2  ;;  %6056 = vbcast.lane.b32.xlu0 %v6050_v13, 264  ;;  %v6083_v2 = vrot.slane %v14756_v46, %v14642_v61 }
 0x28f   : > { %6052 = vbcast.lane.b32.xlu1 %v6050_v13, 256  ;;  %12113 = vmatprep.subr.bf16.mxu0 %v14724_v53 }
 0x290   : > { %10896 = vmatprep.mubr.f32.mxu0 %v14572_v63 }
 0x292   : > { %12115 = vmatpush3.bf16.msra.mxu0 %v14724_v53  ;;  %6067 = vbcast.lane.b32.xlu0 %v6061_v11, 264  ;;  %v6094_v53 = vrot.slane %v14756_v46, %v14650_v44 }
 0x293   : > { %6063 = vbcast.lane.b32.xlu1 %v6061_v11, 256  ;;  %12117 = vmatprep.subr.bf16.mxu0 %v12116_v4 }
 0x296   : > { %12119 = vmatpush3.bf16.msra.mxu0 %v12116_v4  ;;  %6078 = vbcast.lane.b32.xlu0 %v6072_v37, 264 }
 0x297   : > { %6074 = vbcast.lane.b32.xlu1 %v6072_v37, 256  ;;  %12121 = vmatprep.subr.bf16.mxu0 %v14688_v25 }
 0x299   : > { %10897 = vmatmul.mubr.f32.vlgmr.msra.gmra.mrb[12].mxu0 %v14654_v49 }
 0x29a   : > { %12123 = vmatpush3.bf16.msra.mxu0 %v14688_v25  ;;  %6089 = vbcast.lane.b32.xlu0 %v6083_v2, 264 }
 0x29b   : > { %6085 = vbcast.lane.b32.xlu1 %v6083_v2, 256  ;;  %12125 = vmatprep.subr.bf16.mxu0 %v14707_v40 }
 0x29c   : > { %10899 = vmatprep.mubr.f32.mxu0 %v14681_v59 }
 0x29d   : > { %10900 = vmatmul.mubr.f32.gmra.mrb[14].mxu0 %v14685_v39 }
 0x29e   : > { %12127 = vmatpush3.bf16.msra.mxu0 %v14707_v40  ;;  %6100 = vbcast.lane.b32.xlu0 %v6094_v53, 264 }
 0x29f   : > { %6096 = vbcast.lane.b32.xlu1 %v6094_v53, 256  ;;  %12129 = vmatprep.subr.bf16.mxu0 %v14720_v58 }
 0x2a0   : > { %10918 = vmatprep.mubr.f32.mxu0 %v14577_v33 }
 0x2a2   : > { %12131 = vmatpush3.bf16.msra.mxu0 %v14720_v58  ;;  %6111 = vbcast.lane.b32.xlu0 %v6105_v14, 264 }
 0x2a3   : > { %6107 = vbcast.lane.b32.xlu1 %v6105_v14, 256  ;;  %12133 = vmatprep.subr.bf16.mxu0 %v14731_v1 }
 0x2a6   : > { %12135 = vmatpush3.bf16.msra.mxu0 %v14731_v1  ;;  %5946 = vbcast.lane.b32.xlu0 %v5940_v57, 264 }
 0x2a7   : > { %5942 = vbcast.lane.b32.xlu1 %v5940_v57, 256  ;;  %12137 = vmatprep.subr.bf16.mxu0 %v14710_v41 }
 0x2a9   : > { %10919 = vmatmul.mubr.f32.vlgmr.msra.gmra.mrb[12].mxu0 %v14662_v34 }
 0x2aa   : > { %12139 = vmatpush3.bf16.msra.mxu0 %v14710_v41  ;;  %5957 = vbcast.lane.b32.xlu0 %v5951_v29, 264  ;;  %v5973_v41 = vrot.slane %v14795_v36, %v14632_v12 }
 0x2ab   : > { %5953 = vbcast.lane.b32.xlu1 %v5951_v29, 256  ;;  %12141 = vmatprep.subr.bf16.mxu0 %v14726_v60 }
 0x2ac   : > { %10921 = vmatprep.mubr.f32.mxu0 %v14705_v52 }
 0x2ad   : > { %10922 = vmatmul.mubr.f32.gmra.mrb[14].mxu0 %v14718_v27 }
 0x2ae   : > { %12143 = vmatpush3.bf16.msra.mxu0 %v14726_v60  ;;  %5968 = vbcast.lane.b32.xlu0 %v5962_v3, 264  ;;  %v5995_v60 = vrot.slane %v14795_v36, %v14642_v61 }
 0x2af   : > { %5964 = vbcast.lane.b32.xlu1 %v5962_v3, 256  ;;  %12145 = vmatprep.subr.bf16.mxu0 %v14733_v16 }
 0x2b0   : > { %10940 = vmatprep.mubr.f32.mxu0 %v14567_v62 }
 0x2b2   : > { %12147 = vmatpush3.bf16.msra.mxu0 %v14733_v16  ;;  %5979 = vbcast.lane.b32.xlu0 %v5973_v41, 264  ;;  %v6006_v16 = vrot.slane %v14795_v36, %v14650_v44 }
 0x2b3   : > { %5975 = vbcast.lane.b32.xlu1 %v5973_v41, 256  ;;  %12149 = vmatprep.subr.bf16.mxu0 %v14741_v51 }
 0x2b6   : > { %12151 = vmatpush3.bf16.msra.mxu0 %v14741_v51  ;;  %5990 = vbcast.lane.b32.xlu0 %v5984_v26, 264 }
 0x2b7   : > { %5986 = vbcast.lane.b32.xlu1 %v5984_v26, 256  ;;  %12153 = vmatprep.subr.bf16.mxu0 %v14688_v25 }
 0x2b9   : > { %10941 = vmatmul.mubr.f32.vlgmr.msra.gmra.mrb[12].mxu0 %v14645_v19 }
 0x2ba   : > { %12155 = vmatpush3.bf16.msra.mxu0 %v14688_v25  ;;  %6001 = vbcast.lane.b32.xlu0 %v5995_v60, 264  ;;  %v6017_v25 = vrot.slane %v14795_v36, %v14659_v24 }
 0x2bb   : > { %5997 = vbcast.lane.b32.xlu1 %v5995_v60, 256  ;;  %12157 = vmatprep.subr.bf16.mxu0 %v14707_v40 }
 0x2bc   : > { %10943 = vmatprep.mubr.f32.mxu0 %v14670_v17 }
 0x2bd   : > { %10944 = vmatmul.mubr.f32.gmra.mrb[14].mxu0 %v14673_v8 }
 0x2be   : > { %12159 = vmatpush3.bf16.msra.mxu0 %v14707_v40  ;;  %6012 = vbcast.lane.b32.xlu0 %v6006_v16, 264 }
 0x2bf   : > { %6008 = vbcast.lane.b32.xlu1 %v6006_v16, 256  ;;  %12161 = vmatprep.subr.bf16.mxu0 %v14720_v58 }
 0x2c0   : > { %10962 = vmatprep.mubr.f32.mxu0 %v14567_v62 }
 0x2c2   : > { %12163 = vmatpush3.bf16.msra.mxu0 %v14720_v58  ;;  %6023 = vbcast.lane.b32.xlu0 %v6017_v25, 264 }
 0x2c3   : > { %6019 = vbcast.lane.b32.xlu1 %v6017_v25, 256  ;;  %12165 = vmatprep.subr.bf16.mxu0 %v14731_v1 }
 0x2c6   : > { %12167 = vmatpush3.bf16.msra.mxu0 %v14731_v1 }
 0x2c9   : > { %10963 = vmatmul.mubr.f32.vlgmr.msra.gmra.mrb[12].mxu0 %v14645_v19 }
 0x2ca   : > { %10965 = vmatprep.mubr.f32.mxu0 %v14670_v17 }
 0x2cd   : > { %10966 = vmatmul.mubr.f32.gmra.mrb[14].mxu0 %v14673_v8 }
 0x2ce   : > { %v11222_v40 = vpop.f32.mrb[8].mxu1  ;;  %11248 = vmatprep.mubr.f32.mxu0 %v14582_v31 }
 0x2cf   : > { %v3916_v58 = vand.u32 4294901760, %v11222_v40  ;;  %v3854_v4 = vpop.f32.mrb[9].mxu1 }
 0x2d0   : > { %v3913_v32 = vand.u32 4294901760, %v3854_v4 }
 0x2d1   : > { %v4034_v35 = vsub.f32 %v11222_v40, %v3916_v58 }
 0x2d2   : > { %v14850_v48 = vpack.c.bf16 %v3916_v58, %v3913_v32  ;;  %v4027_v51 = vsub.f32 %v3854_v4, %v3913_v32  ;;  %v11225_v42 = vpop.f32.mrb[10].mxu1 }
 0x2d3   : > { %v4035_v9 = vand.u32 4294901760, %v4034_v35  ;;  %v3922_v5 = vand.u32 4294901760, %v11225_v42  ;;  %v3866_v1 = vpop.f32.mrb[11].mxu1 }
 0x2d4   : > { %v4028_v28 = vand.u32 4294901760, %v4027_v51  ;;  %v3919_v50 = vand.u32 4294901760, %v3866_v1  ;;  %12361 = vmatprep.subr.bf16.mxu0 %v14850_v48  ;;  %v14853_v22 = vpack.c.bf16 %v4034_v35, %v4027_v51 }
 0x2d5   : > { %v4036_v23 = vsub.f32 %v4034_v35, %v4035_v9  ;;  %v4048_v18 = vsub.f32 %v11225_v42, %v3922_v5  ;;  %12363 = vmatpush3.bf16.msra.mxu0 %v14850_v48 }
 0x2d6   : > { %v4029_v31 = vsub.f32 %v4027_v51, %v4028_v28  ;;  %v14856_v13 = vpack.c.bf16 %v3922_v5, %v3919_v50  ;;  %v4041_v11 = vsub.f32 %v3866_v1, %v3919_v50  ;;  %v11228_v37 = vpop.f32.mrb[12].mxu1  ;;  %v14858_v2 = vpack.c.bf16 %v4035_v9, %v4028_v28 }
 0x2d7   : > { %v4049_v53 = vand.u32 4294901760, %v4048_v18  ;;  %v3928_v14 = vand.u32 4294901760, %v11228_v37  ;;  %v3878_v57 = vpop.f32.mrb[13].mxu1  ;;  %v4037_v29 = vand.u32 4294901760, %v4036_v23 }
 0x2d8   : > { %v4042_v3 = vand.u32 4294901760, %v4041_v11  ;;  %v3925_v41 = vand.u32 4294901760, %v3878_v57  ;;  %12365 = vmatprep.subr.bf16.mxu0 %v14856_v13  ;;  %v4030_v26 = vand.u32 4294901760, %v4029_v31  ;;  %v12396_v60 = vpack.c.bf16 %v4048_v18, %v4041_v11 }
 0x2d9   : > { %v4050_v16 = vsub.f32 %v4048_v18, %v4049_v53  ;;  %v4062_v25 = vsub.f32 %v11228_v37, %v3928_v14  ;;  %12367 = vmatpush3.bf16.msra.mxu0 %v14856_v13 }
 0x2da   : > { %v4043_v40 = vsub.f32 %v4041_v11, %v4042_v3  ;;  %v14862_v58 = vpack.c.bf16 %v3928_v14, %v3925_v41  ;;  %v4055_v4 = vsub.f32 %v3878_v57, %v3925_v41  ;;  %v11231_v32 = vpop.f32.mrb[14].mxu1  ;;  %v12376_v35 = vpack.c.bf16 %v4037_v29, %v4030_v26 }
 0x2db   : > { %v4063_v51 = vand.u32 4294901760, %v4062_v25  ;;  %v3934_v42 = vand.u32 4294901760, %v11231_v32  ;;  %v3890_v9 = vpop.f32.mrb[15].mxu1  ;;  %v4051_v5 = vand.u32 4294901760, %v4050_v16  ;;  %v14864_v1 = vpack.c.bf16 %v4049_v53, %v4042_v3 }
 0x2dc   : > { %v4056_v28 = vand.u32 4294901760, %v4055_v4  ;;  %v3931_v50 = vand.u32 4294901760, %v3890_v9  ;;  %12369 = vmatprep.subr.bf16.mxu0 %v14862_v58  ;;  %v4044_v23 = vand.u32 4294901760, %v4043_v40  ;;  %v12400_v18 = vpack.c.bf16 %v4062_v25, %v4055_v4 }
 0x2dd   : > { %v4064_v31 = vsub.f32 %v4062_v25, %v4063_v51  ;;  %v4076_v37 = vsub.f32 %v11231_v32, %v3934_v42  ;;  %12371 = vmatpush3.bf16.msra.mxu0 %v14862_v58 }
 0x2de   : > { %v4057_v11 = vsub.f32 %v4055_v4, %v4056_v28  ;;  %v14868_v14 = vpack.c.bf16 %v3934_v42, %v3931_v50  ;;  %v4069_v57 = vsub.f32 %v3890_v9, %v3931_v50  ;;  %v12380_v29 = vpack.c.bf16 %v4051_v5, %v4044_v23 }
 0x2df   : > { %v4077_v41 = vand.u32 4294901760, %v4076_v37  ;;  %v4065_v26 = vand.u32 4294901760, %v4064_v31  ;;  %v12432_v16 = vpack.c.bf16 %v4063_v51, %v4056_v28  ;;  %v18651_v28 = vld [vmem:[#allocation52_spill] sm:$0xff]  ;;  %v18652_v31 = vld [vmem:[#allocation54_spill] sm:$0xff] }
 0x2e0   : > { %v4070_v53 = vand.u32 4294901760, %v4069_v57  ;;  %12373 = vmatprep.subr.bf16.mxu0 %v14868_v14  ;;  %v4058_v3 = vand.u32 4294901760, %v4057_v11  ;;  %v12404_v38 = vpack.c.bf16 %v4076_v37, %v4069_v57 }
 0x2e1   : > { %v4078_v7 = vsub.f32 %v4076_v37, %v4077_v41  ;;  %12375 = vmatpush3.bf16.msra.mxu0 %v14868_v14  ;;  %v18653_v37 = vld [vmem:[#allocation55_spill] sm:$0xff] }
 0x2e2   : > { %v4071_v25 = vsub.f32 %v4069_v57, %v4070_v53  ;;  %12377 = vmatprep.subr.bf16.mxu0 %v12376_v35  ;;  %v12384_v40 = vpack.c.bf16 %v4065_v26, %v4058_v3  ;;  %v12436_v32 = vpack.c.bf16 %v4077_v41, %v4070_v53  ;;  %v12475_v11 = vpack.c.bf16 %v18653_v37, %v18652_v31  ;;  %v18654_v57 = vld [vmem:[#allocation56_spill] sm:$0xff]  ;;  %v18656_v53 = vld [vmem:[#allocation25_spill] sm:$0xff]  ;;  %v18664_v37 = vld [vmem:[#allocation19_spill] sm:$0xff] }
 0x2e3   : > { %v4079_v4 = vand.u32 4294901760, %v4078_v7  ;;  %v18657_v3 = vld [vmem:[#allocation29_spill] sm:$0xff] }
 0x2e4   : > { %11249 = vmatmul.mubr.f32.vlgmr.msra.gmra.mrb[16].mxu0 %v14691_v43  ;;  %v4072_v42 = vand.u32 4294901760, %v4071_v25  ;;  %v14902_v43 = vpop.permute.xlu0 %2225  ;;  %v12481_v25 = vpack.c.bf16 %v18657_v3, %v18656_v53  ;;  %v18666_v53 = vld [vmem:[#allocation36_spill] sm:$0xff]  ;;  %v18667_v3 = vld [vmem:[#allocation26_spill] sm:$0xff] }
 0x2e5   : > { %12379 = vmatpush3.bf16.msra.mxu0 %v12376_v35  ;;  %11251 = vmatprep.mubr.f32.mxu0 %v14745_v20  ;;  %v18639_v20 = vmov 0.0|0.0   ;;  %v18648_v35 = vld [vmem:[#allocation47_spill] sm:$0xff] }
 0x2e6   : > { %12381 = vmatprep.subr.bf16.mxu0 %v12380_v29  ;;  %v12388_v51 = vpack.c.bf16 %v4079_v4, %v4072_v42  ;;  %v18659_v4 = vld [vmem:[#allocation27_spill] sm:$0xff] }
 0x2e8   : > { %11252 = vmatmul.mubr.f32.gmra.mrb[18].mxu0 %v14748_v47 }
 0x2e9   : > { %12383 = vmatpush3.bf16.msra.mxu0 %v12380_v29  ;;  %11270 = vmatprep.mubr.f32.mxu0 %v14567_v62  ;;  %v18655_v29 = vld [vmem:[#allocation57_spill] sm:$0xff] }
 0x2ea   : > { %12385 = vmatprep.subr.bf16.mxu0 %v12384_v40  ;;  %v12478_v41 = vpack.c.bf16 %v18655_v29, %v18654_v57 }
 0x2ed   : > { %12387 = vmatpush3.bf16.msra.mxu0 %v12384_v40 }
 0x2ee   : > { %12389 = vmatprep.subr.bf16.mxu0 %v12388_v51 }
 0x2f1   : > { %12391 = vmatpush3.bf16.msra.mxu0 %v12388_v51 }
 0x2f2   : > { %12393 = vmatprep.subr.bf16.mxu0 %v14853_v22 }
 0x2f4   : > { %11271 = vmatmul.mubr.f32.vlgmr.msra.gmra.mrb[16].mxu0 %v14645_v19 }
 0x2f5   : > { %12395 = vmatpush3.bf16.msra.mxu0 %v14853_v22  ;;  %11273 = vmatprep.mubr.f32.mxu0 %v14670_v17 }
 0x2f6   : > { %12397 = vmatprep.subr.bf16.mxu0 %v12396_v60 }
 0x2f8   : > { %11274 = vmatmul.mubr.f32.gmra.mrb[18].mxu0 %v14673_v8 }
 0x2f9   : > { %12399 = vmatpush3.bf16.msra.mxu0 %v12396_v60  ;;  %11292 = vmatprep.mubr.f32.mxu0 %v14572_v63  ;;  %v14905_v63 = vpop.permute.xlu1 %2223 }
 0x2fa   : > { %12401 = vmatprep.subr.bf16.mxu0 %v12400_v18 }
 0x2fd   : > { %12403 = vmatpush3.bf16.msra.mxu0 %v12400_v18 }
 0x2fe   : > { %12405 = vmatprep.subr.bf16.mxu0 %v12404_v38 }
 0x301   : > { %12407 = vmatpush3.bf16.msra.mxu0 %v12404_v38  ;;  %v14947_v38 = vpack.c.bf16 %v14206_v6, %v14199_v56 }
 0x302   : > { %12409 = vmatprep.subr.bf16.mxu0 %v14850_v48 }
 0x304   : > { %11293 = vmatmul.mubr.f32.vlgmr.msra.gmra.mrb[16].mxu0 %v14654_v49  ;;  %v14919_v49 = vpop.permute.xlu1 %2227 }
 0x305   : > { %12411 = vmatpush3.bf16.msra.mxu0 %v14850_v48  ;;  %11295 = vmatprep.mubr.f32.mxu0 %v14681_v59  ;;  %v4578_v59 = vld [vmem:[%s18065_s7] sm:$0xf] }
 0x306   : > { %12413 = vmatprep.subr.bf16.mxu0 %v14856_v13 }
 0x308   : > { %11296 = vmatmul.mubr.f32.gmra.mrb[18].mxu0 %v14685_v39 }
 0x309   : > { %12415 = vmatpush3.bf16.msra.mxu0 %v14856_v13  ;;  %11314 = vmatprep.mubr.f32.mxu0 %v14577_v33  ;;  %v14911_v33 = vpop.permute.xlu0 %2229 }
 0x30a   : > { %12417 = vmatprep.subr.bf16.mxu0 %v14862_v58 }
 0x30d   : > { %12419 = vmatpush3.bf16.msra.mxu0 %v14862_v58  ;;  %v14923_v39 = vpop.permute.xlu0 %3902 }
 0x30e   : > { %12421 = vmatprep.subr.bf16.mxu0 %v14868_v14  ;;  %18637 = vst [vmem:[#allocation21_spill] sm:$0xff] %v14923_v39 }
 0x311   : > { %12423 = vmatpush3.bf16.msra.mxu0 %v14868_v14  ;;  %v14937_v47 = vpop.permute.xlu0 %3906 }
 0x312   : > { %12425 = vmatprep.subr.bf16.mxu0 %v14858_v2  ;;  %18640 = vst [vmem:[#allocation32_spill] sm:$0xff] %v14937_v47 }
 0x314   : > { %11315 = vmatmul.mubr.f32.vlgmr.msra.gmra.mrb[16].mxu0 %v14662_v34  ;;  %v4580_v34 = vsel %vm2235_vm0, %v4578_v59, 0  ;;  %v18660_v59 = vld [vmem:[#allocation37_spill] sm:$0xff]  ;;  %vm9027_vm0 = vcmask 97344  }
 0x315   : > { %12427 = vmatpush3.bf16.msra.mxu0 %v14858_v2  ;;  %11317 = vmatprep.mubr.f32.mxu0 %v14705_v52  ;;  %v14927_v52 = vand.u32 4294901760, %v4580_v34 }
 0x316   : > { %12429 = vmatprep.subr.bf16.mxu0 %v14864_v1 }
 0x317   : > { %v14941_v7 = vsub.f32 %v4580_v34, %v14927_v52  ;;  %v18661_v34 = vld [vmem:[#allocation45_spill] sm:$0xff] }
 0x318   : > { %11318 = vmatmul.mubr.f32.gmra.mrb[18].mxu0 %v14718_v27  ;;  %v14929_v27 = vpop.permute.xlu1 %3900 }
 0x319   : > { %12431 = vmatpush3.bf16.msra.mxu0 %v14864_v1  ;;  %11336 = vmatprep.mubr.f32.mxu0 %v14567_v62  ;;  %18638 = vst [vmem:[#allocation24_spill] sm:$0xff] %v14929_v27  ;;  %v18650_v1 = vld [vmem:[#allocation50_spill] sm:$0xff] }
 0x31a   : > { %12433 = vmatprep.subr.bf16.mxu0 %v12432_v16  ;;  %v12472_v50 = vpack.c.bf16 %v18651_v28, %v18650_v1 }
 0x31d   : > { %12435 = vmatpush3.bf16.msra.mxu0 %v12432_v16 }
 0x31e   : > { %12437 = vmatprep.subr.bf16.mxu0 %v12436_v32 }
 0x321   : > { %12439 = vmatpush3.bf16.msra.mxu0 %v12436_v32  ;;  %v18658_v32 = vld [vmem:[#allocation35_spill] sm:$0xff] }
 0x322   : > { %12441 = vmatprep.subr.bf16.mxu0 %v14850_v48  ;;  %v12484_v42 = vpack.c.bf16 %v18659_v4, %v18658_v32  ;;  %v18668_v4 = vld [vmem:[#allocation28_spill] sm:$0xff] }
 0x324   : > { %11337 = vmatmul.mubr.f32.vlgmr.msra.gmra.mrb[16].mxu0 %v14645_v19 }
 0x325   : > { %12443 = vmatpush3.bf16.msra.mxu0 %v14850_v48  ;;  %11339 = vmatprep.mubr.f32.mxu0 %v14670_v17  ;;  %v14949_v48 = vpop.permute.xlu1 %3904 }
 0x326   : > { %12445 = vmatprep.subr.bf16.mxu0 %v14856_v13  ;;  %18641 = vst [vmem:[#allocation20_spill] sm:$0xff] %v14949_v48 }
 0x328   : > { %11340 = vmatmul.mubr.f32.gmra.mrb[18].mxu0 %v14673_v8 }
 0x329   : > { %12447 = vmatpush3.bf16.msra.mxu0 %v14856_v13  ;;  %11358 = vmatprep.mubr.f32.mxu0 %v14567_v62  ;;  %v14934_v62 = vpack.c.bf16 %v14186_v10, %v14124_v0  ;;  %v4657_v0 = vand.u32 4294901760, %v14941_v7  ;;  %v14954_v10 = vpop.permute.xlu0 %6605  ;;  %v14964_v56 = vpop.permute.xlu1 %6603  ;;  %v18645_v13 = vld [vmem:[#allocation18_spill] sm:$0xff] }
 0x32a   : > { %12449 = vmatprep.subr.bf16.mxu0 %v14862_v58 }
 0x32b   : > { %v4658_v6 = vsub.f32 %v14941_v7, %v4657_v0 }
 0x32d   : > { %12451 = vmatpush3.bf16.msra.mxu0 %v14862_v58  ;;  %v4659_v60 = vand.u32 4294901760, %v4658_v6  ;;  %v18647_v58 = vld [vmem:[#allocation17_spill] sm:$0xff]  ;;  %v14980_v5 = vpop.permute.xlu1 %7261 }
 0x32e   : > { %12453 = vmatprep.subr.bf16.mxu0 %v14868_v14  ;;  %v12469_v9 = vpack.c.bf16 %v18648_v35, %v18647_v58  ;;  %18649 = vst [vmem:[#allocation6_spill] sm:$0xff] %v14980_v5 }
 0x331   : > { %12455 = vmatpush3.bf16.msra.mxu0 %v14868_v14  ;;  %v14990_v18 = vpop.permute.xlu1 %5854 }
 0x332   : > { %12456 = vmatprep.subr.bf16.mxu0 %v18639_v20 }
 0x334   : > { %11359 = vmatmul.mubr.f32.vlgmr.msra.gmra.mrb[16].mxu0 %v14645_v19  ;;  %v18642_v19 = vld [vmem:[#allocation31_spill] sm:$0xff] }
 0x335   : > { %12458 = vmatpush3.bf16.msra.mxu0 %v14934_v62  ;;  %11361 = vmatprep.mubr.f32.mxu0 %v14670_v17  ;;  %v14959_v22 = vpack.c.bf16 %v18642_v19, %v14227_v45  ;;  %v18643_v17 = vmov 0.0   ;;  %v14975_v45 = vpop.permute.xlu0 %7254  ;;  %v14999_v26 = vpop.permute.xlu1 %5865  ;;  %v12487_v19 = vpack.c.bf16 %v18661_v34, %v18660_v59  ;;  %v18671_v34 = vld [vmem:[#allocation53_spill] sm:$0xff] }
 0x336   : > { %12459 = vmatprep.subr.bf16.mxu0 %v18639_v20  ;;  %18646 = vst [vmem:[#allocation33_spill] sm:$0xff] %v14975_v45 }
 0x338   : > { %11362 = vmatmul.mubr.f32.gmra.mrb[18].mxu0 %v14673_v8  ;;  %v18644_v8 = vld [vmem:[#allocation22_spill] sm:$0xff] }
 0x339   : > { %12461 = vmatpush3.bf16.msra.mxu0 %v14947_v38  ;;  %11380 = vmatprep.mubr.msk.f32.mxu0 %vm13130_vm1, %v18643_v17  ;;  %v14972_v2 = vpack.c.bf16 %v18645_v13, %v18644_v8  ;;  %v14985_v23 = vpop.permute.xlu0 %5858  ;;  %v15007_v40 = vpop.permute.xlu1 %5876  ;;  %v18662_v13 = vld [vmem:[#allocation46_spill] sm:$0xff] }
 0x33a   : > { %12462 = vmatprep.subr.bf16.mxu0 %v18639_v20 }
 0x33d   : > { %12464 = vmatpush3.bf16.msra.mxu0 %v14959_v22  ;;  %v14995_v14 = vpop.permute.xlu0 %5869  ;;  %v15019_v6 = vpop.permute.xlu1 %5887 }
 0x33e   : > { %12465 = vmatprep.subr.bf16.mxu0 %v18639_v20 }
 0x341   : > { %12467 = vmatpush3.bf16.msra.mxu0 %v14972_v2  ;;  %v15002_v16 = vpop.permute.xlu0 %5880  ;;  %v15027_v35 = vpop.permute.xlu1 %5898 }
 0x342   : > { %12468 = vmatprep.subr.bf16.mxu0 %v18639_v20 }
 0x344   : > { %11381 = vmatmul.mubr.f32.vlgmr.msra.gmra.mrb[20].mxu0 %v4659_v60  ;;  %v18663_v60 = vld [vmem:[#allocation49_spill] sm:$0xff] }
 0x345   : > { %12470 = vmatpush3.bf16.msra.mxu0 %v12469_v9  ;;  %11399 = vmatprep.mubr.msk.f32.mxu0 %vm13130_vm1, %v18643_v17  ;;  %v15015_v51 = vpop.permute.xlu0 %5891  ;;  %v12490_v58 = vpack.c.bf16 %v18663_v60, %v18662_v13  ;;  %v15036_v1 = vpop.permute.xlu1 %5909 }
 0x346   : > { %12471 = vmatprep.subr.bf16.mxu0 %v18639_v20 }
 0x349   : > { %12473 = vmatpush3.bf16.msra.mxu0 %v12472_v50  ;;  %v15022_v8 = vpop.permute.xlu0 %5902  ;;  %v15043_v50 = vpop.permute.xlu1 %5920 }
 0x34a   : > { %12474 = vmatprep.subr.bf16.mxu0 %v18639_v20 }
 0x34d   : > { %12476 = vmatpush3.bf16.msra.mxu0 %v12475_v11  ;;  %v15030_v9 = vpop.permute.xlu0 %5913  ;;  %v18665_v11 = vld [vmem:[#allocation23_spill] sm:$0xff]  ;;  %v15052_v29 = vpop.permute.xlu1 %5931 }
 0x34e   : > { %12477 = vmatprep.subr.bf16.mxu0 %v18639_v20  ;;  %v12505_v57 = vpack.c.bf16 %v18665_v11, %v18664_v37 }
 0x351   : > { %12479 = vmatpush3.bf16.msra.mxu0 %v12478_v41  ;;  %v15039_v28 = vpop.permute.xlu0 %5924  ;;  %v15064_v32 = vpop.permute.xlu1 %5766 }
 0x352   : > { %12480 = vmatprep.subr.bf16.mxu0 %v18639_v20 }
 0x354   : > { %11400 = vmatmul.mubr.f32.vlgmr.msra.gmra.mrb[20].mxu0 %v14927_v52 }
 0x355   : > { %12482 = vmatpush3.bf16.msra.mxu0 %v12481_v25  ;;  %11418 = vmatprep.mubr.msk.f32.mxu0 %vm13130_vm1, %v18643_v17  ;;  %v15047_v31 = vpop.permute.xlu0 %5935  ;;  %v12508_v25 = vpack.c.bf16 %v18667_v3, %v18666_v53  ;;  %v15073_v13 = vpop.permute.xlu1 %5777  ;;  %v13132_v3 = vmov 1966171168  }
 0x356   : > { %12483 = vmatprep.subr.bf16.mxu0 %v18639_v20 }
 0x359   : > { %12485 = vmatpush3.bf16.msra.mxu0 %v12484_v42  ;;  %v15057_v41 = vpop.permute.xlu0 %5770  ;;  %v18669_v42 = vld [vmem:[#allocation48_spill] sm:$0xff] }
 0x35a   : > { %12486 = vmatprep.subr.bf16.mxu0 %v18639_v20  ;;  %v12511_v59 = vpack.c.bf16 %v18669_v42, %v18668_v4 }
 0x35d   : > { %12488 = vmatpush3.bf16.msra.mxu0 %v12487_v19 }
 0x35e   : > { %12489 = vmatprep.subr.bf16.mxu0 %v18639_v20 }
 0x361   : > { %12491 = vmatpush3.bf16.msra.mxu0 %v12490_v58  ;;  %v15079_v58 = vpop.permute.xlu1 %5788 }
 0x362   : > { %12492 = vmatprep.subr.bf16.mxu0 %v18639_v20 }
 0x364   : > { %11419 = vmatmul.mubr.f32.vlgmr.msra.gmra.mrb[20].mxu0 %v14941_v7  ;;  %v15069_v7 = vpop.permute.xlu0 %5781 }
 0x365   : > { %12494 = vmatpush3.bf16.msra.mxu0 %v14934_v62  ;;  %11437 = vmatprep.mubr.msk.f32.mxu0 %vm13130_vm1, %v18643_v17  ;;  %v15089_v11 = vpop.permute.xlu1 %5799 }
 0x366   : > { %12495 = vmatprep.subr.bf16.mxu0 %v18639_v20 }
 0x368   : > { %v15076_v60 = vpop.permute.xlu0 %5792 }
 0x369   : > { %12497 = vmatpush3.bf16.msra.mxu0 %v14947_v38 }
 0x36a   : > { %12498 = vmatprep.subr.bf16.mxu0 %v18639_v20 }
 0x36c   : > { %v15086_v37 = vpop.permute.xlu0 %5803 }
 0x36d   : > { %12500 = vmatpush3.bf16.msra.mxu0 %v14959_v22 }
 0x36e   : > { %12501 = vmatprep.subr.bf16.mxu0 %v18639_v20 }
 0x371   : > { %12503 = vmatpush3.bf16.msra.mxu0 %v14972_v2 }
 0x372   : > { %12504 = vmatprep.subr.bf16.mxu0 %v18639_v20 }
 0x374   : > { %11438 = vmatmul.mubr.f32.vlgmr.msra.gmra.mrb[20].mxu0 %v4657_v0  ;;  %v18670_v0 = vld [vmem:[#allocation51_spill] sm:$0xff] }
 0x375   : > { %12506 = vmatpush3.bf16.msra.mxu0 %v12505_v57  ;;  %11456 = vmatprep.mubr.msk.f32.mxu0 %vm13130_vm1, %v18643_v17  ;;  %v12514_v19 = vpack.c.bf16 %v18671_v34, %v18670_v0  ;;  %v15092_v57 = vpop.permute.xlu0 %5814 }
 0x376   : > { %12507 = vmatprep.subr.bf16.mxu0 %v18639_v20 }
 0x379   : > { %12509 = vmatpush3.bf16.msra.mxu0 %v12508_v25  ;;  %v15099_v53 = vpop.permute.xlu0 %5825  ;;  %v6119_v25 = vunpack.c.l.s4 %v13132_v3 }
 0x37a   : > { %12510 = vmatprep.subr.bf16.mxu0 %v18639_v20 }
 0x37b   : > { %v6120_v4 = vunpack.c.0.s8 %v6119_v25 }
 0x37d   : > { %12512 = vmatpush3.bf16.msra.mxu0 %v12511_v59  ;;  %v15104_v42 = vpop.permute.xlu0 %5836  ;;  %v18672_v59 = vld [vmem:[#allocation34_spill] sm:$0xff] }
 0x37e   : > { %12513 = vmatprep.subr.bf16.mxu0 %v18639_v20  ;;  %v15107_v0 = vsub.s32 %v6120_v4, %v18672_v59 }
 0x380   : > { %18673 = vst [vmem:[#allocation14_spill] sm:$0xff] %v15107_v0 }
 0x381   : > { %12515 = vmatpush3.bf16.msra.mxu0 %v12514_v19  ;;  %v15117_v3 = vpop.permute.xlu0 %5847 }
 0x382   : > { %12516 = vmatprep.subr.bf16.mxu0 %v18639_v20 }
 0x384   : > { %11457 = vmatmul.mubr.f32.vlgmr.msra.gmra.mrb[20].mxu0 %v14927_v52 }
 0x385   : > { %12518 = vmatpush3.bf16.msra.mxu0 %v14934_v62  ;;  %11475 = vmatprep.mubr.msk.f32.mxu0 %vm13130_vm1, %v18643_v17  ;;  %v15096_v62 = vpop.permute.xlu1 %5810 }
 0x386   : > { %12519 = vmatprep.subr.bf16.mxu0 %v18639_v20 }
 0x389   : > { %12521 = vmatpush3.bf16.msra.mxu0 %v14947_v38  ;;  %v15102_v38 = vpop.permute.xlu1 %5821 }
 0x38a   : > { %12522 = vmatprep.subr.bf16.mxu0 %v18639_v20 }
 0x38d   : > { %12524 = vmatpush3.bf16.msra.mxu0 %v14959_v22  ;;  %v15109_v22 = vpop.permute.xlu1 %5832 }
 0x38e   : > { %12525 = vmatprep.subr.bf16.mxu0 %v18639_v20 }
 0x391   : > { %12527 = vmatpush3.bf16.msra.mxu0 %v14972_v2  ;;  %v15126_v27 = vpop.permute.xlu1 %5843 }
 0x392   : > { %18676 = vst [vmem:[#allocation9_spill] sm:$0xff] %v15126_v27 }
 0x394   : > { %11476 = vmatmul.mubr.f32.vlgmr.msra.gmra.mrb[20].mxu0 %v14927_v52 }
 0x395   : > { %v15138_v36 = vpop.permute.xlu1 %6030 }
 0x39c   : > { %v10964_v34 = vpop.f32.mrb[12].mxu0 }
 0x39d   : > { %v15112_v19 = vadd.f32 %v10964_v34, %v14902_v43  ;;  %v2888_v2 = vpop.f32.mrb[13].mxu0  ;;  %v15130_v34 = vpop.permute.xlu0 %6034 }
 0x39e   : > { %v15115_v48 = vadd.f32 %v2888_v2, %v14905_v63 }
 0x39f   : > { %18674 = vst [vmem:[#allocation7_spill] sm:$0xff] %v15112_v19  ;;  %v6173_v52 = vrot.slane %v15112_v19, %v15107_v0  ;;  %v6166_v39 = vcombine.high %v15112_v19, %v15112_v19 }
 0x3a0   : > { %18675 = vst [vmem:[#allocation8_spill] sm:$0xff] %v15115_v48  ;;  %v15121_v25 = vpop.f32.mrb[14].mxu0  ;;  %v6124_v43 = vrot.slane %v15115_v48, %v15107_v0  ;;  %v6117_v45 = vcombine.high %v15115_v48, %v15115_v48 }
 0x3a1   : > { %v6189_v4 = vrot.slane %v6173_v52, %v15107_v0  ;;  %v15124_v47 = vpop.f32.mrb[15].mxu0  ;;  %v6181_v44 = vcombine.high %v6173_v52, %v6173_v52  ;;  %v15144_v55 = vpop.permute.xlu0 %6045  ;;  %v15147_v12 = vrot.slane %v6166_v39, %v15107_v0 }
 0x3a2   : > { %v15134_v2 = vrot.slane %v6124_v43, %v15107_v0  ;;  %v6132_v15 = vcombine.high %v6124_v43, %v6124_v43  ;;  %v15161_v52 = vpop.permute.xlu1 %6041  ;;  %v15191_v59 = vrot.slane %v6117_v45, %v15107_v0 }
 0x3a3   : > { %v6348_v63 = vrot.slane %v6189_v4, %v14610_v30  ;;  %v15164_v39 = vrot.slane %v6181_v44, %v15107_v0  ;;  %v6211_v43 = vcombine.high %v6189_v4, %v6189_v4 }
 0x3a4   : > { %v6316_v61 = vrot.slane %v15134_v2, %v14610_v30 }
 0x3a5   : > { %v6489_v24 = vmul.f32 %v6348_v63, %v14990_v18  ;;  %v6490_v46 = vmul.f32 %v6348_v63, %v14985_v23  ;;  %v15158_v23 = vld [vmem:[%s18064_s6 + $0x8] sm:$0xff]  ;;  %v15174_v19 = vpop.permute.xlu0 %6056  ;;  %v6352_v4 = vrot.slane %v15164_v39, %v14610_v30  ;;  %v6356_v48 = vrot.slane %v6211_v43, %v14610_v30 }
 0x3a6   : > { %v6474_v63 = vmul.f32 %v6316_v61, %v15057_v41  ;;  %v6473_v5 = vmul.f32 %v6316_v61, %v15064_v32 }
 0x3a7   : > { %v6553_v21 = vmul.f32 %v15152_v54, %v6489_v24  ;;  %v6554_v18 = vmul.f32 %v15158_v23, %v6490_v46  ;;  %v15170_v24 = vrot.slane %v15147_v12, %v15107_v0  ;;  %v15177_v46 = vrot.slane %v6132_v15, %v15107_v0 }
 0x3a8   : > { %v6538_v61 = vmul.f32 %v15158_v23, %v6474_v63  ;;  %v6537_v32 = vmul.f32 %v15152_v54, %v6473_v5  ;;  %v15199_v63 = vpop.permute.xlu1 %6052  ;;  %v6491_v45 = vmul.f32 %v6352_v4, %v14999_v26  ;;  %v6492_v17 = vmul.f32 %v6352_v4, %v14995_v14 }
 0x3a9   : > { %v15180_v44 = vadd.f32 %v14964_v56, %v6553_v21  ;;  %v15183_v41 = vadd.f32 %v14954_v10, %v6554_v18  ;;  %v6364_v18 = vrot.slane %v15170_v24, %v14610_v30  ;;  %v15218_v27 = vpop.permute.xlu0 %6067 }
 0x3aa   : > { %v15202_v5 = vadd.f32 %v14954_v10, %v6538_v61  ;;  %v15205_v43 = vadd.f32 %v14964_v56, %v6537_v32  ;;  %v6320_v32 = vrot.slane %v15177_v46, %v14610_v30  ;;  %v6556_v26 = vmul.f32 %v15158_v23, %v6492_v17 }
 0x3ab   : > { %18677 = vst [vmem:[#allocation10_spill] sm:$0xff] %v15180_v44  ;;  %18678 = vst [vmem:[#allocation11_spill] sm:$0xff] %v15183_v41  ;;  %v6722_v15 = vsel %vm6673_vm2, %v15180_v44, -inf  ;;  %v6725_v21 = vsel %vm6673_vm2, %v15183_v41, -inf  ;;  %v6493_v44 = vmul.f32 %v6356_v48, %v15007_v40  ;;  %v6494_v41 = vmul.f32 %v6356_v48, %v15002_v16 }
 0x3ac   : > { %6723 = vmax.xlane.f32.xlu0 %v6722_v15  ;;  %6726 = vmax.xlane.f32.xlu1 %v6725_v21  ;;  %v6497_v20 = vmul.f32 %v6364_v18, %v15027_v35  ;;  %v6677_v15 = vsel %vm6673_vm2, %v15202_v5, -inf  ;;  %v6555_v21 = vmul.f32 %v15152_v54, %v6491_v45  ;;  %v6498_v61 = vmul.f32 %v6364_v18, %v15022_v8  ;;  %v15234_v18 = vpop.permute.xlu1 %6063 }
 0x3ad   : > { %v6674_v14 = vsel %vm6673_vm2, %v15205_v43, -inf  ;;  %v6557_v48 = vmul.f32 %v15152_v54, %v6493_v44  ;;  %v6558_v16 = vmul.f32 %v15158_v23, %v6494_v41  ;;  %v6162_v40 = vcombine.high %v15134_v2, %v15134_v2 }
 0x3ae   : > { %v15228_v8 = vadd.f32 %v14964_v56, %v6555_v21  ;;  %v15231_v35 = vadd.f32 %v14954_v10, %v6556_v26  ;;  %v6561_v4 = vmul.f32 %v15152_v54, %v6497_v20  ;;  %v6562_v44 = vmul.f32 %v15158_v23, %v6498_v61 }
 0x3af   : > { %v15237_v17 = vadd.f32 %v14964_v56, %v6557_v48  ;;  %v6476_v41 = vmul.f32 %v6320_v32, %v15069_v7  ;;  %v6475_v2 = vmul.f32 %v6320_v32, %v15073_v13  ;;  %v15244_v45 = vrot.slane %v15191_v59, %v15107_v0  ;;  %v15254_v7 = vpop.permute.xlu0 %6078 }
 0x3b0   : > { %6678 = vmax.xlane.f32.xlu0 %v6677_v15  ;;  %6675 = vmax.xlane.f32.xlu1 %v6674_v14  ;;  %v6728_v15 = vsel %vm6673_vm2, %v15228_v8, -inf  ;;  %v6731_v20 = vsel %vm6673_vm2, %v15231_v35, -inf  ;;  %v15251_v21 = vadd.f32 %v14954_v10, %v6558_v16  ;;  %v6324_v61 = vrot.slane %v6162_v40, %v14610_v30 }
 0x3b1   : > { %v6182_v13 = vcombine.high %v15147_v12, %v15147_v12  ;;  %v6213_v32 = vcombine.high %v15164_v39, %v15164_v39  ;;  %v15261_v14 = vadd.f32 %v14964_v56, %v6561_v4  ;;  %v6734_v26 = vsel %vm6673_vm2, %v15237_v17, -inf }
 0x3b2   : > { %v15266_v48 = vadd.f32 %v14954_v10, %v6562_v44  ;;  %v6540_v16 = vmul.f32 %v15158_v23, %v6476_v41  ;;  %v6539_v40 = vmul.f32 %v15152_v54, %v6475_v2  ;;  %v6478_v12 = vmul.f32 %v6324_v61, %v15076_v60 }
 0x3b3   : > { %18679 = vst [vmem:[#allocation5_spill] sm:$0xff] %v15261_v14  ;;  %v6477_v39 = vmul.f32 %v6324_v61, %v15079_v58  ;;  %v6332_v4 = vrot.slane %v15244_v45, %v14610_v30  ;;  %v15279_v44 = vrot.slane %v6182_v13, %v15107_v0  ;;  %v15283_v41 = vadd.f32 %v15121_v25, %v14911_v33  ;;  %v15296_v13 = vpop.permute.xlu0 %6089 }
 0x3b4   : > { %6729 = vmax.xlane.f32.xlu0 %v6728_v15  ;;  %6732 = vmax.xlane.f32.xlu1 %v6731_v20  ;;  %18680 = vst [vmem:[#allocation31_spill] sm:$0xff] %v15266_v48  ;;  %v6737_v15 = vsel %vm6673_vm2, %v15251_v21, -inf  ;;  %v15276_v20 = vpop.permute.xlu1 %6074  ;;  %v6746_v2 = vsel %vm6673_vm2, %v15261_v14, -inf  ;;  %v6749_v60 = vsel %vm6673_vm2, %v15266_v48, -inf  ;;  %v15290_v58 = vadd.f32 %v14954_v10, %v6540_v16 }
 0x3b5   : > { %18681 = vst [vmem:[#allocation22_spill] sm:$0xff] %v15283_v41  ;;  %v15293_v61 = vadd.f32 %v14964_v56, %v6539_v40  ;;  %v6541_v33 = vmul.f32 %v15152_v54, %v6477_v39  ;;  %v6482_v25 = vmul.f32 %v6332_v4, %v15092_v57  ;;  %v6481_v14 = vmul.f32 %v6332_v4, %v15096_v62 }
 0x3b6   : > { %18682 = vst [vmem:[#allocation18_spill] sm:$0xff] %v15290_v58  ;;  %v6212_v16 = vcombine.high %v15170_v24, %v15170_v24  ;;  %v15306_v40 = vrot.slane %v15283_v41, %v15107_v0 }
 0x3b7   : > { %18683 = vst [vmem:[#allocation17_spill] sm:$0xff] %v15293_v61  ;;  %v6680_v57 = vsel %vm6673_vm2, %v15293_v61, -inf  ;;  %v15322_v4 = vadd.f32 %v14964_v56, %v6541_v33 }
 0x3b8   : > { %6735 = vmax.xlane.f32.xlu0 %v6734_v26  ;;  %6738 = vmax.xlane.f32.xlu1 %v6737_v15  ;;  %v6360_v26 = vrot.slane %v6213_v32, %v14610_v30  ;;  %v6542_v15 = vmul.f32 %v15158_v23, %v6478_v12  ;;  %v6368_v32 = vrot.slane %v15279_v44, %v14610_v30  ;;  %v15310_v48 = vpop.permute.xlu1 %6085  ;;  %v6683_v12 = vsel %vm6673_vm2, %v15290_v58, -inf  ;;  %v15326_v58 = vpop.permute.xlu0 %6100 }
 0x3b9   : > { %18685 = vst [vmem:[#allocation50_spill] sm:$0xff] %v15322_v4  ;;  %v15330_v61 = vrot.slane %v15306_v40, %v15107_v0  ;;  %v6372_v33 = vrot.slane %v6212_v16, %v14610_v30  ;;  %v6164_v16 = vcombine.high %v15177_v46, %v15177_v46 }
 0x3ba   : > { %v6496_v62 = vmul.f32 %v6360_v26, %v15015_v51  ;;  %v6495_v39 = vmul.f32 %v6360_v26, %v15019_v6  ;;  %v15319_v24 = vadd.f32 %v14954_v10, %v6542_v15  ;;  %v6500_v51 = vmul.f32 %v6368_v32, %v15030_v9 }
 0x3bb   : > { %v6499_v15 = vmul.f32 %v6368_v32, %v15036_v1  ;;  %v6133_v1 = vcombine.high %v15191_v59, %v15191_v59  ;;  %v15355_v32 = vadd.f32 %v15124_v47, %v14919_v49  ;;  %v6502_v47 = vmul.f32 %v6372_v33, %v15039_v28 }
 0x3bc   : > { %6747 = vmax.xlane.f32.xlu0 %v6746_v2  ;;  %6750 = vmax.xlane.f32.xlu1 %v6749_v60  ;;  %18684 = vst [vmem:[#allocation47_spill] sm:$0xff] %v15319_v24  ;;  %v6546_v2 = vmul.f32 %v15158_v23, %v6482_v25  ;;  %v6545_v60 = vmul.f32 %v15152_v54, %v6481_v14  ;;  %v6689_v14 = vsel %vm6673_vm2, %v15319_v24, -inf  ;;  %v6686_v25 = vsel %vm6673_vm2, %v15322_v4, -inf  ;;  %v15347_v9 = vpop.permute.xlu1 %6096 }
 0x3bd   : > { %v6560_v6 = vmul.f32 %v15158_v23, %v6496_v62  ;;  %v6559_v26 = vmul.f32 %v15152_v54, %v6495_v39  ;;  %18688 = vst [vmem:[#allocation55_spill] sm:$0xff] %v15355_v32  ;;  %v6564_v62 = vmul.f32 %v15158_v23, %v6500_v51  ;;  %v6412_v39 = vrot.slane %v15330_v61, %v14610_v30 }
 0x3be   : > { %v6563_v59 = vmul.f32 %v15152_v54, %v6499_v15  ;;  %v6501_v51 = vmul.f32 %v6372_v33, %v15043_v50  ;;  %v15382_v15 = vrot.slane %v15355_v32, %v15107_v0 }
 0x3bf   : > { %v6522_v33 = vmul.f32 %v6412_v39, %v15130_v34  ;;  %v6163_v34 = vcombine.high %v15244_v45, %v15244_v45 }
 0x3c0   : > { %6684 = vmax.xlane.f32.xlu1 %v6683_v12  ;;  %6681 = vmax.xlane.f32.xlu0 %v6680_v57  ;;  %v15342_v12 = vadd.f32 %v14954_v10, %v6546_v2  ;;  %v15345_v57 = vadd.f32 %v14964_v56, %v6545_v60  ;;  %v15361_v2 = vadd.f32 %v14954_v10, %v6560_v6 }
 0x3c1   : > { %v15364_v60 = vadd.f32 %v14964_v56, %v6559_v26  ;;  %v15376_v6 = vrot.slane %v6133_v1, %v15107_v0  ;;  %v6264_v26 = vcombine.high %v15283_v41, %v15283_v41  ;;  %v15392_v50 = vadd.f32 %v14964_v56, %v6563_v59 }
 0x3c2   : > { %18686 = vst [vmem:[#allocation52_spill] sm:$0xff] %v15342_v12  ;;  %18687 = vst [vmem:[#allocation54_spill] sm:$0xff] %v15345_v57  ;;  %v6701_v46 = vsel %vm6673_vm2, %v15342_v12, -inf  ;;  %v6698_v49 = vsel %vm6673_vm2, %v15345_v57, -inf  ;;  %v15387_v12 = vpop.permute.xlu1 %6107  ;;  %v6743_v28 = vsel %vm6673_vm2, %v15361_v2, -inf  ;;  %v6521_v1 = vmul.f32 %v6412_v39, %v15138_v36 }
 0x3c3   : > { %18689 = vst [vmem:[#allocation56_spill] sm:$0xff] %v15361_v2  ;;  %18690 = vst [vmem:[#allocation57_spill] sm:$0xff] %v15364_v60  ;;  %v6328_v41 = vrot.slane %v6164_v16, %v14610_v30  ;;  %v6215_v57 = vcombine.high %v15355_v32, %v15355_v32  ;;  %v6278_v36 = vrot.slane %v6264_v26, %v15107_v0  ;;  %v6752_v16 = vsel %vm6673_vm2, %v15392_v50, -inf }
 0x3c4   : > { %6690 = vmax.xlane.f32.xlu1 %v6689_v14  ;;  %6687 = vmax.xlane.f32.xlu0 %v6686_v25  ;;  %v15367_v14 = vpop.permute.xlu0 %6111  ;;  %v15385_v25 = vadd.f32 %v14954_v10, %v6564_v62  ;;  %18692 = vst [vmem:[#allocation29_spill] sm:$0xff] %v15392_v50  ;;  %v6565_v62 = vmul.f32 %v15152_v54, %v6501_v51 }
 0x3c5   : > { %v15408_v39 = vrot.slane %v15382_v15, %v15107_v0  ;;  %v6586_v51 = vmul.f32 %v15158_v23, %v6522_v33  ;;  %v6480_v32 = vmul.f32 %v6328_v41, %v15086_v37  ;;  %v6279_v50 = vcombine.high %v15306_v40, %v15306_v40 }
 0x3c6   : > { %18691 = vst [vmem:[#allocation25_spill] sm:$0xff] %v15385_v25  ;;  %v15422_v26 = vadd.f32 %v14964_v56, %v6565_v62  ;;  %v5943_v2 = vpop.permute.xlu1 %5942  ;;  %v6229_v33 = vrot.slane %v6215_v57, %v15107_v0 }
 0x3c7   : > { %v6380_v62 = vrot.slane %v15408_v39, %v14610_v30  ;;  %v15435_v37 = vadd.f32 %v14954_v10, %v6586_v51  ;;  %v15451_v51 = vrot.slane %v6278_v36, %v15107_v0 }
 0x3c8   : > { %6702 = vmax.xlane.f32.xlu1 %v6701_v46  ;;  %6699 = vmax.xlane.f32.xlu0 %v6698_v49  ;;  %v6740_v46 = vsel %vm6673_vm2, %v15364_v60, -inf  ;;  %v6566_v49 = vmul.f32 %v15158_v23, %v6502_v47  ;;  %v5947_v59 = vpop.permute.xlu0 %5946  ;;  %v6755_v47 = vsel %vm6673_vm2, %v15385_v25, -inf  ;;  %18694 = vst [vmem:[#allocation27_spill] sm:$0xff] %v15422_v26  ;;  %v6479_v25 = vmul.f32 %v6328_v41, %v15089_v11 }
 0x3c9   : > { %v6340_v60 = vrot.slane %v6163_v34, %v14610_v30  ;;  %18695 = vst [vmem:[#allocation37_spill] sm:$0xff] %v15435_v37  ;;  %v6544_v34 = vmul.f32 %v15158_v23, %v6480_v32  ;;  %v6214_v32 = vcombine.high %v15279_v44, %v15279_v44  ;;  %v6506_v44 = vmul.f32 %v6380_v62, %v5947_v59 }
 0x3ca   : > { %v15419_v45 = vadd.f32 %v14954_v10, %v6566_v49  ;;  %v6230_v49 = vcombine.high %v15382_v15, %v15382_v15 }
 0x3cc   : > { %6744 = vmax.xlane.f32.xlu1 %v6743_v28  ;;  %6741 = vmax.xlane.f32.xlu0 %v6740_v46  ;;  %v6585_v28 = vmul.f32 %v15152_v54, %v6521_v1  ;;  %v6336_v46 = vrot.slane %v15376_v6, %v14610_v30  ;;  %18693 = vst [vmem:[#allocation35_spill] sm:$0xff] %v15419_v45  ;;  %v15442_v57 = vpop.permute.xlu0 %5957  ;;  %v6761_v15 = vsel %vm6673_vm2, %v15419_v45, -inf }
 0x3cd   : > { %v6280_v1 = vcombine.high %v6278_v36, %v6278_v36  ;;  %v6486_v45 = vmul.f32 %v6340_v60, %v15104_v42 }
 0x3ce   : > { %v15438_v11 = vadd.f32 %v14964_v56, %v6585_v28  ;;  %v6484_v41 = vmul.f32 %v6336_v46, %v15099_v53  ;;  %v6483_v40 = vmul.f32 %v6336_v46, %v15102_v38  ;;  %v15454_v28 = vrot.slane %v6279_v50, %v15107_v0 }
 0x3cf   : > { %v6309_v53 = vcombine.high %v15330_v61, %v15330_v61  ;;  %v6231_v38 = vcombine.high %v6229_v33, %v6229_v33  ;;  %v15459_v46 = vrot.slane %v6229_v33, %v15107_v0  ;;  %v6821_v50 = vsel %vm6673_vm2, %v15435_v37, -inf }
 0x3d0   : > { %6756 = vmax.xlane.f32.xlu1 %v6755_v47  ;;  %6753 = vmax.xlane.f32.xlu0 %v6752_v16  ;;  %18696 = vst [vmem:[#allocation45_spill] sm:$0xff] %v15438_v11  ;;  %v6758_v47 = vsel %vm6673_vm2, %v15422_v26, -inf  ;;  %v6543_v16 = vmul.f32 %v15152_v54, %v6479_v25  ;;  %v15464_v25 = vpop.permute.xlu1 %5953  ;;  %v6548_v36 = vmul.f32 %v15158_v23, %v6484_v41  ;;  %v6818_v33 = vsel %vm6673_vm2, %v15438_v11, -inf }
 0x3d1   : > { %v6547_v61 = vmul.f32 %v15152_v54, %v6483_v40  ;;  %v15480_v26 = vrot.slane %v6280_v1, %v15107_v0  ;;  %v6505_v40 = vmul.f32 %v6380_v62, %v5943_v2  ;;  %v6376_v37 = vrot.slane %v6214_v32, %v14610_v30 }
 0x3d2   : > { %v15477_v42 = vadd.f32 %v14964_v56, %v6543_v16  ;;  %v6416_v59 = vrot.slane %v15454_v28, %v14610_v30  ;;  %v15491_v1 = vrot.slane %v6230_v49, %v15107_v0  ;;  %v15494_v16 = vrot.slane %v6231_v38, %v15107_v0 }
 0x3d3   : > { %v15505_v32 = vadd.f32 %v14964_v56, %v6547_v61  ;;  %v6570_v49 = vmul.f32 %v15158_v23, %v6506_v44  ;;  %v6260_v38 = vcombine.high %v15408_v39, %v15408_v39  ;;  %v6504_v61 = vmul.f32 %v6376_v37, %v15047_v31 }
 0x3d4   : > { %6762 = vmax.xlane.f32.xlu1 %v6761_v15  ;;  %6759 = vmax.xlane.f32.xlu0 %v6758_v47  ;;  %v6485_v15 = vmul.f32 %v6340_v60, %v15109_v22  ;;  %v15474_v47 = vadd.f32 %v14954_v10, %v6544_v34  ;;  %18698 = vst [vmem:[#allocation49_spill] sm:$0xff] %v15477_v42  ;;  %v5969_v22 = vpop.permute.xlu0 %5968 }
 0x3d5   : > { %v6550_v34 = vmul.f32 %v15158_v23, %v6486_v45  ;;  %v6692_v45 = vsel %vm6673_vm2, %v15477_v42, -inf  ;;  %18700 = vst [vmem:[#allocation23_spill] sm:$0xff] %v15505_v32  ;;  %v6524_v44 = vmul.f32 %v6416_v59, %v15144_v55  ;;  %v15532_v31 = vadd.f32 %v14954_v10, %v6570_v49 }
 0x3d6   : > { %18697 = vst [vmem:[#allocation46_spill] sm:$0xff] %v15474_v47  ;;  %v6549_v2 = vmul.f32 %v15152_v54, %v6485_v15  ;;  %v6695_v62 = vsel %vm6673_vm2, %v15474_v47, -inf  ;;  %v6420_v15 = vrot.slane %v6309_v53, %v14610_v30  ;;  %v6503_v53 = vmul.f32 %v6376_v37, %v15052_v29 }
 0x3d7   : > { %v15515_v60 = vadd.f32 %v14954_v10, %v6550_v34  ;;  %v6704_v34 = vsel %vm6673_vm2, %v15505_v32, -inf  ;;  %18703 = vst [vmem:[#allocation28_spill] sm:$0xff] %v15532_v31  ;;  %v6428_v55 = vrot.slane %v15451_v51, %v14610_v30  ;;  %v6523_v29 = vmul.f32 %v6416_v59, %v15161_v52 }
 0x3d8   : > { %6822 = vmax.xlane.f32.xlu1 %v6821_v50  ;;  %6819 = vmax.xlane.f32.xlu0 %v6818_v33  ;;  %v15497_v50 = vadd.f32 %v14954_v10, %v6548_v36  ;;  %v5965_v33 = vpop.permute.xlu1 %5964  ;;  %v6569_v36 = vmul.f32 %v15152_v54, %v6505_v40  ;;  %v15524_v40 = vadd.f32 %v14964_v56, %v6549_v2 }
 0x3d9   : > { %18701 = vst [vmem:[#allocation36_spill] sm:$0xff] %v15515_v60  ;;  %v6526_v37 = vmul.f32 %v6420_v15, %v15174_v19  ;;  %v6713_v41 = vsel %vm6673_vm2, %v15515_v60, -inf  ;;  %v6568_v49 = vmul.f32 %v15158_v23, %v6504_v61  ;;  %v6588_v0 = vmul.f32 %v15158_v23, %v6524_v44 }
 0x3da   : > { %18699 = vst [vmem:[#allocation19_spill] sm:$0xff] %v15497_v50  ;;  %v6707_v39 = vsel %vm6673_vm2, %v15497_v50, -inf  ;;  %18702 = vst [vmem:[#allocation26_spill] sm:$0xff] %v15524_v40  ;;  %v15539_v2 = vadd.f32 %v14964_v56, %v6569_v36  ;;  %v6384_v50 = vrot.slane %v15491_v1, %v14610_v30  ;;  %v6710_v36 = vsel %vm6673_vm2, %v15524_v40, -inf }
 0x3db   : > { %v6388_v52 = vrot.slane %v6260_v38, %v14610_v30  ;;  %v6396_v19 = vrot.slane %v15459_v46, %v14610_v30  ;;  %v6525_v59 = vmul.f32 %v6420_v15, %v15199_v63  ;;  %v6530_v61 = vmul.f32 %v6428_v55, %v15254_v7 }
 0x3dc   : > { %6696 = vmax.xlane.f32.xlu1 %v6695_v62  ;;  %6693 = vmax.xlane.f32.xlu0 %v6692_v45  ;;  %v15527_v62 = vpop.permute.xlu0 %5979  ;;  %v6165_v45 = vcombine.high %v15376_v6, %v15376_v6  ;;  %18704 = vst [vmem:[#allocation48_spill] sm:$0xff] %v15539_v2  ;;  %v15549_v6 = vpop.permute.xlu1 %5975  ;;  %v6529_v44 = vmul.f32 %v6428_v55, %v15276_v20  ;;  %v6773_v60 = vsel %vm6673_vm2, %v15532_v31, -inf }
 0x3dd   : > { %v6587_v38 = vmul.f32 %v15152_v54, %v6523_v29  ;;  %v6590_v40 = vmul.f32 %v15158_v23, %v6526_v37  ;;  %v15568_v63 = vadd.f32 %v14954_v10, %v6568_v49  ;;  %v15571_v7 = vadd.f32 %v14954_v10, %v6588_v0 }
 0x3de   : > { %v6508_v20 = vmul.f32 %v6384_v50, %v15442_v57  ;;  %v6510_v55 = vmul.f32 %v6388_v52, %v5969_v22  ;;  %v6589_v29 = vmul.f32 %v15152_v54, %v6525_v59  ;;  %v6594_v37 = vmul.f32 %v15158_v23, %v6530_v61  ;;  %v18710_v22 = vld [vmem:[#allocation9_spill] sm:$0xff] }
 0x3df   : > { %18705 = vst [vmem:[#allocation51_spill] sm:$0xff] %v15568_v63  ;;  %18706 = vst [vmem:[#allocation53_spill] sm:$0xff] %v15571_v7  ;;  %v6593_v49 = vmul.f32 %v15152_v54, %v6529_v44  ;;  %v15583_v57 = vadd.f32 %v14964_v56, %v6587_v38 }
 0x3e0   : > { %6708 = vmax.xlane.f32.xlu1 %v6707_v39  ;;  %6705 = vmax.xlane.f32.xlu0 %v6704_v34  ;;  %v6567_v39 = vmul.f32 %v15152_v54, %v6503_v53  ;;  %v6344_v34 = vrot.slane %v6165_v45, %v14610_v30  ;;  %v6770_v53 = vsel %vm6673_vm2, %v15539_v2, -inf  ;;  %v5991_v32 = vpop.permute.xlu0 %5990  ;;  %v6509_v45 = vmul.f32 %v6388_v52, %v5965_v33  ;;  %v5987_v0 = vpop.permute.xlu1 %5986 }
 0x3e1   : > { %18708 = vst [vmem:[#allocation59_spill] sm:$0xff] %v15583_v57  ;;  %v6572_v33 = vmul.f32 %v15158_v23, %v6508_v20  ;;  %v6513_v52 = vmul.f32 %v6396_v19, %v5987_v0  ;;  %v15599_v61 = vadd.f32 %v14964_v56, %v6589_v29  ;;  %v15602_v44 = vadd.f32 %v14954_v10, %v6594_v37  ;;  %v13042_v20 = vld [vmem:[%s18061_s3] sm:$0xff] }
 0x3e2   : > { %v15576_v15 = vadd.f32 %v14964_v56, %v6567_v39  ;;  %v6488_v31 = vmul.f32 %v6344_v34, %v15117_v3  ;;  %v6573_v59 = vmul.f32 %v15152_v54, %v6509_v45  ;;  %v18727_v2 = vcombine.high %v15491_v1, %v15491_v1  ;;  %v13048_v1 = vld [vmem:[%s18061_s3 + $0x30] sm:$0xff] }
 0x3e3   : > { %18711 = vst [vmem:[#allocation9_spill] sm:$0xff] %v15599_v61  ;;  %18712 = vst [vmem:[#allocation61_spill] sm:$0xff] %v15602_v44  ;;  %v6577_v37 = vmul.f32 %v15152_v54, %v6513_v52 }
 0x3e4   : > { %6714 = vmax.xlane.f32.xlu1 %v6713_v41  ;;  %6711 = vmax.xlane.f32.xlu0 %v6710_v36  ;;  %v6507_v41 = vmul.f32 %v6384_v50, %v15464_v25  ;;  %18707 = vst [vmem:[#allocation58_spill] sm:$0xff] %v15576_v15  ;;  %v6514_v36 = vmul.f32 %v6396_v19, %v5991_v32  ;;  %v6767_v32 = vsel %vm6673_vm2, %v15568_v63, -inf  ;;  %v6764_v3 = vsel %vm6673_vm2, %v15576_v15, -inf  ;;  %v6002_v4 = vpop.permute.xlu0 %6001 }
 0x3e5   : > { %v15586_v25 = vadd.f32 %v14954_v10, %v6590_v40  ;;  %v6487_v50 = vmul.f32 %v6344_v34, %v18710_v22  ;;  %v15605_v34 = vadd.f32 %v14964_v56, %v6593_v49  ;;  %v6552_v19 = vmul.f32 %v15158_v23, %v6488_v31 }
 0x3e6   : > { %v6571_v39 = vmul.f32 %v15152_v54, %v6507_v41  ;;  %v6578_v40 = vmul.f32 %v15158_v23, %v6514_v36  ;;  %v5121_v41 = vand.u32 4294901760, %v13042_v20  ;;  %v6824_v31 = vsel %vm6673_vm2, %v15583_v57, -inf }
 0x3e7   : > { %18709 = vst [vmem:[#allocation60_spill] sm:$0xff] %v15586_v25  ;;  %18713 = vst [vmem:[#allocation62_spill] sm:$0xff] %v15605_v34  ;;  %v6551_v38 = vmul.f32 %v15152_v54, %v6487_v50  ;;  %v15620_v36 = vadd.f32 %v14954_v10, %v6572_v33  ;;  %v6833_v49 = vsel %vm6673_vm2, %v15586_v25, -inf  ;;  %v15632_v22 = vadd.f32 %v14964_v56, %v6573_v59 }
 0x3e8   : > { %6774 = vmax.xlane.f32.xlu1 %v6773_v60  ;;  %6771 = vmax.xlane.f32.xlu0 %v6770_v53  ;;  %v6574_v60 = vmul.f32 %v15158_v23, %v6510_v55  ;;  %v6827_v53 = vsel %vm6673_vm2, %v15571_v7, -inf  ;;  %v13043_v55 = vld [vmem:[%s18061_s3 + $0x8] sm:$0xff]  ;;  %v15623_v29 = vadd.f32 %v14964_v56, %v6571_v39  ;;  %v15635_v50 = vadd.f32 %v14954_v10, %v6578_v40 }
 0x3e9   : > { %v5124_v45 = vand.u32 4294901760, %v13043_v55  ;;  %18714 = vst [vmem:[#allocation63_spill] sm:$0xff] %v15620_v36  ;;  %18717 = vst [vmem:[#allocation66_spill] sm:$0xff] %v15632_v22  ;;  %v6845_v33 = vsel %vm6673_vm2, %v15602_v44, -inf  ;;  %v6842_v39 = vsel %vm6673_vm2, %v15605_v34, -inf  ;;  %v15644_v52 = vadd.f32 %v14954_v10, %v6552_v19  ;;  %v13044_v44 = vld [vmem:[%s18061_s3 + $0x10] sm:$0xff] }
 0x3ea   : > { %18715 = vst [vmem:[#allocation64_spill] sm:$0xff] %v15623_v29  ;;  %v15629_v0 = vadd.f32 %v14954_v10, %v6574_v60  ;;  %18718 = vst [vmem:[#allocation67_spill] sm:$0xff] %v15635_v50  ;;  %v18721_v60 = vcombine.high %v15454_v28, %v15454_v28  ;;  %v5127_v34 = vand.u32 4294901760, %v13044_v44  ;;  %v15660_v19 = vsel %vm6673_vm2, %v15620_v36, -inf  ;;  %v13047_v7 = vld [vmem:[%s18061_s3 + $0x28] sm:$0xff] }
 0x3eb   : > { %18719 = vst [vmem:[#allocation68_spill] sm:$0xff] %v15644_v52  ;;  %v15653_v40 = vpack.c.bf16 %v5124_v45, %v5121_v41  ;;  %v6432_v28 = vrot.slane %v15480_v26, %v14610_v30  ;;  %v15681_v36 = vsel %vm6673_vm2, %v15635_v50, -inf  ;;  %v6719_v25 = vsel %vm6673_vm2, %v15644_v52, -inf  ;;  %v13046_v50 = vld [vmem:[%s18061_s3 + $0x20] sm:$0xff] }
 0x3ec   : > { %6768 = vmax.xlane.f32.xlu1 %v6767_v32  ;;  %6765 = vmax.xlane.f32.xlu0 %v6764_v3  ;;  %18716 = vst [vmem:[#allocation65_spill] sm:$0xff] %v15629_v0  ;;  %v6830_v32 = vsel %vm6673_vm2, %v15599_v61, -inf  ;;  %v15647_v3 = vadd.f32 %v14964_v56, %v6551_v38  ;;  %v6424_v59 = vrot.slane %v18721_v60, %v14610_v30  ;;  %v15677_v60 = vsel %vm6673_vm2, %v15632_v22, -inf }
 0x3ed   : > { %18722 = vst [vmem:[#allocation70_spill] sm:$0xff] %v15653_v40  ;;  %v15667_v38 = vadd.f32 %v14964_v56, %v6577_v37  ;;  %12530 = vmatpush3.bf16.msra.mxu1 %v15653_v40  ;;  %v13045_v37 = vld [vmem:[%s18061_s3 + $0x18] sm:$0xff]  ;;  %v18725_v61 = vmov 0.0|0.0   ;;  %v5133_v40 = vand.u32 4294901760, %v13046_v50  ;;  %v5136_v57 = vand.u32 4294901760, %v13047_v7 }
 0x3ee   : > { %18720 = vst [vmem:[#allocation69_spill] sm:$0xff] %v15647_v3  ;;  %12531 = vmatprep.subr.bf16.mxu1 %v18725_v61  ;;  %v6716_v52 = vsel %vm6673_vm2, %v15647_v3, -inf  ;;  %v6532_v15 = vmul.f32 %v6432_v28, %v15296_v13  ;;  %v6392_v47 = vrot.slane %v18727_v2, %v14610_v30  ;;  %v5139_v2 = vand.u32 4294901760, %v13048_v1 }
 0x3ef   : > { %18723 = vst [vmem:[#allocation71_spill] sm:$0xff] %v15667_v38  ;;  %v15723_v13 = vpack.c.bf16 %v5136_v57, %v5133_v40  ;;  %v15743_v3 = vsel %vm6673_vm2, %v15667_v38, -inf  ;;  %v15747_v11 = vsub.f32 %v13044_v44, %v5127_v34 }
 0x3f0   : > { %6828 = vmax.xlane.f32.xlu1 %v6827_v53  ;;  %6825 = vmax.xlane.f32.xlu0 %v6824_v31  ;;  %v15664_v53 = vsel %vm6673_vm2, %v15623_v29, -inf  ;;  %v15673_v31 = vsel %vm6673_vm2, %v15629_v0, -inf  ;;  %v5130_v29 = vand.u32 4294901760, %v13045_v37  ;;  %v18724_v0 = vcombine.high %v15451_v51, %v15451_v51 }
 0x3f1   : > { %v6528_v51 = vmul.f32 %v6424_v59, %v15218_v27  ;;  %18729 = vst [vmem:[#allocation73_spill] sm:$0xff] %v15723_v13 }
 0x3f2   : > { %v6436_v22 = vrot.slane %v18724_v0, %v14610_v30  ;;  %v6527_v0 = vmul.f32 %v6424_v59, %v15234_v18  ;;  %v15704_v63 = vpack.c.bf16 %v5130_v29, %v5127_v34  ;;  %v6531_v18 = vmul.f32 %v6432_v28, %v15310_v48  ;;  %v15731_v59 = vld [vmem:[%s18061_s3 + $0x38] sm:$0xff] }
 0x3f3   : > { %v15736_v28 = vsub.f32 %v13042_v20, %v5121_v41  ;;  %v6592_v42 = vmul.f32 %v15158_v23, %v6528_v51  ;;  %v15756_v20 = vld [vmem:[%s18061_s3 + $0x40] sm:$0xff]  ;;  %v6596_v34 = vmul.f32 %v15158_v23, %v6532_v15 }
 0x3f4   : > { %6834 = vmax.xlane.f32.xlu1 %v6833_v49  ;;  %6831 = vmax.xlane.f32.xlu0 %v6830_v32  ;;  %18726 = vst [vmem:[#allocation72_spill] sm:$0xff] %v15704_v63  ;;  %v15713_v49 = vrot.slane %v15494_v16, %v14610_v30  ;;  %v18728_v32 = vcombine.high %v15459_v46, %v15459_v46  ;;  %v18302_v41 = vand.u32 4294901760, %v15756_v20 }
 0x3f5   : > { %12533 = vmatpush3.bf16.msra.mxu1 %v15704_v63  ;;  %v6533_v48 = vmul.f32 %v6436_v22, %v15347_v9  ;;  %v15738_v63 = vsub.f32 %v13043_v55, %v5124_v45  ;;  %v6591_v46 = vmul.f32 %v15152_v54, %v6527_v0  ;;  %v15751_v9 = vmul.f32 %v6392_v47, %v15549_v6  ;;  %v15762_v55 = vld [vmem:[%s18061_s3 + $0x48] sm:$0xff] }
 0x3f6   : > { %v15719_v27 = vrot.slane %v18728_v32, %v14610_v30  ;;  %v6534_v32 = vmul.f32 %v6436_v22, %v15326_v58  ;;  %12534 = vmatprep.subr.bf16.mxu1 %v18725_v61  ;;  %v6512_v58 = vmul.f32 %v6392_v47, %v15527_v62  ;;  %v18300_v44 = vand.u32 4294901760, %v15762_v55 }
 0x3f7   : > { %v15766_v62 = vsub.f32 %v13045_v37, %v5130_v29  ;;  %v15769_v47 = vsub.f32 %v13046_v50, %v5133_v40  ;;  %v18730_v6 = vand.u32 4294901760, %v15731_v59  ;;  %v6595_v22 = vmul.f32 %v15152_v54, %v6531_v18 }
 0x3f8   : > { %6846 = vmax.xlane.f32.xlu1 %v6845_v33  ;;  %6843 = vmax.xlane.f32.xlu0 %v6842_v39  ;;  %v15776_v33 = vsub.f32 %v13047_v7, %v5136_v57  ;;  %v18301_v39 = vand.u32 4294901760, %v15736_v28  ;;  %v18303_v15 = vand.u32 4294901760, %v15738_v63  ;;  %v15782_v29 = vadd.f32 %v14954_v10, %v6592_v42  ;;  %v13052_v57 = vld [vmem:[%s18061_s3 + $0x50] sm:$0xff]  ;;  %v13053_v42 = vld [vmem:[%s18061_s3 + $0x58] sm:$0xff] }
 0x3f9   : > { %12536 = vmatpush3.bf16.msra.mxu1 %v15723_v13  ;;  %v15773_v45 = vpack.c.bf16 %v18730_v6, %v5139_v2  ;;  %v6598_v50 = vmul.f32 %v15158_v23, %v6534_v32  ;;  %v6597_v40 = vmul.f32 %v15152_v54, %v6533_v48  ;;  %v18304_v37 = vand.u32 4294901760, %v15747_v11 }
 0x3fa   : > { %12537 = vmatprep.subr.bf16.mxu1 %v18725_v61  ;;  %18732 = vst [vmem:[#allocation75_spill] sm:$0xff] %v15782_v29  ;;  %v15791_v7 = vpack.c.bf16 %v18300_v44, %v18302_v41  ;;  %v5215_v51 = vsub.f32 %v15736_v28, %v18301_v39  ;;  %v5222_v0 = vsub.f32 %v15738_v63, %v18303_v15 }
 0x3fb   : > { %18731 = vst [vmem:[#allocation74_spill] sm:$0xff] %v15773_v45  ;;  %v5229_v18 = vsub.f32 %v15747_v11, %v18304_v37  ;;  %v15814_v44 = vadd.f32 %v14964_v56, %v6591_v46  ;;  %v6576_v39 = vmul.f32 %v15158_v23, %v6512_v58  ;;  %v15824_v48 = vadd.f32 %v14954_v10, %v6596_v34 }
 0x3fc   : > { %6720 = vmax.xlane.f32.xlu1 %v6719_v25  ;;  %6717 = vmax.xlane.f32.xlu0 %v6716_v52  ;;  %18733 = vst [vmem:[#allocation76_spill] sm:$0xff] %v15791_v7  ;;  %v5151_v25 = vand.u32 4294901760, %v13052_v57  ;;  %v5154_v52 = vand.u32 4294901760, %v13053_v42  ;;  %v5216_v41 = vand.u32 4294901760, %v5215_v51  ;;  %v15826_v32 = vsub.f32 %v13048_v1, %v5139_v2  ;;  %v13055_v2 = vld [vmem:[%s18061_s3 + $0x68] sm:$0xff] }
 0x3fd   : > { %12539 = vmatpush3.bf16.msra.mxu1 %v15773_v45  ;;  %18735 = vst [vmem:[#allocation78_spill] sm:$0xff] %v15814_v44  ;;  %v5223_v46 = vand.u32 4294901760, %v5222_v0  ;;  %v18740_v34 = vand.u32 4294901760, %v15776_v33  ;;  %v5160_v0 = vand.u32 4294901760, %v13055_v2  ;;  %v15851_v24 = vadd.f32 %v14964_v56, %v6595_v22 }
 0x3fe   : > { %12540 = vmatprep.subr.bf16.mxu1 %v18725_v61  ;;  %v15831_v45 = vpack.c.bf16 %v5154_v52, %v5151_v25 }
 0x3ff   : > { %v5250_v1 = vsub.f32 %v15776_v33, %v18740_v34 }
 0x400   : > { %6780 = vmax.xlane.f32.xlu1 %v15660_v19  ;;  %6777 = vmax.xlane.f32.xlu0 %v15664_v53  ;;  %18738 = vst [vmem:[#allocation80_spill] sm:$0xff] %v15831_v45  ;;  %v13054_v19 = vld [vmem:[%s18061_s3 + $0x60] sm:$0xff]  ;;  %v18739_v53 = vand.u32 4294901760, %v15769_v47 }
 0x401   : > { %v5157_v51 = vand.u32 4294901760, %v13054_v19  ;;  %12542 = vmatpush3.bf16.msra.mxu1 %v15791_v7  ;;  %v5251_v7 = vand.u32 4294901760, %v5250_v1 }
 0x402   : > { %v5243_v15 = vsub.f32 %v15769_v47, %v18739_v53  ;;  %v15854_v53 = vadd.f32 %v14954_v10, %v6598_v50  ;;  %12543 = vmatprep.subr.bf16.mxu1 %v18725_v61  ;;  %v18745_v50 = vand.u32 4294901760, %v15756_v20 }
 0x404   : > { %v5244_v34 = vand.u32 4294901760, %v5243_v15  ;;  %6786 = vmax.xlane.f32.xlu1 %v15673_v31  ;;  %6783 = vmax.xlane.f32.xlu0 %v15677_v60  ;;  %v6839_v31 = vsel %vm6673_vm2, %v15782_v29, -inf  ;;  %v6836_v60 = vsel %vm6673_vm2, %v15814_v44, -inf  ;;  %v15900_v29 = vsub.f32 %v13052_v57, %v5151_v25 }
 0x405   : > { %12545 = vmatpush3.bf16.msra.mxu1 %v15831_v45  ;;  %v15902_v44 = vsub.f32 %v13053_v42, %v5154_v52  ;;  %v18748_v45 = vand.u32 4294901760, %v15826_v32  ;;  %v6851_v57 = vsel %vm6673_vm2, %v15824_v48, -inf  ;;  %v6848_v25 = vsel %vm6673_vm2, %v15851_v24, -inf }
 0x406   : > { %12546 = vmatprep.subr.bf16.mxu1 %v18725_v61 }
 0x407   : > { %v15811_v6 = vpop.f32.mrb[16].mxu0 }
 0x408   : > { %18734 = vst [vmem:[#allocation77_spill] sm:$0xff] %v15811_v6  ;;  %v15821_v37 = vpop.f32.mrb[17].mxu0  ;;  %v18737_v6 = vand.u32 4294901760, %v15766_v62  ;;  %6798 = vmax.xlane.f32.xlu1 %v15681_v36  ;;  %6795 = vmax.xlane.f32.xlu0 %v15743_v3  ;;  %v6516_v36 = vmul.f32 %v15713_v49, %v6002_v4  ;;  %v5998_v3 = vpop.permute.xlu1 %5997 }
 0x409   : > { %18736 = vst [vmem:[#allocation79_spill] sm:$0xff] %v15821_v37  ;;  %v5230_v37 = vand.u32 4294901760, %v5229_v18  ;;  %v15862_v18 = vadd.f32 %v14964_v56, %v6597_v40  ;;  %v15880_v40 = vadd.f32 %v14954_v10, %v6576_v39  ;;  %v18747_v39 = vand.u32 4294901760, %v15762_v55 }
 0x40a   : > { %v5236_v58 = vsub.f32 %v15766_v62, %v18737_v6  ;;  %v15846_v6 = vpack.c.bf16 %v5223_v46, %v5216_v41  ;;  %v18744_v46 = vand.u32 4294901760, %v15731_v59 }
 0x40b   : > { %v15848_v38 = vpop.f32.mrb[18].mxu0 }
 0x40c   : > { %18741 = vst [vmem:[#allocation81_spill] sm:$0xff] %v15846_v6  ;;  %v5237_v13 = vand.u32 4294901760, %v5236_v58  ;;  %18742 = vst [vmem:[#allocation82_spill] sm:$0xff] %v15848_v38  ;;  %v15859_v41 = vpop.f32.mrb[19].mxu0  ;;  %v15867_v22 = vsub.f32 %v15731_v59, %v18744_v46  ;;  %v15872_v58 = vsub.f32 %v15756_v20, %v18745_v50  ;;  %v13056_v59 = vld [vmem:[%s18061_s3 + $0x70] sm:$0xff]  ;;  %v15886_v20 = vpack.c.bf16 %v5160_v0, %v5157_v51  ;;  %v13057_v46 = vld [vmem:[%s18061_s3 + $0x78] sm:$0xff] }
 0x40d   : > { %18743 = vst [vmem:[#allocation83_spill] sm:$0xff] %v15859_v41  ;;  %v5163_v1 = vand.u32 4294901760, %v13056_v59  ;;  %v5166_v50 = vand.u32 4294901760, %v13057_v46  ;;  %v15893_v41 = vpack.c.bf16 %v5251_v7, %v5244_v34  ;;  %v15898_v38 = vsub.f32 %v15762_v55, %v18747_v39  ;;  %6840 = vmax.xlane.f32.xlu1 %v6839_v31  ;;  %6837 = vmax.xlane.f32.xlu0 %v6836_v60 }
 0x40e   : > { %18746 = vst [vmem:[#allocation84_spill] sm:$0xff] %v15886_v20  ;;  %v15891_v15 = vpack.c.bf16 %v5237_v13, %v5230_v37  ;;  %v5257_v6 = vsub.f32 %v15826_v32, %v18748_v45  ;;  %v15910_v13 = vsub.f32 %v13054_v19, %v5157_v51  ;;  %v15912_v37 = vsub.f32 %v13055_v2, %v5160_v0 }
 0x40f   : > { %v18319_v55 = vand.u32 4294901760, %v15867_v22  ;;  %v18318_v7 = vand.u32 4294901760, %v15872_v58  ;;  %v6575_v45 = vmul.f32 %v15152_v54, %v15751_v9  ;;  %12548 = vmatpush3.bf16.msra.mxu1 %v15886_v20  ;;  %v15924_v42 = vpack.c.bf16 %v5166_v50, %v5163_v1 }
 0x410   : > { %v5258_v52 = vand.u32 4294901760, %v5257_v6  ;;  %v6515_v2 = vmul.f32 %v15713_v49, %v5998_v3  ;;  %12549 = vmatprep.subr.bf16.mxu1 %v18725_v61  ;;  %v18320_v4 = vand.u32 4294901760, %v15898_v38  ;;  %v18321_v9 = vand.u32 4294901760, %v15900_v29 }
 0x411   : > { %18749 = vst [vmem:[#allocation85_spill] sm:$0xff] %v15924_v42  ;;  %v5264_v19 = vsub.f32 %v15867_v22, %v18319_v55  ;;  %v5271_v51 = vsub.f32 %v15872_v58, %v18318_v7  ;;  %v18322_v0 = vand.u32 4294901760, %v15902_v44  ;;  %v6312_v6 = vcombine.high %v15480_v26, %v15480_v26  ;;  %6852 = vmax.xlane.f32.xlu1 %v6851_v57 }
 0x412   : > { %v18327_v39 = vand.u32 4294901760, %v15910_v13  ;;  %v18328_v7 = vand.u32 4294901760, %v15912_v37  ;;  %v5278_v49 = vsub.f32 %v15898_v38, %v18320_v4  ;;  %v5285_v3 = vsub.f32 %v15900_v29, %v18321_v9  ;;  %v6013_v4 = vpop.permute.xlu0 %6012  ;;  %6849 = vmax.xlane.f32.xlu0 %v6848_v25 }
 0x413   : > { %v5265_v34 = vand.u32 4294901760, %v5264_v19  ;;  %v5272_v55 = vand.u32 4294901760, %v5271_v51  ;;  %v5292_v31 = vsub.f32 %v15902_v44, %v18322_v0  ;;  %12551 = vmatpush3.bf16.msra.mxu1 %v15924_v42  ;;  %v15951_v26 = vsub.f32 %v13056_v59, %v5163_v1  ;;  %v6009_v59 = vpop.permute.xlu1 %6008 }
 0x414   : > { %v5299_v19 = vsub.f32 %v15910_v13, %v18327_v39  ;;  %v5306_v51 = vsub.f32 %v15912_v37, %v18328_v7  ;;  %v15961_v9 = vsub.f32 %v13057_v46, %v5166_v50  ;;  %12552 = vmatprep.subr.bf16.mxu1 %v18725_v61  ;;  %v5279_v0 = vand.u32 4294901760, %v5278_v49 }
 0x415   : > { %v15953_v60 = vpack.c.bf16 %v5265_v34, %v5258_v52  ;;  %v5286_v20 = vand.u32 4294901760, %v5285_v3  ;;  %v5293_v42 = vand.u32 4294901760, %v5292_v31  ;;  %v15965_v1 = vadd.f32 %v14964_v56, %v6575_v45 }
 0x416   : > { %v6518_v52 = vmul.f32 %v15719_v27, %v6013_v4  ;;  %v5300_v34 = vand.u32 4294901760, %v5299_v19  ;;  %v5307_v39 = vand.u32 4294901760, %v5306_v51  ;;  %v6517_v7 = vmul.f32 %v15719_v27, %v6009_v59 }
 0x417   : > { %v6263_v46 = vcombine.high %v15494_v16, %v15494_v16  ;;  %v15971_v50 = vpack.c.bf16 %v5279_v0, %v5272_v55  ;;  %v15973_v49 = vpack.c.bf16 %v5293_v42, %v5286_v20  ;;  %v6580_v3 = vmul.f32 %v15158_v23, %v6516_v36 }
 0x418   : > { %v6579_v57 = vmul.f32 %v15152_v54, %v6515_v2  ;;  %v6440_v25 = vrot.slane %v6312_v6, %v14610_v30  ;;  %v15978_v45 = vpack.c.bf16 %v5307_v39, %v5300_v34  ;;  %v6857_v4 = vsel %vm6673_vm2, %v15854_v53, -inf  ;;  %v6024_v34 = vpop.permute.xlu0 %6023 }
 0x419   : > { %v6854_v27 = vsel %vm6673_vm2, %v15862_v18, -inf  ;;  %v18330_v16 = vand.u32 4294901760, %v15951_v26  ;;  %v18329_v55 = vand.u32 4294901760, %v15961_v9  ;;  %6858 = vmax.xlane.f32.xlu1 %v6857_v4  ;;  %v6791_v20 = vsel %vm6673_vm2, %v15880_v40, -inf }
 0x41a   : > { %6855 = vmax.xlane.f32.xlu0 %v6854_v27  ;;  %v6788_v36 = vsel %vm6673_vm2, %v15965_v1, -inf  ;;  %v6582_v2 = vmul.f32 %v15158_v23, %v6518_v52  ;;  %v6581_v0 = vmul.f32 %v15152_v54, %v6517_v7  ;;  %v16001_v31 = vadd.f32 %v14954_v10, %v6580_v3  ;;  %v13058_v27 = vld [vmem:[%s18064_s6 + $0x8] sm:$0xff] }
 0x41b   : > { %v5313_v6 = vsub.f32 %v15951_v26, %v18330_v16  ;;  %v5320_v39 = vsub.f32 %v15961_v9, %v18329_v55  ;;  %v16004_v19 = vadd.f32 %v14964_v56, %v6579_v57  ;;  %v6536_v51 = vmul.f32 %v6440_v25, %v15367_v14  ;;  %v6020_v57 = vpop.permute.xlu1 %6019 }
 0x41c   : > { %v6408_v23 = vrot.slane %v6263_v46, %v14610_v30  ;;  %v6535_v54 = vmul.f32 %v6440_v25, %v15387_v12  ;;  %v16012_v3 = vadd.f32 %v14954_v10, %v6582_v2  ;;  %v6803_v14 = vsel %vm6673_vm2, %v16001_v31, -inf }
 0x41d   : > { %v5314_v7 = vand.u32 4294901760, %v5313_v6  ;;  %v5321_v59 = vand.u32 4294901760, %v5320_v39  ;;  %6792 = vmax.xlane.f32.xlu1 %v6791_v20  ;;  %v6800_v12 = vsel %vm6673_vm2, %v16004_v19, -inf  ;;  %v16021_v46 = vadd.f32 %v14964_v56, %v6581_v0 }
 0x41e   : > { %6789 = vmax.xlane.f32.xlu0 %v6788_v36  ;;  %v6520_v25 = vmul.f32 %v6408_v23, %v6024_v34  ;;  %v6600_v20 = vmul.f32 %v13058_v27, %v6536_v51  ;;  %v13059_v36 = vld [vmem:[%s18064_s6] sm:$0xff]  ;;  %v6519_v6 = vmul.f32 %v6408_v23, %v6020_v57  ;;  %v6809_v0 = vsel %vm6673_vm2, %v16012_v3, -inf }
 0x41f   : > { %v16014_v4 = vpack.c.bf16 %v5321_v59, %v5314_v7  ;;  %v6599_v2 = vmul.f32 %v13059_v36, %v6535_v54  ;;  %v6806_v7 = vsel %vm6673_vm2, %v16021_v46, -inf }
 0x420   : > { %v6584_v59 = vmul.f32 %v13058_v27, %v6520_v25  ;;  %v16036_v51 = vadd.f32 %v14954_v10, %v6600_v20  ;;  %v6583_v54 = vmul.f32 %v13059_v36, %v6519_v6 }
 0x421   : > { %6804 = vmax.xlane.f32.xlu1 %v6803_v14  ;;  %v16039_v34 = vadd.f32 %v14964_v56, %v6599_v2 }
 0x422   : > { %6801 = vmax.xlane.f32.xlu0 %v6800_v12  ;;  %v16044_v57 = vadd.f32 %v14954_v10, %v6584_v59  ;;  %v6863_v14 = vsel %vm6673_vm2, %v16036_v51, -inf  ;;  %v16051_v25 = vadd.f32 %v14964_v56, %v6583_v54  ;;  %v18751_v54 = vld [vmem:[#allocation11_spill] sm:$0xff] }
 0x423   : > { %v6860_v12 = vsel %vm6673_vm2, %v16039_v34, -inf }
 0x424   : > { %v6815_v20 = vsel %vm6673_vm2, %v16044_v57, -inf  ;;  %v6812_v10 = vsel %vm6673_vm2, %v16051_v25, -inf }
 0x425   : > { %6810 = vmax.xlane.f32.xlu1 %v6809_v0 }
 0x426   : > { %6807 = vmax.xlane.f32.xlu0 %v6806_v7  ;;  %v18750_v7 = vld [vmem:[#allocation10_spill] sm:$0xff] }
 0x429   : > { %6864 = vmax.xlane.f32.xlu1 %v6863_v14 }
 0x42a   : > { %6861 = vmax.xlane.f32.xlu0 %v6860_v12 }
 0x42d   : > { %6816 = vmax.xlane.f32.xlu1 %v6815_v20 }
 0x42e   : > { %6813 = vmax.xlane.f32.xlu0 %v6812_v10 }
 0x439   : > { %v16065_v6 = vpop.xlane.xlu0 %6723  ;;  %v16067_v0 = vpop.xlane.xlu1 %6726 }
 0x43a   : > { %v6882_v59 = vsub.f32 %v18750_v7, %v16065_v6  ;;  %v6883_v14 = vsub.f32 %v18751_v54, %v16067_v0 }
 0x43c   : > { %v6962_v12 = vmul.f32 1.442695, %v6882_v59  ;;  %v6964_v55 = vmul.f32 1.442695, %v6883_v14 }
 0x43d   : > { %v16073_v20 = vpop.xlane.xlu0 %6678  ;;  %v16075_v10 = vpop.xlane.xlu1 %6675 }
 0x43e   : > { %18752 = vst [vmem:[#allocation10_spill] sm:$0xff] %v16073_v20  ;;  %18753 = vst [vmem:[#allocation11_spill] sm:$0xff] %v16075_v10  ;;  %12896 = vpow2.f32 %v6962_v12  ;;  %v6867_v16 = vsub.f32 %v15202_v5, %v16073_v20  ;;  %v6866_v2 = vsub.f32 %v15205_v43, %v16075_v10 }
 0x43f   : > { %12898 = vpow2.f32 %v6964_v55 }
 0x440   : > { %v6932_v56 = vmul.f32 1.442695, %v6867_v16  ;;  %v6930_v36 = vmul.f32 1.442695, %v6866_v2 }
 0x441   : > { %v16081_v7 = vpop.xlane.xlu0 %6729  ;;  %v16083_v27 = vpop.xlane.xlu1 %6732 }
 0x442   : > { %12900 = vpow2.f32 %v6932_v56  ;;  %v6884_v59 = vsub.f32 %v15228_v8, %v16081_v7  ;;  %v6885_v54 = vsub.f32 %v15231_v35, %v16083_v27 }
 0x443   : > { %12902 = vpow2.f32 %v6930_v36 }
 0x444   : > { %v6966_v14 = vmul.f32 1.442695, %v6884_v59  ;;  %v6968_v5 = vmul.f32 1.442695, %v6885_v54  ;;  %v18757_v54 = vld [vmem:[#allocation5_spill] sm:$0xff] }
 0x445   : > { %v16089_v12 = vpop.xlane.xlu0 %6735  ;;  %v16091_v43 = vpop.xlane.xlu1 %6738 }
 0x446   : > { %18754 = vst [vmem:[#allocation86_spill] sm:$0xff] %v16091_v43  ;;  %12904 = vpow2.f32 %v6966_v14  ;;  %v6886_v16 = vsub.f32 %v15237_v17, %v16089_v12  ;;  %v6887_v55 = vsub.f32 %v15251_v21, %v16091_v43  ;;  %v18758_v17 = vld [vmem:[#allocation31_spill] sm:$0xff] }
 0x447   : > { %12906 = vpow2.f32 %v6968_v5 }
 0x448   : > { %v12897_v56 = vpop.eup %12896  ;;  %v6970_v8 = vmul.f32 1.442695, %v6886_v16  ;;  %v6972_v23 = vmul.f32 1.442695, %v6887_v55 }
 0x449   : > { %v12899_v2 = vpop.eup %12898  ;;  %v16097_v35 = vpop.xlane.xlu0 %6747  ;;  %v7106_v59 = vsel %vm6673_vm2, %v12897_v56, 0.0 }
 0x44a   : > { %18755 = vst [vmem:[#allocation87_spill] sm:$0xff] %v16097_v35  ;;  %v16099_v36 = vpop.xlane.xlu1 %6750  ;;  %12908 = vpow2.f32 %v6970_v8  ;;  %v6890_v14 = vsub.f32 %v18757_v54, %v16097_v35  ;;  %7107 = vadd.xlane.f32.xlu0 %v7106_v59  ;;  %v7109_v21 = vsel %vm6673_vm2, %v12899_v2, 0.0  ;;  %v18761_v8 = vld [vmem:[#allocation17_spill] sm:$0xff]  ;;  %v18762_v59 = vld [vmem:[#allocation18_spill] sm:$0xff] }
 0x44b   : > { %18756 = vst [vmem:[#allocation88_spill] sm:$0xff] %v16099_v36  ;;  %12910 = vpow2.f32 %v6972_v23  ;;  %v6891_v5 = vsub.f32 %v18758_v17, %v16099_v36  ;;  %7110 = vadd.xlane.f32.xlu1 %v7109_v21 }
 0x44c   : > { %v12901_v16 = vpop.eup %12900  ;;  %v6978_v39 = vmul.f32 1.442695, %v6890_v14 }
 0x44d   : > { %v12903_v55 = vpop.eup %12902  ;;  %v6980_v52 = vmul.f32 1.442695, %v6891_v5  ;;  %v16107_v42 = vpop.xlane.xlu0 %6681  ;;  %v7061_v56 = vsel %vm6673_vm2, %v12901_v16, 0.0  ;;  %v18765_v16 = vld [vmem:[#allocation50_spill] sm:$0xff] }
 0x44e   : > { %18759 = vst [vmem:[#allocation5_spill] sm:$0xff] %v16107_v42  ;;  %v16109_v30 = vpop.xlane.xlu1 %6684  ;;  %12912 = vpow2.f32 %v6978_v39  ;;  %v6868_v23 = vsub.f32 %v18761_v8, %v16107_v42  ;;  %v7058_v2 = vsel %vm6673_vm2, %v12903_v55, 0.0 }
 0x44f   : > { %18760 = vst [vmem:[#allocation31_spill] sm:$0xff] %v16109_v30  ;;  %v6869_v54 = vsub.f32 %v18762_v59, %v16109_v30  ;;  %12914 = vpow2.f32 %v6980_v52  ;;  %7062 = vadd.xlane.f32.xlu1 %v7061_v56  ;;  %7059 = vadd.xlane.f32.xlu0 %v7058_v2  ;;  %v18766_v52 = vld [vmem:[#allocation47_spill] sm:$0xff] }
 0x450   : > { %v12905_v14 = vpop.eup %12904  ;;  %v6934_v17 = vmul.f32 1.442695, %v6868_v23 }
 0x451   : > { %v6936_v21 = vmul.f32 1.442695, %v6869_v54  ;;  %v12907_v5 = vpop.eup %12906  ;;  %v16117_v10 = vpop.xlane.xlu0 %6687  ;;  %v7112_v39 = vsel %vm6673_vm2, %v12905_v14, 0.0 }
 0x452   : > { %18763 = vst [vmem:[#allocation17_spill] sm:$0xff] %v16117_v10  ;;  %v16119_v20 = vpop.xlane.xlu1 %6690  ;;  %12916 = vpow2.f32 %v6934_v17  ;;  %v6870_v8 = vsub.f32 %v18765_v16, %v16117_v10  ;;  %v7115_v23 = vsel %vm6673_vm2, %v12907_v5, 0.0  ;;  %v18769_v17 = vld [vmem:[#allocation54_spill] sm:$0xff]  ;;  %v18770_v16 = vld [vmem:[#allocation52_spill] sm:$0xff] }
 0x453   : > { %18764 = vst [vmem:[#allocation18_spill] sm:$0xff] %v16119_v20  ;;  %12918 = vpow2.f32 %v6936_v21  ;;  %v6871_v55 = vsub.f32 %v18766_v52, %v16119_v20  ;;  %7113 = vadd.xlane.f32.xlu0 %v7112_v39  ;;  %7116 = vadd.xlane.f32.xlu1 %v7115_v23 }
 0x454   : > { %v12909_v59 = vpop.eup %12908  ;;  %v6938_v56 = vmul.f32 1.442695, %v6870_v8 }
 0x455   : > { %v12911_v54 = vpop.eup %12910  ;;  %v6940_v2 = vmul.f32 1.442695, %v6871_v55  ;;  %v16127_v30 = vpop.xlane.xlu0 %6699  ;;  %v7118_v14 = vsel %vm6673_vm2, %v12909_v59, 0.0 }
 0x456   : > { %18767 = vst [vmem:[#allocation50_spill] sm:$0xff] %v16127_v30  ;;  %v16129_v42 = vpop.xlane.xlu1 %6702  ;;  %12920 = vpow2.f32 %v6938_v56  ;;  %v6874_v21 = vsub.f32 %v18769_v17, %v16127_v30  ;;  %v7121_v8 = vsel %vm6673_vm2, %v12911_v54, 0.0  ;;  %v18773_v56 = vld [vmem:[#allocation57_spill] sm:$0xff]  ;;  %v18774_v17 = vld [vmem:[#allocation56_spill] sm:$0xff] }
 0x457   : > { %18768 = vst [vmem:[#allocation47_spill] sm:$0xff] %v16129_v42  ;;  %12922 = vpow2.f32 %v6940_v2  ;;  %v6875_v5 = vsub.f32 %v18770_v16, %v16129_v42  ;;  %7119 = vadd.xlane.f32.xlu0 %v7118_v14  ;;  %7122 = vadd.xlane.f32.xlu1 %v7121_v8 }
 0x458   : > { %v12913_v39 = vpop.eup %12912  ;;  %v6946_v52 = vmul.f32 1.442695, %v6874_v21 }
 0x459   : > { %v12915_v55 = vpop.eup %12914  ;;  %v6948_v23 = vmul.f32 1.442695, %v6875_v5  ;;  %v16137_v20 = vpop.xlane.xlu0 %6741  ;;  %v7130_v59 = vsel %vm6673_vm2, %v12913_v39, 0.0 }
 0x45a   : > { %18771 = vst [vmem:[#allocation54_spill] sm:$0xff] %v16137_v20  ;;  %v16139_v10 = vpop.xlane.xlu1 %6744  ;;  %12924 = vpow2.f32 %v6946_v52  ;;  %v6888_v2 = vsub.f32 %v18773_v56, %v16137_v20  ;;  %v7133_v54 = vsel %vm6673_vm2, %v12915_v55, 0.0  ;;  %v18777_v52 = vld [vmem:[#allocation29_spill] sm:$0xff] }
 0x45b   : > { %18772 = vst [vmem:[#allocation52_spill] sm:$0xff] %v16139_v10  ;;  %v6889_v16 = vsub.f32 %v18774_v17, %v16139_v10  ;;  %12926 = vpow2.f32 %v6948_v23  ;;  %7131 = vadd.xlane.f32.xlu0 %v7130_v59  ;;  %7134 = vadd.xlane.f32.xlu1 %v7133_v54  ;;  %v18778_v23 = vld [vmem:[#allocation25_spill] sm:$0xff] }
 0x45c   : > { %v12917_v14 = vpop.eup %12916  ;;  %v6974_v21 = vmul.f32 1.442695, %v6888_v2 }
 0x45d   : > { %v6976_v8 = vmul.f32 1.442695, %v6889_v16  ;;  %v12919_v5 = vpop.eup %12918  ;;  %v16147_v42 = vpop.xlane.xlu0 %6753  ;;  %v7064_v39 = vsel %vm6673_vm2, %v12917_v14, 0.0 }
 0x45e   : > { %18775 = vst [vmem:[#allocation57_spill] sm:$0xff] %v16147_v42  ;;  %v16149_v30 = vpop.xlane.xlu1 %6756  ;;  %12928 = vpow2.f32 %v6974_v21  ;;  %v6892_v56 = vsub.f32 %v18777_v52, %v16147_v42  ;;  %v7067_v59 = vsel %vm6673_vm2, %v12919_v5, 0.0  ;;  %v18781_v52 = vld [vmem:[#allocation27_spill] sm:$0xff] }
 0x45f   : > { %18776 = vst [vmem:[#allocation56_spill] sm:$0xff] %v16149_v30  ;;  %12930 = vpow2.f32 %v6976_v8  ;;  %v6893_v55 = vsub.f32 %v18778_v23, %v16149_v30  ;;  %7065 = vadd.xlane.f32.xlu0 %v7064_v39  ;;  %7068 = vadd.xlane.f32.xlu1 %v7067_v59  ;;  %v18782_v39 = vld [vmem:[#allocation35_spill] sm:$0xff] }
 0x460   : > { %v12921_v2 = vpop.eup %12920  ;;  %v6982_v16 = vmul.f32 1.442695, %v6892_v56 }
 0x461   : > { %v12923_v35 = vpop.eup %12922  ;;  %v6984_v10 = vmul.f32 1.442695, %v6893_v55  ;;  %v16159_v14 = vpop.xlane.xlu0 %6759  ;;  %v7070_v8 = vsel %vm6673_vm2, %v12921_v2, 0.0 }
 0x462   : > { %18779 = vst [vmem:[#allocation29_spill] sm:$0xff] %v16159_v14  ;;  %v16161_v21 = vpop.xlane.xlu1 %6762  ;;  %12932 = vpow2.f32 %v6982_v16  ;;  %v6894_v23 = vsub.f32 %v18781_v52, %v16159_v14  ;;  %v7073_v56 = vsel %vm6673_vm2, %v12923_v35, 0.0  ;;  %v18785_v52 = vld [vmem:[#allocation45_spill] sm:$0xff] }
 0x463   : > { %18780 = vst [vmem:[#allocation25_spill] sm:$0xff] %v16161_v21  ;;  %12934 = vpow2.f32 %v6984_v10  ;;  %v6895_v5 = vsub.f32 %v18782_v39, %v16161_v21  ;;  %7071 = vadd.xlane.f32.xlu0 %v7070_v8  ;;  %7074 = vadd.xlane.f32.xlu1 %v7073_v56  ;;  %v18786_v35 = vld [vmem:[#allocation37_spill] sm:$0xff] }
 0x464   : > { %v6986_v30 = vmul.f32 1.442695, %v6894_v23 }
 0x465   : > { %v6988_v42 = vmul.f32 1.442695, %v6895_v5  ;;  %v16172_v2 = vpop.xlane.xlu0 %6819 }
 0x466   : > { %18783 = vst [vmem:[#allocation27_spill] sm:$0xff] %v16172_v2  ;;  %v16174_v16 = vpop.xlane.xlu1 %6822  ;;  %12936 = vpow2.f32 %v6986_v30  ;;  %v6914_v39 = vsub.f32 %v18785_v52, %v16172_v2 }
 0x467   : > { %v5115_v17 = vpop.f32.mrb[20].mxu0  ;;  %18784 = vst [vmem:[#allocation35_spill] sm:$0xff] %v16174_v16  ;;  %12938 = vpow2.f32 %v6988_v42  ;;  %v6915_v8 = vsub.f32 %v18786_v35, %v16174_v16  ;;  %v18787_v35 = vld [vmem:[#allocation49_spill] sm:$0xff] }
 0x468   : > { %v16157_v54 = vand.u32 4294901760, %v5115_v17  ;;  %v11477_v36 = vpop.f32.mrb[21].mxu0  ;;  %v7026_v21 = vmul.f32 1.442695, %v6914_v39 }
 0x469   : > { %v12925_v36 = vpop.eup %12924  ;;  %v7028_v14 = vmul.f32 1.442695, %v6915_v8 }
 0x46a   : > { %v16170_v55 = vsub.f32 %v5115_v17, %v16157_v54  ;;  %v12927_v59 = vpop.eup %12926  ;;  %v7082_v10 = vsel %vm6673_vm2, %v12925_v36, 0.0  ;;  %v16186_v36 = vpop.xlane.xlu0 %6693  ;;  %12940 = vpow2.f32 %v7026_v21 }
 0x46b   : > { %v12929_v23 = vpop.eup %12928  ;;  %7083 = vadd.xlane.f32.xlu0 %v7082_v10  ;;  %v7085_v5 = vsel %vm6673_vm2, %v12927_v59, 0.0  ;;  %v16188_v42 = vpop.xlane.xlu1 %6696  ;;  %v6872_v39 = vsub.f32 %v18787_v35, %v16186_v36  ;;  %v18788_v10 = vld [vmem:[#allocation46_spill] sm:$0xff]  ;;  %12942 = vpow2.f32 %v7028_v14  ;;  %v18791_v35 = vld [vmem:[#allocation23_spill] sm:$0xff] }
 0x46c   : > { %v18350_v17 = vand.u32 4294901760, %v16170_v55  ;;  %v12931_v56 = vpop.eup %12930  ;;  %7086 = vadd.xlane.f32.xlu1 %v7085_v5  ;;  %v7124_v52 = vsel %vm6673_vm2, %v12929_v23, 0.0  ;;  %v6873_v59 = vsub.f32 %v18788_v10, %v16188_v42 }
 0x46d   : > { %v7127_v16 = vsel %vm6673_vm2, %v12931_v56, 0.0  ;;  %v12933_v2 = vpop.eup %12932  ;;  %v18793_v56 = vmov 0.0  }
 0x46e   : > { %v5204_v30 = vsub.f32 %v16170_v55, %v18350_v17  ;;  %v6942_v17 = vmul.f32 1.442695, %v6872_v39  ;;  %v6944_v5 = vmul.f32 1.442695, %v6873_v59  ;;  %v12935_v20 = vpop.eup %12934  ;;  %v16196_v43 = vpop.xlane.xlu0 %6705  ;;  %v7136_v21 = vsel %vm6673_vm2, %v12933_v2, 0.0 }
 0x46f   : > { %7125 = vadd.xlane.f32.xlu0 %v7124_v52  ;;  %18789 = vst [vmem:[#allocation45_spill] sm:$0xff] %v16196_v43  ;;  %v16198_v23 = vpop.xlane.xlu1 %6708  ;;  %v6876_v14 = vsub.f32 %v18791_v35, %v16196_v43  ;;  %v18794_v52 = vld [vmem:[#allocation19_spill] sm:$0xff]  ;;  %v7139_v2 = vsel %vm6673_vm2, %v12935_v20, 0.0 }
 0x470   : > { %v5205_v8 = vand.u32 4294901760, %v5204_v30  ;;  %7128 = vadd.xlane.f32.xlu1 %v7127_v16  ;;  %18790 = vst [vmem:[#allocation37_spill] sm:$0xff] %v16198_v23  ;;  %12944 = vpow2.f32 %v6942_v17  ;;  %v18792_v30 = vld [vmem:[#allocation81_spill] sm:$0xff]  ;;  %v6877_v16 = vsub.f32 %v18794_v52, %v16198_v23  ;;  %v12937_v39 = vpop.eup %12936 }
 0x471   : > { %12946 = vpow2.f32 %v6944_v5  ;;  %v6950_v10 = vmul.f32 1.442695, %v6876_v14  ;;  %v12939_v17 = vpop.eup %12938  ;;  %v18796_v5 = vld [vmem:[#allocation26_spill] sm:$0xff] }
 0x472   : > { %11511 = vmatmul.mubr.f32.vlgmr.msra.gmra.mrb[16].mxu1 %v5205_v8  ;;  %v6952_v59 = vmul.f32 1.442695, %v6877_v16  ;;  %v16210_v8 = vpop.xlane.xlu0 %6711  ;;  %v7145_v20 = vsel %vm6673_vm2, %v12939_v17, 0.0  ;;  %v18801_v17 = vld [vmem:[#allocation28_spill] sm:$0xff] }
 0x473   : > { %12554 = vmatpush3.bf16.msra.mxu1 %v18792_v30  ;;  %11545 = vmatprep.mubr.msk.f32.mxu1 %vm13130_vm1, %v18793_v56  ;;  %v16212_v35 = vpop.xlane.xlu1 %6714  ;;  %v7142_v30 = vsel %vm6673_vm2, %v12937_v39, 0.0  ;;  %12948 = vpow2.f32 %v6950_v10  ;;  %v6878_v52 = vsub.f32 %v18796_v5, %v16210_v8 }
 0x474   : > { %12555 = vmatprep.subr.bf16.mxu1 %v18725_v61  ;;  %7137 = vadd.xlane.f32.xlu0 %v7136_v21  ;;  %18795 = vst [vmem:[#allocation49_spill] sm:$0xff] %v16212_v35  ;;  %12950 = vpow2.f32 %v6952_v59  ;;  %v18797_v21 = vld [vmem:[#allocation36_spill] sm:$0xff]  ;;  %v12941_v16 = vpop.eup %12940 }
 0x475   : > { %7140 = vadd.xlane.f32.xlu1 %v7139_v2  ;;  %v6879_v14 = vsub.f32 %v18797_v21, %v16212_v35  ;;  %v6954_v2 = vmul.f32 1.442695, %v6878_v52  ;;  %v12943_v23 = vpop.eup %12942  ;;  %v18800_v59 = vld [vmem:[#allocation48_spill] sm:$0xff] }
 0x476   : > { %v16222_v39 = vpop.xlane.xlu0 %6771 }
 0x477   : > { %12557 = vmatpush3.bf16.msra.mxu1 %v15891_v15  ;;  %v6956_v43 = vmul.f32 1.442695, %v6879_v14  ;;  %18798 = vst [vmem:[#allocation46_spill] sm:$0xff] %v16222_v39  ;;  %v16224_v10 = vpop.xlane.xlu1 %6774  ;;  %v7202_v15 = vsel %vm6673_vm2, %v12941_v16, 0.0  ;;  %12952 = vpow2.f32 %v6954_v2  ;;  %v6898_v5 = vsub.f32 %v18800_v59, %v16222_v39 }
 0x478   : > { %12558 = vmatprep.subr.bf16.mxu1 %v18725_v61  ;;  %7143 = vadd.xlane.f32.xlu0 %v7142_v30  ;;  %18799 = vst [vmem:[#allocation23_spill] sm:$0xff] %v16224_v10  ;;  %v6899_v52 = vsub.f32 %v18801_v17, %v16224_v10  ;;  %v7205_v30 = vsel %vm6673_vm2, %v12943_v23, 0.0  ;;  %v18803_v23 = vld [vmem:[#allocation51_spill] sm:$0xff] }
 0x479   : > { %7146 = vadd.xlane.f32.xlu1 %v7145_v20  ;;  %12954 = vpow2.f32 %v6956_v43  ;;  %v6994_v14 = vmul.f32 1.442695, %v6898_v5  ;;  %v18802_v43 = vld [vmem:[#allocation58_spill] sm:$0xff] }
 0x47a   : > { %v12945_v21 = vpop.eup %12944  ;;  %v6996_v35 = vmul.f32 1.442695, %v6899_v52  ;;  %v16234_v16 = vpop.xlane.xlu0 %6765 }
 0x47b   : > { %12560 = vmatpush3.bf16.msra.mxu1 %v15893_v41  ;;  %v12947_v20 = vpop.eup %12946  ;;  %v16236_v2 = vpop.xlane.xlu1 %6768  ;;  %v7076_v41 = vsel %vm6673_vm2, %v12945_v21, 0.0  ;;  %12956 = vpow2.f32 %v6994_v14  ;;  %v6896_v59 = vsub.f32 %v18802_v43, %v16234_v16 }
 0x47c   : > { %12561 = vmatprep.subr.bf16.mxu1 %v18725_v61  ;;  %7203 = vadd.xlane.f32.xlu0 %v7202_v15  ;;  %v6897_v17 = vsub.f32 %v18803_v23, %v16236_v2  ;;  %12958 = vpow2.f32 %v6996_v35  ;;  %v7079_v15 = vsel %vm6673_vm2, %v12947_v20, 0.0  ;;  %v18806_v20 = vld [vmem:[#allocation53_spill] sm:$0xff] }
 0x47d   : > { %7206 = vadd.xlane.f32.xlu1 %v7205_v30  ;;  %v12949_v5 = vpop.eup %12948  ;;  %v6990_v52 = vmul.f32 1.442695, %v6896_v59 }
 0x47e   : > { %v6992_v30 = vmul.f32 1.442695, %v6897_v17  ;;  %v12951_v10 = vpop.eup %12950  ;;  %v16246_v21 = vpop.xlane.xlu0 %6825  ;;  %v7088_v43 = vsel %vm6673_vm2, %v12949_v5, 0.0 }
 0x47f   : > { %12563 = vmatpush3.bf16.msra.mxu1 %v15953_v60  ;;  %v16248_v14 = vpop.xlane.xlu1 %6828  ;;  %12960 = vpow2.f32 %v6990_v52  ;;  %v18805_v60 = vld [vmem:[#allocation59_spill] sm:$0xff]  ;;  %v7091_v17 = vsel %vm6673_vm2, %v12951_v10, 0.0 }
 0x480   : > { %12564 = vmatprep.subr.bf16.mxu1 %v18725_v61  ;;  %7077 = vadd.xlane.f32.xlu0 %v7076_v41  ;;  %18804 = vst [vmem:[#allocation81_spill] sm:$0xff] %v16248_v14  ;;  %v6916_v35 = vsub.f32 %v18805_v60, %v16246_v21  ;;  %12962 = vpow2.f32 %v6992_v30  ;;  %v6917_v59 = vsub.f32 %v18806_v20, %v16248_v14  ;;  %v18808_v30 = vld [vmem:[#allocation9_spill] sm:$0xff] }
 0x481   : > { %7080 = vadd.xlane.f32.xlu1 %v7079_v15  ;;  %v12953_v41 = vpop.eup %12952 }
 0x482   : > { %v7030_v23 = vmul.f32 1.442695, %v6916_v35  ;;  %v7032_v39 = vmul.f32 1.442695, %v6917_v59  ;;  %v16258_v5 = vpop.xlane.xlu0 %6831  ;;  %v18809_v35 = vld [vmem:[#allocation60_spill] sm:$0xff] }
 0x483   : > { %12566 = vmatpush3.bf16.msra.mxu1 %v15971_v50  ;;  %v12955_v15 = vpop.eup %12954  ;;  %v16260_v52 = vpop.xlane.xlu1 %6834  ;;  %v7094_v50 = vsel %vm6673_vm2, %v12953_v41, 0.0  ;;  %v6918_v60 = vsub.f32 %v18808_v30, %v16258_v5  ;;  %v18812_v30 = vld [vmem:[#allocation62_spill] sm:$0xff] }
 0x484   : > { %12567 = vmatprep.subr.bf16.mxu1 %v18725_v61  ;;  %7089 = vadd.xlane.f32.xlu0 %v7088_v43  ;;  %18807 = vst [vmem:[#allocation19_spill] sm:$0xff] %v16260_v52  ;;  %12964 = vpow2.f32 %v7030_v23  ;;  %v6919_v43 = vsub.f32 %v18809_v35, %v16260_v52  ;;  %v7097_v10 = vsel %vm6673_vm2, %v12955_v15, 0.0 }
 0x485   : > { %7092 = vadd.xlane.f32.xlu1 %v7091_v17  ;;  %v12957_v20 = vpop.eup %12956  ;;  %12966 = vpow2.f32 %v7032_v39  ;;  %v7034_v59 = vmul.f32 1.442695, %v6918_v60  ;;  %v18813_v39 = vld [vmem:[#allocation61_spill] sm:$0xff] }
 0x486   : > { %v12959_v17 = vpop.eup %12958  ;;  %v7036_v14 = vmul.f32 1.442695, %v6919_v43  ;;  %v16270_v41 = vpop.xlane.xlu0 %6843 }
 0x487   : > { %12569 = vmatpush3.bf16.msra.mxu1 %v15973_v49  ;;  %18810 = vst [vmem:[#allocation26_spill] sm:$0xff] %v16270_v41  ;;  %v16272_v23 = vpop.xlane.xlu1 %6846  ;;  %v7154_v49 = vsel %vm6673_vm2, %v12957_v20, 0.0  ;;  %12968 = vpow2.f32 %v7034_v59  ;;  %v6922_v35 = vsub.f32 %v18812_v30, %v16270_v41 }
 0x488   : > { %12570 = vmatprep.subr.bf16.mxu1 %v18725_v61  ;;  %7095 = vadd.xlane.f32.xlu0 %v7094_v50  ;;  %18811 = vst [vmem:[#allocation36_spill] sm:$0xff] %v16272_v23  ;;  %12970 = vpow2.f32 %v7036_v14  ;;  %v6923_v15 = vsub.f32 %v18813_v39, %v16272_v23  ;;  %v7157_v50 = vsel %vm6673_vm2, %v12959_v17, 0.0  ;;  %v18814_v14 = vld [vmem:[#allocation69_spill] sm:$0xff]  ;;  %v18815_v17 = vld [vmem:[#allocation68_spill] sm:$0xff] }
 0x489   : > { %7098 = vadd.xlane.f32.xlu1 %v7097_v10  ;;  %v12961_v60 = vpop.eup %12960  ;;  %v7042_v43 = vmul.f32 1.442695, %v6922_v35 }
 0x48a   : > { %v12963_v10 = vpop.eup %12962  ;;  %v7044_v52 = vmul.f32 1.442695, %v6923_v15  ;;  %v16282_v20 = vpop.xlane.xlu0 %6717 }
 0x48b   : > { %12572 = vmatpush3.bf16.msra.mxu1 %v15978_v45  ;;  %v16284_v59 = vpop.xlane.xlu1 %6720  ;;  %v7148_v45 = vsel %vm6673_vm2, %v12961_v60, 0.0  ;;  %12972 = vpow2.f32 %v7042_v43  ;;  %v6880_v30 = vsub.f32 %v18814_v14, %v16282_v20 }
 0x48c   : > { %12573 = vmatprep.subr.bf16.mxu1 %v18725_v61  ;;  %7155 = vadd.xlane.f32.xlu0 %v7154_v49  ;;  %v6881_v39 = vsub.f32 %v18815_v17, %v16284_v59  ;;  %12974 = vpow2.f32 %v7044_v52  ;;  %v7151_v49 = vsel %vm6673_vm2, %v12963_v10, 0.0  ;;  %v18819_v10 = vpack.c.bf16 %v15738_v63, %v15736_v28 }
 0x48d   : > { %7158 = vadd.xlane.f32.xlu1 %v7157_v50  ;;  %v6958_v15 = vmul.f32 1.442695, %v6880_v30 }
 0x48e   : > { %v12965_v35 = vpop.eup %12964  ;;  %v6960_v50 = vmul.f32 1.442695, %v6881_v39  ;;  %v16294_v60 = vpop.xlane.xlu0 %6777 }
 0x48f   : > { %12575 = vmatpush3.bf16.msra.mxu1 %v16014_v4  ;;  %18816 = vst [vmem:[#allocation48_spill] sm:$0xff] %v16294_v60  ;;  %v16296_v43 = vpop.xlane.xlu1 %6780  ;;  %v7208_v14 = vsel %vm6673_vm2, %v12965_v35, 0.0  ;;  %v12967_v17 = vpop.eup %12966  ;;  %12976 = vpow2.f32 %v6958_v15  ;;  %v18818_v4 = vld [vmem:[#allocation64_spill] sm:$0xff] }
 0x490   : > { %12576 = vmatprep.subr.bf16.mxu1 %v18725_v61  ;;  %7149 = vadd.xlane.f32.xlu0 %v7148_v45  ;;  %18817 = vst [vmem:[#allocation28_spill] sm:$0xff] %v16296_v43  ;;  %v6900_v52 = vsub.f32 %v18818_v4, %v16294_v60  ;;  %12978 = vpow2.f32 %v6960_v50  ;;  %v18820_v45 = vld [vmem:[#allocation63_spill] sm:$0xff]  ;;  %v7211_v35 = vsel %vm6673_vm2, %v12967_v17, 0.0  ;;  %v18823_v50 = vld [vmem:[#allocation66_spill] sm:$0xff] }
 0x491   : > { %7152 = vadd.xlane.f32.xlu1 %v7151_v49  ;;  %v6901_v30 = vsub.f32 %v18820_v45, %v16296_v43  ;;  %v12969_v39 = vpop.eup %12968  ;;  %v18824_v43 = vpack.c.bf16 %v15766_v62, %v15747_v11 }
 0x492   : > { %11546 = vmatmul.mubr.f32.vlgmr.msra.gmra.mrb[16].mxu1 %v16157_v54  ;;  %v6998_v49 = vmul.f32 1.442695, %v6900_v52  ;;  %v12971_v15 = vpop.eup %12970  ;;  %v16311_v60 = vpop.xlane.xlu0 %6783  ;;  %v7214_v23 = vsel %vm6673_vm2, %v12969_v39, 0.0 }
 0x493   : > { %12578 = vmatpush3.bf16.msra.mxu1 %v18819_v10  ;;  %11580 = vmatprep.mubr.msk.f32.mxu1 %vm13130_vm1, %v18793_v56  ;;  %v7000_v4 = vmul.f32 1.442695, %v6901_v30  ;;  %18821 = vst [vmem:[#allocation58_spill] sm:$0xff] %v16311_v60  ;;  %v16313_v10 = vpop.xlane.xlu1 %6786  ;;  %v6902_v45 = vsub.f32 %v18823_v50, %v16311_v60  ;;  %v7217_v52 = vsel %vm6673_vm2, %v12971_v15, 0.0  ;;  %v18829_v15 = vpack.c.bf16 %v15776_v33, %v15769_v47 }
 0x494   : > { %12579 = vmatprep.subr.bf16.mxu1 %v18725_v61  ;;  %7209 = vadd.xlane.f32.xlu0 %v7208_v14  ;;  %18822 = vst [vmem:[#allocation51_spill] sm:$0xff] %v16313_v10  ;;  %12980 = vpow2.f32 %v6998_v49  ;;  %v18825_v14 = vld [vmem:[#allocation65_spill] sm:$0xff] }
 0x495   : > { %7212 = vadd.xlane.f32.xlu1 %v7211_v35  ;;  %v6903_v17 = vsub.f32 %v18825_v14, %v16313_v10  ;;  %v12973_v30 = vpop.eup %12972  ;;  %12982 = vpow2.f32 %v7000_v4  ;;  %v7002_v35 = vmul.f32 1.442695, %v6902_v45  ;;  %v18828_v14 = vld [vmem:[#allocation71_spill] sm:$0xff] }
 0x496   : > { %v12975_v39 = vpop.eup %12974  ;;  %v16325_v41 = vpop.xlane.xlu0 %6795 }
 0x497   : > { %12581 = vmatpush3.bf16.msra.mxu1 %v18824_v43  ;;  %v7004_v49 = vmul.f32 1.442695, %v6903_v17  ;;  %18826 = vst [vmem:[#allocation59_spill] sm:$0xff] %v16325_v41  ;;  %v16327_v50 = vpop.xlane.xlu1 %6798  ;;  %v7226_v43 = vsel %vm6673_vm2, %v12973_v30, 0.0  ;;  %12984 = vpow2.f32 %v7002_v35  ;;  %v6906_v10 = vsub.f32 %v18828_v14, %v16325_v41 }
 0x498   : > { %12582 = vmatprep.subr.bf16.mxu1 %v18725_v61  ;;  %7215 = vadd.xlane.f32.xlu0 %v7214_v23  ;;  %18827 = vst [vmem:[#allocation53_spill] sm:$0xff] %v16327_v50  ;;  %v18830_v23 = vld [vmem:[#allocation67_spill] sm:$0xff]  ;;  %v7229_v45 = vsel %vm6673_vm2, %v12975_v39, 0.0 }
 0x499   : > { %7218 = vadd.xlane.f32.xlu1 %v7217_v52  ;;  %12986 = vpow2.f32 %v7004_v49  ;;  %v6907_v4 = vsub.f32 %v18830_v23, %v16327_v50  ;;  %v12977_v17 = vpop.eup %12976  ;;  %v7010_v52 = vmul.f32 1.442695, %v6906_v10  ;;  %v18831_v49 = vld [vmem:[#allocation78_spill] sm:$0xff]  ;;  %v18832_v39 = vld [vmem:[#allocation75_spill] sm:$0xff]  ;;  %v18833_v10 = vpack.c.bf16 %v15867_v22, %v15826_v32 }
 0x49a   : > { %v12979_v30 = vpop.eup %12978  ;;  %v16339_v60 = vpop.xlane.xlu0 %6837 }
 0x49b   : > { %12584 = vmatpush3.bf16.msra.mxu1 %v18829_v15  ;;  %v7012_v35 = vmul.f32 1.442695, %v6907_v4  ;;  %v16341_v14 = vpop.xlane.xlu1 %6840  ;;  %v7100_v15 = vsel %vm6673_vm2, %v12977_v17, 0.0  ;;  %12988 = vpow2.f32 %v7010_v52  ;;  %v6920_v23 = vsub.f32 %v18831_v49, %v16339_v60 }
 0x49c   : > { %12585 = vmatprep.subr.bf16.mxu1 %v18725_v61  ;;  %7227 = vadd.xlane.f32.xlu0 %v7226_v43  ;;  %v6921_v50 = vsub.f32 %v18832_v39, %v16341_v14  ;;  %v7103_v43 = vsel %vm6673_vm2, %v12979_v30, 0.0  ;;  %v18834_v30 = vpack.c.bf16 %v15898_v38, %v15872_v58 }
 0x49d   : > { %7230 = vadd.xlane.f32.xlu1 %v7229_v45  ;;  %12990 = vpow2.f32 %v7012_v35  ;;  %v7038_v45 = vmul.f32 1.442695, %v6920_v23 }
 0x49e   : > { %v12981_v4 = vpop.eup %12980  ;;  %v7040_v41 = vmul.f32 1.442695, %v6921_v50 }
 0x49f   : > { %12587 = vmatpush3.bf16.msra.mxu1 %v18833_v10  ;;  %v16353_v17 = vpop.xlane.xlu0 %6849  ;;  %v16355_v52 = vpop.xlane.xlu1 %6852  ;;  %v7160_v49 = vsel %vm6673_vm2, %v12981_v4, 0.0  ;;  %12992 = vpow2.f32 %v7038_v45 }
 0x4a0   : > { %12588 = vmatprep.subr.bf16.mxu1 %v18725_v61  ;;  %7101 = vadd.xlane.f32.xlu0 %v7100_v15  ;;  %v12983_v39 = vpop.eup %12982  ;;  %v6924_v35 = vsub.f32 %v15851_v24, %v16353_v17  ;;  %12994 = vpow2.f32 %v7040_v41  ;;  %v6925_v50 = vsub.f32 %v15824_v48, %v16355_v52  ;;  %v18835_v41 = vpack.c.bf16 %v15902_v44, %v15900_v29 }
 0x4a1   : > { %7104 = vadd.xlane.f32.xlu1 %v7103_v43  ;;  %v12985_v15 = vpop.eup %12984  ;;  %v7163_v10 = vsel %vm6673_vm2, %v12983_v39, 0.0 }
 0x4a2   : > { %v7046_v23 = vmul.f32 1.442695, %v6924_v35  ;;  %v7048_v4 = vmul.f32 1.442695, %v6925_v50 }
 0x4a3   : > { %12590 = vmatpush3.bf16.msra.mxu1 %v18834_v30  ;;  %v12987_v43 = vpop.eup %12986  ;;  %v7166_v30 = vsel %vm6673_vm2, %v12985_v15, 0.0 }
 0x4a4   : > { %12591 = vmatprep.subr.bf16.mxu1 %v18725_v61  ;;  %7161 = vadd.xlane.f32.xlu0 %v7160_v49  ;;  %12996 = vpow2.f32 %v7046_v23  ;;  %v7169_v39 = vsel %vm6673_vm2, %v12987_v43, 0.0  ;;  %v18838_v43 = vpack.c.bf16 %v15912_v37, %v15910_v13 }
 0x4a5   : > { %7164 = vadd.xlane.f32.xlu1 %v7163_v10  ;;  %12998 = vpow2.f32 %v7048_v4  ;;  %v12989_v35 = vpop.eup %12988 }
 0x4a6   : > { %v16369_v24 = vpop.xlane.xlu1 %6858 }
 0x4a7   : > { %v16367_v45 = vpop.xlane.xlu0 %6855  ;;  %12593 = vmatpush3.bf16.msra.mxu1 %v18835_v41  ;;  %v6927_v49 = vsub.f32 %v15854_v53, %v16369_v24  ;;  %v12991_v15 = vpop.eup %12990  ;;  %v7178_v41 = vsel %vm6673_vm2, %v12989_v35, 0.0 }
 0x4a8   : > { %v6926_v48 = vsub.f32 %v15862_v18, %v16367_v45  ;;  %12594 = vmatprep.subr.bf16.mxu1 %v18725_v61  ;;  %7167 = vadd.xlane.f32.xlu0 %v7166_v30  ;;  %v7181_v30 = vsel %vm6673_vm2, %v12991_v15, 0.0  ;;  %v18841_v15 = vpack.c.bf16 %v15961_v9, %v15951_v26 }
 0x4a9   : > { %v7052_v23 = vmul.f32 1.442695, %v6927_v49  ;;  %7170 = vadd.xlane.f32.xlu1 %v7169_v39 }
 0x4aa   : > { %v7050_v50 = vmul.f32 1.442695, %v6926_v48  ;;  %v16383_v18 = vpop.xlane.xlu1 %6792  ;;  %v12993_v48 = vpop.eup %12992 }
 0x4ab   : > { %v16381_v10 = vpop.xlane.xlu0 %6789  ;;  %18837 = vst [vmem:[#allocation60_spill] sm:$0xff] %v16383_v18  ;;  %12596 = vmatpush3.bf16.msra.mxu1 %v18838_v43  ;;  %v6905_v4 = vsub.f32 %v15880_v40, %v16383_v18  ;;  %v12995_v39 = vpop.eup %12994  ;;  %v7220_v43 = vsel %vm6673_vm2, %v12993_v48, 0.0 }
 0x4ac   : > { %18836 = vst [vmem:[#allocation9_spill] sm:$0xff] %v16381_v10  ;;  %13000 = vpow2.f32 %v7050_v50  ;;  %v6904_v53 = vsub.f32 %v15965_v1, %v16381_v10  ;;  %12597 = vmatprep.subr.bf16.mxu1 %v18725_v61  ;;  %7179 = vadd.xlane.f32.xlu0 %v7178_v41 }
 0x4ad   : > { %13002 = vpow2.f32 %v7052_v23  ;;  %v7008_v35 = vmul.f32 1.442695, %v6905_v4  ;;  %7182 = vadd.xlane.f32.xlu1 %v7181_v30  ;;  %v7223_v4 = vsel %vm6673_vm2, %v12995_v39, 0.0 }
 0x4ae   : > { %v7006_v49 = vmul.f32 1.442695, %v6904_v53  ;;  %v16397_v1 = vpop.xlane.xlu1 %6804  ;;  %v12997_v41 = vpop.eup %12996 }
 0x4af   : > { %v16395_v50 = vpop.xlane.xlu0 %6801  ;;  %18840 = vst [vmem:[#allocation61_spill] sm:$0xff] %v16397_v1  ;;  %12599 = vmatpush3.bf16.msra.mxu1 %v18841_v15  ;;  %v6909_v23 = vsub.f32 %v16001_v31, %v16397_v1  ;;  %v12999_v30 = vpop.eup %12998  ;;  %v7232_v15 = vsel %vm6673_vm2, %v12997_v41, 0.0 }
 0x4b0   : > { %18839 = vst [vmem:[#allocation62_spill] sm:$0xff] %v16395_v50  ;;  %13004 = vpow2.f32 %v7006_v49  ;;  %v6908_v40 = vsub.f32 %v16004_v19, %v16395_v50  ;;  %12600 = vmatprep.subr.bf16.mxu1 %v18725_v61  ;;  %7221 = vadd.xlane.f32.xlu0 %v7220_v43  ;;  %v7235_v43 = vsel %vm6673_vm2, %v12999_v30, 0.0 }
 0x4b1   : > { %13006 = vpow2.f32 %v7008_v35  ;;  %v7016_v48 = vmul.f32 1.442695, %v6909_v23  ;;  %7224 = vadd.xlane.f32.xlu1 %v7223_v4  ;;  %v18844_v35 = vld [vmem:[#allocation70_spill] sm:$0xff] }
 0x4b2   : > { %v7014_v53 = vmul.f32 1.442695, %v6908_v40  ;;  %v16411_v19 = vpop.xlane.xlu1 %6810  ;;  %11581 = vmatmul.mubr.f32.vlgmr.msra.gmra.mrb[16].mxu1 %v16170_v55 }
 0x4b3   : > { %v16409_v49 = vpop.xlane.xlu0 %6807  ;;  %18843 = vst [vmem:[#allocation68_spill] sm:$0xff] %v16411_v19  ;;  %12602 = vmatpush3.bf16.msra.mxu1 %v18844_v35  ;;  %11615 = vmatprep.mubr.msk.f32.mxu1 %vm13130_vm1, %v18793_v56  ;;  %v6911_v39 = vsub.f32 %v16012_v3, %v16411_v19 }
 0x4b4   : > { %18842 = vst [vmem:[#allocation69_spill] sm:$0xff] %v16409_v49  ;;  %13008 = vpow2.f32 %v7014_v53  ;;  %v6910_v31 = vsub.f32 %v16021_v46, %v16409_v49  ;;  %12603 = vmatprep.subr.bf16.mxu1 %v18725_v61  ;;  %7233 = vadd.xlane.f32.xlu0 %v7232_v15 }
 0x4b5   : > { %13010 = vpow2.f32 %v7016_v48  ;;  %v7020_v53 = vmul.f32 1.442695, %v6911_v39  ;;  %7236 = vadd.xlane.f32.xlu1 %v7235_v43  ;;  %v18845_v48 = vld [vmem:[#allocation72_spill] sm:$0xff] }
 0x4b6   : > { %v13001_v40 = vpop.eup %13000  ;;  %v7018_v23 = vmul.f32 1.442695, %v6910_v31  ;;  %v16426_v4 = vpop.xlane.xlu1 %6864 }
 0x4b7   : > { %v13003_v41 = vpop.eup %13002  ;;  %v16424_v46 = vpop.xlane.xlu0 %6861  ;;  %v7238_v49 = vsel %vm6673_vm2, %v13001_v40, 0.0  ;;  %12605 = vmatpush3.bf16.msra.mxu1 %v18845_v48  ;;  %v6929_v30 = vsub.f32 %v16036_v51, %v16426_v4 }
 0x4b8   : > { %13012 = vpow2.f32 %v7018_v23  ;;  %v6928_v3 = vsub.f32 %v16039_v34, %v16424_v46  ;;  %v7241_v15 = vsel %vm6673_vm2, %v13003_v41, 0.0  ;;  %12606 = vmatprep.subr.bf16.mxu1 %v18725_v61  ;;  %7239 = vadd.xlane.f32.xlu0 %v7238_v49 }
 0x4b9   : > { %13014 = vpow2.f32 %v7020_v53  ;;  %v7056_v19 = vmul.f32 1.442695, %v6929_v30  ;;  %7242 = vadd.xlane.f32.xlu1 %v7241_v15  ;;  %v18848_v53 = vld [vmem:[#allocation73_spill] sm:$0xff] }
 0x4ba   : > { %v13005_v31 = vpop.eup %13004  ;;  %v7054_v39 = vmul.f32 1.442695, %v6928_v3  ;;  %v16438_v23 = vpop.xlane.xlu1 %6816 }
 0x4bb   : > { %v13007_v43 = vpop.eup %13006  ;;  %v16436_v40 = vpop.xlane.xlu0 %6813  ;;  %18847 = vst [vmem:[#allocation63_spill] sm:$0xff] %v16438_v23  ;;  %v7172_v34 = vsel %vm6673_vm2, %v13005_v31, 0.0  ;;  %12608 = vmatpush3.bf16.msra.mxu1 %v18848_v53  ;;  %v6913_v41 = vsub.f32 %v16044_v57, %v16438_v23 }
 0x4bc   : > { %18846 = vst [vmem:[#allocation64_spill] sm:$0xff] %v16436_v40  ;;  %13016 = vpow2.f32 %v7054_v39  ;;  %v6912_v51 = vsub.f32 %v16051_v25, %v16436_v40  ;;  %12609 = vmatprep.subr.bf16.mxu1 %v18725_v61  ;;  %7173 = vadd.xlane.f32.xlu0 %v7172_v34  ;;  %v7175_v30 = vsel %vm6673_vm2, %v13007_v43, 0.0  ;;  %v18849_v39 = vld [vmem:[#allocation74_spill] sm:$0xff]  ;;  %v18876_v40 = vld [vmem:[#allocation57_spill] sm:$0xff] }
 0x4bd   : > { %13018 = vpow2.f32 %v7056_v19  ;;  %v7024_v1 = vmul.f32 1.442695, %v6913_v41  ;;  %7176 = vadd.xlane.f32.xlu1 %v7175_v30 }
 0x4be   : > { %v13009_v49 = vpop.eup %13008  ;;  %v7022_v3 = vmul.f32 1.442695, %v6912_v51  ;;  %v18850_v51 = vld [vmem:[#allocation76_spill] sm:$0xff] }
 0x4bf   : > { %v13011_v15 = vpop.eup %13010  ;;  %v7184_v31 = vsel %vm6673_vm2, %v13009_v49, 0.0  ;;  %12611 = vmatpush3.bf16.msra.mxu1 %v18849_v39 }
 0x4c0   : > { %13020 = vpow2.f32 %v7022_v3  ;;  %v7187_v25 = vsel %vm6673_vm2, %v13011_v15, 0.0  ;;  %12612 = vmatprep.subr.bf16.mxu1 %v18725_v61  ;;  %7185 = vadd.xlane.f32.xlu0 %v7184_v31 }
 0x4c1   : > { %13022 = vpow2.f32 %v7024_v1  ;;  %7188 = vadd.xlane.f32.xlu1 %v7187_v25  ;;  %v18851_v1 = vld [vmem:[#allocation80_spill] sm:$0xff] }
 0x4c2   : > { %v13013_v57 = vpop.eup %13012 }
 0x4c3   : > { %v13015_v19 = vpop.eup %13014  ;;  %v7190_v34 = vsel %vm6673_vm2, %v13013_v57, 0.0  ;;  %12614 = vmatpush3.bf16.msra.mxu1 %v18850_v51  ;;  %v18852_v57 = vld [vmem:[#allocation84_spill] sm:$0xff] }
 0x4c4   : > { %v7193_v43 = vsel %vm6673_vm2, %v13015_v19, 0.0  ;;  %12615 = vmatprep.subr.bf16.mxu1 %v18725_v61  ;;  %7191 = vadd.xlane.f32.xlu0 %v7190_v34  ;;  %v18853_v34 = vld [vmem:[#allocation85_spill] sm:$0xff] }
 0x4c5   : > { %7194 = vadd.xlane.f32.xlu1 %v7193_v43  ;;  %v18854_v43 = vand.u32 4294901760, %v15736_v28  ;;  %v18860_v28 = vand.u32 4294901760, %v15776_v33  ;;  %v18864_v33 = vand.u32 4294901760, %v15898_v38  ;;  %v18867_v38 = vand.u32 4294901760, %v15910_v13 }
 0x4c6   : > { %v13017_v41 = vpop.eup %13016 }
 0x4c7   : > { %v13019_v49 = vpop.eup %13018  ;;  %v7244_v3 = vsel %vm6673_vm2, %v13017_v41, 0.0  ;;  %12617 = vmatpush3.bf16.msra.mxu1 %v18851_v1  ;;  %v18855_v41 = vand.u32 4294901760, %v15738_v63  ;;  %v18859_v63 = vand.u32 4294901760, %v15769_v47  ;;  %v18863_v47 = vand.u32 4294901760, %v15872_v58 }
 0x4c8   : > { %v7247_v30 = vsel %vm6673_vm2, %v13019_v49, 0.0  ;;  %12618 = vmatprep.subr.bf16.mxu1 %v18725_v61  ;;  %7245 = vadd.xlane.f32.xlu0 %v7244_v3  ;;  %v18856_v3 = vand.u32 4294901760, %v16170_v55  ;;  %v18861_v55 = vand.u32 4294901760, %v15826_v32 }
 0x4c9   : > { %7248 = vadd.xlane.f32.xlu1 %v7247_v30  ;;  %v12625_v49 = vpack.c.bf16 %v18855_v41, %v18854_v43  ;;  %v18857_v30 = vand.u32 4294901760, %v15747_v11  ;;  %v18862_v11 = vand.u32 4294901760, %v15867_v22  ;;  %v12637_v41 = vpack.c.bf16 %v18864_v33, %v18863_v47 }
 0x4ca   : > { %v13021_v15 = vpop.eup %13020  ;;  %v18865_v22 = vand.u32 4294901760, %v15900_v29  ;;  %v18871_v33 = vlaneseq }
 0x4cb   : > { %v7196_v31 = vsel %vm6673_vm2, %v13021_v15, 0.0  ;;  %v13023_v25 = vpop.eup %13022  ;;  %12620 = vmatpush3.bf16.msra.mxu1 %v18852_v57  ;;  %v18858_v15 = vand.u32 4294901760, %v15766_v62  ;;  %v12634_v62 = vpack.c.bf16 %v18862_v11, %v18861_v55 }
 0x4cc   : > { %v7199_v19 = vsel %vm6673_vm2, %v13023_v25, 0.0  ;;  %12621 = vmatprep.subr.bf16.mxu1 %v18725_v61  ;;  %7197 = vadd.xlane.f32.xlu0 %v7196_v31  ;;  %v12631_v31 = vpack.c.bf16 %v18860_v28, %v18859_v63  ;;  %vm9080_vm2 = vcmask 113768  }
 0x4cd   : > { %7200 = vadd.xlane.f32.xlu1 %v7199_v19  ;;  %v12628_v25 = vpack.c.bf16 %v18858_v15, %v18857_v30 }
 0x4cf   : > { %12623 = vmatpush3.bf16.msra.mxu1 %v18853_v34 }
 0x4d0   : > { %12624 = vmatprep.subr.bf16.mxu1 %v18725_v61 }
 0x4d2   : > { %11616 = vmatmul.mubr.f32.vlgmr.msra.gmra.mrb[16].mxu1 %v18856_v3  ;;  %v18866_v3 = vand.u32 4294901760, %v15902_v44  ;;  %v18869_v44 = vand.u32 4294901760, %v15951_v26 }
 0x4d3   : > { %12626 = vmatpush3.bf16.msra.mxu1 %v12625_v49  ;;  %11650 = vmatprep.mubr.msk.f32.mxu1 %vm13130_vm1, %v18793_v56 }
 0x4d4   : > { %12627 = vmatprep.subr.bf16.mxu1 %v18725_v61  ;;  %v12640_v30 = vpack.c.bf16 %v18866_v3, %v18865_v22 }
 0x4d7   : > { %12629 = vmatpush3.bf16.msra.mxu1 %v12628_v25  ;;  %v16488_v19 = vpop.xlane.xlu0 %7107  ;;  %v18868_v25 = vand.u32 4294901760, %v15912_v37 }
 0x4d8   : > { %12630 = vmatprep.subr.bf16.mxu1 %v18725_v61  ;;  %v16491_v43 = vpop.xlane.xlu1 %7110 }
 0x4d9   : > { %v12643_v63 = vpack.c.bf16 %v18868_v25, %v18867_v38 }
 0x4db   : > { %12632 = vmatpush3.bf16.msra.mxu1 %v12631_v31  ;;  %v18870_v31 = vand.u32 4294901760, %v15961_v9 }
 0x4dc   : > { %12633 = vmatprep.subr.bf16.mxu1 %v18725_v61  ;;  %v16498_v49 = vpop.xlane.xlu0 %7059  ;;  %v16500_v32 = vpop.xlane.xlu1 %7062 }
 0x4dd   : > { %v12646_v55 = vpack.c.bf16 %v18870_v31, %v18869_v44 }
 0x4df   : > { %12635 = vmatpush3.bf16.msra.mxu1 %v12634_v62 }
 0x4e0   : > { %12636 = vmatprep.subr.bf16.mxu1 %v18725_v61  ;;  %v16507_v15 = vpop.xlane.xlu0 %7113  ;;  %v16509_v58 = vpop.xlane.xlu1 %7116 }
 0x4e3   : > { %12638 = vmatpush3.bf16.msra.mxu1 %v12637_v41  ;;  %v7333_v41 = vand.u32 127, %v18871_v33 }
 0x4e4   : > { %12639 = vmatprep.subr.bf16.mxu1 %v18725_v61  ;;  %v16516_v28 = vpop.xlane.xlu0 %7119  ;;  %v16518_v29 = vpop.xlane.xlu1 %7122 }
 0x4e7   : > { %12641 = vmatpush3.bf16.msra.mxu1 %v12640_v30  ;;  %v18872_v30 = vld [vmem:[#allocation34_spill] sm:$0xff] }
 0x4e8   : > { %12642 = vmatprep.subr.bf16.mxu1 %v18725_v61  ;;  %v16525_v11 = vpop.xlane.xlu0 %7131  ;;  %v16527_v13 = vpop.xlane.xlu1 %7134  ;;  %v16561_v38 = vsub.s32 %v7333_v41, %v18872_v30 }
 0x4ea   : > { %v7411_v31 = vrot.slane %v16065_v6, %v16561_v38  ;;  %v7429_v33 = vrot.slane %v16089_v12, %v16561_v38  ;;  %v7456_v50 = vrot.slane %v18876_v40, %v16561_v38 }
 0x4eb   : > { %12644 = vmatpush3.bf16.msra.mxu1 %v12643_v63  ;;  %v7420_v63 = vrot.slane %v16081_v7, %v16561_v38 }
 0x4ec   : > { %12645 = vmatprep.subr.bf16.mxu1 %v18725_v61  ;;  %v16530_v37 = vpop.xlane.xlu0 %7065  ;;  %v16533_v62 = vpop.xlane.xlu1 %7068 }
 0x4ef   : > { %12647 = vmatpush3.bf16.msra.mxu1 %v12646_v55 }
 0x4f0   : > { %12648 = vmatprep.subr.bf16.mxu1 %v18725_v61  ;;  %v16539_v9 = vpop.xlane.xlu0 %7071  ;;  %v16541_v26 = vpop.xlane.xlu1 %7074 }
 0x4f2   : > { %11651 = vmatmul.mubr.f32.vlgmr.msra.gmra.mrb[16].mxu1 %v16157_v54 }
 0x4f3   : > { %12650 = vmatpush3.bf16.msra.mxu1 %v18844_v35  ;;  %11685 = vmatprep.mubr.msk.f32.mxu1 %vm13130_vm1, %v18793_v56  ;;  %v7338_v35 = vadd.s32 4294967288, %v7333_v41  ;;  %vm9055_vm1 = vcmask 105568  }
 0x4f4   : > { %12651 = vmatprep.subr.bf16.mxu1 %v18725_v61 }
 0x4f5   : > { %v16564_v25 = vsub.s32 %v7338_v35, %v18872_v30  ;;  %v18875_v30 = vld [vmem:[#allocation52_spill] sm:$0xff] }
 0x4f7   : > { %12653 = vmatpush3.bf16.msra.mxu1 %v18845_v48  ;;  %v7415_v55 = vrot.slane %v16067_v0, %v16564_v25  ;;  %v7442_v6 = vrot.slane %v18875_v30, %v16564_v25 }
 0x4f8   : > { %12654 = vmatprep.subr.bf16.mxu1 %v18725_v61  ;;  %v16545_v47 = vpop.xlane.xlu0 %7083 }
 0x4f9   : > { %v16548_v22 = vpop.xlane.xlu1 %7086 }
 0x4fb   : > { %12656 = vmatpush3.bf16.msra.mxu1 %v18848_v53 }
 0x4fc   : > { %12657 = vmatprep.subr.bf16.mxu1 %v18725_v61  ;;  %v16552_v56 = vpop.xlane.xlu0 %7125 }
 0x4fd   : > { %v16554_v3 = vpop.xlane.xlu1 %7128 }
 0x4ff   : > { %12659 = vmatpush3.bf16.msra.mxu1 %v18849_v39  ;;  %v7424_v39 = vrot.slane %v16083_v27, %v16564_v25  ;;  %v18874_v27 = vld [vmem:[#allocation54_spill] sm:$0xff] }
 0x500   : > { %12660 = vmatprep.subr.bf16.mxu1 %v18725_v61  ;;  %v7438_v7 = vrot.slane %v18874_v27, %v16561_v38 }
 0x501   : > { %v16558_v48 = vpop.xlane.xlu0 %7137  ;;  %v7425_v0 = vsel %vm7343_vm3, %v7424_v39, %v7420_v63  ;;  %v18877_v63 = vld [vmem:[#allocation56_spill] sm:$0xff] }
 0x502   : > { %v16566_v53 = vpop.xlane.xlu1 %7140  ;;  %v7443_v30 = vsel %vm7343_vm3, %v7442_v6, %v7438_v7  ;;  %v7460_v39 = vrot.slane %v18877_v63, %v16564_v25  ;;  %v18882_v6 = vld [vmem:[#allocation38_spill] sm:$0xff] }
 0x503   : > { %12662 = vmatpush3.bf16.msra.mxu1 %v18850_v51  ;;  %v18873_v51 = vld [vmem:[#allocation86_spill] sm:$0xff] }
 0x504   : > { %12663 = vmatprep.subr.bf16.mxu1 %v18725_v61  ;;  %v7433_v41 = vrot.slane %v18873_v51, %v16564_v25  ;;  %v7416_v51 = vsel %vm7343_vm3, %v7415_v55, %v7411_v31  ;;  %v18878_v31 = vld [vmem:[#allocation87_spill] sm:$0xff] }
 0x505   : > { %v16574_v44 = vpop.xlane.xlu0 %7143  ;;  %v7638_v27 = vsel %vm7624_vm4, %v7425_v0, %v7416_v51  ;;  %v7447_v55 = vrot.slane %v18878_v31, %v16561_v38  ;;  %v18881_v0 = vld [vmem:[#allocation25_spill] sm:$0xff]  ;;  %v18883_v51 = vld [vmem:[#allocation7_spill] sm:$0xff]  ;;  %v7474_v31 = vrot.slane %v16234_v16, %v16561_v38 }
 0x506   : > { %v16584_v35 = vpop.xlane.xlu1 %7146  ;;  %v7434_v23 = vsel %vm7343_vm3, %v7433_v41, %v7429_v33  ;;  %v18879_v33 = vld [vmem:[#allocation88_spill] sm:$0xff]  ;;  %v7469_v7 = vrot.slane %v18881_v0, %v16564_v25  ;;  %v7251_v40 = vmul.f32 %v18883_v51, %v18882_v6  ;;  %v7461_v0 = vsel %vm7343_vm3, %v7460_v39, %v7456_v50 }
 0x507   : > { %12665 = vmatpush3.bf16.msra.mxu1 %v18851_v1  ;;  %v7451_v41 = vrot.slane %v18879_v33, %v16564_v25  ;;  %v7639_v10 = vsel %vm7626_vm5, %v7434_v23, %v7638_v27  ;;  %v7478_v33 = vrot.slane %v16236_v2, %v16564_v25  ;;  %v7823_v50 = vrot.slane %v16507_v15, %v16561_v38 }
 0x508   : > { %12666 = vmatprep.subr.bf16.mxu1 %v18725_v61  ;;  %v7827_v39 = vrot.slane %v16509_v58, %v16564_v25  ;;  %v7836_v51 = vrot.slane %v16518_v29, %v16564_v25  ;;  %v7841_v58 = vrot.slane %v16552_v56, %v16561_v38 }
 0x509   : > { %v16593_v12 = vpop.xlane.xlu0 %7203  ;;  %v7452_v23 = vsel %vm7343_vm3, %v7451_v41, %v7447_v55  ;;  %v7814_v41 = vrot.slane %v16488_v19, %v16561_v38  ;;  %v18885_v19 = vld [vmem:[#allocation6_spill] sm:$0xff] }
 0x50a   : > { %v16597_v1 = vpop.xlane.xlu1 %7206 }
 0x50b   : > { %12668 = vmatpush3.bf16.msra.mxu1 %v18852_v57  ;;  %v18880_v57 = vld [vmem:[#allocation29_spill] sm:$0xff] }
 0x50c   : > { %12669 = vmatprep.subr.bf16.mxu1 %v18725_v61  ;;  %v7465_v18 = vrot.slane %v18880_v57, %v16561_v38  ;;  %v7640_v61 = vsel %vm7628_vm6, %v7443_v30, %v7639_v10  ;;  %v18884_v10 = vld [vmem:[#allocation33_spill] sm:$0xff] }
 0x50d   : > { %v16618_v63 = vpop.xlane.xlu0 %7077  ;;  %v7258_v30 = vmul.f32 %v18884_v10, %v7251_v40  ;;  %v7641_v6 = vsel %vm7630_vm7, %v7452_v23, %v7640_v61  ;;  %v7845_v40 = vrot.slane %v16554_v3, %v16564_v25  ;;  %v7859_v3 = vrot.slane %v16558_v48, %v16561_v38 }
 0x50e   : > { %v16625_v57 = vpop.xlane.xlu1 %7080  ;;  %v7470_v27 = vsel %vm7343_vm3, %v7469_v7, %v7465_v18  ;;  %v7642_v2 = vsel %vm7632_vm8, %v7461_v0, %v7641_v6  ;;  %v7832_v7 = vrot.slane %v16516_v28, %v16561_v38  ;;  %v7850_v6 = vrot.slane %v16525_v11, %v16561_v38 }
 0x50f   : > { %12671 = vmatpush3.bf16.msra.mxu1 %v18853_v34  ;;  %v7479_v34 = vsel %vm7343_vm3, %v7478_v33, %v7474_v31  ;;  %v7643_v55 = vsel %vm7634_vm9, %v7470_v27, %v7642_v2  ;;  %v7265_v31 = vadd.f32 %v18885_v19, %v7258_v30  ;;  %v7846_v56 = vsel %vm7343_vm3, %v7845_v40, %v7841_v58 }
 0x510   : > { %v7644_v15 = vsel %vm7636_vm10, %v7479_v34, %v7643_v55  ;;  %v7837_v29 = vsel %vm7343_vm3, %v7836_v51, %v7832_v7  ;;  %v7863_v27 = vrot.slane %v16566_v53, %v16564_v25  ;;  %v7854_v2 = vrot.slane %v16527_v13, %v16564_v25 }
 0x511   : > { %v16633_v16 = vpop.xlane.xlu0 %7089  ;;  %v7664_v28 = vsub.f32 %v7265_v31, %v7644_v15  ;;  %v7868_v34 = vrot.slane %v16574_v44, %v16561_v38 }
 0x512   : > { %11686 = vmatmul.mubr.f32.vlgmr.msra.gmra.mrb[16].mxu1 %v16157_v54  ;;  %v16642_v18 = vpop.xlane.xlu1 %7092  ;;  %v7818_v54 = vrot.slane %v16491_v43, %v16564_v25  ;;  %v7828_v43 = vsel %vm7343_vm3, %v7827_v39, %v7823_v50  ;;  %v7872_v50 = vrot.slane %v16584_v35, %v16564_v25  ;;  %v7864_v55 = vsel %vm7343_vm3, %v7863_v27, %v7859_v3  ;;  %v18888_v3 = vld [vmem:[#allocation17_spill] sm:$0xff] }
 0x513   : > { %v7855_v11 = vsel %vm7343_vm3, %v7854_v2, %v7850_v6  ;;  %v7357_v27 = vrot.slane %v18888_v3, %v16561_v38  ;;  %v18889_v6 = vld [vmem:[#allocation18_spill] sm:$0xff] }
 0x514   : > { %v7819_v0 = vsel %vm7343_vm3, %v7818_v54, %v7814_v41  ;;  %v7669_v54 = vmul.f32 1.442695, %v7664_v28  ;;  %v7873_v13 = vsel %vm7343_vm3, %v7872_v50, %v7868_v34  ;;  %v7361_v2 = vrot.slane %v18889_v6, %v16564_v25  ;;  %v18890_v34 = vld [vmem:[#allocation10_spill] sm:$0xff] }
 0x515   : > { %v16658_v61 = vpop.xlane.xlu0 %7095  ;;  %v8034_v23 = vsel %vm7624_vm4, %v7828_v43, %v7819_v0  ;;  %v18886_v43 = vld [vmem:[#allocation5_spill] sm:$0xff]  ;;  %v18887_v0 = vld [vmem:[#allocation31_spill] sm:$0xff]  ;;  %v7342_v50 = vrot.slane %v18890_v34, %v16564_v25  ;;  %v7755_v6 = vrot.slane %v16533_v62, %v16564_v25  ;;  %v7742_v62 = vrot.slane %v16498_v49, %v16561_v38 }
 0x516   : > { %v16662_v33 = vpop.xlane.xlu1 %7098  ;;  %v8035_v48 = vsel %vm7626_vm5, %v7837_v29, %v8034_v23  ;;  %v7348_v28 = vrot.slane %v18886_v43, %v16561_v38  ;;  %v7352_v29 = vrot.slane %v18887_v0, %v16564_v25  ;;  %13024 = vpow2.f32 %v7669_v54  ;;  %v18894_v0 = vld [vmem:[#allocation50_spill] sm:$0xff]  ;;  %v18896_v34 = vld [vmem:[#allocation13_spill] sm:$0xff] }
 0x517   : > { %v8036_v53 = vsel %vm7628_vm6, %v7846_v56, %v8035_v48  ;;  %v18891_v48 = vld [vmem:[#allocation11_spill] sm:$0xff] }
 0x518   : > { %v8037_v51 = vsel %vm7630_vm7, %v7855_v11, %v8036_v53  ;;  %v7337_v53 = vrot.slane %v18891_v48, %v16561_v38  ;;  %v7353_v11 = vsel %vm7343_vm3, %v7352_v29, %v7348_v28  ;;  %v7375_v29 = vrot.slane %v18894_v0, %v16561_v38  ;;  %v18899_v0 = vld [vmem:[#allocation12_spill] sm:$0xff] }
 0x519   : > { %v16672_v30 = vpop.xlane.xlu0 %7155  ;;  %v8038_v15 = vsel %vm7632_vm8, %v7864_v55, %v8037_v51  ;;  %v7366_v55 = vrot.slane %v16186_v36, %v16561_v38  ;;  %v18892_v51 = vld [vmem:[#allocation45_spill] sm:$0xff] }
 0x51a   : > { %v16682_v39 = vpop.xlane.xlu1 %7158  ;;  %v8039_v58 = vsel %vm7634_vm9, %v7873_v13, %v8038_v15  ;;  %v18893_v15 = vld [vmem:[#allocation37_spill] sm:$0xff] }
 0x51d   : > { %v7150_v41 = vpop.xlane.xlu0 %7149 }
 0x51e   : > { %v7877_v7 = vrot.slane %v7150_v41, %v16561_v38  ;;  %v7153_v44 = vpop.xlane.xlu1 %7152  ;;  %v7370_v41 = vrot.slane %v16188_v42, %v16564_v25 }
 0x51f   : > { %v7881_v35 = vrot.slane %v7153_v44, %v16564_v25  ;;  %v7344_v44 = vsel %vm7343_vm3, %v7342_v50, %v7337_v53  ;;  %v18897_v50 = vld [vmem:[#allocation8_spill] sm:$0xff] }
 0x520   : > { %v7625_v36 = vsel %vm7624_vm4, %v7353_v11, %v7344_v44  ;;  %v7371_v42 = vsel %vm7343_vm3, %v7370_v41, %v7366_v55  ;;  %v7250_v48 = vmul.f32 %v18897_v50, %v18896_v34  ;;  %v7393_v41 = vrot.slane %v16210_v8, %v16561_v38 }
 0x521   : > { %v7882_v40 = vsel %vm7343_vm3, %v7881_v35, %v7877_v7  ;;  %v16695_v31 = vpop.xlane.xlu0 %7209  ;;  %v7362_v7 = vsel %vm7343_vm3, %v7361_v2, %v7357_v27  ;;  %v7384_v35 = vrot.slane %v18892_v51, %v16561_v38  ;;  %v7751_v27 = vrot.slane %v16530_v37, %v16561_v38  ;;  %v13025_v2 = vpop.eup %13024 }
 0x522   : > { %v8040_v23 = vsel %vm7636_vm10, %v7882_v40, %v8039_v58  ;;  %v16702_v56 = vpop.xlane.xlu1 %7212  ;;  %v7388_v58 = vrot.slane %v18893_v15, %v16564_v25  ;;  %v7627_v43 = vsel %vm7626_vm5, %v7362_v7, %v7625_v36  ;;  %v18898_v7 = vld [vmem:[#allocation49_spill] sm:$0xff]  ;;  %v7402_v37 = vrot.slane %v16282_v20, %v16561_v38 }
 0x523   : > { %13026 = vrcp.f32 %v8040_v23  ;;  %v18895_v23 = vld [vmem:[#allocation47_spill] sm:$0xff]  ;;  %v7629_v53 = vsel %vm7628_vm6, %v7371_v42, %v7627_v43  ;;  %v7397_v44 = vrot.slane %v18898_v7, %v16564_v25  ;;  %v7746_v51 = vrot.slane %v16500_v32, %v16564_v25 }
 0x524   : > { %v7379_v3 = vrot.slane %v18895_v23, %v16564_v25  ;;  %v7389_v55 = vsel %vm7343_vm3, %v7388_v58, %v7384_v35  ;;  %v7406_v35 = vrot.slane %v16284_v59, %v16564_v25  ;;  %v7760_v8 = vrot.slane %v16539_v9, %v16561_v38  ;;  %v18900_v7 = vld [vmem:[#allocation39_spill] sm:$0xff] }
 0x525   : > { %v16716_v54 = vpop.xlane.xlu0 %7215  ;;  %v7764_v58 = vrot.slane %v16541_v26, %v16564_v25  ;;  %v7756_v49 = vsel %vm7343_vm3, %v7755_v6, %v7751_v27  ;;  %v7769_v32 = vrot.slane %v16618_v63, %v16561_v38  ;;  %v7773_v43 = vrot.slane %v16625_v57, %v16564_v25 }
 0x526   : > { %v16719_v13 = vpop.xlane.xlu1 %7218  ;;  %v7380_v20 = vsel %vm7343_vm3, %v7379_v3, %v7375_v29  ;;  %v7257_v26 = vmul.f32 %v18884_v10, %v7250_v48  ;;  %v7747_v29 = vsel %vm7343_vm3, %v7746_v51, %v7742_v62  ;;  %v7407_v63 = vsel %vm7343_vm3, %v7406_v35, %v7402_v37 }
 0x527   : > { %v7631_v59 = vsel %vm7630_vm7, %v7380_v20, %v7629_v53  ;;  %v8027_v27 = vsel %vm7624_vm4, %v7756_v49, %v7747_v29  ;;  %v7765_v57 = vsel %vm7343_vm3, %v7764_v58, %v7760_v8  ;;  %v7778_v34 = vrot.slane %v16545_v47, %v16561_v38  ;;  %v18901_v58 = vld [vmem:[#allocation40_spill] sm:$0xff] }
 0x528   : > { %v7633_v23 = vsel %vm7632_vm8, %v7389_v55, %v7631_v59  ;;  %v7774_v50 = vsel %vm7343_vm3, %v7773_v43, %v7769_v32  ;;  %v7787_v48 = vrot.slane %v16633_v16, %v16561_v38  ;;  %v7791_v53 = vrot.slane %v16642_v18, %v16564_v25 }
 0x529   : > { %v16729_v40 = vpop.xlane.xlu0 %7227  ;;  %v7782_v55 = vrot.slane %v16548_v22, %v16564_v25  ;;  %v8028_v37 = vsel %vm7626_vm5, %v7765_v57, %v8027_v27  ;;  %v7264_v51 = vadd.f32 %v18885_v19, %v7257_v26 }
 0x52a   : > { %v16732_v28 = vpop.xlane.xlu1 %7230  ;;  %v7792_v35 = vsel %vm7343_vm3, %v7791_v53, %v7787_v48  ;;  %v7564_v53 = vrot.slane %v16246_v21, %v16561_v38  ;;  %v7582_v21 = vrot.slane %v16339_v60, %v16561_v38 }
 0x52b   : > { %v7783_v8 = vsel %vm7343_vm3, %v7782_v55, %v7778_v34  ;;  %v18903_v34 = vld [vmem:[#allocation42_spill] sm:$0xff]  ;;  %v18904_v55 = vld [vmem:[#allocation81_spill] sm:$0xff] }
 0x52d   : > { %v13027_v11 = vpop.eup %13026  ;;  %v7102_v15 = vpop.xlane.xlu0 %7101 }
 0x52e   : > { %v16762_v36 = vmul.f32 %v13027_v11, %v13025_v2  ;;  %v7105_v42 = vpop.xlane.xlu1 %7104  ;;  %v7398_v2 = vsel %vm7343_vm3, %v7397_v44, %v7393_v41  ;;  %v7796_v41 = vrot.slane %v16658_v61, %v16561_v38  ;;  %v7800_v11 = vrot.slane %v16662_v33, %v16564_v25 }
 0x52f   : > { %v7635_v44 = vsel %vm7634_vm9, %v7398_v2, %v7633_v23  ;;  %v7805_v16 = vrot.slane %v7102_v15, %v16561_v38  ;;  %v7809_v18 = vrot.slane %v7105_v42, %v16564_v25  ;;  %v8029_v61 = vsel %vm7628_vm6, %v7774_v50, %v8028_v37  ;;  %v18902_v2 = vld [vmem:[#allocation41_spill] sm:$0xff]  ;;  %v18906_v37 = vld [vmem:[#allocation35_spill] sm:$0xff] }
 0x530   : > { %v8158_v9 = vrot.slane %v16762_v36, %v18899_v0  ;;  %v8169_v47 = vrot.slane %v16762_v36, %v18900_v7  ;;  %v7637_v22 = vsel %vm7636_vm10, %v7407_v63, %v7635_v44  ;;  %v7801_v15 = vsel %vm7343_vm3, %v7800_v11, %v7796_v41 }
 0x531   : > { %v16777_v3 = vpop.xlane.xlu0 %7161  ;;  %v8180_v42 = vrot.slane %v16762_v36, %v18901_v58  ;;  %v7663_v20 = vsub.f32 %v7264_v51, %v7637_v22  ;;  %v8030_v49 = vsel %vm7630_vm7, %v7783_v8, %v8029_v61  ;;  %v7810_v32 = vsel %vm7343_vm3, %v7809_v18, %v7805_v16  ;;  %v18907_v22 = vld [vmem:[#allocation19_spill] sm:$0xff] }
 0x532   : > { %8164 = vbcast.lane.b32.xlu0 %v8158_v9, 264  ;;  %8160 = vbcast.lane.b32.xlu1 %v8158_v9, 256  ;;  %v16782_v6 = vpop.xlane.xlu1 %7164  ;;  %v8031_v59 = vsel %vm7632_vm8, %v7792_v35, %v8030_v49  ;;  %v8191_v29 = vrot.slane %v16762_v36, %v18902_v2  ;;  %v8202_v50 = vrot.slane %v16762_v36, %v18903_v34  ;;  %v18908_v35 = vld [vmem:[#allocation43_spill] sm:$0xff] }
 0x533   : > { %v8032_v26 = vsel %vm7634_vm9, %v7801_v15, %v8031_v59  ;;  %v7667_v63 = vmul.f32 1.442695, %v7663_v20  ;;  %v7568_v41 = vrot.slane %v18904_v55, %v16564_v25  ;;  %v7559_v16 = vrot.slane %v18906_v37, %v16564_v25  ;;  %v18909_v59 = vld [vmem:[#allocation44_spill] sm:$0xff] }
 0x534   : > { %v8033_v23 = vsel %vm7636_vm10, %v7810_v32, %v8032_v26  ;;  %v7573_v18 = vrot.slane %v16258_v5, %v16561_v38  ;;  %v7577_v61 = vrot.slane %v18907_v22, %v16564_v25  ;;  %v7586_v51 = vrot.slane %v16341_v14, %v16564_v25  ;;  %v18913_v37 = vld [vmem:[#allocation36_spill] sm:$0xff] }
 0x535   : > { %v16803_v62 = vpop.xlane.xlu0 %7167  ;;  %13028 = vrcp.f32 %v8033_v23  ;;  %v8213_v8 = vrot.slane %v16762_v36, %v18908_v35  ;;  %v7600_v14 = vrot.slane %v16353_v17, %v16561_v38  ;;  %v7604_v32 = vrot.slane %v16355_v52, %v16564_v25 }
 0x536   : > { %8175 = vbcast.lane.b32.xlu0 %v8169_v47, 264  ;;  %8171 = vbcast.lane.b32.xlu1 %v8169_v47, 256  ;;  %v16807_v33 = vpop.xlane.xlu1 %7170  ;;  %13030 = vpow2.f32 %v7667_v63  ;;  %v18905_v47 = vld [vmem:[#allocation27_spill] sm:$0xff]  ;;  %v7578_v49 = vsel %vm7343_vm3, %v7577_v61, %v7573_v18  ;;  %v7587_v60 = vsel %vm7343_vm3, %v7586_v51, %v7582_v21  ;;  %v8224_v26 = vrot.slane %v16762_v36, %v18909_v59 }
 0x537   : > { %v7555_v44 = vrot.slane %v18905_v47, %v16561_v38  ;;  %v18912_v47 = vld [vmem:[#allocation26_spill] sm:$0xff]  ;;  %v7967_v22 = vrot.slane %v16695_v31, %v16561_v38  ;;  %v7971_v61 = vrot.slane %v16702_v56, %v16564_v25  ;;  %v7605_v21 = vsel %vm7343_vm3, %v7604_v32, %v7600_v14 }
 0x538   : > { %v7609_v51 = vrot.slane %v16367_v45, %v16561_v38  ;;  %v7958_v31 = vrot.slane %v16593_v12, %v16561_v38  ;;  %v7962_v56 = vrot.slane %v16597_v1, %v16564_v25  ;;  %v7622_v45 = vrot.slane %v16426_v4, %v16564_v25 }
 0x539   : > { %v16817_v43 = vpop.xlane.xlu0 %7179  ;;  %v7560_v5 = vsel %vm7343_vm3, %v7559_v16, %v7555_v44  ;;  %v7591_v44 = vrot.slane %v18912_v47, %v16561_v38  ;;  %v7595_v16 = vrot.slane %v18913_v37, %v16564_v25  ;;  %v7972_v32 = vsel %vm7343_vm3, %v7971_v61, %v7967_v22 }
 0x53a   : > { %8186 = vbcast.lane.b32.xlu0 %v8180_v42, 264  ;;  %8182 = vbcast.lane.b32.xlu1 %v8180_v42, 256  ;;  %v16820_v9 = vpop.xlane.xlu1 %7182  ;;  %v7569_v42 = vsel %vm7343_vm3, %v7568_v41, %v7564_v53  ;;  %v18911_v53 = vld [vmem:[#allocation22_spill] sm:$0xff] }
 0x53b   : > { %v7596_v12 = vsel %vm7343_vm3, %v7595_v16, %v7591_v44  ;;  %v7998_v16 = vrot.slane %v16732_v28, %v16564_v25 }
 0x53d   : > { %v16826_v27 = vpop.xlane.xlu0 %7221 }
 0x53e   : > { %8197 = vbcast.lane.b32.xlu0 %v8191_v29, 264  ;;  %8193 = vbcast.lane.b32.xlu1 %v8191_v29, 256  ;;  %v16828_v57 = vpop.xlane.xlu1 %7224  ;;  %v7652_v29 = vsel %vm7624_vm4, %v7569_v42, %v7560_v5  ;;  %v18914_v42 = vld [vmem:[#allocation16_spill] sm:$0xff]  ;;  %v7985_v1 = vrot.slane %v16826_v27, %v16561_v38 }
 0x53f   : > { %v13029_v23 = vpop.eup %13028  ;;  %v7653_v41 = vsel %vm7626_vm5, %v7578_v49, %v7652_v29  ;;  %v8235_v5 = vrot.slane %v16762_v36, %v18914_v42  ;;  %v7613_v49 = vrot.slane %v16369_v24, %v16564_v25  ;;  %v7976_v36 = vrot.slane %v16716_v54, %v16561_v38 }
 0x540   : > { %v13031_v52 = vpop.eup %13030  ;;  %v7654_v18 = vsel %vm7628_vm6, %v7587_v60, %v7653_v41  ;;  %v7618_v60 = vrot.slane %v16424_v46, %v16561_v38  ;;  %v7980_v24 = vrot.slane %v16719_v13, %v16564_v25  ;;  %v7989_v4 = vrot.slane %v16828_v57, %v16564_v25 }
 0x541   : > { %v16832_v48 = vpop.xlane.xlu0 %7233  ;;  %v7614_v29 = vsel %vm7343_vm3, %v7613_v49, %v7609_v51 }
 0x542   : > { %8208 = vbcast.lane.b32.xlu0 %v8202_v50, 264  ;;  %8204 = vbcast.lane.b32.xlu1 %v8202_v50, 256  ;;  %v16838_v11 = vpop.xlane.xlu1 %7236  ;;  %v18910_v50 = vld [vmem:[#allocation30_spill] sm:$0xff]  ;;  %v7623_v27 = vsel %vm7343_vm3, %v7622_v45, %v7618_v60  ;;  %v7981_v57 = vsel %vm7343_vm3, %v7980_v24, %v7976_v36  ;;  %v7990_v44 = vsel %vm7343_vm3, %v7989_v4, %v7985_v1 }
 0x543   : > { %v7253_v55 = vmul.f32 %v18911_v53, %v18910_v50  ;;  %v7963_v50 = vsel %vm7343_vm3, %v7962_v56, %v7958_v31  ;;  %v8007_v37 = vrot.slane %v16838_v11, %v16564_v25 }
 0x544   : > { %v8048_v41 = vsel %vm7624_vm4, %v7972_v32, %v7963_v50 }
 0x545   : > { %v16854_v15 = vpop.xlane.xlu0 %7239  ;;  %v7260_v13 = vmul.f32 %v18884_v10, %v7253_v55  ;;  %v7994_v55 = vrot.slane %v16729_v40, %v16561_v38 }
 0x546   : > { %8219 = vbcast.lane.b32.xlu0 %v8213_v8, 264  ;;  %8215 = vbcast.lane.b32.xlu1 %v8213_v8, 256  ;;  %v16857_v20 = vpop.xlane.xlu1 %7242  ;;  %v16888_v8 = vmul.f32 %v13031_v52, %v13029_v23  ;;  %v8003_v52 = vrot.slane %v16832_v48, %v16561_v38 }
 0x547   : > { %v8016_v22 = vrot.slane %v16857_v20, %v16564_v25  ;;  %v7999_v60 = vsel %vm7343_vm3, %v7998_v16, %v7994_v55 }
 0x548   : > { %v8070_v54 = vrot.slane %v16888_v8, %v18899_v0  ;;  %v8081_v40 = vrot.slane %v16888_v8, %v18900_v7  ;;  %v8008_v20 = vsel %vm7343_vm3, %v8007_v37, %v8003_v52  ;;  %v8092_v56 = vrot.slane %v16888_v8, %v18901_v58  ;;  %v18920_v37 = vld [vmem:[#allocation51_spill] sm:$0xff] }
 0x549   : > { %v16869_v63 = vpop.xlane.xlu0 %7173  ;;  %v8103_v4 = vrot.slane %v16888_v8, %v18902_v2  ;;  %v7505_v16 = vrot.slane %v18920_v37, %v16564_v25  ;;  %v18931_v37 = vld [vmem:[#allocation64_spill] sm:$0xff] }
 0x54a   : > { %8230 = vbcast.lane.b32.xlu0 %v8224_v26, 264  ;;  %8226 = vbcast.lane.b32.xlu1 %v8224_v26, 256  ;;  %v16876_v17 = vpop.xlane.xlu1 %7176  ;;  %v7655_v26 = vsel %vm7630_vm7, %v7596_v12, %v7654_v18  ;;  %v8012_v18 = vrot.slane %v16854_v15, %v16561_v38 }
 0x54b   : > { %v7656_v23 = vsel %vm7632_vm8, %v7605_v21, %v7655_v26  ;;  %v8049_v21 = vsel %vm7626_vm5, %v7981_v57, %v8048_v41  ;;  %v18918_v57 = vld [vmem:[#allocation23_spill] sm:$0xff] }
 0x54c   : > { %v7657_v61 = vsel %vm7634_vm9, %v7614_v29, %v7656_v23  ;;  %v8050_v11 = vsel %vm7628_vm6, %v7990_v44, %v8049_v21  ;;  %v8017_v31 = vsel %vm7343_vm3, %v8016_v22, %v8012_v18  ;;  %v18916_v29 = vld [vmem:[#allocation28_spill] sm:$0xff]  ;;  %v7487_v55 = vrot.slane %v18918_v57, %v16564_v25  ;;  %v18919_v44 = vld [vmem:[#allocation58_spill] sm:$0xff]  ;;  %v18921_v18 = vld [vmem:[#allocation9_spill] sm:$0xff] }
 0x54d   : > { %v16900_v14 = vpop.xlane.xlu0 %7185  ;;  %v7658_v51 = vsel %vm7636_vm10, %v7623_v27, %v7657_v61  ;;  %v8051_v36 = vsel %vm7630_vm7, %v7999_v60, %v8050_v11  ;;  %v7496_v50 = vrot.slane %v18916_v29, %v16564_v25  ;;  %v18917_v27 = vld [vmem:[#allocation46_spill] sm:$0xff]  ;;  %v7501_v52 = vrot.slane %v18919_v44, %v16561_v38  ;;  %v18930_v44 = vld [vmem:[#allocation68_spill] sm:$0xff] }
 0x54e   : > { %8241 = vbcast.lane.b32.xlu0 %v8235_v5, 264  ;;  %8237 = vbcast.lane.b32.xlu1 %v8235_v5, 256  ;;  %v16908_v46 = vpop.xlane.xlu1 %7188  ;;  %v7267_v5 = vadd.f32 %v18885_v19, %v7260_v13  ;;  %v8052_v12 = vsel %vm7632_vm8, %v8008_v20, %v8051_v36  ;;  %v18915_v13 = vld [vmem:[#allocation48_spill] sm:$0xff]  ;;  %v7483_v41 = vrot.slane %v18917_v27, %v16561_v38  ;;  %v18924_v20 = vld [vmem:[#allocation61_spill] sm:$0xff]  ;;  %v18926_v36 = vld [vmem:[#allocation55_spill] sm:$0xff] }
 0x54f   : > { %v8053_v32 = vsel %vm7634_vm9, %v8017_v31, %v8052_v12  ;;  %v7492_v23 = vrot.slane %v18915_v13, %v16561_v38  ;;  %v7510_v22 = vrot.slane %v18921_v18, %v16561_v38  ;;  %v8125_v21 = vrot.slane %v16888_v8, %v18908_v35  ;;  %v18929_v27 = vld [vmem:[#allocation69_spill] sm:$0xff]  ;;  %v18932_v18 = vld [vmem:[#allocation63_spill] sm:$0xff] }
 0x550   : > { %v7666_v45 = vsub.f32 %v7267_v5, %v7658_v51  ;;  %v7488_v51 = vsel %vm7343_vm3, %v7487_v55, %v7483_v41  ;;  %v7506_v11 = vsel %vm7343_vm3, %v7505_v16, %v7501_v52  ;;  %v8136_v60 = vrot.slane %v16888_v8, %v18909_v59 }
 0x551   : > { %v16923_v53 = vpop.xlane.xlu0 %7191  ;;  %v7899_v29 = vrot.slane %v16782_v6, %v16564_v25  ;;  %v7537_v41 = vrot.slane %v18929_v27, %v16561_v38  ;;  %v8147_v55 = vrot.slane %v16888_v8, %v18914_v42  ;;  %v7541_v52 = vrot.slane %v18930_v44, %v16564_v25 }
 0x552   : > { %8076 = vbcast.lane.b32.xlu0 %v8070_v54, 264  ;;  %8072 = vbcast.lane.b32.xlu1 %v8070_v54, 256  ;;  %v16928_v47 = vpop.xlane.xlu1 %7194  ;;  %v7673_v26 = vmul.f32 1.442695, %v7666_v45  ;;  %v8114_v54 = vrot.slane %v16888_v8, %v18903_v34  ;;  %v18925_v45 = vld [vmem:[#allocation15_spill] sm:$0xff]  ;;  %v7546_v16 = vrot.slane %v18931_v37, %v16561_v38  ;;  %v7890_v6 = vrot.slane %v16682_v39, %v16564_v25 }
 0x553   : > { %v7908_v8 = vrot.slane %v16807_v33, %v16564_v25  ;;  %v7917_v39 = vrot.slane %v16876_v17, %v16564_v25 }
 0x555   : > { %v7246_v48 = vpop.xlane.xlu0 %7245 }
 0x556   : > { %v8021_v28 = vrot.slane %v7246_v48, %v16561_v38  ;;  %8087 = vbcast.lane.b32.xlu0 %v8081_v40, 264  ;;  %8083 = vbcast.lane.b32.xlu1 %v8081_v40, 256  ;;  %v7249_v15 = vpop.xlane.xlu1 %7248  ;;  %v18922_v40 = vld [vmem:[#allocation60_spill] sm:$0xff]  ;;  %v7497_v48 = vsel %vm7343_vm3, %v7496_v50, %v7492_v23  ;;  %v7895_v23 = vrot.slane %v16777_v3, %v16561_v38 }
 0x557   : > { %v8025_v49 = vrot.slane %v7249_v15, %v16564_v25  ;;  %v7514_v61 = vrot.slane %v18922_v40, %v16564_v25  ;;  %v18923_v15 = vld [vmem:[#allocation62_spill] sm:$0xff]  ;;  %v7886_v3 = vrot.slane %v16672_v30, %v16561_v38  ;;  %v7904_v40 = vrot.slane %v16803_v62, %v16561_v38 }
 0x558   : > { %v7528_v5 = vrot.slane %v18923_v15, %v16561_v38  ;;  %v7913_v30 = vrot.slane %v16869_v63, %v16561_v38 }
 0x559   : > { %v8026_v24 = vsel %vm7343_vm3, %v8025_v49, %v8021_v28  ;;  %v7515_v28 = vsel %vm7343_vm3, %v7514_v61, %v7510_v22  ;;  %v7532_v49 = vrot.slane %v18924_v20, %v16564_v25  ;;  %v7550_v22 = vrot.slane %v18932_v18, %v16564_v25  ;;  %v7198_v17 = vpop.xlane.xlu0 %7197 }
 0x55a   : > { %8098 = vbcast.lane.b32.xlu0 %v8092_v56, 264  ;;  %8094 = vbcast.lane.b32.xlu1 %v8092_v56, 256  ;;  %v8054_v1 = vsel %vm7636_vm10, %v8026_v24, %v8053_v32  ;;  %v7645_v56 = vsel %vm7624_vm4, %v7497_v48, %v7488_v51  ;;  %v7252_v24 = vmul.f32 %v18926_v36, %v18925_v45  ;;  %v18927_v32 = vld [vmem:[#allocation59_spill] sm:$0xff]  ;;  %v7201_v20 = vpop.xlane.xlu1 %7200 }
 0x55b   : > { %13032 = vrcp.f32 %v8054_v1  ;;  %v7646_v12 = vsel %vm7626_vm5, %v7506_v11, %v7645_v56  ;;  %v7519_v1 = vrot.slane %v18927_v32, %v16561_v38  ;;  %v7533_v50 = vsel %vm7343_vm3, %v7532_v49, %v7528_v5 }
 0x55c   : > { %13034 = vpow2.f32 %v7673_v26  ;;  %v18928_v26 = vld [vmem:[#allocation53_spill] sm:$0xff]  ;;  %v7647_v13 = vsel %vm7628_vm6, %v7515_v28, %v7646_v12  ;;  %v7259_v51 = vmul.f32 %v18884_v10, %v7252_v24  ;;  %v7542_v11 = vsel %vm7343_vm3, %v7541_v52, %v7537_v41 }
 0x55d   : > { %v7891_v28 = vsel %vm7343_vm3, %v7890_v6, %v7886_v3  ;;  %v7551_v15 = vsel %vm7343_vm3, %v7550_v22, %v7546_v16  ;;  %v7909_v5 = vsel %vm7343_vm3, %v7908_v8, %v7904_v40  ;;  %v7922_v49 = vrot.slane %v16817_v43, %v16561_v38  ;;  %v18933_v40 = vld [vmem:[#allocation21_spill] sm:$0xff] }
 0x55e   : > { %8109 = vbcast.lane.b32.xlu0 %v8103_v4, 264  ;;  %8105 = vbcast.lane.b32.xlu1 %v8103_v4, 256  ;;  %v7918_v10 = vsel %vm7343_vm3, %v7917_v39, %v7913_v30  ;;  %v7926_v56 = vrot.slane %v16820_v9, %v16564_v25  ;;  %v7940_v45 = vrot.slane %v16923_v53, %v16561_v38  ;;  %v18934_v8 = vld [vmem:[#allocation77_spill] sm:$0xff] }
 0x55f   : > { %v7944_v36 = vrot.slane %v16928_v47, %v16564_v25  ;;  %v7266_v53 = vadd.f32 %v18885_v19, %v7259_v51 }
 0x562   : > { %8120 = vbcast.lane.b32.xlu0 %v8114_v54, 264  ;;  %8116 = vbcast.lane.b32.xlu1 %v8114_v54, 256  ;;  %v7523_v54 = vrot.slane %v18928_v26, %v16564_v25 }
 0x564   : > { %v7524_v61 = vsel %vm7343_vm3, %v7523_v54, %v7519_v1  ;;  %v7927_v1 = vsel %vm7343_vm3, %v7926_v56, %v7922_v49 }
 0x565   : > { %v13033_v31 = vpop.eup %13032  ;;  %v7648_v48 = vsel %vm7630_vm7, %v7524_v61, %v7647_v13  ;;  %v12688_v61 = vadd.f32 %v18934_v8, %v18933_v40 }
 0x566   : > { %8131 = vbcast.lane.b32.xlu0 %v8125_v21, 264  ;;  %8127 = vbcast.lane.b32.xlu1 %v8125_v21, 256  ;;  %v13035_v4 = vpop.eup %13034  ;;  %v7900_v21 = vsel %vm7343_vm3, %v7899_v29, %v7895_v23  ;;  %v7649_v33 = vsel %vm7632_vm8, %v7533_v50, %v7648_v48  ;;  %v18935_v48 = vld [vmem:[#allocation14_spill] sm:$0xff] }
 0x567   : > { %v17010_v57 = vmul.f32 %v13035_v4, %v13033_v31  ;;  %v8041_v63 = vsel %vm7624_vm4, %v7900_v21, %v7891_v28  ;;  %v7935_v31 = vrot.slane %v16908_v46, %v16564_v25  ;;  %v7650_v24 = vsel %vm7634_vm9, %v7542_v11, %v7649_v33 }
 0x568   : > { %v8042_v12 = vsel %vm7626_vm5, %v7909_v5, %v8041_v63  ;;  %v7953_v46 = vrot.slane %v7201_v20, %v16564_v25  ;;  %v7651_v32 = vsel %vm7636_vm10, %v7551_v15, %v7650_v24  ;;  %v7945_v4 = vsel %vm7343_vm3, %v7944_v36, %v7940_v45 }
 0x569   : > { %v8334_v62 = vrot.slane %v17010_v57, %v18899_v0  ;;  %v8345_v43 = vrot.slane %v17010_v57, %v18900_v7  ;;  %v8043_v9 = vsel %vm7628_vm6, %v7918_v10, %v8042_v12  ;;  %v8356_v26 = vrot.slane %v17010_v57, %v18901_v58 }
 0x56a   : > { %8142 = vbcast.lane.b32.xlu0 %v8136_v60, 264  ;;  %8138 = vbcast.lane.b32.xlu1 %v8136_v60, 256  ;;  %v7931_v60 = vrot.slane %v16900_v14, %v16561_v38  ;;  %v7949_v14 = vrot.slane %v7198_v17, %v16561_v38  ;;  %v7665_v38 = vsub.f32 %v7266_v53, %v7651_v32  ;;  %v18937_v32 = vld [vmem:[#allocation79_spill] sm:$0xff]  ;;  %vm9130_vm4 = vcmask 130168  }
 0x56b   : > { %v8044_v25 = vsel %vm7630_vm7, %v7927_v1, %v8043_v9  ;;  %v8367_v29 = vrot.slane %v17010_v57, %v18902_v2  ;;  %v8378_v27 = vrot.slane %v17010_v57, %v18903_v34  ;;  %v8389_v41 = vrot.slane %v17010_v57, %v18908_v35 }
 0x56c   : > { %v7936_v47 = vsel %vm7343_vm3, %v7935_v31, %v7931_v60  ;;  %v7954_v54 = vsel %vm7343_vm3, %v7953_v46, %v7949_v14  ;;  %v7671_v50 = vmul.f32 1.442695, %v7665_v38  ;;  %v8411_v16 = vrot.slane %v17010_v57, %v18914_v42  ;;  %v18936_v46 = vld [vmem:[#allocation24_spill] sm:$0xff] }
 0x56d   : > { %v8045_v13 = vsel %vm7632_vm8, %v7936_v47, %v8044_v25  ;;  %v12689_v9 = vadd.f32 %v18937_v32, %v18936_v46  ;;  %vm9105_vm3 = vcmask 121968   ;;  %vm9211_vm5 = vcmask 162944  }
 0x56e   : > { %8153 = vbcast.lane.b32.xlu0 %v8147_v55, 264  ;;  %8149 = vbcast.lane.b32.xlu1 %v8147_v55, 256  ;;  %v8046_v19 = vsel %vm7634_vm9, %v7945_v4, %v8045_v13  ;;  %v8400_v55 = vrot.slane %v17010_v57, %v18909_v59  ;;  %vm9239_vm6 = vcmask 171168   ;;  %vm9264_vm7 = vcmask 179368  }
 0x56f   : > { %v8047_v23 = vsel %vm7636_vm10, %v7954_v54, %v8046_v19  ;;  %v8430_v54 = vrot.slane %v12689_v9, %v18935_v48  ;;  %vm9289_vm8 = vcmask 187568   ;;  %vm9314_vm9 = vcmask 195768  }
 0x570   : > { %13036 = vrcp.f32 %v8047_v23  ;;  %vm9395_vm10 = vcmask 228544  }
 0x571   : > { %13038 = vpow2.f32 %v7671_v50 }
 0x572   : > { %8340 = vbcast.lane.b32.xlu0 %v8334_v62, 264  ;;  %8336 = vbcast.lane.b32.xlu1 %v8334_v62, 256  ;;  %v8479_v62 = vrot.slane %v12688_v61, %v18935_v48 }
 0x574   : > { %v8487_v28 = vcombine.high %v8479_v62, %v8479_v62 }
 0x576   : > { %8351 = vbcast.lane.b32.xlu0 %v8345_v43, 264  ;;  %8347 = vbcast.lane.b32.xlu1 %v8345_v43, 256 }
 0x57a   : > { %8362 = vbcast.lane.b32.xlu0 %v8356_v26, 264  ;;  %8358 = vbcast.lane.b32.xlu1 %v8356_v26, 256  ;;  %v13037_v44 = vpop.eup %13036 }
 0x57b   : > { %v13039_v52 = vpop.eup %13038 }
 0x57c   : > { %v8064_v37 = vmul.f32 %v13039_v52, %v13037_v44 }
 0x57e   : > { %8373 = vbcast.lane.b32.xlu0 %v8367_v29, 264  ;;  %8369 = vbcast.lane.b32.xlu1 %v8367_v29, 256  ;;  %v8246_v3 = vrot.slane %v8064_v37, %v18899_v0  ;;  %v8257_v6 = vrot.slane %v8064_v37, %v18900_v7  ;;  %v8268_v18 = vrot.slane %v8064_v37, %v18901_v58 }
 0x57f   : > { %v8279_v22 = vrot.slane %v8064_v37, %v18902_v2  ;;  %v8290_v57 = vrot.slane %v8064_v37, %v18903_v34  ;;  %v8301_v39 = vrot.slane %v8064_v37, %v18908_v35  ;;  %v8312_v11 = vrot.slane %v8064_v37, %v18909_v59 }
 0x580   : > { %v8495_v34 = vrot.slane %v8479_v62, %v18935_v48  ;;  %v8323_v5 = vrot.slane %v8064_v37, %v18914_v42  ;;  %v8509_v35 = vrot.slane %v8487_v28, %v18935_v48  ;;  %v8472_v59 = vcombine.high %v12688_v61, %v12688_v61 }
 0x582   : > { %8384 = vbcast.lane.b32.xlu0 %v8378_v27, 264  ;;  %8380 = vbcast.lane.b32.xlu1 %v8378_v27, 256  ;;  %v8654_v17 = vrot.slane %v8495_v34, %v18899_v0  ;;  %v8658_v31 = vrot.slane %v8509_v35, %v18899_v0  ;;  %v8517_v56 = vcombine.high %v8495_v34, %v8495_v34 }
 0x583   : > { %v8486_v24 = vrot.slane %v8472_v59, %v18935_v48  ;;  %v8519_v14 = vcombine.high %v8509_v35, %v8509_v35 }
 0x584   : > { %v8662_v12 = vrot.slane %v8517_v56, %v18899_v0 }
 0x585   : > { %v8488_v26 = vcombine.high %v8486_v24, %v8486_v24  ;;  %v8666_v38 = vrot.slane %v8519_v14, %v18899_v0  ;;  %v8502_v25 = vrot.slane %v8486_v24, %v18935_v48 }
 0x586   : > { %8395 = vbcast.lane.b32.xlu0 %v8389_v41, 264  ;;  %8391 = vbcast.lane.b32.xlu1 %v8389_v41, 256  ;;  %v8438_v41 = vcombine.high %v8430_v54, %v8430_v54 }
 0x587   : > { %v8670_v50 = vrot.slane %v8502_v25, %v18899_v0  ;;  %v8516_v27 = vrot.slane %v8488_v26, %v18935_v48 }
 0x589   : > { %v8520_v62 = vcombine.high %v8516_v27, %v8516_v27 }
 0x58a   : > { %8406 = vbcast.lane.b32.xlu0 %v8400_v55, 264  ;;  %8402 = vbcast.lane.b32.xlu1 %v8400_v55, 256  ;;  %v8446_v55 = vrot.slane %v8430_v54, %v18935_v48 }
 0x58b   : > { %v8682_v35 = vrot.slane %v8520_v62, %v18899_v0 }
 0x58e   : > { %8417 = vbcast.lane.b32.xlu0 %v8411_v16, 264  ;;  %8413 = vbcast.lane.b32.xlu1 %v8411_v16, 256 }
 0x592   : > { %8252 = vbcast.lane.b32.xlu0 %v8246_v3, 264  ;;  %8248 = vbcast.lane.b32.xlu1 %v8246_v3, 256  ;;  %v8674_v3 = vrot.slane %v8516_v27, %v18899_v0 }
 0x596   : > { %8263 = vbcast.lane.b32.xlu0 %v8257_v6, 264  ;;  %8259 = vbcast.lane.b32.xlu1 %v8257_v6, 256  ;;  %v8518_v6 = vcombine.high %v8502_v25, %v8502_v25  ;;  %v18939_v25 = vld [vmem:[#allocation82_spill] sm:$0xff] }
 0x59a   : > { %8274 = vbcast.lane.b32.xlu0 %v8268_v18, 264  ;;  %8270 = vbcast.lane.b32.xlu1 %v8268_v18, 256  ;;  %v8622_v18 = vrot.slane %v8446_v55, %v18899_v0 }
 0x59e   : > { %8285 = vbcast.lane.b32.xlu0 %v8279_v22, 264  ;;  %8281 = vbcast.lane.b32.xlu1 %v8279_v22, 256  ;;  %v8460_v22 = vrot.slane %v8438_v41, %v18935_v48 }
 0x5a2   : > { %8296 = vbcast.lane.b32.xlu0 %v8290_v57, 264  ;;  %8292 = vbcast.lane.b32.xlu1 %v8290_v57, 256 }
 0x5a4   : > { %v8165_v21 = vpop.permute.xlu0 %8164  ;;  %v8161_v30 = vpop.permute.xlu1 %8160 }
 0x5a5   : > { %v8796_v20 = vmul.f32 %v8654_v17, %v8165_v21  ;;  %v8795_v49 = vmul.f32 %v8654_v17, %v8161_v30 }
 0x5a6   : > { %8307 = vbcast.lane.b32.xlu0 %v8301_v39, 264  ;;  %8303 = vbcast.lane.b32.xlu1 %v8301_v39, 256  ;;  %v8678_v39 = vrot.slane %v8518_v6, %v18899_v0 }
 0x5a8   : > { %v8176_v51 = vpop.permute.xlu0 %8175  ;;  %v8172_v33 = vpop.permute.xlu1 %8171 }
 0x5a9   : > { %v8798_v42 = vmul.f32 %v8658_v31, %v8176_v51  ;;  %v8797_v45 = vmul.f32 %v8658_v31, %v8172_v33  ;;  %v8423_v51 = vcombine.high %v12689_v9, %v12689_v9  ;;  %v8626_v33 = vrot.slane %v8460_v22, %v18899_v0 }
 0x5aa   : > { %8318 = vbcast.lane.b32.xlu0 %v8312_v11, 264  ;;  %8314 = vbcast.lane.b32.xlu1 %v8312_v11, 256  ;;  %v8468_v11 = vcombine.high %v8446_v55, %v8446_v55 }
 0x5ac   : > { %v8187_v15 = vpop.permute.xlu0 %8186  ;;  %v8183_v63 = vpop.permute.xlu1 %8182 }
 0x5ad   : > { %v8800_v53 = vmul.f32 %v8662_v12, %v8187_v15  ;;  %v8799_v47 = vmul.f32 %v8662_v12, %v8183_v63 }
 0x5ae   : > { %8329 = vbcast.lane.b32.xlu0 %v8323_v5, 264  ;;  %8325 = vbcast.lane.b32.xlu1 %v8323_v5, 256 }
 0x5b0   : > { %v8198_v10 = vpop.permute.xlu0 %8197  ;;  %v8194_v60 = vpop.permute.xlu1 %8193 }
 0x5b1   : > { %v8802_v13 = vmul.f32 %v8666_v38, %v8198_v10  ;;  %v8801_v19 = vmul.f32 %v8666_v38, %v8194_v60  ;;  %v8470_v10 = vcombine.high %v8460_v22, %v8460_v22  ;;  %v18938_v38 = vld [vmem:[#allocation32_spill] sm:$0xff] }
 0x5b2   : > { %8981 = vrot.lane.b32.xlu0 %v8796_v20, %s13133_s22  ;;  %8979 = vrot.lane.b32.xlu1 %v8795_v49, %s13133_s22  ;;  %v8437_v20 = vrot.slane %v8423_v51, %v18935_v48  ;;  %v8630_v49 = vrot.slane %v8468_v11, %v18899_v0  ;;  %v12690_v54 = vadd.f32 %v18939_v25, %v18938_v38  ;;  %v18941_v38 = vld [vmem:[#allocation83_spill] sm:$0xff] }
 0x5b4   : > { %v8209_v36 = vpop.permute.xlu0 %8208  ;;  %v8205_v43 = vpop.permute.xlu1 %8204  ;;  %v8453_v24 = vrot.slane %v8437_v20, %v18935_v48  ;;  %v8577_v41 = vrot.slane %v12690_v54, %v18935_v48 }
 0x5b5   : > { %v8804_v44 = vmul.f32 %v8670_v50, %v8209_v36  ;;  %v8803_v52 = vmul.f32 %v8670_v50, %v8205_v43  ;;  %v8439_v36 = vcombine.high %v8437_v20, %v8437_v20  ;;  %v8634_v43 = vrot.slane %v8470_v10, %v18899_v0 }
 0x5b6   : > { %8985 = vrot.lane.b32.xlu0 %v8798_v42, %s13133_s22  ;;  %8983 = vrot.lane.b32.xlu1 %v8797_v45, %s13133_s22  ;;  %v8638_v9 = vrot.slane %v8453_v24, %v18899_v0  ;;  %v8585_v6 = vcombine.high %v8577_v41, %v8577_v41 }
 0x5b8   : > { %v8220_v1 = vpop.permute.xlu0 %8219  ;;  %v8216_v4 = vpop.permute.xlu1 %8215 }
 0x5b9   : > { %v8806_v57 = vmul.f32 %v8674_v3, %v8220_v1  ;;  %v8805_v40 = vmul.f32 %v8674_v3, %v8216_v4 }
 0x5ba   : > { %8989 = vrot.lane.b32.xlu0 %v8800_v53, %s13133_s22  ;;  %8987 = vrot.lane.b32.xlu1 %v8799_v47, %s13133_s22  ;;  %v8467_v53 = vrot.slane %v8439_v36, %v18935_v48 }
 0x5bc   : > { %v8231_v23 = vpop.permute.xlu0 %8230  ;;  %v8227_v29 = vpop.permute.xlu1 %8226 }
 0x5bd   : > { %v8808_v28 = vmul.f32 %v8678_v39, %v8231_v23  ;;  %v8807_v34 = vmul.f32 %v8678_v39, %v8227_v29 }
 0x5be   : > { %8993 = vrot.lane.b32.xlu0 %v8802_v13, %s13133_s22  ;;  %8991 = vrot.lane.b32.xlu1 %v8801_v19, %s13133_s22  ;;  %v8642_v13 = vrot.slane %v8467_v53, %v18899_v0  ;;  %v8469_v19 = vcombine.high %v8453_v24, %v8453_v24 }
 0x5c0   : > { %v8242_v37 = vpop.permute.xlu0 %8241  ;;  %v8238_v16 = vpop.permute.xlu1 %8237  ;;  %v8646_v55 = vrot.slane %v8469_v19, %v18899_v0 }
 0x5c1   : > { %v8810_v60 = vmul.f32 %v8682_v35, %v8242_v37  ;;  %v8809_v59 = vmul.f32 %v8682_v35, %v8238_v16 }
 0x5c2   : > { %8997 = vrot.lane.b32.xlu0 %v8804_v44, %s13133_s22  ;;  %8995 = vrot.lane.b32.xlu1 %v8803_v52, %s13133_s22  ;;  %v8471_v44 = vcombine.high %v8467_v53, %v8467_v53 }
 0x5c4   : > { %v8077_v8 = vpop.permute.xlu0 %8076  ;;  %v8073_v61 = vpop.permute.xlu1 %8072  ;;  %v8650_v22 = vrot.slane %v8471_v44, %v18899_v0 }
 0x5c5   : > { %v8780_v21 = vmul.f32 %v8622_v18, %v8077_v8  ;;  %v8779_v30 = vmul.f32 %v8622_v18, %v8073_v61  ;;  %v8593_v18 = vrot.slane %v8577_v41, %v18935_v48 }
 0x5c6   : > { %9001 = vrot.lane.b32.xlu0 %v8806_v57, %s13133_s22  ;;  %8999 = vrot.lane.b32.xlu1 %v8805_v40, %s13133_s22 }
 0x5c7   : > { %8845 = vst.msk [vmem:[%s17130_s13 + $0x8] sm:$0xff] %vm8843_vm11, %v8780_v21  ;;  %8844 = vst.msk [vmem:[%s17130_s13] sm:$0xff] %vm8843_vm11, %v8779_v30  ;;  %v8718_v21 = vrot.slane %v8593_v18, %v18899_v0  ;;  %v8607_v30 = vrot.slane %v8585_v6, %v18935_v48 }
 0x5c8   : > { %v8088_v15 = vpop.permute.xlu0 %8087  ;;  %v8084_v63 = vpop.permute.xlu1 %8083 }
 0x5c9   : > { %v8782_v5 = vmul.f32 %v8626_v33, %v8088_v15  ;;  %v8781_v17 = vmul.f32 %v8626_v33, %v8084_v63  ;;  %v8722_v15 = vrot.slane %v8607_v30, %v18899_v0  ;;  %v8615_v63 = vcombine.high %v8593_v18, %v8593_v18 }
 0x5ca   : > { %9005 = vrot.lane.b32.xlu0 %v8808_v28, %s13133_s22  ;;  %9003 = vrot.lane.b32.xlu1 %v8807_v34, %s13133_s22  ;;  %v8570_v34 = vcombine.high %v12690_v54, %v12690_v54 }
 0x5cb   : > { %8847 = vst.msk [vmem:[%s17130_s13 + $0x18] sm:$0xff] %vm8843_vm11, %v8782_v5  ;;  %8846 = vst.msk [vmem:[%s17130_s13 + $0x10] sm:$0xff] %vm8843_vm11, %v8781_v17  ;;  %v8726_v10 = vrot.slane %v8615_v63, %v18899_v0 }
 0x5cc   : > { %v8099_v31 = vpop.permute.xlu0 %8098  ;;  %v8095_v56 = vpop.permute.xlu1 %8094 }
 0x5cd   : > { %v8784_v42 = vmul.f32 %v8630_v49, %v8099_v31  ;;  %v8783_v45 = vmul.f32 %v8630_v49, %v8095_v56  ;;  %v8584_v49 = vrot.slane %v8570_v34, %v18935_v48 }
 0x5ce   : > { %9009 = vrot.lane.b32.xlu0 %v8810_v60, %s13133_s22  ;;  %9007 = vrot.lane.b32.xlu1 %v8809_v59, %s13133_s22  ;;  %v8617_v60 = vcombine.high %v8607_v30, %v8607_v30 }
 0x5cf   : > { %8849 = vst.msk [vmem:[%s17130_s13 + $0x28] sm:$0xff] %vm8843_vm11, %v8784_v42  ;;  %8848 = vst.msk [vmem:[%s17130_s13 + $0x20] sm:$0xff] %vm8843_vm11, %v8783_v45  ;;  %v8586_v45 = vcombine.high %v8584_v49, %v8584_v49 }
 0x5d0   : > { %v8110_v12 = vpop.permute.xlu0 %8109  ;;  %v8106_v14 = vpop.permute.xlu1 %8105  ;;  %v8730_v36 = vrot.slane %v8617_v60, %v18899_v0 }
 0x5d1   : > { %v8786_v46 = vmul.f32 %v8634_v43, %v8110_v12  ;;  %v8785_v32 = vmul.f32 %v8634_v43, %v8106_v14  ;;  %v8600_v43 = vrot.slane %v8584_v49, %v18935_v48 }
 0x5d3   : > { %8851 = vst.msk [vmem:[%s17130_s13 + $0x38] sm:$0xff] %vm8843_vm11, %v8786_v46  ;;  %8850 = vst.msk [vmem:[%s17130_s13 + $0x30] sm:$0xff] %vm8843_vm11, %v8785_v32  ;;  %v8734_v32 = vrot.slane %v8600_v43, %v18899_v0 }
 0x5d4   : > { %v8121_v47 = vpop.permute.xlu0 %8120  ;;  %v8117_v1 = vpop.permute.xlu1 %8116 }
 0x5d5   : > { %v8788_v4 = vmul.f32 %v8638_v9, %v8121_v47  ;;  %v8787_v26 = vmul.f32 %v8638_v9, %v8117_v1  ;;  %v8614_v9 = vrot.slane %v8586_v45, %v18935_v48 }
 0x5d7   : > { %8853 = vst.msk [vmem:[%s17130_s13 + $0x48] sm:$0xff] %vm8843_vm11, %v8788_v4  ;;  %8852 = vst.msk [vmem:[%s17130_s13 + $0x40] sm:$0xff] %vm8843_vm11, %v8787_v26  ;;  %v18940_v26 = vld [vmem:[#allocation20_spill] sm:$0xff]  ;;  %v8738_v54 = vrot.slane %v8614_v9, %v18899_v0 }
 0x5d8   : > { %v8132_v23 = vpop.permute.xlu0 %8131  ;;  %v8128_v29 = vpop.permute.xlu1 %8127  ;;  %v12691_v25 = vadd.f32 %v18941_v38, %v18940_v26 }
 0x5d9   : > { %v8790_v50 = vmul.f32 %v8642_v13, %v8132_v23  ;;  %v8789_v27 = vmul.f32 %v8642_v13, %v8128_v29  ;;  %v8616_v13 = vcombine.high %v8600_v43, %v8600_v43 }
 0x5db   : > { %8855 = vst.msk [vmem:[%s17130_s13 + $0x58] sm:$0xff] %vm8843_vm11, %v8790_v50  ;;  %8854 = vst.msk [vmem:[%s17130_s13 + $0x50] sm:$0xff] %vm8843_vm11, %v8789_v27  ;;  %v8528_v27 = vrot.slane %v12691_v25, %v18935_v48  ;;  %v8742_v41 = vrot.slane %v8616_v13, %v18899_v0 }
 0x5dc   : > { %v8143_v52 = vpop.permute.xlu0 %8142  ;;  %v8139_v37 = vpop.permute.xlu1 %8138 }
 0x5dd   : > { %v8792_v16 = vmul.f32 %v8646_v55, %v8143_v52  ;;  %v8791_v3 = vmul.f32 %v8646_v55, %v8139_v37  ;;  %v8618_v55 = vcombine.high %v8614_v9, %v8614_v9  ;;  %v8544_v18 = vrot.slane %v8528_v27, %v18935_v48 }
 0x5df   : > { %8857 = vst.msk [vmem:[%s17130_s13 + $0x68] sm:$0xff] %vm8843_vm11, %v8792_v16  ;;  %8856 = vst.msk [vmem:[%s17130_s13 + $0x60] sm:$0xff] %vm8843_vm11, %v8791_v3  ;;  %v8536_v3 = vcombine.high %v8528_v27, %v8528_v27  ;;  %v8746_v6 = vrot.slane %v8618_v55, %v18899_v0  ;;  %v8566_v34 = vcombine.high %v8544_v18, %v8544_v18 }
 0x5e0   : > { %v8154_v57 = vpop.permute.xlu0 %8153  ;;  %v8150_v40 = vpop.permute.xlu1 %8149 }
 0x5e1   : > { %v8794_v8 = vmul.f32 %v8650_v22, %v8154_v57  ;;  %v8793_v61 = vmul.f32 %v8650_v22, %v8150_v40 }
 0x5e3   : > { %8859 = vst.msk [vmem:[%s17130_s13 + $0x78] sm:$0xff] %vm8843_vm11, %v8794_v8  ;;  %8858 = vst.msk [vmem:[%s17130_s13 + $0x70] sm:$0xff] %vm8843_vm11, %v8793_v61  ;;  %v8686_v61 = vrot.slane %v8544_v18, %v18899_v0  ;;  %vm9423_vm11 = vcmask 236768  }
 0x5e4   : > { %v8341_v39 = vpop.permute.xlu0 %8340  ;;  %v8337_v62 = vpop.permute.xlu1 %8336 }
 0x5e5   : > { %v8828_v51 = vmul.f32 %v8718_v21, %v8341_v39  ;;  %v8827_v33 = vmul.f32 %v8718_v21, %v8337_v62  ;;  %v17185_v11 = vpop.f32.mrb[16].mxu1  ;;  %v8558_v21 = vrot.slane %v8536_v3, %v18935_v48 }
 0x5e6   : > { %v11687_v28 = vpop.f32.mrb[17].mxu1 }
 0x5e7   : > { %9349 = vrot.lane.b32.xlu0 %v8828_v51, %s13134_s17  ;;  %9347 = vrot.lane.b32.xlu1 %v8827_v33, %s13134_s17  ;;  %v8521_v33 = vcombine.high %v12691_v25, %v12691_v25  ;;  %v8690_v28 = vrot.slane %v8558_v21, %v18899_v0  ;;  %v8568_v49 = vcombine.high %v8558_v21, %v8558_v21 }
 0x5e8   : > { %v8352_v5 = vpop.permute.xlu0 %8351  ;;  %v8348_v17 = vpop.permute.xlu1 %8347 }
 0x5e9   : > { %v8830_v35 = vmul.f32 %v8722_v15, %v8352_v5  ;;  %v8829_v20 = vmul.f32 %v8722_v15, %v8348_v17 }
 0x5eb   : > { %9353 = vrot.lane.b32.xlu0 %v8830_v35, %s13134_s17  ;;  %9351 = vrot.lane.b32.xlu1 %v8829_v20, %s13134_s17  ;;  %v8535_v35 = vrot.slane %v8521_v33, %v18935_v48  ;;  %v8694_v20 = vrot.slane %v8566_v34, %v18899_v0 }
 0x5ec   : > { %v8363_v59 = vpop.permute.xlu0 %8362  ;;  %v8359_v31 = vpop.permute.xlu1 %8358 }
 0x5ed   : > { %v8832_v56 = vmul.f32 %v8726_v10, %v8363_v59  ;;  %v8831_v42 = vmul.f32 %v8726_v10, %v8359_v31  ;;  %v8537_v45 = vcombine.high %v8535_v35, %v8535_v35 }
 0x5ef   : > { %9357 = vrot.lane.b32.xlu0 %v8832_v56, %s13134_s17  ;;  %9355 = vrot.lane.b32.xlu1 %v8831_v42, %s13134_s17  ;;  %v8698_v56 = vrot.slane %v8568_v49, %v18899_v0  ;;  %v8551_v42 = vrot.slane %v8535_v35, %v18935_v48 }
 0x5f0   : > { %v8374_v24 = vpop.permute.xlu0 %8373  ;;  %v8370_v12 = vpop.permute.xlu1 %8369 }
 0x5f1   : > { %v8834_v14 = vmul.f32 %v8730_v36, %v8374_v24  ;;  %v8833_v46 = vmul.f32 %v8730_v36, %v8370_v12 }
 0x5f3   : > { %9361 = vrot.lane.b32.xlu0 %v8834_v14, %s13134_s17  ;;  %9359 = vrot.lane.b32.xlu1 %v8833_v46, %s13134_s17  ;;  %v8702_v14 = vrot.slane %v8551_v42, %v18899_v0  ;;  %v8565_v46 = vrot.slane %v8537_v45, %v18935_v48 }
 0x5f4   : > { %v8385_v53 = vpop.permute.xlu0 %8384  ;;  %v8381_v47 = vpop.permute.xlu1 %8380 }
 0x5f5   : > { %v8836_v1 = vmul.f32 %v8734_v32, %v8385_v53  ;;  %v8835_v4 = vmul.f32 %v8734_v32, %v8381_v47  ;;  %v8569_v13 = vcombine.high %v8565_v46, %v8565_v46 }
 0x5f7   : > { %9365 = vrot.lane.b32.xlu0 %v8836_v1, %s13134_s17  ;;  %9363 = vrot.lane.b32.xlu1 %v8835_v4, %s13134_s17  ;;  %v8706_v1 = vrot.slane %v8565_v46, %v18899_v0  ;;  %v8567_v4 = vcombine.high %v8551_v42, %v8551_v42  ;;  %v8714_v27 = vrot.slane %v8569_v13, %v18899_v0 }
 0x5f8   : > { %v8396_v19 = vpop.permute.xlu0 %8395  ;;  %v8392_v23 = vpop.permute.xlu1 %8391 }
 0x5f9   : > { %v8838_v29 = vmul.f32 %v8738_v54, %v8396_v19  ;;  %v8837_v50 = vmul.f32 %v8738_v54, %v8392_v23  ;;  %v8710_v48 = vrot.slane %v8567_v4, %v18899_v0 }
 0x5fb   : > { %9369 = vrot.lane.b32.xlu0 %v8838_v29, %s13134_s17  ;;  %9367 = vrot.lane.b32.xlu1 %v8837_v50, %s13134_s17 }
 0x5fc   : > { %v8407_v44 = vpop.permute.xlu0 %8406  ;;  %v8403_v52 = vpop.permute.xlu1 %8402 }
 0x5fd   : > { %v8840_v37 = vmul.f32 %v8742_v41, %v8407_v44  ;;  %v8839_v16 = vmul.f32 %v8742_v41, %v8403_v52  ;;  %v13060_v44 = vld [vmem:[%s18063_s5] ss:$0 sm:$0xff] }
 0x5fe   : > { %v12692_v52 = vadd.f32 %v13060_v44, %v17185_v11 }
 0x5ff   : > { %9373 = vrot.lane.b32.xlu0 %v8840_v37, %s13134_s17  ;;  %9371 = vrot.lane.b32.xlu1 %v8839_v16, %s13134_s17 }
 0x600   : > { %v8418_v22 = vpop.permute.xlu0 %8417  ;;  %v8414_v57 = vpop.permute.xlu1 %8413  ;;  %v8863_v3 = vrot.slane %v12692_v52, %v18899_v0 }
 0x601   : > { %v8842_v40 = vmul.f32 %v8746_v6, %v8418_v22  ;;  %v8841_v8 = vmul.f32 %v8746_v6, %v8414_v57  ;;  %v9047_v57 = vrot.slane %v12692_v52, %v18900_v7  ;;  %v9231_v7 = vrot.slane %v12692_v52, %v18901_v58 }
 0x603   : > { %9377 = vrot.lane.b32.xlu0 %v8842_v40, %s13134_s17  ;;  %9375 = vrot.lane.b32.xlu1 %v8841_v8, %s13134_s17  ;;  %s13136_s17 = smov [#allocation2]  }
 0x604   : > { %v8253_v30 = vpop.permute.xlu0 %8252  ;;  %v8249_v39 = vpop.permute.xlu1 %8248 }
 0x605   : > { %v8812_v62 = vmul.f32 %v8686_v61, %v8253_v30  ;;  %v8811_v51 = vmul.f32 %v8686_v61, %v8249_v39 }
 0x607   : > { %9165 = vrot.lane.b32.xlu0 %v8812_v62, %s13135_s12  ;;  %9163 = vrot.lane.b32.xlu1 %v8811_v51, %s13135_s12 }
 0x608   : > { %v8264_v15 = vpop.permute.xlu0 %8263  ;;  %v8260_v63 = vpop.permute.xlu1 %8259 }
 0x609   : > { %v8814_v5 = vmul.f32 %v8690_v28, %v8264_v15  ;;  %v8813_v17 = vmul.f32 %v8690_v28, %v8260_v63  ;;  %v9415_v28 = vrot.slane %v12692_v52, %v18902_v2 }
 0x60b   : > { %9169 = vrot.lane.b32.xlu0 %v8814_v5, %s13135_s12  ;;  %9167 = vrot.lane.b32.xlu1 %v8813_v17, %s13135_s12 }
 0x60c   : > { %v8275_v10 = vpop.permute.xlu0 %8274  ;;  %v8271_v60 = vpop.permute.xlu1 %8270 }
 0x60d   : > { %v8816_v59 = vmul.f32 %v8694_v20, %v8275_v10  ;;  %v8815_v31 = vmul.f32 %v8694_v20, %v8271_v60 }
 0x60f   : > { %9173 = vrot.lane.b32.xlu0 %v8816_v59, %s13135_s12  ;;  %9171 = vrot.lane.b32.xlu1 %v8815_v31, %s13135_s12 }
 0x610   : > { %v8286_v36 = vpop.permute.xlu0 %8285  ;;  %v8282_v43 = vpop.permute.xlu1 %8281 }
 0x611   : > { %v8818_v24 = vmul.f32 %v8698_v56, %v8286_v36  ;;  %v8817_v12 = vmul.f32 %v8698_v56, %v8282_v43 }
 0x613   : > { %9177 = vrot.lane.b32.xlu0 %v8818_v24, %s13135_s12  ;;  %9175 = vrot.lane.b32.xlu1 %v8817_v12, %s13135_s12 }
 0x614   : > { %v8297_v32 = vpop.permute.xlu0 %8296  ;;  %v8293_v9 = vpop.permute.xlu1 %8292 }
 0x615   : > { %v8820_v53 = vmul.f32 %v8702_v14, %v8297_v32  ;;  %v8819_v47 = vmul.f32 %v8702_v14, %v8293_v9 }
 0x617   : > { %9181 = vrot.lane.b32.xlu0 %v8820_v53, %s13135_s12  ;;  %9179 = vrot.lane.b32.xlu1 %v8819_v47, %s13135_s12 }
 0x618   : > { %v8308_v26 = vpop.permute.xlu0 %8307  ;;  %v8304_v38 = vpop.permute.xlu1 %8303 }
 0x619   : > { %v8822_v25 = vmul.f32 %v8706_v1, %v8308_v26  ;;  %v8821_v54 = vmul.f32 %v8706_v1, %v8304_v38 }
 0x61b   : > { %9185 = vrot.lane.b32.xlu0 %v8822_v25, %s13135_s12  ;;  %9183 = vrot.lane.b32.xlu1 %v8821_v54, %s13135_s12 }
 0x61c   : > { %v8319_v19 = vpop.permute.xlu0 %8318  ;;  %v8315_v23 = vpop.permute.xlu1 %8314 }
 0x61d   : > { %v8824_v29 = vmul.f32 %v8710_v48, %v8319_v19  ;;  %v8823_v50 = vmul.f32 %v8710_v48, %v8315_v23 }
 0x61f   : > { %9189 = vrot.lane.b32.xlu0 %v8824_v29, %s13135_s12  ;;  %9187 = vrot.lane.b32.xlu1 %v8823_v50, %s13135_s12 }
 0x620   : > { %v8330_v41 = vpop.permute.xlu0 %8329  ;;  %v8326_v55 = vpop.permute.xlu1 %8325 }
 0x621   : > { %v8826_v37 = vmul.f32 %v8714_v27, %v8330_v41  ;;  %v8825_v16 = vmul.f32 %v8714_v27, %v8326_v55 }
 0x623   : > { %9193 = vrot.lane.b32.xlu0 %v8826_v37, %s13135_s12  ;;  %9191 = vrot.lane.b32.xlu1 %v8825_v16, %s13135_s12  ;;  %s13065_s12 = sshll.u32 %s13136_s17, 4  ;;  %s13066_s12 = int_to_ptr.vmem [resolvable:$false] %s13065_s12 }
 0x624   : > { %v17250_v6 = vpop.permute.xlu0 %8981  ;;  %v17252_v18 = vpop.permute.xlu1 %8979  ;;  %s13067_s26 = scalar_lea.vmem %s13066_s12, 4096  ;;  %p13068_p0 = scmp.lt.s32.totalorder %s17980_s19, %s13066_s12 }
 0x625   : > { %p13069_p1 = scmp.lt.s32.totalorder %s13067_s26, %s13061_s25 }
 0x627   : > { %8869 = vbcast.lane.b32.xlu0 %v8863_v3, 264  ;;  %8865 = vbcast.lane.b32.xlu1 %v8863_v3, 256  ;;  %p13070_p2 = por %p13069_p1, %p13068_p0 }
 0x628   : > { %v17254_v22 = vpop.permute.xlu0 %8985  ;;  %v17256_v11 = vpop.permute.xlu1 %8983 }
 0x629   : > { %p13071_p3 = pnand %p13070_p2, %p13064_p13 }
 0x62b   : > { %8894 = vbcast.lane.b32.xlu0 %v8863_v3, 280  ;;  %8890 = vbcast.lane.b32.xlu1 %v8863_v3, 272 }
 0x62c   : > { %v17259_v40 = vpop.permute.xlu0 %8989  ;;  %v17261_v0 = vpop.permute.xlu1 %8987 }
 0x62f   : > { %8919 = vbcast.lane.b32.xlu0 %v8863_v3, 296  ;;  %8915 = vbcast.lane.b32.xlu1 %v8863_v3, 288 }
 0x630   : > { %v17263_v8 = vpop.permute.xlu0 %8993  ;;  %v17265_v61 = vpop.permute.xlu1 %8991 }
 0x633   : > { %8944 = vbcast.lane.b32.xlu0 %v8863_v3, 312  ;;  %8940 = vbcast.lane.b32.xlu1 %v8863_v3, 304 }
 0x634   : > { %v17267_v21 = vpop.permute.xlu0 %8997  ;;  %v17269_v30 = vpop.permute.xlu1 %8995 }
 0x637   : > { %9053 = vbcast.lane.b32.xlu0 %v9047_v57, 264  ;;  %9049 = vbcast.lane.b32.xlu1 %v9047_v57, 256 }
 0x638   : > { %v17272_v39 = vpop.permute.xlu0 %9001  ;;  %v17274_v62 = vpop.permute.xlu1 %8999 }
 0x63b   : > { %9078 = vbcast.lane.b32.xlu0 %v9047_v57, 280  ;;  %9074 = vbcast.lane.b32.xlu1 %v9047_v57, 272 }
 0x63c   : > { %v17276_v51 = vpop.permute.xlu0 %9005  ;;  %v17278_v33 = vpop.permute.xlu1 %9003 }
 0x63f   : > { %9103 = vbcast.lane.b32.xlu0 %v9047_v57, 296  ;;  %9099 = vbcast.lane.b32.xlu1 %v9047_v57, 288 }
 0x640   : > { %v17281_v34 = vpop.permute.xlu0 %9009  ;;  %v17283_v58 = vpop.permute.xlu1 %9007 }
 0x643   : > { %9128 = vbcast.lane.b32.xlu0 %v9047_v57, 312  ;;  %9124 = vbcast.lane.b32.xlu1 %v9047_v57, 304 }
 0x647   : > { %9237 = vbcast.lane.b32.xlu0 %v9231_v7, 264  ;;  %9233 = vbcast.lane.b32.xlu1 %v9231_v7, 256 }
 0x64b   : > { %9262 = vbcast.lane.b32.xlu0 %v9231_v7, 280  ;;  %9258 = vbcast.lane.b32.xlu1 %v9231_v7, 272 }
 0x64f   : > { %9287 = vbcast.lane.b32.xlu0 %v9231_v7, 296  ;;  %9283 = vbcast.lane.b32.xlu1 %v9231_v7, 288 }
 0x653   : > { %9312 = vbcast.lane.b32.xlu0 %v9231_v7, 312  ;;  %9308 = vbcast.lane.b32.xlu1 %v9231_v7, 304 }
 0x657   : > { %9421 = vbcast.lane.b32.xlu0 %v9415_v28, 264  ;;  %9417 = vbcast.lane.b32.xlu1 %v9415_v28, 256 }
 0x659   : > { %v17285_v15 = vpop.permute.xlu0 %9349  ;;  %v17287_v63 = vpop.permute.xlu1 %9347 }
 0x65b   : > { %9446 = vbcast.lane.b32.xlu0 %v9415_v28, 280  ;;  %9442 = vbcast.lane.b32.xlu1 %v9415_v28, 272 }
 0x65d   : > { %v17289_v5 = vpop.permute.xlu0 %9353  ;;  %v17291_v17 = vpop.permute.xlu1 %9351 }
 0x65f   : > { %9471 = vbcast.lane.b32.xlu0 %v9415_v28, 296  ;;  %9467 = vbcast.lane.b32.xlu1 %v9415_v28, 288 }
 0x661   : > { %v17293_v35 = vpop.permute.xlu0 %9357  ;;  %v17295_v2 = vpop.permute.xlu1 %9355 }
 0x663   : > { %9496 = vbcast.lane.b32.xlu0 %v9415_v28, 312  ;;  %9492 = vbcast.lane.b32.xlu1 %v9415_v28, 304 }
 0x665   : > { %v17297_v20 = vpop.permute.xlu0 %9361  ;;  %v17299_v49 = vpop.permute.xlu1 %9359 }
 0x669   : > { %v17301_v10 = vpop.permute.xlu0 %9365  ;;  %v17303_v60 = vpop.permute.xlu1 %9363 }
 0x66d   : > { %v17305_v59 = vpop.permute.xlu0 %9369  ;;  %v17307_v31 = vpop.permute.xlu1 %9367 }
 0x671   : > { %v17309_v56 = vpop.permute.xlu0 %9373  ;;  %v17311_v42 = vpop.permute.xlu1 %9371 }
 0x675   : > { %v17313_v45 = vpop.permute.xlu0 %9377  ;;  %v17315_v36 = vpop.permute.xlu1 %9375 }
 0x679   : > { %v17317_v43 = vpop.permute.xlu0 %9165  ;;  %v17319_v24 = vpop.permute.xlu1 %9163 }
 0x67d   : > { %v17321_v12 = vpop.permute.xlu0 %9169  ;;  %v17323_v14 = vpop.permute.xlu1 %9167 }
 0x681   : > { %v17325_v46 = vpop.permute.xlu0 %9173  ;;  %v17327_v32 = vpop.permute.xlu1 %9171 }
 0x685   : > { %v17329_v9 = vpop.permute.xlu0 %9177  ;;  %v17331_v53 = vpop.permute.xlu1 %9175 }
 0x689   : > { %v17333_v47 = vpop.permute.xlu0 %9181  ;;  %v17335_v1 = vpop.permute.xlu1 %9179 }
 0x68d   : > { %v17337_v4 = vpop.permute.xlu0 %9185  ;;  %v17339_v26 = vpop.permute.xlu1 %9183 }
 0x691   : > { %v17341_v38 = vpop.permute.xlu0 %9189  ;;  %v17343_v25 = vpop.permute.xlu1 %9187 }
 0x695   : > { %v17345_v54 = vpop.permute.xlu0 %9193  ;;  %v17347_v48 = vpop.permute.xlu1 %9191 }
 0x699   : > { %v8870_v13 = vpop.permute.xlu0 %8869  ;;  %v8866_v19 = vpop.permute.xlu1 %8865 }
 0x69a   : > { %8873 = vst.msk [vmem:[%s17130_s13 + $0x8] sm:$0xff] %vm8871_vm12, %v8870_v13  ;;  %8875 = vst.msk [vmem:[%s17130_s13 + $0x18] sm:$0xff] %vm8871_vm12, %v8870_v13 }
 0x69b   : > { %8877 = vst.msk [vmem:[%s17130_s13 + $0x28] sm:$0xff] %vm8871_vm12, %v8870_v13  ;;  %8879 = vst.msk [vmem:[%s17130_s13 + $0x38] sm:$0xff] %vm8871_vm12, %v8870_v13 }
 0x69c   : > { %8881 = vst.msk [vmem:[%s17130_s13 + $0x48] sm:$0xff] %vm8871_vm12, %v8870_v13  ;;  %8883 = vst.msk [vmem:[%s17130_s13 + $0x58] sm:$0xff] %vm8871_vm12, %v8870_v13 }
 0x69d   : > { %8885 = vst.msk [vmem:[%s17130_s13 + $0x68] sm:$0xff] %vm8871_vm12, %v8870_v13  ;;  %8887 = vst.msk [vmem:[%s17130_s13 + $0x78] sm:$0xff] %vm8871_vm12, %v8870_v13  ;;  %v8895_v23 = vpop.permute.xlu0 %8894  ;;  %v8891_v29 = vpop.permute.xlu1 %8890 }
 0x69e   : > { %8872 = vst.msk [vmem:[%s17130_s13] sm:$0xff] %vm8871_vm12, %v8866_v19  ;;  %8874 = vst.msk [vmem:[%s17130_s13 + $0x10] sm:$0xff] %vm8871_vm12, %v8866_v19 }
 0x69f   : > { %8876 = vst.msk [vmem:[%s17130_s13 + $0x20] sm:$0xff] %vm8871_vm12, %v8866_v19  ;;  %8878 = vst.msk [vmem:[%s17130_s13 + $0x30] sm:$0xff] %vm8871_vm12, %v8866_v19 }
 0x6a0   : > { %8880 = vst.msk [vmem:[%s17130_s13 + $0x40] sm:$0xff] %vm8871_vm12, %v8866_v19  ;;  %8882 = vst.msk [vmem:[%s17130_s13 + $0x50] sm:$0xff] %vm8871_vm12, %v8866_v19 }
 0x6a1   : > { %8884 = vst.msk [vmem:[%s17130_s13 + $0x60] sm:$0xff] %vm8871_vm12, %v8866_v19  ;;  %8886 = vst.msk [vmem:[%s17130_s13 + $0x70] sm:$0xff] %vm8871_vm12, %v8866_v19  ;;  %v8920_v50 = vpop.permute.xlu0 %8919  ;;  %v8916_v27 = vpop.permute.xlu1 %8915  ;;  %vm9448_vm12 = vcmask 244968  }
 0x6a2   : > { %8898 = vst.msk [vmem:[%s17130_s13 + $0x8] sm:$0xff] %vm8896_vm13, %v8895_v23  ;;  %8900 = vst.msk [vmem:[%s17130_s13 + $0x18] sm:$0xff] %vm8896_vm13, %v8895_v23 }
 0x6a3   : > { %8902 = vst.msk [vmem:[%s17130_s13 + $0x28] sm:$0xff] %vm8896_vm13, %v8895_v23  ;;  %8904 = vst.msk [vmem:[%s17130_s13 + $0x38] sm:$0xff] %vm8896_vm13, %v8895_v23 }
 0x6a4   : > { %8906 = vst.msk [vmem:[%s17130_s13 + $0x48] sm:$0xff] %vm8896_vm13, %v8895_v23  ;;  %8908 = vst.msk [vmem:[%s17130_s13 + $0x58] sm:$0xff] %vm8896_vm13, %v8895_v23 }
 0x6a5   : > { %8910 = vst.msk [vmem:[%s17130_s13 + $0x68] sm:$0xff] %vm8896_vm13, %v8895_v23  ;;  %8912 = vst.msk [vmem:[%s17130_s13 + $0x78] sm:$0xff] %vm8896_vm13, %v8895_v23  ;;  %v8945_v41 = vpop.permute.xlu0 %8944  ;;  %v8941_v55 = vpop.permute.xlu1 %8940 }
 0x6a6   : > { %8897 = vst.msk [vmem:[%s17130_s13] sm:$0xff] %vm8896_vm13, %v8891_v29  ;;  %8899 = vst.msk [vmem:[%s17130_s13 + $0x10] sm:$0xff] %vm8896_vm13, %v8891_v29 }
 0x6a7   : > { %8901 = vst.msk [vmem:[%s17130_s13 + $0x20] sm:$0xff] %vm8896_vm13, %v8891_v29  ;;  %8903 = vst.msk [vmem:[%s17130_s13 + $0x30] sm:$0xff] %vm8896_vm13, %v8891_v29 }
 0x6a8   : > { %8905 = vst.msk [vmem:[%s17130_s13 + $0x40] sm:$0xff] %vm8896_vm13, %v8891_v29  ;;  %8907 = vst.msk [vmem:[%s17130_s13 + $0x50] sm:$0xff] %vm8896_vm13, %v8891_v29 }
 0x6a9   : > { %8909 = vst.msk [vmem:[%s17130_s13 + $0x60] sm:$0xff] %vm8896_vm13, %v8891_v29  ;;  %8911 = vst.msk [vmem:[%s17130_s13 + $0x70] sm:$0xff] %vm8896_vm13, %v8891_v29  ;;  %v9054_v44 = vpop.permute.xlu0 %9053  ;;  %v9050_v52 = vpop.permute.xlu1 %9049  ;;  %vm9473_vm13 = vcmask 253168  }
 0x6aa   : > { %8923 = vst.msk [vmem:[%s17130_s13 + $0x8] sm:$0xff] %vm8921_vm14, %v8920_v50  ;;  %8925 = vst.msk [vmem:[%s17130_s13 + $0x18] sm:$0xff] %vm8921_vm14, %v8920_v50 }
 0x6ab   : > { %8927 = vst.msk [vmem:[%s17130_s13 + $0x28] sm:$0xff] %vm8921_vm14, %v8920_v50  ;;  %8929 = vst.msk [vmem:[%s17130_s13 + $0x38] sm:$0xff] %vm8921_vm14, %v8920_v50 }
 0x6ac   : > { %8931 = vst.msk [vmem:[%s17130_s13 + $0x48] sm:$0xff] %vm8921_vm14, %v8920_v50  ;;  %8933 = vst.msk [vmem:[%s17130_s13 + $0x58] sm:$0xff] %vm8921_vm14, %v8920_v50 }
 0x6ad   : > { %8935 = vst.msk [vmem:[%s17130_s13 + $0x68] sm:$0xff] %vm8921_vm14, %v8920_v50  ;;  %8937 = vst.msk [vmem:[%s17130_s13 + $0x78] sm:$0xff] %vm8921_vm14, %v8920_v50  ;;  %v9079_v37 = vpop.permute.xlu0 %9078  ;;  %v9075_v16 = vpop.permute.xlu1 %9074 }
 0x6ae   : > { %8922 = vst.msk [vmem:[%s17130_s13] sm:$0xff] %vm8921_vm14, %v8916_v27  ;;  %8924 = vst.msk [vmem:[%s17130_s13 + $0x10] sm:$0xff] %vm8921_vm14, %v8916_v27 }
 0x6af   : > { %8926 = vst.msk [vmem:[%s17130_s13 + $0x20] sm:$0xff] %vm8921_vm14, %v8916_v27  ;;  %8928 = vst.msk [vmem:[%s17130_s13 + $0x30] sm:$0xff] %vm8921_vm14, %v8916_v27 }
 0x6b0   : > { %8930 = vst.msk [vmem:[%s17130_s13 + $0x40] sm:$0xff] %vm8921_vm14, %v8916_v27  ;;  %8932 = vst.msk [vmem:[%s17130_s13 + $0x50] sm:$0xff] %vm8921_vm14, %v8916_v27 }
 0x6b1   : > { %8934 = vst.msk [vmem:[%s17130_s13 + $0x60] sm:$0xff] %vm8921_vm14, %v8916_v27  ;;  %8936 = vst.msk [vmem:[%s17130_s13 + $0x70] sm:$0xff] %vm8921_vm14, %v8916_v27  ;;  %v9104_v3 = vpop.permute.xlu0 %9103  ;;  %vm9498_vm14 = vcmask 261368  }
 0x6b2   : > { %8948 = vst.msk [vmem:[%s17130_s13 + $0x8] sm:$0xff] %vm8946_vm15, %v8945_v41  ;;  %8950 = vst.msk [vmem:[%s17130_s13 + $0x18] sm:$0xff] %vm8946_vm15, %v8945_v41 }
 0x6b3   : > { %8952 = vst.msk [vmem:[%s17130_s13 + $0x28] sm:$0xff] %vm8946_vm15, %v8945_v41  ;;  %8954 = vst.msk [vmem:[%s17130_s13 + $0x38] sm:$0xff] %vm8946_vm15, %v8945_v41 }
 0x6b4   : > { %8956 = vst.msk [vmem:[%s17130_s13 + $0x48] sm:$0xff] %vm8946_vm15, %v8945_v41  ;;  %8958 = vst.msk [vmem:[%s17130_s13 + $0x58] sm:$0xff] %vm8946_vm15, %v8945_v41 }
 0x6b5   : > { %8960 = vst.msk [vmem:[%s17130_s13 + $0x68] sm:$0xff] %vm8946_vm15, %v8945_v41  ;;  %8962 = vst.msk [vmem:[%s17130_s13 + $0x78] sm:$0xff] %vm8946_vm15, %v8945_v41 }
 0x6b6   : > { %8947 = vst.msk [vmem:[%s17130_s13] sm:$0xff] %vm8946_vm15, %v8941_v55  ;;  %8949 = vst.msk [vmem:[%s17130_s13 + $0x10] sm:$0xff] %vm8946_vm15, %v8941_v55 }
 0x6b7   : > { %8951 = vst.msk [vmem:[%s17130_s13 + $0x20] sm:$0xff] %vm8946_vm15, %v8941_v55  ;;  %8953 = vst.msk [vmem:[%s17130_s13 + $0x30] sm:$0xff] %vm8946_vm15, %v8941_v55 }
 0x6b8   : > { %8955 = vst.msk [vmem:[%s17130_s13 + $0x40] sm:$0xff] %vm8946_vm15, %v8941_v55  ;;  %8957 = vst.msk [vmem:[%s17130_s13 + $0x50] sm:$0xff] %vm8946_vm15, %v8941_v55 }
 0x6b9   : > { %8959 = vst.msk [vmem:[%s17130_s13 + $0x60] sm:$0xff] %vm8946_vm15, %v8941_v55  ;;  %8961 = vst.msk [vmem:[%s17130_s13 + $0x70] sm:$0xff] %vm8946_vm15, %v8941_v55 }
 0x6ba   : > { %9029 = vst.msk [vmem:[%s17130_s13 + $0x8] sm:$0xff] %vm9027_vm0, %v17250_v6  ;;  %9031 = vst.msk [vmem:[%s17130_s13 + $0x18] sm:$0xff] %vm9027_vm0, %v17254_v22  ;;  %v9100_v6 = vpop.permute.xlu1 %9099 }
 0x6bb   : > { %9033 = vst.msk [vmem:[%s17130_s13 + $0x28] sm:$0xff] %vm9027_vm0, %v17259_v40  ;;  %9035 = vst.msk [vmem:[%s17130_s13 + $0x38] sm:$0xff] %vm9027_vm0, %v17263_v8 }
 0x6bc   : > { %9037 = vst.msk [vmem:[%s17130_s13 + $0x48] sm:$0xff] %vm9027_vm0, %v17267_v21  ;;  %9039 = vst.msk [vmem:[%s17130_s13 + $0x58] sm:$0xff] %vm9027_vm0, %v17272_v39 }
 0x6bd   : > { %9041 = vst.msk [vmem:[%s17130_s13 + $0x68] sm:$0xff] %vm9027_vm0, %v17276_v51  ;;  %9043 = vst.msk [vmem:[%s17130_s13 + $0x78] sm:$0xff] %vm9027_vm0, %v17281_v34 }
 0x6be   : > { %9028 = vst.msk [vmem:[%s17130_s13] sm:$0xff] %vm9027_vm0, %v17252_v18  ;;  %9030 = vst.msk [vmem:[%s17130_s13 + $0x10] sm:$0xff] %vm9027_vm0, %v17256_v11  ;;  %v9129_v18 = vpop.permute.xlu0 %9128  ;;  %v9125_v22 = vpop.permute.xlu1 %9124 }
 0x6bf   : > { %9032 = vst.msk [vmem:[%s17130_s13 + $0x20] sm:$0xff] %vm9027_vm0, %v17261_v0  ;;  %9034 = vst.msk [vmem:[%s17130_s13 + $0x30] sm:$0xff] %vm9027_vm0, %v17265_v61 }
 0x6c0   : > { %9036 = vst.msk [vmem:[%s17130_s13 + $0x40] sm:$0xff] %vm9027_vm0, %v17269_v30  ;;  %9038 = vst.msk [vmem:[%s17130_s13 + $0x50] sm:$0xff] %vm9027_vm0, %v17274_v62 }
 0x6c1   : > { %9040 = vst.msk [vmem:[%s17130_s13 + $0x60] sm:$0xff] %vm9027_vm0, %v17278_v33  ;;  %9042 = vst.msk [vmem:[%s17130_s13 + $0x70] sm:$0xff] %vm9027_vm0, %v17283_v58 }
 0x6c2   : > { %9057 = vst.msk [vmem:[%s17130_s13 + $0x8] sm:$0xff] %vm9055_vm1, %v9054_v44  ;;  %9059 = vst.msk [vmem:[%s17130_s13 + $0x18] sm:$0xff] %vm9055_vm1, %v9054_v44  ;;  %v9238_v11 = vpop.permute.xlu0 %9237  ;;  %v9234_v57 = vpop.permute.xlu1 %9233 }
 0x6c3   : > { %9061 = vst.msk [vmem:[%s17130_s13 + $0x28] sm:$0xff] %vm9055_vm1, %v9054_v44  ;;  %9063 = vst.msk [vmem:[%s17130_s13 + $0x38] sm:$0xff] %vm9055_vm1, %v9054_v44 }
 0x6c4   : > { %9065 = vst.msk [vmem:[%s17130_s13 + $0x48] sm:$0xff] %vm9055_vm1, %v9054_v44  ;;  %9067 = vst.msk [vmem:[%s17130_s13 + $0x58] sm:$0xff] %vm9055_vm1, %v9054_v44 }
 0x6c5   : > { %9069 = vst.msk [vmem:[%s17130_s13 + $0x68] sm:$0xff] %vm9055_vm1, %v9054_v44  ;;  %9071 = vst.msk [vmem:[%s17130_s13 + $0x78] sm:$0xff] %vm9055_vm1, %v9054_v44 }
 0x6c6   : > { %9056 = vst.msk [vmem:[%s17130_s13] sm:$0xff] %vm9055_vm1, %v9050_v52  ;;  %9058 = vst.msk [vmem:[%s17130_s13 + $0x10] sm:$0xff] %vm9055_vm1, %v9050_v52  ;;  %v9263_v40 = vpop.permute.xlu0 %9262  ;;  %v9259_v0 = vpop.permute.xlu1 %9258 }
 0x6c7   : > { %9060 = vst.msk [vmem:[%s17130_s13 + $0x20] sm:$0xff] %vm9055_vm1, %v9050_v52  ;;  %9062 = vst.msk [vmem:[%s17130_s13 + $0x30] sm:$0xff] %vm9055_vm1, %v9050_v52 }
 0x6c8   : > { %9064 = vst.msk [vmem:[%s17130_s13 + $0x40] sm:$0xff] %vm9055_vm1, %v9050_v52  ;;  %9066 = vst.msk [vmem:[%s17130_s13 + $0x50] sm:$0xff] %vm9055_vm1, %v9050_v52 }
 0x6c9   : > { %9068 = vst.msk [vmem:[%s17130_s13 + $0x60] sm:$0xff] %vm9055_vm1, %v9050_v52  ;;  %9070 = vst.msk [vmem:[%s17130_s13 + $0x70] sm:$0xff] %vm9055_vm1, %v9050_v52 }
 0x6ca   : > { %9082 = vst.msk [vmem:[%s17130_s13 + $0x8] sm:$0xff] %vm9080_vm2, %v9079_v37  ;;  %9084 = vst.msk [vmem:[%s17130_s13 + $0x18] sm:$0xff] %vm9080_vm2, %v9079_v37  ;;  %v9288_v8 = vpop.permute.xlu0 %9287  ;;  %v9284_v61 = vpop.permute.xlu1 %9283 }
 0x6cb   : > { %9086 = vst.msk [vmem:[%s17130_s13 + $0x28] sm:$0xff] %vm9080_vm2, %v9079_v37  ;;  %9088 = vst.msk [vmem:[%s17130_s13 + $0x38] sm:$0xff] %vm9080_vm2, %v9079_v37 }
 0x6cc   : > { %9090 = vst.msk [vmem:[%s17130_s13 + $0x48] sm:$0xff] %vm9080_vm2, %v9079_v37  ;;  %9092 = vst.msk [vmem:[%s17130_s13 + $0x58] sm:$0xff] %vm9080_vm2, %v9079_v37 }
 0x6cd   : > { %9094 = vst.msk [vmem:[%s17130_s13 + $0x68] sm:$0xff] %vm9080_vm2, %v9079_v37  ;;  %9096 = vst.msk [vmem:[%s17130_s13 + $0x78] sm:$0xff] %vm9080_vm2, %v9079_v37 }
 0x6ce   : > { %9081 = vst.msk [vmem:[%s17130_s13] sm:$0xff] %vm9080_vm2, %v9075_v16  ;;  %9083 = vst.msk [vmem:[%s17130_s13 + $0x10] sm:$0xff] %vm9080_vm2, %v9075_v16  ;;  %v9313_v21 = vpop.permute.xlu0 %9312  ;;  %v9309_v30 = vpop.permute.xlu1 %9308 }
 0x6cf   : > { %9085 = vst.msk [vmem:[%s17130_s13 + $0x20] sm:$0xff] %vm9080_vm2, %v9075_v16  ;;  %9087 = vst.msk [vmem:[%s17130_s13 + $0x30] sm:$0xff] %vm9080_vm2, %v9075_v16 }
 0x6d0   : > { %9089 = vst.msk [vmem:[%s17130_s13 + $0x40] sm:$0xff] %vm9080_vm2, %v9075_v16  ;;  %9091 = vst.msk [vmem:[%s17130_s13 + $0x50] sm:$0xff] %vm9080_vm2, %v9075_v16 }
 0x6d1   : > { %9093 = vst.msk [vmem:[%s17130_s13 + $0x60] sm:$0xff] %vm9080_vm2, %v9075_v16  ;;  %9095 = vst.msk [vmem:[%s17130_s13 + $0x70] sm:$0xff] %vm9080_vm2, %v9075_v16 }
 0x6d2   : > { %9107 = vst.msk [vmem:[%s17130_s13 + $0x8] sm:$0xff] %vm9105_vm3, %v9104_v3  ;;  %9109 = vst.msk [vmem:[%s17130_s13 + $0x18] sm:$0xff] %vm9105_vm3, %v9104_v3  ;;  %v9422_v7 = vpop.permute.xlu0 %9421  ;;  %v9418_v39 = vpop.permute.xlu1 %9417 }
 0x6d3   : > { %9111 = vst.msk [vmem:[%s17130_s13 + $0x28] sm:$0xff] %vm9105_vm3, %v9104_v3  ;;  %9113 = vst.msk [vmem:[%s17130_s13 + $0x38] sm:$0xff] %vm9105_vm3, %v9104_v3 }
 0x6d4   : > { %9115 = vst.msk [vmem:[%s17130_s13 + $0x48] sm:$0xff] %vm9105_vm3, %v9104_v3  ;;  %9117 = vst.msk [vmem:[%s17130_s13 + $0x58] sm:$0xff] %vm9105_vm3, %v9104_v3 }
 0x6d5   : > { %9119 = vst.msk [vmem:[%s17130_s13 + $0x68] sm:$0xff] %vm9105_vm3, %v9104_v3  ;;  %9121 = vst.msk [vmem:[%s17130_s13 + $0x78] sm:$0xff] %vm9105_vm3, %v9104_v3 }
 0x6d6   : > { %9106 = vst.msk [vmem:[%s17130_s13] sm:$0xff] %vm9105_vm3, %v9100_v6  ;;  %9108 = vst.msk [vmem:[%s17130_s13 + $0x10] sm:$0xff] %vm9105_vm3, %v9100_v6  ;;  %v9447_v62 = vpop.permute.xlu0 %9446  ;;  %v9443_v51 = vpop.permute.xlu1 %9442 }
 0x6d7   : > { %9110 = vst.msk [vmem:[%s17130_s13 + $0x20] sm:$0xff] %vm9105_vm3, %v9100_v6  ;;  %9112 = vst.msk [vmem:[%s17130_s13 + $0x30] sm:$0xff] %vm9105_vm3, %v9100_v6 }
 0x6d8   : > { %9114 = vst.msk [vmem:[%s17130_s13 + $0x40] sm:$0xff] %vm9105_vm3, %v9100_v6  ;;  %9116 = vst.msk [vmem:[%s17130_s13 + $0x50] sm:$0xff] %vm9105_vm3, %v9100_v6 }
 0x6d9   : > { %9118 = vst.msk [vmem:[%s17130_s13 + $0x60] sm:$0xff] %vm9105_vm3, %v9100_v6  ;;  %9120 = vst.msk [vmem:[%s17130_s13 + $0x70] sm:$0xff] %vm9105_vm3, %v9100_v6 }
 0x6da   : > { %9132 = vst.msk [vmem:[%s17130_s13 + $0x8] sm:$0xff] %vm9130_vm4, %v9129_v18  ;;  %9134 = vst.msk [vmem:[%s17130_s13 + $0x18] sm:$0xff] %vm9130_vm4, %v9129_v18  ;;  %v9472_v33 = vpop.permute.xlu0 %9471  ;;  %v9468_v28 = vpop.permute.xlu1 %9467 }
 0x6db   : > { %9136 = vst.msk [vmem:[%s17130_s13 + $0x28] sm:$0xff] %vm9130_vm4, %v9129_v18  ;;  %9138 = vst.msk [vmem:[%s17130_s13 + $0x38] sm:$0xff] %vm9130_vm4, %v9129_v18 }
 0x6dc   : > { %9140 = vst.msk [vmem:[%s17130_s13 + $0x48] sm:$0xff] %vm9130_vm4, %v9129_v18  ;;  %9142 = vst.msk [vmem:[%s17130_s13 + $0x58] sm:$0xff] %vm9130_vm4, %v9129_v18 }
 0x6dd   : > { %9144 = vst.msk [vmem:[%s17130_s13 + $0x68] sm:$0xff] %vm9130_vm4, %v9129_v18  ;;  %9146 = vst.msk [vmem:[%s17130_s13 + $0x78] sm:$0xff] %vm9130_vm4, %v9129_v18 }
 0x6de   : > { %9131 = vst.msk [vmem:[%s17130_s13] sm:$0xff] %vm9130_vm4, %v9125_v22  ;;  %9133 = vst.msk [vmem:[%s17130_s13 + $0x10] sm:$0xff] %vm9130_vm4, %v9125_v22  ;;  %v9497_v34 = vpop.permute.xlu0 %9496  ;;  %v9493_v58 = vpop.permute.xlu1 %9492 }
 0x6df   : > { %9135 = vst.msk [vmem:[%s17130_s13 + $0x20] sm:$0xff] %vm9130_vm4, %v9125_v22  ;;  %9137 = vst.msk [vmem:[%s17130_s13 + $0x30] sm:$0xff] %vm9130_vm4, %v9125_v22 }
 0x6e0   : > { %9139 = vst.msk [vmem:[%s17130_s13 + $0x40] sm:$0xff] %vm9130_vm4, %v9125_v22  ;;  %9141 = vst.msk [vmem:[%s17130_s13 + $0x50] sm:$0xff] %vm9130_vm4, %v9125_v22 }
 0x6e1   : > { %9143 = vst.msk [vmem:[%s17130_s13 + $0x60] sm:$0xff] %vm9130_vm4, %v9125_v22  ;;  %9145 = vst.msk [vmem:[%s17130_s13 + $0x70] sm:$0xff] %vm9130_vm4, %v9125_v22 }
 0x6e2   : > { %9213 = vst.msk [vmem:[%s17130_s13 + $0x8] sm:$0xff] %vm9211_vm5, %v17317_v43  ;;  %9215 = vst.msk [vmem:[%s17130_s13 + $0x18] sm:$0xff] %vm9211_vm5, %v17321_v12 }
 0x6e3   : > { %9217 = vst.msk [vmem:[%s17130_s13 + $0x28] sm:$0xff] %vm9211_vm5, %v17325_v46  ;;  %9219 = vst.msk [vmem:[%s17130_s13 + $0x38] sm:$0xff] %vm9211_vm5, %v17329_v9 }
 0x6e4   : > { %9221 = vst.msk [vmem:[%s17130_s13 + $0x48] sm:$0xff] %vm9211_vm5, %v17333_v47  ;;  %9223 = vst.msk [vmem:[%s17130_s13 + $0x58] sm:$0xff] %vm9211_vm5, %v17337_v4 }
 0x6e5   : > { %9225 = vst.msk [vmem:[%s17130_s13 + $0x68] sm:$0xff] %vm9211_vm5, %v17341_v38  ;;  %9227 = vst.msk [vmem:[%s17130_s13 + $0x78] sm:$0xff] %vm9211_vm5, %v17345_v54 }
 0x6e6   : > { %9212 = vst.msk [vmem:[%s17130_s13] sm:$0xff] %vm9211_vm5, %v17319_v24  ;;  %9214 = vst.msk [vmem:[%s17130_s13 + $0x10] sm:$0xff] %vm9211_vm5, %v17323_v14 }
 0x6e7   : > { %9216 = vst.msk [vmem:[%s17130_s13 + $0x20] sm:$0xff] %vm9211_vm5, %v17327_v32  ;;  %9218 = vst.msk [vmem:[%s17130_s13 + $0x30] sm:$0xff] %vm9211_vm5, %v17331_v53 }
 0x6e8   : > { %9220 = vst.msk [vmem:[%s17130_s13 + $0x40] sm:$0xff] %vm9211_vm5, %v17335_v1  ;;  %9222 = vst.msk [vmem:[%s17130_s13 + $0x50] sm:$0xff] %vm9211_vm5, %v17339_v26 }
 0x6e9   : > { %9224 = vst.msk [vmem:[%s17130_s13 + $0x60] sm:$0xff] %vm9211_vm5, %v17343_v25  ;;  %9226 = vst.msk [vmem:[%s17130_s13 + $0x70] sm:$0xff] %vm9211_vm5, %v17347_v48 }
 0x6ea   : > { %9241 = vst.msk [vmem:[%s17130_s13 + $0x8] sm:$0xff] %vm9239_vm6, %v9238_v11  ;;  %9243 = vst.msk [vmem:[%s17130_s13 + $0x18] sm:$0xff] %vm9239_vm6, %v9238_v11 }
 0x6eb   : > { %9245 = vst.msk [vmem:[%s17130_s13 + $0x28] sm:$0xff] %vm9239_vm6, %v9238_v11  ;;  %9247 = vst.msk [vmem:[%s17130_s13 + $0x38] sm:$0xff] %vm9239_vm6, %v9238_v11 }
 0x6ec   : > { %9249 = vst.msk [vmem:[%s17130_s13 + $0x48] sm:$0xff] %vm9239_vm6, %v9238_v11  ;;  %9251 = vst.msk [vmem:[%s17130_s13 + $0x58] sm:$0xff] %vm9239_vm6, %v9238_v11 }
 0x6ed   : > { %9253 = vst.msk [vmem:[%s17130_s13 + $0x68] sm:$0xff] %vm9239_vm6, %v9238_v11  ;;  %9255 = vst.msk [vmem:[%s17130_s13 + $0x78] sm:$0xff] %vm9239_vm6, %v9238_v11 }
 0x6ee   : > { %9240 = vst.msk [vmem:[%s17130_s13] sm:$0xff] %vm9239_vm6, %v9234_v57  ;;  %9242 = vst.msk [vmem:[%s17130_s13 + $0x10] sm:$0xff] %vm9239_vm6, %v9234_v57 }
 0x6ef   : > { %9244 = vst.msk [vmem:[%s17130_s13 + $0x20] sm:$0xff] %vm9239_vm6, %v9234_v57  ;;  %9246 = vst.msk [vmem:[%s17130_s13 + $0x30] sm:$0xff] %vm9239_vm6, %v9234_v57 }
 0x6f0   : > { %9248 = vst.msk [vmem:[%s17130_s13 + $0x40] sm:$0xff] %vm9239_vm6, %v9234_v57  ;;  %9250 = vst.msk [vmem:[%s17130_s13 + $0x50] sm:$0xff] %vm9239_vm6, %v9234_v57 }
 0x6f1   : > { %9252 = vst.msk [vmem:[%s17130_s13 + $0x60] sm:$0xff] %vm9239_vm6, %v9234_v57  ;;  %9254 = vst.msk [vmem:[%s17130_s13 + $0x70] sm:$0xff] %vm9239_vm6, %v9234_v57 }
 0x6f2   : > { %9266 = vst.msk [vmem:[%s17130_s13 + $0x8] sm:$0xff] %vm9264_vm7, %v9263_v40  ;;  %9268 = vst.msk [vmem:[%s17130_s13 + $0x18] sm:$0xff] %vm9264_vm7, %v9263_v40 }
 0x6f3   : > { %9270 = vst.msk [vmem:[%s17130_s13 + $0x28] sm:$0xff] %vm9264_vm7, %v9263_v40  ;;  %9272 = vst.msk [vmem:[%s17130_s13 + $0x38] sm:$0xff] %vm9264_vm7, %v9263_v40 }
 0x6f4   : > { %9274 = vst.msk [vmem:[%s17130_s13 + $0x48] sm:$0xff] %vm9264_vm7, %v9263_v40  ;;  %9276 = vst.msk [vmem:[%s17130_s13 + $0x58] sm:$0xff] %vm9264_vm7, %v9263_v40 }
 0x6f5   : > { %9278 = vst.msk [vmem:[%s17130_s13 + $0x68] sm:$0xff] %vm9264_vm7, %v9263_v40  ;;  %9280 = vst.msk [vmem:[%s17130_s13 + $0x78] sm:$0xff] %vm9264_vm7, %v9263_v40 }
 0x6f6   : > { %9265 = vst.msk [vmem:[%s17130_s13] sm:$0xff] %vm9264_vm7, %v9259_v0  ;;  %9267 = vst.msk [vmem:[%s17130_s13 + $0x10] sm:$0xff] %vm9264_vm7, %v9259_v0 }
 0x6f7   : > { %9269 = vst.msk [vmem:[%s17130_s13 + $0x20] sm:$0xff] %vm9264_vm7, %v9259_v0  ;;  %9271 = vst.msk [vmem:[%s17130_s13 + $0x30] sm:$0xff] %vm9264_vm7, %v9259_v0 }
 0x6f8   : > { %9273 = vst.msk [vmem:[%s17130_s13 + $0x40] sm:$0xff] %vm9264_vm7, %v9259_v0  ;;  %9275 = vst.msk [vmem:[%s17130_s13 + $0x50] sm:$0xff] %vm9264_vm7, %v9259_v0 }
 0x6f9   : > { %9277 = vst.msk [vmem:[%s17130_s13 + $0x60] sm:$0xff] %vm9264_vm7, %v9259_v0  ;;  %9279 = vst.msk [vmem:[%s17130_s13 + $0x70] sm:$0xff] %vm9264_vm7, %v9259_v0 }
 0x6fa   : > { %9291 = vst.msk [vmem:[%s17130_s13 + $0x8] sm:$0xff] %vm9289_vm8, %v9288_v8  ;;  %9293 = vst.msk [vmem:[%s17130_s13 + $0x18] sm:$0xff] %vm9289_vm8, %v9288_v8 }
 0x6fb   : > { %9295 = vst.msk [vmem:[%s17130_s13 + $0x28] sm:$0xff] %vm9289_vm8, %v9288_v8  ;;  %9297 = vst.msk [vmem:[%s17130_s13 + $0x38] sm:$0xff] %vm9289_vm8, %v9288_v8 }
 0x6fc   : > { %9299 = vst.msk [vmem:[%s17130_s13 + $0x48] sm:$0xff] %vm9289_vm8, %v9288_v8  ;;  %9301 = vst.msk [vmem:[%s17130_s13 + $0x58] sm:$0xff] %vm9289_vm8, %v9288_v8 }
 0x6fd   : > { %9303 = vst.msk [vmem:[%s17130_s13 + $0x68] sm:$0xff] %vm9289_vm8, %v9288_v8  ;;  %9305 = vst.msk [vmem:[%s17130_s13 + $0x78] sm:$0xff] %vm9289_vm8, %v9288_v8 }
 0x6fe   : > { %9290 = vst.msk [vmem:[%s17130_s13] sm:$0xff] %vm9289_vm8, %v9284_v61  ;;  %9292 = vst.msk [vmem:[%s17130_s13 + $0x10] sm:$0xff] %vm9289_vm8, %v9284_v61 }
 0x6ff   : > { %9294 = vst.msk [vmem:[%s17130_s13 + $0x20] sm:$0xff] %vm9289_vm8, %v9284_v61  ;;  %9296 = vst.msk [vmem:[%s17130_s13 + $0x30] sm:$0xff] %vm9289_vm8, %v9284_v61 }
 0x700   : > { %9298 = vst.msk [vmem:[%s17130_s13 + $0x40] sm:$0xff] %vm9289_vm8, %v9284_v61  ;;  %9300 = vst.msk [vmem:[%s17130_s13 + $0x50] sm:$0xff] %vm9289_vm8, %v9284_v61 }
 0x701   : > { %9302 = vst.msk [vmem:[%s17130_s13 + $0x60] sm:$0xff] %vm9289_vm8, %v9284_v61  ;;  %9304 = vst.msk [vmem:[%s17130_s13 + $0x70] sm:$0xff] %vm9289_vm8, %v9284_v61 }
 0x702   : > { %9316 = vst.msk [vmem:[%s17130_s13 + $0x8] sm:$0xff] %vm9314_vm9, %v9313_v21  ;;  %9318 = vst.msk [vmem:[%s17130_s13 + $0x18] sm:$0xff] %vm9314_vm9, %v9313_v21 }
 0x703   : > { %9320 = vst.msk [vmem:[%s17130_s13 + $0x28] sm:$0xff] %vm9314_vm9, %v9313_v21  ;;  %9322 = vst.msk [vmem:[%s17130_s13 + $0x38] sm:$0xff] %vm9314_vm9, %v9313_v21 }
 0x704   : > { %9324 = vst.msk [vmem:[%s17130_s13 + $0x48] sm:$0xff] %vm9314_vm9, %v9313_v21  ;;  %9326 = vst.msk [vmem:[%s17130_s13 + $0x58] sm:$0xff] %vm9314_vm9, %v9313_v21 }
 0x705   : > { %9328 = vst.msk [vmem:[%s17130_s13 + $0x68] sm:$0xff] %vm9314_vm9, %v9313_v21  ;;  %9330 = vst.msk [vmem:[%s17130_s13 + $0x78] sm:$0xff] %vm9314_vm9, %v9313_v21 }
 0x706   : > { %9315 = vst.msk [vmem:[%s17130_s13] sm:$0xff] %vm9314_vm9, %v9309_v30  ;;  %9317 = vst.msk [vmem:[%s17130_s13 + $0x10] sm:$0xff] %vm9314_vm9, %v9309_v30 }
 0x707   : > { %9319 = vst.msk [vmem:[%s17130_s13 + $0x20] sm:$0xff] %vm9314_vm9, %v9309_v30  ;;  %9321 = vst.msk [vmem:[%s17130_s13 + $0x30] sm:$0xff] %vm9314_vm9, %v9309_v30 }
 0x708   : > { %9323 = vst.msk [vmem:[%s17130_s13 + $0x40] sm:$0xff] %vm9314_vm9, %v9309_v30  ;;  %9325 = vst.msk [vmem:[%s17130_s13 + $0x50] sm:$0xff] %vm9314_vm9, %v9309_v30 }
 0x709   : > { %9327 = vst.msk [vmem:[%s17130_s13 + $0x60] sm:$0xff] %vm9314_vm9, %v9309_v30  ;;  %9329 = vst.msk [vmem:[%s17130_s13 + $0x70] sm:$0xff] %vm9314_vm9, %v9309_v30 }
 0x70a   : > { %9397 = vst.msk [vmem:[%s17130_s13 + $0x8] sm:$0xff] %vm9395_vm10, %v17285_v15  ;;  %9399 = vst.msk [vmem:[%s17130_s13 + $0x18] sm:$0xff] %vm9395_vm10, %v17289_v5 }
 0x70b   : > { %9401 = vst.msk [vmem:[%s17130_s13 + $0x28] sm:$0xff] %vm9395_vm10, %v17293_v35  ;;  %9403 = vst.msk [vmem:[%s17130_s13 + $0x38] sm:$0xff] %vm9395_vm10, %v17297_v20 }
 0x70c   : > { %9405 = vst.msk [vmem:[%s17130_s13 + $0x48] sm:$0xff] %vm9395_vm10, %v17301_v10  ;;  %9407 = vst.msk [vmem:[%s17130_s13 + $0x58] sm:$0xff] %vm9395_vm10, %v17305_v59 }
 0x70d   : > { %9409 = vst.msk [vmem:[%s17130_s13 + $0x68] sm:$0xff] %vm9395_vm10, %v17309_v56  ;;  %9411 = vst.msk [vmem:[%s17130_s13 + $0x78] sm:$0xff] %vm9395_vm10, %v17313_v45 }
 0x70e   : > { %9396 = vst.msk [vmem:[%s17130_s13] sm:$0xff] %vm9395_vm10, %v17287_v63  ;;  %9398 = vst.msk [vmem:[%s17130_s13 + $0x10] sm:$0xff] %vm9395_vm10, %v17291_v17 }
 0x70f   : > { %9400 = vst.msk [vmem:[%s17130_s13 + $0x20] sm:$0xff] %vm9395_vm10, %v17295_v2  ;;  %9402 = vst.msk [vmem:[%s17130_s13 + $0x30] sm:$0xff] %vm9395_vm10, %v17299_v49 }
 0x710   : > { %9404 = vst.msk [vmem:[%s17130_s13 + $0x40] sm:$0xff] %vm9395_vm10, %v17303_v60  ;;  %9406 = vst.msk [vmem:[%s17130_s13 + $0x50] sm:$0xff] %vm9395_vm10, %v17307_v31 }
 0x711   : > { %9408 = vst.msk [vmem:[%s17130_s13 + $0x60] sm:$0xff] %vm9395_vm10, %v17311_v42  ;;  %9410 = vst.msk [vmem:[%s17130_s13 + $0x70] sm:$0xff] %vm9395_vm10, %v17315_v36 }
 0x712   : > { %9425 = vst.msk [vmem:[%s17130_s13 + $0x8] sm:$0xff] %vm9423_vm11, %v9422_v7  ;;  %9427 = vst.msk [vmem:[%s17130_s13 + $0x18] sm:$0xff] %vm9423_vm11, %v9422_v7 }
 0x713   : > { %9429 = vst.msk [vmem:[%s17130_s13 + $0x28] sm:$0xff] %vm9423_vm11, %v9422_v7  ;;  %9431 = vst.msk [vmem:[%s17130_s13 + $0x38] sm:$0xff] %vm9423_vm11, %v9422_v7 }
 0x714   : > { %9433 = vst.msk [vmem:[%s17130_s13 + $0x48] sm:$0xff] %vm9423_vm11, %v9422_v7  ;;  %9435 = vst.msk [vmem:[%s17130_s13 + $0x58] sm:$0xff] %vm9423_vm11, %v9422_v7 }
 0x715   : > { %9437 = vst.msk [vmem:[%s17130_s13 + $0x68] sm:$0xff] %vm9423_vm11, %v9422_v7  ;;  %9439 = vst.msk [vmem:[%s17130_s13 + $0x78] sm:$0xff] %vm9423_vm11, %v9422_v7 }
 0x716   : > { %9424 = vst.msk [vmem:[%s17130_s13] sm:$0xff] %vm9423_vm11, %v9418_v39  ;;  %9426 = vst.msk [vmem:[%s17130_s13 + $0x10] sm:$0xff] %vm9423_vm11, %v9418_v39 }
 0x717   : > { %9428 = vst.msk [vmem:[%s17130_s13 + $0x20] sm:$0xff] %vm9423_vm11, %v9418_v39  ;;  %9430 = vst.msk [vmem:[%s17130_s13 + $0x30] sm:$0xff] %vm9423_vm11, %v9418_v39 }
 0x718   : > { %9432 = vst.msk [vmem:[%s17130_s13 + $0x40] sm:$0xff] %vm9423_vm11, %v9418_v39  ;;  %9434 = vst.msk [vmem:[%s17130_s13 + $0x50] sm:$0xff] %vm9423_vm11, %v9418_v39 }
 0x719   : > { %9436 = vst.msk [vmem:[%s17130_s13 + $0x60] sm:$0xff] %vm9423_vm11, %v9418_v39  ;;  %9438 = vst.msk [vmem:[%s17130_s13 + $0x70] sm:$0xff] %vm9423_vm11, %v9418_v39 }
 0x71a   : > { %9450 = vst.msk [vmem:[%s17130_s13 + $0x8] sm:$0xff] %vm9448_vm12, %v9447_v62  ;;  %9452 = vst.msk [vmem:[%s17130_s13 + $0x18] sm:$0xff] %vm9448_vm12, %v9447_v62 }
 0x71b   : > { %9454 = vst.msk [vmem:[%s17130_s13 + $0x28] sm:$0xff] %vm9448_vm12, %v9447_v62  ;;  %9456 = vst.msk [vmem:[%s17130_s13 + $0x38] sm:$0xff] %vm9448_vm12, %v9447_v62 }
 0x71c   : > { %9458 = vst.msk [vmem:[%s17130_s13 + $0x48] sm:$0xff] %vm9448_vm12, %v9447_v62  ;;  %9460 = vst.msk [vmem:[%s17130_s13 + $0x58] sm:$0xff] %vm9448_vm12, %v9447_v62 }
 0x71d   : > { %9462 = vst.msk [vmem:[%s17130_s13 + $0x68] sm:$0xff] %vm9448_vm12, %v9447_v62  ;;  %9464 = vst.msk [vmem:[%s17130_s13 + $0x78] sm:$0xff] %vm9448_vm12, %v9447_v62 }
 0x71e   : > { %9449 = vst.msk [vmem:[%s17130_s13] sm:$0xff] %vm9448_vm12, %v9443_v51  ;;  %9451 = vst.msk [vmem:[%s17130_s13 + $0x10] sm:$0xff] %vm9448_vm12, %v9443_v51 }
 0x71f   : > { %9453 = vst.msk [vmem:[%s17130_s13 + $0x20] sm:$0xff] %vm9448_vm12, %v9443_v51  ;;  %9455 = vst.msk [vmem:[%s17130_s13 + $0x30] sm:$0xff] %vm9448_vm12, %v9443_v51 }
 0x720   : > { %9457 = vst.msk [vmem:[%s17130_s13 + $0x40] sm:$0xff] %vm9448_vm12, %v9443_v51  ;;  %9459 = vst.msk [vmem:[%s17130_s13 + $0x50] sm:$0xff] %vm9448_vm12, %v9443_v51 }
 0x721   : > { %9461 = vst.msk [vmem:[%s17130_s13 + $0x60] sm:$0xff] %vm9448_vm12, %v9443_v51  ;;  %9463 = vst.msk [vmem:[%s17130_s13 + $0x70] sm:$0xff] %vm9448_vm12, %v9443_v51 }
 0x722   : > { %9475 = vst.msk [vmem:[%s17130_s13 + $0x8] sm:$0xff] %vm9473_vm13, %v9472_v33  ;;  %9477 = vst.msk [vmem:[%s17130_s13 + $0x18] sm:$0xff] %vm9473_vm13, %v9472_v33 }
 0x723   : > { %9479 = vst.msk [vmem:[%s17130_s13 + $0x28] sm:$0xff] %vm9473_vm13, %v9472_v33  ;;  %9481 = vst.msk [vmem:[%s17130_s13 + $0x38] sm:$0xff] %vm9473_vm13, %v9472_v33 }
 0x724   : > { %9483 = vst.msk [vmem:[%s17130_s13 + $0x48] sm:$0xff] %vm9473_vm13, %v9472_v33  ;;  %9485 = vst.msk [vmem:[%s17130_s13 + $0x58] sm:$0xff] %vm9473_vm13, %v9472_v33 }
 0x725   : > { %9487 = vst.msk [vmem:[%s17130_s13 + $0x68] sm:$0xff] %vm9473_vm13, %v9472_v33  ;;  %9489 = vst.msk [vmem:[%s17130_s13 + $0x78] sm:$0xff] %vm9473_vm13, %v9472_v33 }
 0x726   : > { %9474 = vst.msk [vmem:[%s17130_s13] sm:$0xff] %vm9473_vm13, %v9468_v28  ;;  %9476 = vst.msk [vmem:[%s17130_s13 + $0x10] sm:$0xff] %vm9473_vm13, %v9468_v28 }
 0x727   : > { %9478 = vst.msk [vmem:[%s17130_s13 + $0x20] sm:$0xff] %vm9473_vm13, %v9468_v28  ;;  %9480 = vst.msk [vmem:[%s17130_s13 + $0x30] sm:$0xff] %vm9473_vm13, %v9468_v28 }
 0x728   : > { %9482 = vst.msk [vmem:[%s17130_s13 + $0x40] sm:$0xff] %vm9473_vm13, %v9468_v28  ;;  %9484 = vst.msk [vmem:[%s17130_s13 + $0x50] sm:$0xff] %vm9473_vm13, %v9468_v28 }
 0x729   : > { %9486 = vst.msk [vmem:[%s17130_s13 + $0x60] sm:$0xff] %vm9473_vm13, %v9468_v28  ;;  %9488 = vst.msk [vmem:[%s17130_s13 + $0x70] sm:$0xff] %vm9473_vm13, %v9468_v28 }
 0x72a   : > { %9500 = vst.msk [vmem:[%s17130_s13 + $0x8] sm:$0xff] %vm9498_vm14, %v9497_v34  ;;  %9502 = vst.msk [vmem:[%s17130_s13 + $0x18] sm:$0xff] %vm9498_vm14, %v9497_v34 }
 0x72b   : > { %9504 = vst.msk [vmem:[%s17130_s13 + $0x28] sm:$0xff] %vm9498_vm14, %v9497_v34  ;;  %9506 = vst.msk [vmem:[%s17130_s13 + $0x38] sm:$0xff] %vm9498_vm14, %v9497_v34 }
 0x72c   : > { %9508 = vst.msk [vmem:[%s17130_s13 + $0x48] sm:$0xff] %vm9498_vm14, %v9497_v34  ;;  %9510 = vst.msk [vmem:[%s17130_s13 + $0x58] sm:$0xff] %vm9498_vm14, %v9497_v34 }
 0x72d   : > { %9512 = vst.msk [vmem:[%s17130_s13 + $0x68] sm:$0xff] %vm9498_vm14, %v9497_v34  ;;  %9514 = vst.msk [vmem:[%s17130_s13 + $0x78] sm:$0xff] %vm9498_vm14, %v9497_v34 }
 0x72e   : > { %9499 = vst.msk [vmem:[%s17130_s13] sm:$0xff] %vm9498_vm14, %v9493_v58  ;;  %9501 = vst.msk [vmem:[%s17130_s13 + $0x10] sm:$0xff] %vm9498_vm14, %v9493_v58 }
 0x72f   : > { %9503 = vst.msk [vmem:[%s17130_s13 + $0x20] sm:$0xff] %vm9498_vm14, %v9493_v58  ;;  %9505 = vst.msk [vmem:[%s17130_s13 + $0x30] sm:$0xff] %vm9498_vm14, %v9493_v58 }
 0x730   : > { %9507 = vst.msk [vmem:[%s17130_s13 + $0x40] sm:$0xff] %vm9498_vm14, %v9493_v58  ;;  %9509 = vst.msk [vmem:[%s17130_s13 + $0x50] sm:$0xff] %vm9498_vm14, %v9493_v58 }
 0x731   : > { %9511 = vst.msk [vmem:[%s17130_s13 + $0x60] sm:$0xff] %vm9498_vm14, %v9493_v58  ;;  %9513 = vst.msk [vmem:[%s17130_s13 + $0x70] sm:$0xff] %vm9498_vm14, %v9493_v58 }
 0x732   : > { %13074 = shalt.err (!%p13071_p3)
}
 0x733   : > { %s13075_s23 = scalar_lea.hbm %s17978_s24, 2048  ;;  %s13079_s18 = scalar_lea.hbm %s18066_s8, 4096 }
 0x734   : > { %p13076_p4 = scmp.ne.s32.totalorder %s17978_s24, %s13075_s23  ;;  %p13080_p9 = scmp.lt.u32.totalorder %s17978_s24, %s18066_s8 }
 0x735   : > { %p13081_p10 = scmp.lt.u32.totalorder %s13079_s18, %s13075_s23  ;;  %p13083_p12 = scmp.lt.u32.totalorder %s13075_s23, %s17978_s24 }
 0x736   : > { %p13077_p7 = pnand %p13076_p4, %p13221_p5 }
 0x737   : > { %p13082_p11 = por %p13081_p10, %p13080_p9 }
 0x738   : > { %p13078_p8 = pneg %p13077_p7 }
 0x739   : > { %p13084_p13 = por %p13083_p12, %p13082_p11 }
 0x73b   : > { %p13085_p0 = pnand %p13084_p13, %p13078_p8 }
 0x73d   : > { %13088 = shalt.err (!%p13085_p0)
}
 0x73e   : > { %s13137_s25 = smov 128  }
 0x73f   : > { %12845 = dma.vmem_to_hbm [thread:$0]  (%p13221_p5), %s17980_s19, 2048, %s17978_s24, %s18016_s20, %s13137_s25, %s13137_s25, %s13133_s22  }
 0x740 PF: > { %p12851_p1 = scmp.ge.s32.totalorder %s13123_s30, 2  ;;  %s9544_s17 = sand.u32 1, %s13111_s27  }
 0x741   : > { %s9545_s12 = scalar_lea.sflag [#allocation3], %s9544_s17 }
 0x742   : > { %p12848_p2 = pnand %p12851_p1, %p13225_p6 }
 0x744   : > { %13106 = dma.done.wait (!%p12848_p2), %s9545_s12, 2048  }
 0x745   : > { %13108 = vsyncadd (!%p12848_p2), %s9545_s12, 4294965248  ;;  %p18_p3 = scmp.ge.s32.totalorder %s13208_s11, 4   ;;  %s18942_s27 = smov %s13115_s28 }
 0x746   : > { %s18943_s28 = smov %s13119_s29  ;;  %s18944_s29 = smov %s13219_s14 }
 0x747   : > { %s18945_s30 = smov %s13208_s11  ;;  %20 = sbr.rel (!%p18_p3) target bundleno = 3 (0x3), region = 93 }
 0x74e   :  { %9550 = vsyncpa [#allocation3], 1 }
 0x74f   :  { %9552 = vsyncpa [#allocation3 + $0x1], 1 }

</bundles_post_ra>
